<compile_context>
chip_gen: v7x
topology: tpu7x:2x2x1
jax: 0.10.0
libtpu: 0.0.40
codegen_flags: <defaults>
</compile_context>

<pallas_src>
import functools
import numpy as np
import jax
import jax.numpy as jnp
from jax.experimental import pallas as pl
from jax.experimental.pallas import tpu as pltpu

# ----------------------------- config ---------------------------------------
B, S, H, F, V, L = 2, 16, 32, 64, 64, 2      # batch, seq, hidden, ffn, vocab, layers
BS = B * S                                   # fused token slab rows
VPAD = 128                                   # lane-dense padded vocab (logits slab)
LATENT_ID, START_ID, END_ID, EOS_ID = 60, 61, 62, 63
IGNORE_INDEX = -100
NEG = -1e9

assert S & (S - 1) == 0, "in-kernel bias uses shift/and; use // and % for non-pow2 S"
_SBITS = S.bit_length() - 1

# rows per layer in the packed f32 vector slab:
#   ln1g ln1b bq bk bv bo ln2g ln2b b2   (all H-wide)
_VROWS_PER_LAYER = 9
_VROWS = _VROWS_PER_LAYER * L + 2            # + lnfg, lnfb


# ----------------------------- fused Pallas kernel ---------------------------
def _make_kernel(n_latent, n_cols):
    """Fused Coconut forward: (n_latent + 1) transformer passes, in-kernel
    latent fills, LM head and masked mean cross-entropy. Single grid step."""

    def kernel(lat_ref,                                     # SMEM (B*n_cols,) i32 scalar prefetch
               ep_ref, mask_ref, labels_ref,                # VMEM activations / metadata
               vecs_ref, b1_ref, wmats_ref, wffn_ref, wlm_ref,   # packed weight slabs
               loss_ref, emb_out_ref, logits_ref):          # VMEM outputs
        pos = ep_ref[1]                                     # (BS, H) f32 position embeds

        # ---- block-diagonal causal + padding bias, built in-kernel (no DMA) ----
        r = jax.lax.broadcasted_iota(jnp.int32, (BS, BS), 0)
        c = jax.lax.broadcasted_iota(jnp.int32, (BS, BS), 1)
        same_b = jnp.right_shift(r, _SBITS) == jnp.right_shift(c, _SBITS)
        causal = jnp.bitwise_and(c, S - 1) <= jnp.bitwise_and(r, S - 1)
        attend = mask_ref[...] > 0.0                        # (1, BS) broadcast over rows
        bias = jnp.where(same_b & causal & attend, 0.0, NEG)  # (BS, BS) f32

        def vrow(i):                                        # (1, H) f32 packed vector row
            return vecs_ref[pl.ds(i, 1), :]

        def layer_norm(h, g, b):
            # var = E[x^2] - mu^2: the two row reductions are independent.
            mu = jnp.mean(h, axis=-1, keepdims=True)
            ex2 = jnp.mean(h * h, axis=-1, keepdims=True)
            var = ex2 - mu * mu
            return (h - mu) * jax.lax.rsqrt(var + 1e-5) * g + b

        def forward(emb):
            """Full-sequence causal forward; returns post-ln_f hidden (BS, H) f32."""
            x = emb + pos
            for l in range(L):                              # static unroll (L = 2)
                base = _VROWS_PER_LAYER * l
                h = layer_norm(x, vrow(base + 0), vrow(base + 1)).astype(jnp.bfloat16)
                # TODO(synk): optional QKV fusion into one (H,128) bf16 matmul per
                # layer (3 MXU pushes -> 1) -- keep only if measured positive.
                q = jnp.dot(h, wmats_ref[0 * L + l],
                            preferred_element_type=jnp.float32) + vrow(base + 2)
                k = jnp.dot(h, wmats_ref[1 * L + l],
                            preferred_element_type=jnp.float32) + vrow(base + 3)
                v = jnp.dot(h, wmats_ref[2 * L + l],
                            preferred_element_type=jnp.float32) + vrow(base + 4)
                # q @ k^T without transpose (contract last axes); 1/sqrt(H) is
                # already folded into wq/bq on the host.
                s = jax.lax.dot_general(
                    q.astype(jnp.bfloat16), k.astype(jnp.bfloat16),
                    (((1,), (1,)), ((), ())),
                    preferred_element_type=jnp.float32) + bias
                s = s - jnp.max(s, axis=-1, keepdims=True)
                p = jnp.exp(s)
                p = p * pl.reciprocal(jnp.sum(p, axis=-1, keepdims=True), approx=True)
                a = jnp.dot(p.astype(jnp.bfloat16), v.astype(jnp.bfloat16),
                            preferred_element_type=jnp.float32)
                x = x + jnp.dot(a.astype(jnp.bfloat16), wmats_ref[3 * L + l],
                                preferred_element_type=jnp.float32) + vrow(base + 5)
                h2 = layer_norm(x, vrow(base + 6), vrow(base + 7)).astype(jnp.bfloat16)
                mid = jax.nn.gelu(
                    jnp.dot(h2, wffn_ref[l], preferred_element_type=jnp.float32)
                    + b1_ref[pl.ds(l, 1), :])
                # w2 is stored transposed as (H, F): contract last axes again.
                x = x + jax.lax.dot_general(
                    mid.astype(jnp.bfloat16), wffn_ref[L + l],
                    (((1,), (1,)), ((), ())),
                    preferred_element_type=jnp.float32) + vrow(base + 8)
            return layer_norm(x, vrow(_VROWS_PER_LAYER * L),
                              vrow(_VROWS_PER_LAYER * L + 1))   # post-ln_f (HF GPT-2)

        rows_col = jax.lax.broadcasted_iota(jnp.int32, (BS, 1), 0)

        # TODO(synk): at large S, restrict each non-final pass to the prefix rows
        # it needs (rows <= current latent position); full recompute is fine at S=16.
        cur = ep_ref[0]                                     # working embeds (BS, H) f32
        for p_idx in range(n_latent):                       # static unroll over passes
            hid = forward(cur)
            # hid_prev[i] = hid[i-1] via a single XLU sublane roll (exact, cheap).
            hid_prev = pltpu.roll(hid, shift=1, axis=0)
            fill = None
            for b in range(B):
                tok = lat_ref[b * n_cols + p_idx]           # -1 => no latent this pass
                # tok >= 1 guard: avoid the wrap-around row (a latent at sequence
                # position 0 is ill-defined in the reference as well).
                hit = jnp.logical_and(rows_col == b * S + tok, tok >= 1)
                fill = hit if fill is None else jnp.logical_or(fill, hit)
            cur = jnp.where(fill, hid_prev, cur)

        # Single 4 KiB store; kept at H=32 lanes (lane-padding it would need an
        # in-kernel concat for a negligible win).
        emb_out_ref[...] = cur                              # fully-filled inputs_embeds

        # Final pass: lane-dense (BS, 128) logits slab (wlm is zero-padded to 128).
        hid = forward(cur)
        logits_pad = jnp.dot(hid.astype(jnp.bfloat16), wlm_ref[...],
                             preferred_element_type=jnp.float32)
        logits_ref[...] = logits_pad

        # Fused cross-entropy over all 128 lanes: pad columns are biased to -1e9
        # so full-width max / lse / one-hot reductions are unmasked and exact.
        lane = jax.lax.broadcasted_iota(jnp.int32, (BS, VPAD), 1)
        logits_m = logits_pad + jnp.where(lane < V, 0.0, NEG)
        labels = labels_ref[...]                            # (BS, 1) i32, already shifted
        m = jnp.max(logits_m, axis=-1, keepdims=True)
        lse = m + jnp.log(jnp.sum(jnp.exp(logits_m - m), axis=-1, keepdims=True))
        onehot = (lane == labels).astype(jnp.float32)       # never hits pad lanes
        true_logit = jnp.sum(logits_m * onehot, axis=-1, keepdims=True)
        valid = (labels != IGNORE_INDEX).astype(jnp.float32)
        total = jnp.sum((lse - true_logit) * valid, axis=0, keepdims=True)   # (1, 1)
        denom = jnp.maximum(jnp.sum(valid, axis=0, keepdims=True), 1.0)      # (1, 1)
        loss_ref[...] = total / denom

    return kernel


# ----------------------------- jitted wrapper --------------------------------
@functools.partial(jax.jit, static_argnames=("n_latent", "n_cols"))
def coconut_fused(packed, input_ids, attention_mask, labels, position_ids,
                  latent_pos_flat, *, n_latent, n_cols):
    # Embedding / position gathers are tiny XLA preprocessing; everything heavy
    # (all passes, fills, LM head, loss) happens inside the single pallas_call.
    emb = packed["wte"][input_ids].reshape(BS, H)
    pos = packed["wpe"][position_ids].reshape(BS, H)
    ep = jnp.stack([emb, pos], axis=0)                      # (2, BS, H) -- one DMA
    mask_row = attention_mask.reshape(1, BS).astype(jnp.float32)

    lab_shift = jnp.concatenate(
        [labels.astype(jnp.int32)[:, 1:],
         jnp.full((B, 1), IGNORE_INDEX, jnp.int32)], axis=1).reshape(BS, 1)

    ins = [ep, mask_row, lab_shift,
           packed["vecs"], packed["b1"], packed["wmats"], packed["wffn"],
           packed["wlm"]]

    def _vspec(shape):
        nd = len(shape)
        def imap(i, lat):                                   # scalar-prefetch ref is positional
            return (0,) * nd
        # TODO(synk): pipeline_mode=pl.Buffered(1) would halve input VMEM with
        # grid=(1,); left at default double-buffering (footprint is < 0.5 MiB here).
        return pl.BlockSpec(shape, imap)

    in_specs = [_vspec(tuple(x.shape)) for x in ins]
    out_specs = [_vspec((1, 1)), _vspec((BS, H)), _vspec((BS, VPAD))]
    out_shape = (jax.ShapeDtypeStruct((1, 1), jnp.float32),
                 jax.ShapeDtypeStruct((BS, H), jnp.float32),
                 jax.ShapeDtypeStruct((BS, VPAD), jnp.float32))

    # Single TensorCore on purpose: at this size the kernel is latency-bound and
    # a megacore split would only duplicate weight DMAs + add barrier overhead.
    loss, emb_out, logits_pad = pl.pallas_call(
        _make_kernel(n_latent, n_cols),
        out_shape=out_shape,
        grid_spec=pltpu.PrefetchScalarGridSpec(
            num_scalar_prefetch=1, grid=(1,),
            in_specs=in_specs, out_specs=out_specs),
        compiler_params=pltpu.CompilerParams(
            dimension_semantics=("arbitrary",)),
    )(latent_pos_flat, *ins)

    inputs_embeds = emb_out.reshape(B, S, H)
    logits = logits_pad[:, :V].reshape(B, S, V)
    return loss[0, 0], inputs_embeds, logits


# ----------------------------- params ----------------------------------------
def init_params(key):
    ks = jax.random.split(key, 10)
    sd = 0.02

    def nrm(k, shape):
        return jax.random.normal(k, shape, jnp.float32) * sd

    wlm_f32 = jnp.zeros((H, VPAD), jnp.float32).at[:, :V].set(nrm(ks[7], (H, V)))
    return {
        "wte": nrm(ks[0], (V, H)),
        "wpe": nrm(ks[1], (S, H)),
        "ln1g": jnp.ones((L, 1, H), jnp.float32),
        "ln1b": jnp.zeros((L, 1, H), jnp.float32),
        "wq": nrm(ks[2], (L, H, H)).astype(jnp.bfloat16),
        "bq": jnp.zeros((L, 1, H), jnp.float32),
        "wk": nrm(ks[3], (L, H, H)).astype(jnp.bfloat16),
        "bk": jnp.zeros((L, 1, H), jnp.float32),
        "wv": nrm(ks[4], (L, H, H)).astype(jnp.bfloat16),
        "bv": jnp.zeros((L, 1, H), jnp.float32),
        "wo": nrm(ks[5], (L, H, H)).astype(jnp.bfloat16),
        "bo": jnp.zeros((L, 1, H), jnp.float32),
        "ln2g": jnp.ones((L, 1, H), jnp.float32),
        "ln2b": jnp.zeros((L, 1, H), jnp.float32),
        "w1": nrm(ks[6], (L, H, F)).astype(jnp.bfloat16),
        "b1": jnp.zeros((L, 1, F), jnp.float32),
        "w2": nrm(ks[8], (L, F, H)).astype(jnp.bfloat16),
        "b2": jnp.zeros((L, 1, H), jnp.float32),
        "lnfg": jnp.ones((1, H), jnp.float32),
        "lnfb": jnp.zeros((1, H), jnp.float32),
        "wlm": wlm_f32.astype(jnp.bfloat16),                 # padded to 128 lanes
    }


def pack_params(params):
    """One-time host-side packing: merge the 19 small weight arrays into a few
    lane/sublane-dense slabs and fold the 1/sqrt(H) attention scale into wq/bq."""
    scale = float(1.0 / np.sqrt(H))
    wq_s = (params["wq"].astype(jnp.float32) * scale).astype(jnp.bfloat16)
    bq_s = params["bq"] * scale

    rows = []
    for l in range(L):
        rows += [params["ln1g"][l, 0], params["ln1b"][l, 0],
                 bq_s[l, 0], params["bk"][l, 0], params["bv"][l, 0], params["bo"][l, 0],
                 params["ln2g"][l, 0], params["ln2b"][l, 0], params["b2"][l, 0]]
    rows += [params["lnfg"][0], params["lnfb"][0]]
    vecs = jnp.stack(rows, axis=0).astype(jnp.float32)       # (9L+2, H) f32

    wmats = jnp.concatenate(
        [wq_s, params["wk"], params["wv"], params["wo"]], axis=0)        # (4L, H, H) bf16
    w2t = jnp.transpose(params["w2"], (0, 2, 1))                         # (L, H, F)
    wffn = jnp.concatenate([params["w1"], w2t], axis=0)                  # (2L, H, F) bf16

    return {
        "wte": params["wte"], "wpe": params["wpe"],
        "vecs": vecs,
        "b1": params["b1"].reshape(L, F).astype(jnp.float32),
        "wmats": wmats, "wffn": wffn,
        "wlm": params["wlm"],
    }


# ----------------------------- Coconut forward (host glue) -------------------
def coconut_forward(packed, input_ids, attention_mask, labels, position_ids):
    """Mirrors Coconut.forward (store_latent=False, insert_latent=None)."""
    # TODO(synk): store_latent / insert_latent intervention paths and the
    # generate()/batch_generate() decoding loops are not implemented.
    ids_np = np.asarray(input_ids)
    bsz, _ = ids_np.shape
    latent_lists = [np.where(ids_np[b] == LATENT_ID)[0] for b in range(bsz)]
    max_n_latents = int(max(len(l) for l in latent_lists))
    n_cols = max(max_n_latents, 1)
    lat = np.full((bsz, n_cols), -1, dtype=np.int32)
    for b, lst in enumerate(latent_lists):
        lat[b, : len(lst)] = lst

    loss, inputs_embeds, logits = coconut_fused(
        packed,
        jnp.asarray(input_ids, jnp.int32),
        jnp.asarray(attention_mask, jnp.int32),
        jnp.asarray(labels, jnp.int32),
        jnp.asarray(position_ids, jnp.int32),
        jnp.asarray(lat.reshape(-1)),
        n_latent=max_n_latents, n_cols=n_cols)
    return loss, inputs_embeds, logits


# ----------------------------- main ------------------------------------------
if __name__ == "__main__":
    key = jax.random.PRNGKey(0)
    kp, kt = jax.random.split(key)
    params = init_params(kp)
    packed = pack_params(params)                            # one-time host-side packing

    # deterministic example inputs (Coconut-style sequence with 2 latent tokens)
    ids = np.array(jax.random.randint(kt, (B, S), 0, 60), dtype=np.int32)  # writable copy
    ids[:, 4] = START_ID
    ids[:, 5] = LATENT_ID
    ids[:, 6] = LATENT_ID
    ids[:, 7] = END_ID
    ids[:, S - 1] = EOS_ID
    input_ids = jnp.asarray(ids)

    attention_mask = jnp.ones((B, S), jnp.int32)
    labels_np = ids.copy()
    labels_np[:, :8] = IGNORE_INDEX                        # mask question + latent region
    labels = jnp.asarray(labels_np)
    position_ids = jnp.broadcast_to(jnp.arange(S, dtype=jnp.int32), (B, S))

    loss, final_embeds, logits = coconut_forward(
        packed, input_ids, attention_mask, labels, position_ids)

    jax.block_until_ready((loss, final_embeds, logits))
    assert logits.shape == (B, S, V)
    assert final_embeds.shape == (B, S, H)
    assert bool(jnp.isfinite(loss))
    print("KERNEL_OK")
</pallas_src>

<mosaic_0001>
module attributes {stable_mosaic.version = 11 : i64} {
  func.func @kernel(%arg0: i32, %arg1: memref<4xi32, #tpu.memory_space<smem>>, %arg2: memref<2x32x32xf32, #tpu.memory_space<vmem>>, %arg3: memref<1x32xf32, #tpu.memory_space<vmem>>, %arg4: memref<32x1xi32, #tpu.memory_space<vmem>>, %arg5: memref<20x32xf32, #tpu.memory_space<vmem>>, %arg6: memref<2x64xf32, #tpu.memory_space<vmem>>, %arg7: memref<8x32x32xbf16, #tpu.memory_space<vmem>>, %arg8: memref<4x32x64xbf16, #tpu.memory_space<vmem>>, %arg9: memref<32x128xbf16, #tpu.memory_space<vmem>>, %arg10: memref<1x1xf32, #tpu.memory_space<vmem>>, %arg11: memref<32x32xf32, #tpu.memory_space<vmem>>, %arg12: memref<32x128xf32, #tpu.memory_space<vmem>>) attributes {dimension_semantics = [#tpu.dimension_semantics<arbitrary>], iteration_bounds = array<i64: 1>, scalar_prefetch = 1 : i64, scratch_operands = 0 : i64, tpu.core_type = #tpu.core_type<tc>, window_params = [{pipeline_mode = #tpu.pipeline_mode<synchronous>, transform_indices = @transform_0, window_bounds = array<i64: 2, 32, 32>}, {pipeline_mode = #tpu.pipeline_mode<synchronous>, transform_indices = @transform_1, window_bounds = array<i64: 1, 32>}, {pipeline_mode = #tpu.pipeline_mode<synchronous>, transform_indices = @transform_2, window_bounds = array<i64: 32, 1>}, {pipeline_mode = #tpu.pipeline_mode<synchronous>, transform_indices = @transform_3, window_bounds = array<i64: 20, 32>}, {pipeline_mode = #tpu.pipeline_mode<synchronous>, transform_indices = @transform_4, window_bounds = array<i64: 2, 64>}, {pipeline_mode = #tpu.pipeline_mode<synchronous>, transform_indices = @transform_5, window_bounds = array<i64: 8, 32, 32>}, {pipeline_mode = #tpu.pipeline_mode<synchronous>, transform_indices = @transform_6, window_bounds = array<i64: 4, 32, 64>}, {pipeline_mode = #tpu.pipeline_mode<synchronous>, transform_indices = @transform_7, window_bounds = array<i64: 32, 128>}, {pipeline_mode = #tpu.pipeline_mode<synchronous>, transform_indices = @transform_8, window_bounds = array<i64: 1, 1>}, {pipeline_mode = #tpu.pipeline_mode<synchronous>, transform_indices = @transform_9, window_bounds = array<i64: 32, 32>}, {pipeline_mode = #tpu.pipeline_mode<synchronous>, transform_indices = @transform_10, window_bounds = array<i64: 32, 128>}]} {
    %c1 = arith.constant 1 : index
    %c0 = arith.constant 0 : index
    %c0_0 = arith.constant 0 : index
    %0 = vector.load %arg2[%c1, %c0, %c0_0] : memref<2x32x32xf32, #tpu.memory_space<vmem>>, vector<1x32x32xf32>
    %1 = vector.shape_cast %0 : vector<1x32x32xf32> to vector<32x32xf32>
    %2 = tpu.iota {dimensions = array<i32: 0>} : vector<32x32xi32>
    %3 = tpu.iota {dimensions = array<i32: 1>} : vector<32x32xi32>
    %c4_i32 = arith.constant 4 : i32
    %4 = vector.broadcast %c4_i32 : i32 to vector<32x32xi32>
    %5 = arith.shrsi %2, %4 : vector<32x32xi32>
    %c4_i32_1 = arith.constant 4 : i32
    %6 = vector.broadcast %c4_i32_1 : i32 to vector<32x32xi32>
    %7 = arith.shrsi %3, %6 : vector<32x32xi32>
    %8 = arith.cmpi eq, %5, %7 : vector<32x32xi32>
    %c15_i32 = arith.constant 15 : i32
    %9 = vector.broadcast %c15_i32 : i32 to vector<32x32xi32>
    %10 = arith.andi %3, %9 : vector<32x32xi32>
    %c15_i32_2 = arith.constant 15 : i32
    %11 = vector.broadcast %c15_i32_2 : i32 to vector<32x32xi32>
    %12 = arith.andi %2, %11 : vector<32x32xi32>
    %13 = arith.cmpi sle, %10, %12 : vector<32x32xi32>
    %c0_3 = arith.constant 0 : index
    %c0_4 = arith.constant 0 : index
    %14 = vector.load %arg3[%c0_3, %c0_4] : memref<1x32xf32, #tpu.memory_space<vmem>>, vector<1x32xf32>
    %cst = arith.constant 0.000000e+00 : f32
    %15 = vector.broadcast %cst : f32 to vector<1x32xf32>
    %16 = arith.cmpf ogt, %14, %15 : vector<1x32xf32>
    %17 = arith.andi %8, %13 : vector<32x32xi1>
    %18 = vector.broadcast %16 : vector<1x32xi1> to vector<32x32xi1>
    %19 = arith.andi %17, %18 : vector<32x32xi1>
    %cst_5 = arith.constant 0.000000e+00 : f32
    %cst_6 = arith.constant -1.000000e+09 : f32
    %20 = vector.broadcast %cst_5 : f32 to vector<32x32xf32>
    %21 = vector.broadcast %cst_6 : f32 to vector<32x32xf32>
    %22 = arith.select %19, %20, %21 : vector<32x32xi1>, vector<32x32xf32>
    %23 = tpu.iota {dimensions = array<i32: 0>} : vector<32x1xi32>
    %c0_7 = arith.constant 0 : index
    %c0_8 = arith.constant 0 : index
    %c0_9 = arith.constant 0 : index
    %24 = vector.load %arg2[%c0_7, %c0_8, %c0_9] : memref<2x32x32xf32, #tpu.memory_space<vmem>>, vector<1x32x32xf32>
    %25 = vector.shape_cast %24 : vector<1x32x32xf32> to vector<32x32xf32>
    %26 = arith.addf %25, %1 : vector<32x32xf32>
    %c0_10 = arith.constant 0 : index
    %c0_11 = arith.constant 0 : index
    %27 = vector.load %arg5[%c0_10, %c0_11] : memref<20x32xf32, #tpu.memory_space<vmem>>, vector<1x32xf32>
    %c1_12 = arith.constant 1 : index
    %c0_13 = arith.constant 0 : index
    %28 = vector.load %arg5[%c1_12, %c0_13] : memref<20x32xf32, #tpu.memory_space<vmem>>, vector<1x32xf32>
    %cst_14 = arith.constant dense<0.000000e+00> : vector<32xf32>
    %29 = vector.multi_reduction <add>, %26, %cst_14 [1] : vector<32x32xf32> to vector<32xf32>
    %30 = vector.shape_cast %29 : vector<32xf32> to vector<32x1xf32>
    %cst_15 = arith.constant 3.200000e+01 : f32
    %31 = vector.broadcast %cst_15 : f32 to vector<32x1xf32>
    %32 = arith.divf %30, %31 : vector<32x1xf32>
    %33 = arith.mulf %26, %26 : vector<32x32xf32>
    %cst_16 = arith.constant dense<0.000000e+00> : vector<32xf32>
    %34 = vector.multi_reduction <add>, %33, %cst_16 [1] : vector<32x32xf32> to vector<32xf32>
    %35 = vector.shape_cast %34 : vector<32xf32> to vector<32x1xf32>
    %cst_17 = arith.constant 3.200000e+01 : f32
    %36 = vector.broadcast %cst_17 : f32 to vector<32x1xf32>
    %37 = arith.divf %35, %36 : vector<32x1xf32>
    %38 = arith.mulf %32, %32 : vector<32x1xf32>
    %39 = arith.subf %37, %38 : vector<32x1xf32>
    %40 = vector.broadcast %32 : vector<32x1xf32> to vector<32x32xf32>
    %41 = arith.subf %26, %40 : vector<32x32xf32>
    %cst_18 = arith.constant 9.99999974E-6 : f32
    %42 = vector.broadcast %cst_18 : f32 to vector<32x1xf32>
    %43 = arith.addf %39, %42 : vector<32x1xf32>
    %44 = math.rsqrt %43 : vector<32x1xf32>
    %45 = vector.broadcast %44 : vector<32x1xf32> to vector<32x32xf32>
    %46 = arith.mulf %41, %45 : vector<32x32xf32>
    %47 = vector.broadcast %27 : vector<1x32xf32> to vector<32x32xf32>
    %48 = arith.mulf %46, %47 : vector<32x32xf32>
    %49 = vector.broadcast %28 : vector<1x32xf32> to vector<32x32xf32>
    %50 = arith.addf %48, %49 : vector<32x32xf32>
    %51 = arith.truncf %50 : vector<32x32xf32> to vector<32x32xbf16>
    %c0_19 = arith.constant 0 : index
    %c0_20 = arith.constant 0 : index
    %c0_21 = arith.constant 0 : index
    %52 = vector.load %arg7[%c0_19, %c0_20, %c0_21] : memref<8x32x32xbf16, #tpu.memory_space<vmem>>, vector<1x32x32xbf16>
    %53 = vector.shape_cast %52 : vector<1x32x32xbf16> to vector<32x32xbf16>
    %cst_22 = arith.constant dense<0.000000e+00> : vector<32x32xf32>
    %54 = tpu.matmul %51, %53, %cst_22 {dimension_numbers = #tpu.dot_dimension_numbers<[1], [0], [0], [1], [0, 0, 1, 1], [], []>} : vector<32x32xbf16>, vector<32x32xbf16>, vector<32x32xf32> -> vector<32x32xf32>
    %c2 = arith.constant 2 : index
    %c0_23 = arith.constant 0 : index
    %55 = vector.load %arg5[%c2, %c0_23] : memref<20x32xf32, #tpu.memory_space<vmem>>, vector<1x32xf32>
    %56 = vector.broadcast %55 : vector<1x32xf32> to vector<32x32xf32>
    %57 = arith.addf %54, %56 : vector<32x32xf32>
    %c2_24 = arith.constant 2 : index
    %c0_25 = arith.constant 0 : index
    %c0_26 = arith.constant 0 : index
    %58 = vector.load %arg7[%c2_24, %c0_25, %c0_26] : memref<8x32x32xbf16, #tpu.memory_space<vmem>>, vector<1x32x32xbf16>
    %59 = vector.shape_cast %58 : vector<1x32x32xbf16> to vector<32x32xbf16>
    %cst_27 = arith.constant dense<0.000000e+00> : vector<32x32xf32>
    %60 = tpu.matmul %51, %59, %cst_27 {dimension_numbers = #tpu.dot_dimension_numbers<[1], [0], [0], [1], [0, 0, 1, 1], [], []>} : vector<32x32xbf16>, vector<32x32xbf16>, vector<32x32xf32> -> vector<32x32xf32>
    %c3 = arith.constant 3 : index
    %c0_28 = arith.constant 0 : index
    %61 = vector.load %arg5[%c3, %c0_28] : memref<20x32xf32, #tpu.memory_space<vmem>>, vector<1x32xf32>
    %62 = vector.broadcast %61 : vector<1x32xf32> to vector<32x32xf32>
    %63 = arith.addf %60, %62 : vector<32x32xf32>
    %c4 = arith.constant 4 : index
    %c0_29 = arith.constant 0 : index
    %c0_30 = arith.constant 0 : index
    %64 = vector.load %arg7[%c4, %c0_29, %c0_30] : memref<8x32x32xbf16, #tpu.memory_space<vmem>>, vector<1x32x32xbf16>
    %65 = vector.shape_cast %64 : vector<1x32x32xbf16> to vector<32x32xbf16>
    %cst_31 = arith.constant dense<0.000000e+00> : vector<32x32xf32>
    %66 = tpu.matmul %51, %65, %cst_31 {dimension_numbers = #tpu.dot_dimension_numbers<[1], [0], [0], [1], [0, 0, 1, 1], [], []>} : vector<32x32xbf16>, vector<32x32xbf16>, vector<32x32xf32> -> vector<32x32xf32>
    %c4_32 = arith.constant 4 : index
    %c0_33 = arith.constant 0 : index
    %67 = vector.load %arg5[%c4_32, %c0_33] : memref<20x32xf32, #tpu.memory_space<vmem>>, vector<1x32xf32>
    %68 = vector.broadcast %67 : vector<1x32xf32> to vector<32x32xf32>
    %69 = arith.addf %66, %68 : vector<32x32xf32>
    %70 = arith.truncf %57 : vector<32x32xf32> to vector<32x32xbf16>
    %71 = arith.truncf %63 : vector<32x32xf32> to vector<32x32xbf16>
    %cst_34 = arith.constant dense<0.000000e+00> : vector<32x32xf32>
    %72 = tpu.matmul %70, %71, %cst_34 {dimension_numbers = #tpu.dot_dimension_numbers<[1], [1], [0], [0], [0, 0, 1, 0], [], []>} : vector<32x32xbf16>, vector<32x32xbf16>, vector<32x32xf32> -> vector<32x32xf32>
    %73 = arith.addf %72, %22 : vector<32x32xf32>
    %cst_35 = arith.constant dense<0xFF800000> : vector<32xf32>
    %74 = vector.multi_reduction <maximumf>, %73, %cst_35 [1] : vector<32x32xf32> to vector<32xf32>
    %75 = vector.shape_cast %74 : vector<32xf32> to vector<32x1xf32>
    %76 = vector.broadcast %75 : vector<32x1xf32> to vector<32x32xf32>
    %77 = arith.subf %73, %76 : vector<32x32xf32>
    %78 = math.exp %77 : vector<32x32xf32>
    %cst_36 = arith.constant dense<0.000000e+00> : vector<32xf32>
    %79 = vector.multi_reduction <add>, %78, %cst_36 [1] : vector<32x32xf32> to vector<32xf32>
    %80 = vector.shape_cast %79 : vector<32xf32> to vector<32x1xf32>
    %81 = tpu.reciprocal %80 {approx = true} : vector<32x1xf32> -> vector<32x1xf32>
    %82 = vector.broadcast %81 : vector<32x1xf32> to vector<32x32xf32>
    %83 = arith.mulf %78, %82 : vector<32x32xf32>
    %84 = arith.truncf %83 : vector<32x32xf32> to vector<32x32xbf16>
    %85 = arith.truncf %69 : vector<32x32xf32> to vector<32x32xbf16>
    %cst_37 = arith.constant dense<0.000000e+00> : vector<32x32xf32>
    %86 = tpu.matmul %84, %85, %cst_37 {dimension_numbers = #tpu.dot_dimension_numbers<[1], [0], [0], [1], [0, 0, 1, 1], [], []>} : vector<32x32xbf16>, vector<32x32xbf16>, vector<32x32xf32> -> vector<32x32xf32>
    %87 = arith.truncf %86 : vector<32x32xf32> to vector<32x32xbf16>
    %c6 = arith.constant 6 : index
    %c0_38 = arith.constant 0 : index
    %c0_39 = arith.constant 0 : index
    %88 = vector.load %arg7[%c6, %c0_38, %c0_39] : memref<8x32x32xbf16, #tpu.memory_space<vmem>>, vector<1x32x32xbf16>
    %89 = vector.shape_cast %88 : vector<1x32x32xbf16> to vector<32x32xbf16>
    %cst_40 = arith.constant dense<0.000000e+00> : vector<32x32xf32>
    %90 = tpu.matmul %87, %89, %cst_40 {dimension_numbers = #tpu.dot_dimension_numbers<[1], [0], [0], [1], [0, 0, 1, 1], [], []>} : vector<32x32xbf16>, vector<32x32xbf16>, vector<32x32xf32> -> vector<32x32xf32>
    %91 = arith.addf %26, %90 : vector<32x32xf32>
    %c5 = arith.constant 5 : index
    %c0_41 = arith.constant 0 : index
    %92 = vector.load %arg5[%c5, %c0_41] : memref<20x32xf32, #tpu.memory_space<vmem>>, vector<1x32xf32>
    %93 = vector.broadcast %92 : vector<1x32xf32> to vector<32x32xf32>
    %94 = arith.addf %91, %93 : vector<32x32xf32>
    %c6_42 = arith.constant 6 : index
    %c0_43 = arith.constant 0 : index
    %95 = vector.load %arg5[%c6_42, %c0_43] : memref<20x32xf32, #tpu.memory_space<vmem>>, vector<1x32xf32>
    %c7 = arith.constant 7 : index
    %c0_44 = arith.constant 0 : index
    %96 = vector.load %arg5[%c7, %c0_44] : memref<20x32xf32, #tpu.memory_space<vmem>>, vector<1x32xf32>
    %cst_45 = arith.constant dense<0.000000e+00> : vector<32xf32>
    %97 = vector.multi_reduction <add>, %94, %cst_45 [1] : vector<32x32xf32> to vector<32xf32>
    %98 = vector.shape_cast %97 : vector<32xf32> to vector<32x1xf32>
    %cst_46 = arith.constant 3.200000e+01 : f32
    %99 = vector.broadcast %cst_46 : f32 to vector<32x1xf32>
    %100 = arith.divf %98, %99 : vector<32x1xf32>
    %101 = arith.mulf %94, %94 : vector<32x32xf32>
    %cst_47 = arith.constant dense<0.000000e+00> : vector<32xf32>
    %102 = vector.multi_reduction <add>, %101, %cst_47 [1] : vector<32x32xf32> to vector<32xf32>
    %103 = vector.shape_cast %102 : vector<32xf32> to vector<32x1xf32>
    %cst_48 = arith.constant 3.200000e+01 : f32
    %104 = vector.broadcast %cst_48 : f32 to vector<32x1xf32>
    %105 = arith.divf %103, %104 : vector<32x1xf32>
    %106 = arith.mulf %100, %100 : vector<32x1xf32>
    %107 = arith.subf %105, %106 : vector<32x1xf32>
    %108 = vector.broadcast %100 : vector<32x1xf32> to vector<32x32xf32>
    %109 = arith.subf %94, %108 : vector<32x32xf32>
    %cst_49 = arith.constant 9.99999974E-6 : f32
    %110 = vector.broadcast %cst_49 : f32 to vector<32x1xf32>
    %111 = arith.addf %107, %110 : vector<32x1xf32>
    %112 = math.rsqrt %111 : vector<32x1xf32>
    %113 = vector.broadcast %112 : vector<32x1xf32> to vector<32x32xf32>
    %114 = arith.mulf %109, %113 : vector<32x32xf32>
    %115 = vector.broadcast %95 : vector<1x32xf32> to vector<32x32xf32>
    %116 = arith.mulf %114, %115 : vector<32x32xf32>
    %117 = vector.broadcast %96 : vector<1x32xf32> to vector<32x32xf32>
    %118 = arith.addf %116, %117 : vector<32x32xf32>
    %119 = arith.truncf %118 : vector<32x32xf32> to vector<32x32xbf16>
    %c0_50 = arith.constant 0 : index
    %c0_51 = arith.constant 0 : index
    %c0_52 = arith.constant 0 : index
    %120 = vector.load %arg8[%c0_50, %c0_51, %c0_52] : memref<4x32x64xbf16, #tpu.memory_space<vmem>>, vector<1x32x64xbf16>
    %121 = vector.shape_cast %120 : vector<1x32x64xbf16> to vector<32x64xbf16>
    %cst_53 = arith.constant dense<0.000000e+00> : vector<32x64xf32>
    %122 = tpu.matmul %119, %121, %cst_53 {dimension_numbers = #tpu.dot_dimension_numbers<[1], [0], [0], [1], [0, 0, 1, 1], [], []>} : vector<32x32xbf16>, vector<32x64xbf16>, vector<32x64xf32> -> vector<32x64xf32>
    %c0_54 = arith.constant 0 : index
    %c0_55 = arith.constant 0 : index
    %123 = vector.load %arg6[%c0_54, %c0_55] : memref<2x64xf32, #tpu.memory_space<vmem>>, vector<1x64xf32>
    %124 = vector.broadcast %123 : vector<1x64xf32> to vector<32x64xf32>
    %125 = arith.addf %122, %124 : vector<32x64xf32>
    %126 = arith.mulf %125, %125 : vector<32x64xf32>
    %127 = arith.mulf %125, %126 : vector<32x64xf32>
    %cst_56 = arith.constant 4.471500e-02 : f32
    %128 = vector.broadcast %cst_56 : f32 to vector<32x64xf32>
    %129 = arith.mulf %128, %127 : vector<32x64xf32>
    %130 = arith.addf %125, %129 : vector<32x64xf32>
    %cst_57 = arith.constant 0.797884583 : f32
    %131 = vector.broadcast %cst_57 : f32 to vector<32x64xf32>
    %132 = arith.mulf %131, %130 : vector<32x64xf32>
    %133 = math.tanh %132 : vector<32x64xf32>
    %cst_58 = arith.constant 1.000000e+00 : f32
    %134 = vector.broadcast %cst_58 : f32 to vector<32x64xf32>
    %135 = arith.addf %134, %133 : vector<32x64xf32>
    %cst_59 = arith.constant 5.000000e-01 : f32
    %136 = vector.broadcast %cst_59 : f32 to vector<32x64xf32>
    %137 = arith.mulf %136, %135 : vector<32x64xf32>
    %138 = arith.mulf %125, %137 : vector<32x64xf32>
    %139 = arith.truncf %138 : vector<32x64xf32> to vector<32x64xbf16>
    %c2_60 = arith.constant 2 : index
    %c0_61 = arith.constant 0 : index
    %c0_62 = arith.constant 0 : index
    %140 = vector.load %arg8[%c2_60, %c0_61, %c0_62] : memref<4x32x64xbf16, #tpu.memory_space<vmem>>, vector<1x32x64xbf16>
    %141 = vector.shape_cast %140 : vector<1x32x64xbf16> to vector<32x64xbf16>
    %cst_63 = arith.constant dense<0.000000e+00> : vector<32x32xf32>
    %142 = tpu.matmul %139, %141, %cst_63 {dimension_numbers = #tpu.dot_dimension_numbers<[1], [1], [0], [0], [0, 0, 1, 0], [], []>} : vector<32x64xbf16>, vector<32x64xbf16>, vector<32x32xf32> -> vector<32x32xf32>
    %143 = arith.addf %94, %142 : vector<32x32xf32>
    %c8 = arith.constant 8 : index
    %c0_64 = arith.constant 0 : index
    %144 = vector.load %arg5[%c8, %c0_64] : memref<20x32xf32, #tpu.memory_space<vmem>>, vector<1x32xf32>
    %145 = vector.broadcast %144 : vector<1x32xf32> to vector<32x32xf32>
    %146 = arith.addf %143, %145 : vector<32x32xf32>
    %c9 = arith.constant 9 : index
    %c0_65 = arith.constant 0 : index
    %147 = vector.load %arg5[%c9, %c0_65] : memref<20x32xf32, #tpu.memory_space<vmem>>, vector<1x32xf32>
    %c10 = arith.constant 10 : index
    %c0_66 = arith.constant 0 : index
    %148 = vector.load %arg5[%c10, %c0_66] : memref<20x32xf32, #tpu.memory_space<vmem>>, vector<1x32xf32>
    %cst_67 = arith.constant dense<0.000000e+00> : vector<32xf32>
    %149 = vector.multi_reduction <add>, %146, %cst_67 [1] : vector<32x32xf32> to vector<32xf32>
    %150 = vector.shape_cast %149 : vector<32xf32> to vector<32x1xf32>
    %cst_68 = arith.constant 3.200000e+01 : f32
    %151 = vector.broadcast %cst_68 : f32 to vector<32x1xf32>
    %152 = arith.divf %150, %151 : vector<32x1xf32>
    %153 = arith.mulf %146, %146 : vector<32x32xf32>
    %cst_69 = arith.constant dense<0.000000e+00> : vector<32xf32>
    %154 = vector.multi_reduction <add>, %153, %cst_69 [1] : vector<32x32xf32> to vector<32xf32>
    %155 = vector.shape_cast %154 : vector<32xf32> to vector<32x1xf32>
    %cst_70 = arith.constant 3.200000e+01 : f32
    %156 = vector.broadcast %cst_70 : f32 to vector<32x1xf32>
    %157 = arith.divf %155, %156 : vector<32x1xf32>
    %158 = arith.mulf %152, %152 : vector<32x1xf32>
    %159 = arith.subf %157, %158 : vector<32x1xf32>
    %160 = vector.broadcast %152 : vector<32x1xf32> to vector<32x32xf32>
    %161 = arith.subf %146, %160 : vector<32x32xf32>
    %cst_71 = arith.constant 9.99999974E-6 : f32
    %162 = vector.broadcast %cst_71 : f32 to vector<32x1xf32>
    %163 = arith.addf %159, %162 : vector<32x1xf32>
    %164 = math.rsqrt %163 : vector<32x1xf32>
    %165 = vector.broadcast %164 : vector<32x1xf32> to vector<32x32xf32>
    %166 = arith.mulf %161, %165 : vector<32x32xf32>
    %167 = vector.broadcast %147 : vector<1x32xf32> to vector<32x32xf32>
    %168 = arith.mulf %166, %167 : vector<32x32xf32>
    %169 = vector.broadcast %148 : vector<1x32xf32> to vector<32x32xf32>
    %170 = arith.addf %168, %169 : vector<32x32xf32>
    %171 = arith.truncf %170 : vector<32x32xf32> to vector<32x32xbf16>
    %c1_72 = arith.constant 1 : index
    %c0_73 = arith.constant 0 : index
    %c0_74 = arith.constant 0 : index
    %172 = vector.load %arg7[%c1_72, %c0_73, %c0_74] : memref<8x32x32xbf16, #tpu.memory_space<vmem>>, vector<1x32x32xbf16>
    %173 = vector.shape_cast %172 : vector<1x32x32xbf16> to vector<32x32xbf16>
    %cst_75 = arith.constant dense<0.000000e+00> : vector<32x32xf32>
    %174 = tpu.matmul %171, %173, %cst_75 {dimension_numbers = #tpu.dot_dimension_numbers<[1], [0], [0], [1], [0, 0, 1, 1], [], []>} : vector<32x32xbf16>, vector<32x32xbf16>, vector<32x32xf32> -> vector<32x32xf32>
    %c11 = arith.constant 11 : index
    %c0_76 = arith.constant 0 : index
    %175 = vector.load %arg5[%c11, %c0_76] : memref<20x32xf32, #tpu.memory_space<vmem>>, vector<1x32xf32>
    %176 = vector.broadcast %175 : vector<1x32xf32> to vector<32x32xf32>
    %177 = arith.addf %174, %176 : vector<32x32xf32>
    %c3_77 = arith.constant 3 : index
    %c0_78 = arith.constant 0 : index
    %c0_79 = arith.constant 0 : index
    %178 = vector.load %arg7[%c3_77, %c0_78, %c0_79] : memref<8x32x32xbf16, #tpu.memory_space<vmem>>, vector<1x32x32xbf16>
    %179 = vector.shape_cast %178 : vector<1x32x32xbf16> to vector<32x32xbf16>
    %cst_80 = arith.constant dense<0.000000e+00> : vector<32x32xf32>
    %180 = tpu.matmul %171, %179, %cst_80 {dimension_numbers = #tpu.dot_dimension_numbers<[1], [0], [0], [1], [0, 0, 1, 1], [], []>} : vector<32x32xbf16>, vector<32x32xbf16>, vector<32x32xf32> -> vector<32x32xf32>
    %c12 = arith.constant 12 : index
    %c0_81 = arith.constant 0 : index
    %181 = vector.load %arg5[%c12, %c0_81] : memref<20x32xf32, #tpu.memory_space<vmem>>, vector<1x32xf32>
    %182 = vector.broadcast %181 : vector<1x32xf32> to vector<32x32xf32>
    %183 = arith.addf %180, %182 : vector<32x32xf32>
    %c5_82 = arith.constant 5 : index
    %c0_83 = arith.constant 0 : index
    %c0_84 = arith.constant 0 : index
    %184 = vector.load %arg7[%c5_82, %c0_83, %c0_84] : memref<8x32x32xbf16, #tpu.memory_space<vmem>>, vector<1x32x32xbf16>
    %185 = vector.shape_cast %184 : vector<1x32x32xbf16> to vector<32x32xbf16>
    %cst_85 = arith.constant dense<0.000000e+00> : vector<32x32xf32>
    %186 = tpu.matmul %171, %185, %cst_85 {dimension_numbers = #tpu.dot_dimension_numbers<[1], [0], [0], [1], [0, 0, 1, 1], [], []>} : vector<32x32xbf16>, vector<32x32xbf16>, vector<32x32xf32> -> vector<32x32xf32>
    %c13 = arith.constant 13 : index
    %c0_86 = arith.constant 0 : index
    %187 = vector.load %arg5[%c13, %c0_86] : memref<20x32xf32, #tpu.memory_space<vmem>>, vector<1x32xf32>
    %188 = vector.broadcast %187 : vector<1x32xf32> to vector<32x32xf32>
    %189 = arith.addf %186, %188 : vector<32x32xf32>
    %190 = arith.truncf %177 : vector<32x32xf32> to vector<32x32xbf16>
    %191 = arith.truncf %183 : vector<32x32xf32> to vector<32x32xbf16>
    %cst_87 = arith.constant dense<0.000000e+00> : vector<32x32xf32>
    %192 = tpu.matmul %190, %191, %cst_87 {dimension_numbers = #tpu.dot_dimension_numbers<[1], [1], [0], [0], [0, 0, 1, 0], [], []>} : vector<32x32xbf16>, vector<32x32xbf16>, vector<32x32xf32> -> vector<32x32xf32>
    %193 = arith.addf %192, %22 : vector<32x32xf32>
    %cst_88 = arith.constant dense<0xFF800000> : vector<32xf32>
    %194 = vector.multi_reduction <maximumf>, %193, %cst_88 [1] : vector<32x32xf32> to vector<32xf32>
    %195 = vector.shape_cast %194 : vector<32xf32> to vector<32x1xf32>
    %196 = vector.broadcast %195 : vector<32x1xf32> to vector<32x32xf32>
    %197 = arith.subf %193, %196 : vector<32x32xf32>
    %198 = math.exp %197 : vector<32x32xf32>
    %cst_89 = arith.constant dense<0.000000e+00> : vector<32xf32>
    %199 = vector.multi_reduction <add>, %198, %cst_89 [1] : vector<32x32xf32> to vector<32xf32>
    %200 = vector.shape_cast %199 : vector<32xf32> to vector<32x1xf32>
    %201 = tpu.reciprocal %200 {approx = true} : vector<32x1xf32> -> vector<32x1xf32>
    %202 = vector.broadcast %201 : vector<32x1xf32> to vector<32x32xf32>
    %203 = arith.mulf %198, %202 : vector<32x32xf32>
    %204 = arith.truncf %203 : vector<32x32xf32> to vector<32x32xbf16>
    %205 = arith.truncf %189 : vector<32x32xf32> to vector<32x32xbf16>
    %cst_90 = arith.constant dense<0.000000e+00> : vector<32x32xf32>
    %206 = tpu.matmul %204, %205, %cst_90 {dimension_numbers = #tpu.dot_dimension_numbers<[1], [0], [0], [1], [0, 0, 1, 1], [], []>} : vector<32x32xbf16>, vector<32x32xbf16>, vector<32x32xf32> -> vector<32x32xf32>
    %207 = arith.truncf %206 : vector<32x32xf32> to vector<32x32xbf16>
    %c7_91 = arith.constant 7 : index
    %c0_92 = arith.constant 0 : index
    %c0_93 = arith.constant 0 : index
    %208 = vector.load %arg7[%c7_91, %c0_92, %c0_93] : memref<8x32x32xbf16, #tpu.memory_space<vmem>>, vector<1x32x32xbf16>
    %209 = vector.shape_cast %208 : vector<1x32x32xbf16> to vector<32x32xbf16>
    %cst_94 = arith.constant dense<0.000000e+00> : vector<32x32xf32>
    %210 = tpu.matmul %207, %209, %cst_94 {dimension_numbers = #tpu.dot_dimension_numbers<[1], [0], [0], [1], [0, 0, 1, 1], [], []>} : vector<32x32xbf16>, vector<32x32xbf16>, vector<32x32xf32> -> vector<32x32xf32>
    %211 = arith.addf %146, %210 : vector<32x32xf32>
    %c14 = arith.constant 14 : index
    %c0_95 = arith.constant 0 : index
    %212 = vector.load %arg5[%c14, %c0_95] : memref<20x32xf32, #tpu.memory_space<vmem>>, vector<1x32xf32>
    %213 = vector.broadcast %212 : vector<1x32xf32> to vector<32x32xf32>
    %214 = arith.addf %211, %213 : vector<32x32xf32>
    %c15 = arith.constant 15 : index
    %c0_96 = arith.constant 0 : index
    %215 = vector.load %arg5[%c15, %c0_96] : memref<20x32xf32, #tpu.memory_space<vmem>>, vector<1x32xf32>
    %c16 = arith.constant 16 : index
    %c0_97 = arith.constant 0 : index
    %216 = vector.load %arg5[%c16, %c0_97] : memref<20x32xf32, #tpu.memory_space<vmem>>, vector<1x32xf32>
    %cst_98 = arith.constant dense<0.000000e+00> : vector<32xf32>
    %217 = vector.multi_reduction <add>, %214, %cst_98 [1] : vector<32x32xf32> to vector<32xf32>
    %218 = vector.shape_cast %217 : vector<32xf32> to vector<32x1xf32>
    %cst_99 = arith.constant 3.200000e+01 : f32
    %219 = vector.broadcast %cst_99 : f32 to vector<32x1xf32>
    %220 = arith.divf %218, %219 : vector<32x1xf32>
    %221 = arith.mulf %214, %214 : vector<32x32xf32>
    %cst_100 = arith.constant dense<0.000000e+00> : vector<32xf32>
    %222 = vector.multi_reduction <add>, %221, %cst_100 [1] : vector<32x32xf32> to vector<32xf32>
    %223 = vector.shape_cast %222 : vector<32xf32> to vector<32x1xf32>
    %cst_101 = arith.constant 3.200000e+01 : f32
    %224 = vector.broadcast %cst_101 : f32 to vector<32x1xf32>
    %225 = arith.divf %223, %224 : vector<32x1xf32>
    %226 = arith.mulf %220, %220 : vector<32x1xf32>
    %227 = arith.subf %225, %226 : vector<32x1xf32>
    %228 = vector.broadcast %220 : vector<32x1xf32> to vector<32x32xf32>
    %229 = arith.subf %214, %228 : vector<32x32xf32>
    %cst_102 = arith.constant 9.99999974E-6 : f32
    %230 = vector.broadcast %cst_102 : f32 to vector<32x1xf32>
    %231 = arith.addf %227, %230 : vector<32x1xf32>
    %232 = math.rsqrt %231 : vector<32x1xf32>
    %233 = vector.broadcast %232 : vector<32x1xf32> to vector<32x32xf32>
    %234 = arith.mulf %229, %233 : vector<32x32xf32>
    %235 = vector.broadcast %215 : vector<1x32xf32> to vector<32x32xf32>
    %236 = arith.mulf %234, %235 : vector<32x32xf32>
    %237 = vector.broadcast %216 : vector<1x32xf32> to vector<32x32xf32>
    %238 = arith.addf %236, %237 : vector<32x32xf32>
    %239 = arith.truncf %238 : vector<32x32xf32> to vector<32x32xbf16>
    %c1_103 = arith.constant 1 : index
    %c0_104 = arith.constant 0 : index
    %c0_105 = arith.constant 0 : index
    %240 = vector.load %arg8[%c1_103, %c0_104, %c0_105] : memref<4x32x64xbf16, #tpu.memory_space<vmem>>, vector<1x32x64xbf16>
    %241 = vector.shape_cast %240 : vector<1x32x64xbf16> to vector<32x64xbf16>
    %cst_106 = arith.constant dense<0.000000e+00> : vector<32x64xf32>
    %242 = tpu.matmul %239, %241, %cst_106 {dimension_numbers = #tpu.dot_dimension_numbers<[1], [0], [0], [1], [0, 0, 1, 1], [], []>} : vector<32x32xbf16>, vector<32x64xbf16>, vector<32x64xf32> -> vector<32x64xf32>
    %c1_107 = arith.constant 1 : index
    %c0_108 = arith.constant 0 : index
    %243 = vector.load %arg6[%c1_107, %c0_108] : memref<2x64xf32, #tpu.memory_space<vmem>>, vector<1x64xf32>
    %244 = vector.broadcast %243 : vector<1x64xf32> to vector<32x64xf32>
    %245 = arith.addf %242, %244 : vector<32x64xf32>
    %246 = arith.mulf %245, %245 : vector<32x64xf32>
    %247 = arith.mulf %245, %246 : vector<32x64xf32>
    %cst_109 = arith.constant 4.471500e-02 : f32
    %248 = vector.broadcast %cst_109 : f32 to vector<32x64xf32>
    %249 = arith.mulf %248, %247 : vector<32x64xf32>
    %250 = arith.addf %245, %249 : vector<32x64xf32>
    %cst_110 = arith.constant 0.797884583 : f32
    %251 = vector.broadcast %cst_110 : f32 to vector<32x64xf32>
    %252 = arith.mulf %251, %250 : vector<32x64xf32>
    %253 = math.tanh %252 : vector<32x64xf32>
    %cst_111 = arith.constant 1.000000e+00 : f32
    %254 = vector.broadcast %cst_111 : f32 to vector<32x64xf32>
    %255 = arith.addf %254, %253 : vector<32x64xf32>
    %cst_112 = arith.constant 5.000000e-01 : f32
    %256 = vector.broadcast %cst_112 : f32 to vector<32x64xf32>
    %257 = arith.mulf %256, %255 : vector<32x64xf32>
    %258 = arith.mulf %245, %257 : vector<32x64xf32>
    %259 = arith.truncf %258 : vector<32x64xf32> to vector<32x64xbf16>
    %c3_113 = arith.constant 3 : index
    %c0_114 = arith.constant 0 : index
    %c0_115 = arith.constant 0 : index
    %260 = vector.load %arg8[%c3_113, %c0_114, %c0_115] : memref<4x32x64xbf16, #tpu.memory_space<vmem>>, vector<1x32x64xbf16>
    %261 = vector.shape_cast %260 : vector<1x32x64xbf16> to vector<32x64xbf16>
    %cst_116 = arith.constant dense<0.000000e+00> : vector<32x32xf32>
    %262 = tpu.matmul %259, %261, %cst_116 {dimension_numbers = #tpu.dot_dimension_numbers<[1], [1], [0], [0], [0, 0, 1, 0], [], []>} : vector<32x64xbf16>, vector<32x64xbf16>, vector<32x32xf32> -> vector<32x32xf32>
    %263 = arith.addf %214, %262 : vector<32x32xf32>
    %c17 = arith.constant 17 : index
    %c0_117 = arith.constant 0 : index
    %264 = vector.load %arg5[%c17, %c0_117] : memref<20x32xf32, #tpu.memory_space<vmem>>, vector<1x32xf32>
    %265 = vector.broadcast %264 : vector<1x32xf32> to vector<32x32xf32>
    %266 = arith.addf %263, %265 : vector<32x32xf32>
    %c18 = arith.constant 18 : index
    %c0_118 = arith.constant 0 : index
    %267 = vector.load %arg5[%c18, %c0_118] : memref<20x32xf32, #tpu.memory_space<vmem>>, vector<1x32xf32>
    %c19 = arith.constant 19 : index
    %c0_119 = arith.constant 0 : index
    %268 = vector.load %arg5[%c19, %c0_119] : memref<20x32xf32, #tpu.memory_space<vmem>>, vector<1x32xf32>
    %cst_120 = arith.constant dense<0.000000e+00> : vector<32xf32>
    %269 = vector.multi_reduction <add>, %266, %cst_120 [1] : vector<32x32xf32> to vector<32xf32>
    %270 = vector.shape_cast %269 : vector<32xf32> to vector<32x1xf32>
    %cst_121 = arith.constant 3.200000e+01 : f32
    %271 = vector.broadcast %cst_121 : f32 to vector<32x1xf32>
    %272 = arith.divf %270, %271 : vector<32x1xf32>
    %273 = arith.mulf %266, %266 : vector<32x32xf32>
    %cst_122 = arith.constant dense<0.000000e+00> : vector<32xf32>
    %274 = vector.multi_reduction <add>, %273, %cst_122 [1] : vector<32x32xf32> to vector<32xf32>
    %275 = vector.shape_cast %274 : vector<32xf32> to vector<32x1xf32>
    %cst_123 = arith.constant 3.200000e+01 : f32
    %276 = vector.broadcast %cst_123 : f32 to vector<32x1xf32>
    %277 = arith.divf %275, %276 : vector<32x1xf32>
    %278 = arith.mulf %272, %272 : vector<32x1xf32>
    %279 = arith.subf %277, %278 : vector<32x1xf32>
    %280 = vector.broadcast %272 : vector<32x1xf32> to vector<32x32xf32>
    %281 = arith.subf %266, %280 : vector<32x32xf32>
    %cst_124 = arith.constant 9.99999974E-6 : f32
    %282 = vector.broadcast %cst_124 : f32 to vector<32x1xf32>
    %283 = arith.addf %279, %282 : vector<32x1xf32>
    %284 = math.rsqrt %283 : vector<32x1xf32>
    %285 = vector.broadcast %284 : vector<32x1xf32> to vector<32x32xf32>
    %286 = arith.mulf %281, %285 : vector<32x32xf32>
    %287 = vector.broadcast %267 : vector<1x32xf32> to vector<32x32xf32>
    %288 = arith.mulf %286, %287 : vector<32x32xf32>
    %289 = vector.broadcast %268 : vector<1x32xf32> to vector<32x32xf32>
    %290 = arith.addf %288, %289 : vector<32x32xf32>
    %c1_i32 = arith.constant 1 : i32
    %291 = tpu.dynamic_rotate %290 by %c1_i32 dim 0 : vector<32x32xf32>, i32 -> vector<32x32xf32>
    %c0_125 = arith.constant 0 : index
    %292 = memref.load %arg1[%c0_125] : memref<4xi32, #tpu.memory_space<smem>>
    %c0_i32 = arith.constant 0 : i32
    %293 = arith.addi %c0_i32, %292 : i32
    %294 = vector.broadcast %293 : i32 to vector<32x1xi32>
    %295 = arith.cmpi eq, %23, %294 : vector<32x1xi32>
    %c1_i32_126 = arith.constant 1 : i32
    %296 = arith.cmpi sge, %292, %c1_i32_126 : i32
    %297 = vector.broadcast %296 : i1 to vector<32x1xi1>
    %298 = arith.andi %295, %297 : vector<32x1xi1>
    %c2_127 = arith.constant 2 : index
    %299 = memref.load %arg1[%c2_127] : memref<4xi32, #tpu.memory_space<smem>>
    %c16_i32 = arith.constant 16 : i32
    %300 = arith.addi %c16_i32, %299 : i32
    %301 = vector.broadcast %300 : i32 to vector<32x1xi32>
    %302 = arith.cmpi eq, %23, %301 : vector<32x1xi32>
    %c1_i32_128 = arith.constant 1 : i32
    %303 = arith.cmpi sge, %299, %c1_i32_128 : i32
    %304 = vector.broadcast %303 : i1 to vector<32x1xi1>
    %305 = arith.andi %302, %304 : vector<32x1xi1>
    %306 = arith.ori %298, %305 : vector<32x1xi1>
    %307 = vector.shape_cast %306 : vector<32x1xi1> to vector<32x1xi1>
    %308 = vector.broadcast %307 : vector<32x1xi1> to vector<32x32xi1>
    %309 = arith.select %308, %291, %25 : vector<32x32xi1>, vector<32x32xf32>
    %310 = arith.addf %309, %1 : vector<32x32xf32>
    %c0_129 = arith.constant 0 : index
    %c0_130 = arith.constant 0 : index
    %311 = vector.load %arg5[%c0_129, %c0_130] : memref<20x32xf32, #tpu.memory_space<vmem>>, vector<1x32xf32>
    %c1_131 = arith.constant 1 : index
    %c0_132 = arith.constant 0 : index
    %312 = vector.load %arg5[%c1_131, %c0_132] : memref<20x32xf32, #tpu.memory_space<vmem>>, vector<1x32xf32>
    %cst_133 = arith.constant dense<0.000000e+00> : vector<32xf32>
    %313 = vector.multi_reduction <add>, %310, %cst_133 [1] : vector<32x32xf32> to vector<32xf32>
    %314 = vector.shape_cast %313 : vector<32xf32> to vector<32x1xf32>
    %cst_134 = arith.constant 3.200000e+01 : f32
    %315 = vector.broadcast %cst_134 : f32 to vector<32x1xf32>
    %316 = arith.divf %314, %315 : vector<32x1xf32>
    %317 = arith.mulf %310, %310 : vector<32x32xf32>
    %cst_135 = arith.constant dense<0.000000e+00> : vector<32xf32>
    %318 = vector.multi_reduction <add>, %317, %cst_135 [1] : vector<32x32xf32> to vector<32xf32>
    %319 = vector.shape_cast %318 : vector<32xf32> to vector<32x1xf32>
    %cst_136 = arith.constant 3.200000e+01 : f32
    %320 = vector.broadcast %cst_136 : f32 to vector<32x1xf32>
    %321 = arith.divf %319, %320 : vector<32x1xf32>
    %322 = arith.mulf %316, %316 : vector<32x1xf32>
    %323 = arith.subf %321, %322 : vector<32x1xf32>
    %324 = vector.broadcast %316 : vector<32x1xf32> to vector<32x32xf32>
    %325 = arith.subf %310, %324 : vector<32x32xf32>
    %cst_137 = arith.constant 9.99999974E-6 : f32
    %326 = vector.broadcast %cst_137 : f32 to vector<32x1xf32>
    %327 = arith.addf %323, %326 : vector<32x1xf32>
    %328 = math.rsqrt %327 : vector<32x1xf32>
    %329 = vector.broadcast %328 : vector<32x1xf32> to vector<32x32xf32>
    %330 = arith.mulf %325, %329 : vector<32x32xf32>
    %331 = vector.broadcast %311 : vector<1x32xf32> to vector<32x32xf32>
    %332 = arith.mulf %330, %331 : vector<32x32xf32>
    %333 = vector.broadcast %312 : vector<1x32xf32> to vector<32x32xf32>
    %334 = arith.addf %332, %333 : vector<32x32xf32>
    %335 = arith.truncf %334 : vector<32x32xf32> to vector<32x32xbf16>
    %c0_138 = arith.constant 0 : index
    %c0_139 = arith.constant 0 : index
    %c0_140 = arith.constant 0 : index
    %336 = vector.load %arg7[%c0_138, %c0_139, %c0_140] : memref<8x32x32xbf16, #tpu.memory_space<vmem>>, vector<1x32x32xbf16>
    %337 = vector.shape_cast %336 : vector<1x32x32xbf16> to vector<32x32xbf16>
    %cst_141 = arith.constant dense<0.000000e+00> : vector<32x32xf32>
    %338 = tpu.matmul %335, %337, %cst_141 {dimension_numbers = #tpu.dot_dimension_numbers<[1], [0], [0], [1], [0, 0, 1, 1], [], []>} : vector<32x32xbf16>, vector<32x32xbf16>, vector<32x32xf32> -> vector<32x32xf32>
    %c2_142 = arith.constant 2 : index
    %c0_143 = arith.constant 0 : index
    %339 = vector.load %arg5[%c2_142, %c0_143] : memref<20x32xf32, #tpu.memory_space<vmem>>, vector<1x32xf32>
    %340 = vector.broadcast %339 : vector<1x32xf32> to vector<32x32xf32>
    %341 = arith.addf %338, %340 : vector<32x32xf32>
    %c2_144 = arith.constant 2 : index
    %c0_145 = arith.constant 0 : index
    %c0_146 = arith.constant 0 : index
    %342 = vector.load %arg7[%c2_144, %c0_145, %c0_146] : memref<8x32x32xbf16, #tpu.memory_space<vmem>>, vector<1x32x32xbf16>
    %343 = vector.shape_cast %342 : vector<1x32x32xbf16> to vector<32x32xbf16>
    %cst_147 = arith.constant dense<0.000000e+00> : vector<32x32xf32>
    %344 = tpu.matmul %335, %343, %cst_147 {dimension_numbers = #tpu.dot_dimension_numbers<[1], [0], [0], [1], [0, 0, 1, 1], [], []>} : vector<32x32xbf16>, vector<32x32xbf16>, vector<32x32xf32> -> vector<32x32xf32>
    %c3_148 = arith.constant 3 : index
    %c0_149 = arith.constant 0 : index
    %345 = vector.load %arg5[%c3_148, %c0_149] : memref<20x32xf32, #tpu.memory_space<vmem>>, vector<1x32xf32>
    %346 = vector.broadcast %345 : vector<1x32xf32> to vector<32x32xf32>
    %347 = arith.addf %344, %346 : vector<32x32xf32>
    %c4_150 = arith.constant 4 : index
    %c0_151 = arith.constant 0 : index
    %c0_152 = arith.constant 0 : index
    %348 = vector.load %arg7[%c4_150, %c0_151, %c0_152] : memref<8x32x32xbf16, #tpu.memory_space<vmem>>, vector<1x32x32xbf16>
    %349 = vector.shape_cast %348 : vector<1x32x32xbf16> to vector<32x32xbf16>
    %cst_153 = arith.constant dense<0.000000e+00> : vector<32x32xf32>
    %350 = tpu.matmul %335, %349, %cst_153 {dimension_numbers = #tpu.dot_dimension_numbers<[1], [0], [0], [1], [0, 0, 1, 1], [], []>} : vector<32x32xbf16>, vector<32x32xbf16>, vector<32x32xf32> -> vector<32x32xf32>
    %c4_154 = arith.constant 4 : index
    %c0_155 = arith.constant 0 : index
    %351 = vector.load %arg5[%c4_154, %c0_155] : memref<20x32xf32, #tpu.memory_space<vmem>>, vector<1x32xf32>
    %352 = vector.broadcast %351 : vector<1x32xf32> to vector<32x32xf32>
    %353 = arith.addf %350, %352 : vector<32x32xf32>
    %354 = arith.truncf %341 : vector<32x32xf32> to vector<32x32xbf16>
    %355 = arith.truncf %347 : vector<32x32xf32> to vector<32x32xbf16>
    %cst_156 = arith.constant dense<0.000000e+00> : vector<32x32xf32>
    %356 = tpu.matmul %354, %355, %cst_156 {dimension_numbers = #tpu.dot_dimension_numbers<[1], [1], [0], [0], [0, 0, 1, 0], [], []>} : vector<32x32xbf16>, vector<32x32xbf16>, vector<32x32xf32> -> vector<32x32xf32>
    %357 = arith.addf %356, %22 : vector<32x32xf32>
    %cst_157 = arith.constant dense<0xFF800000> : vector<32xf32>
    %358 = vector.multi_reduction <maximumf>, %357, %cst_157 [1] : vector<32x32xf32> to vector<32xf32>
    %359 = vector.shape_cast %358 : vector<32xf32> to vector<32x1xf32>
    %360 = vector.broadcast %359 : vector<32x1xf32> to vector<32x32xf32>
    %361 = arith.subf %357, %360 : vector<32x32xf32>
    %362 = math.exp %361 : vector<32x32xf32>
    %cst_158 = arith.constant dense<0.000000e+00> : vector<32xf32>
    %363 = vector.multi_reduction <add>, %362, %cst_158 [1] : vector<32x32xf32> to vector<32xf32>
    %364 = vector.shape_cast %363 : vector<32xf32> to vector<32x1xf32>
    %365 = tpu.reciprocal %364 {approx = true} : vector<32x1xf32> -> vector<32x1xf32>
    %366 = vector.broadcast %365 : vector<32x1xf32> to vector<32x32xf32>
    %367 = arith.mulf %362, %366 : vector<32x32xf32>
    %368 = arith.truncf %367 : vector<32x32xf32> to vector<32x32xbf16>
    %369 = arith.truncf %353 : vector<32x32xf32> to vector<32x32xbf16>
    %cst_159 = arith.constant dense<0.000000e+00> : vector<32x32xf32>
    %370 = tpu.matmul %368, %369, %cst_159 {dimension_numbers = #tpu.dot_dimension_numbers<[1], [0], [0], [1], [0, 0, 1, 1], [], []>} : vector<32x32xbf16>, vector<32x32xbf16>, vector<32x32xf32> -> vector<32x32xf32>
    %371 = arith.truncf %370 : vector<32x32xf32> to vector<32x32xbf16>
    %c6_160 = arith.constant 6 : index
    %c0_161 = arith.constant 0 : index
    %c0_162 = arith.constant 0 : index
    %372 = vector.load %arg7[%c6_160, %c0_161, %c0_162] : memref<8x32x32xbf16, #tpu.memory_space<vmem>>, vector<1x32x32xbf16>
    %373 = vector.shape_cast %372 : vector<1x32x32xbf16> to vector<32x32xbf16>
    %cst_163 = arith.constant dense<0.000000e+00> : vector<32x32xf32>
    %374 = tpu.matmul %371, %373, %cst_163 {dimension_numbers = #tpu.dot_dimension_numbers<[1], [0], [0], [1], [0, 0, 1, 1], [], []>} : vector<32x32xbf16>, vector<32x32xbf16>, vector<32x32xf32> -> vector<32x32xf32>
    %375 = arith.addf %310, %374 : vector<32x32xf32>
    %c5_164 = arith.constant 5 : index
    %c0_165 = arith.constant 0 : index
    %376 = vector.load %arg5[%c5_164, %c0_165] : memref<20x32xf32, #tpu.memory_space<vmem>>, vector<1x32xf32>
    %377 = vector.broadcast %376 : vector<1x32xf32> to vector<32x32xf32>
    %378 = arith.addf %375, %377 : vector<32x32xf32>
    %c6_166 = arith.constant 6 : index
    %c0_167 = arith.constant 0 : index
    %379 = vector.load %arg5[%c6_166, %c0_167] : memref<20x32xf32, #tpu.memory_space<vmem>>, vector<1x32xf32>
    %c7_168 = arith.constant 7 : index
    %c0_169 = arith.constant 0 : index
    %380 = vector.load %arg5[%c7_168, %c0_169] : memref<20x32xf32, #tpu.memory_space<vmem>>, vector<1x32xf32>
    %cst_170 = arith.constant dense<0.000000e+00> : vector<32xf32>
    %381 = vector.multi_reduction <add>, %378, %cst_170 [1] : vector<32x32xf32> to vector<32xf32>
    %382 = vector.shape_cast %381 : vector<32xf32> to vector<32x1xf32>
    %cst_171 = arith.constant 3.200000e+01 : f32
    %383 = vector.broadcast %cst_171 : f32 to vector<32x1xf32>
    %384 = arith.divf %382, %383 : vector<32x1xf32>
    %385 = arith.mulf %378, %378 : vector<32x32xf32>
    %cst_172 = arith.constant dense<0.000000e+00> : vector<32xf32>
    %386 = vector.multi_reduction <add>, %385, %cst_172 [1] : vector<32x32xf32> to vector<32xf32>
    %387 = vector.shape_cast %386 : vector<32xf32> to vector<32x1xf32>
    %cst_173 = arith.constant 3.200000e+01 : f32
    %388 = vector.broadcast %cst_173 : f32 to vector<32x1xf32>
    %389 = arith.divf %387, %388 : vector<32x1xf32>
    %390 = arith.mulf %384, %384 : vector<32x1xf32>
    %391 = arith.subf %389, %390 : vector<32x1xf32>
    %392 = vector.broadcast %384 : vector<32x1xf32> to vector<32x32xf32>
    %393 = arith.subf %378, %392 : vector<32x32xf32>
    %cst_174 = arith.constant 9.99999974E-6 : f32
    %394 = vector.broadcast %cst_174 : f32 to vector<32x1xf32>
    %395 = arith.addf %391, %394 : vector<32x1xf32>
    %396 = math.rsqrt %395 : vector<32x1xf32>
    %397 = vector.broadcast %396 : vector<32x1xf32> to vector<32x32xf32>
    %398 = arith.mulf %393, %397 : vector<32x32xf32>
    %399 = vector.broadcast %379 : vector<1x32xf32> to vector<32x32xf32>
    %400 = arith.mulf %398, %399 : vector<32x32xf32>
    %401 = vector.broadcast %380 : vector<1x32xf32> to vector<32x32xf32>
    %402 = arith.addf %400, %401 : vector<32x32xf32>
    %403 = arith.truncf %402 : vector<32x32xf32> to vector<32x32xbf16>
    %c0_175 = arith.constant 0 : index
    %c0_176 = arith.constant 0 : index
    %c0_177 = arith.constant 0 : index
    %404 = vector.load %arg8[%c0_175, %c0_176, %c0_177] : memref<4x32x64xbf16, #tpu.memory_space<vmem>>, vector<1x32x64xbf16>
    %405 = vector.shape_cast %404 : vector<1x32x64xbf16> to vector<32x64xbf16>
    %cst_178 = arith.constant dense<0.000000e+00> : vector<32x64xf32>
    %406 = tpu.matmul %403, %405, %cst_178 {dimension_numbers = #tpu.dot_dimension_numbers<[1], [0], [0], [1], [0, 0, 1, 1], [], []>} : vector<32x32xbf16>, vector<32x64xbf16>, vector<32x64xf32> -> vector<32x64xf32>
    %c0_179 = arith.constant 0 : index
    %c0_180 = arith.constant 0 : index
    %407 = vector.load %arg6[%c0_179, %c0_180] : memref<2x64xf32, #tpu.memory_space<vmem>>, vector<1x64xf32>
    %408 = vector.broadcast %407 : vector<1x64xf32> to vector<32x64xf32>
    %409 = arith.addf %406, %408 : vector<32x64xf32>
    %410 = arith.mulf %409, %409 : vector<32x64xf32>
    %411 = arith.mulf %409, %410 : vector<32x64xf32>
    %cst_181 = arith.constant 4.471500e-02 : f32
    %412 = vector.broadcast %cst_181 : f32 to vector<32x64xf32>
    %413 = arith.mulf %412, %411 : vector<32x64xf32>
    %414 = arith.addf %409, %413 : vector<32x64xf32>
    %cst_182 = arith.constant 0.797884583 : f32
    %415 = vector.broadcast %cst_182 : f32 to vector<32x64xf32>
    %416 = arith.mulf %415, %414 : vector<32x64xf32>
    %417 = math.tanh %416 : vector<32x64xf32>
    %cst_183 = arith.constant 1.000000e+00 : f32
    %418 = vector.broadcast %cst_183 : f32 to vector<32x64xf32>
    %419 = arith.addf %418, %417 : vector<32x64xf32>
    %cst_184 = arith.constant 5.000000e-01 : f32
    %420 = vector.broadcast %cst_184 : f32 to vector<32x64xf32>
    %421 = arith.mulf %420, %419 : vector<32x64xf32>
    %422 = arith.mulf %409, %421 : vector<32x64xf32>
    %423 = arith.truncf %422 : vector<32x64xf32> to vector<32x64xbf16>
    %c2_185 = arith.constant 2 : index
    %c0_186 = arith.constant 0 : index
    %c0_187 = arith.constant 0 : index
    %424 = vector.load %arg8[%c2_185, %c0_186, %c0_187] : memref<4x32x64xbf16, #tpu.memory_space<vmem>>, vector<1x32x64xbf16>
    %425 = vector.shape_cast %424 : vector<1x32x64xbf16> to vector<32x64xbf16>
    %cst_188 = arith.constant dense<0.000000e+00> : vector<32x32xf32>
    %426 = tpu.matmul %423, %425, %cst_188 {dimension_numbers = #tpu.dot_dimension_numbers<[1], [1], [0], [0], [0, 0, 1, 0], [], []>} : vector<32x64xbf16>, vector<32x64xbf16>, vector<32x32xf32> -> vector<32x32xf32>
    %427 = arith.addf %378, %426 : vector<32x32xf32>
    %c8_189 = arith.constant 8 : index
    %c0_190 = arith.constant 0 : index
    %428 = vector.load %arg5[%c8_189, %c0_190] : memref<20x32xf32, #tpu.memory_space<vmem>>, vector<1x32xf32>
    %429 = vector.broadcast %428 : vector<1x32xf32> to vector<32x32xf32>
    %430 = arith.addf %427, %429 : vector<32x32xf32>
    %c9_191 = arith.constant 9 : index
    %c0_192 = arith.constant 0 : index
    %431 = vector.load %arg5[%c9_191, %c0_192] : memref<20x32xf32, #tpu.memory_space<vmem>>, vector<1x32xf32>
    %c10_193 = arith.constant 10 : index
    %c0_194 = arith.constant 0 : index
    %432 = vector.load %arg5[%c10_193, %c0_194] : memref<20x32xf32, #tpu.memory_space<vmem>>, vector<1x32xf32>
    %cst_195 = arith.constant dense<0.000000e+00> : vector<32xf32>
    %433 = vector.multi_reduction <add>, %430, %cst_195 [1] : vector<32x32xf32> to vector<32xf32>
    %434 = vector.shape_cast %433 : vector<32xf32> to vector<32x1xf32>
    %cst_196 = arith.constant 3.200000e+01 : f32
    %435 = vector.broadcast %cst_196 : f32 to vector<32x1xf32>
    %436 = arith.divf %434, %435 : vector<32x1xf32>
    %437 = arith.mulf %430, %430 : vector<32x32xf32>
    %cst_197 = arith.constant dense<0.000000e+00> : vector<32xf32>
    %438 = vector.multi_reduction <add>, %437, %cst_197 [1] : vector<32x32xf32> to vector<32xf32>
    %439 = vector.shape_cast %438 : vector<32xf32> to vector<32x1xf32>
    %cst_198 = arith.constant 3.200000e+01 : f32
    %440 = vector.broadcast %cst_198 : f32 to vector<32x1xf32>
    %441 = arith.divf %439, %440 : vector<32x1xf32>
    %442 = arith.mulf %436, %436 : vector<32x1xf32>
    %443 = arith.subf %441, %442 : vector<32x1xf32>
    %444 = vector.broadcast %436 : vector<32x1xf32> to vector<32x32xf32>
    %445 = arith.subf %430, %444 : vector<32x32xf32>
    %cst_199 = arith.constant 9.99999974E-6 : f32
    %446 = vector.broadcast %cst_199 : f32 to vector<32x1xf32>
    %447 = arith.addf %443, %446 : vector<32x1xf32>
    %448 = math.rsqrt %447 : vector<32x1xf32>
    %449 = vector.broadcast %448 : vector<32x1xf32> to vector<32x32xf32>
    %450 = arith.mulf %445, %449 : vector<32x32xf32>
    %451 = vector.broadcast %431 : vector<1x32xf32> to vector<32x32xf32>
    %452 = arith.mulf %450, %451 : vector<32x32xf32>
    %453 = vector.broadcast %432 : vector<1x32xf32> to vector<32x32xf32>
    %454 = arith.addf %452, %453 : vector<32x32xf32>
    %455 = arith.truncf %454 : vector<32x32xf32> to vector<32x32xbf16>
    %c1_200 = arith.constant 1 : index
    %c0_201 = arith.constant 0 : index
    %c0_202 = arith.constant 0 : index
    %456 = vector.load %arg7[%c1_200, %c0_201, %c0_202] : memref<8x32x32xbf16, #tpu.memory_space<vmem>>, vector<1x32x32xbf16>
    %457 = vector.shape_cast %456 : vector<1x32x32xbf16> to vector<32x32xbf16>
    %cst_203 = arith.constant dense<0.000000e+00> : vector<32x32xf32>
    %458 = tpu.matmul %455, %457, %cst_203 {dimension_numbers = #tpu.dot_dimension_numbers<[1], [0], [0], [1], [0, 0, 1, 1], [], []>} : vector<32x32xbf16>, vector<32x32xbf16>, vector<32x32xf32> -> vector<32x32xf32>
    %c11_204 = arith.constant 11 : index
    %c0_205 = arith.constant 0 : index
    %459 = vector.load %arg5[%c11_204, %c0_205] : memref<20x32xf32, #tpu.memory_space<vmem>>, vector<1x32xf32>
    %460 = vector.broadcast %459 : vector<1x32xf32> to vector<32x32xf32>
    %461 = arith.addf %458, %460 : vector<32x32xf32>
    %c3_206 = arith.constant 3 : index
    %c0_207 = arith.constant 0 : index
    %c0_208 = arith.constant 0 : index
    %462 = vector.load %arg7[%c3_206, %c0_207, %c0_208] : memref<8x32x32xbf16, #tpu.memory_space<vmem>>, vector<1x32x32xbf16>
    %463 = vector.shape_cast %462 : vector<1x32x32xbf16> to vector<32x32xbf16>
    %cst_209 = arith.constant dense<0.000000e+00> : vector<32x32xf32>
    %464 = tpu.matmul %455, %463, %cst_209 {dimension_numbers = #tpu.dot_dimension_numbers<[1], [0], [0], [1], [0, 0, 1, 1], [], []>} : vector<32x32xbf16>, vector<32x32xbf16>, vector<32x32xf32> -> vector<32x32xf32>
    %c12_210 = arith.constant 12 : index
    %c0_211 = arith.constant 0 : index
    %465 = vector.load %arg5[%c12_210, %c0_211] : memref<20x32xf32, #tpu.memory_space<vmem>>, vector<1x32xf32>
    %466 = vector.broadcast %465 : vector<1x32xf32> to vector<32x32xf32>
    %467 = arith.addf %464, %466 : vector<32x32xf32>
    %c5_212 = arith.constant 5 : index
    %c0_213 = arith.constant 0 : index
    %c0_214 = arith.constant 0 : index
    %468 = vector.load %arg7[%c5_212, %c0_213, %c0_214] : memref<8x32x32xbf16, #tpu.memory_space<vmem>>, vector<1x32x32xbf16>
    %469 = vector.shape_cast %468 : vector<1x32x32xbf16> to vector<32x32xbf16>
    %cst_215 = arith.constant dense<0.000000e+00> : vector<32x32xf32>
    %470 = tpu.matmul %455, %469, %cst_215 {dimension_numbers = #tpu.dot_dimension_numbers<[1], [0], [0], [1], [0, 0, 1, 1], [], []>} : vector<32x32xbf16>, vector<32x32xbf16>, vector<32x32xf32> -> vector<32x32xf32>
    %c13_216 = arith.constant 13 : index
    %c0_217 = arith.constant 0 : index
    %471 = vector.load %arg5[%c13_216, %c0_217] : memref<20x32xf32, #tpu.memory_space<vmem>>, vector<1x32xf32>
    %472 = vector.broadcast %471 : vector<1x32xf32> to vector<32x32xf32>
    %473 = arith.addf %470, %472 : vector<32x32xf32>
    %474 = arith.truncf %461 : vector<32x32xf32> to vector<32x32xbf16>
    %475 = arith.truncf %467 : vector<32x32xf32> to vector<32x32xbf16>
    %cst_218 = arith.constant dense<0.000000e+00> : vector<32x32xf32>
    %476 = tpu.matmul %474, %475, %cst_218 {dimension_numbers = #tpu.dot_dimension_numbers<[1], [1], [0], [0], [0, 0, 1, 0], [], []>} : vector<32x32xbf16>, vector<32x32xbf16>, vector<32x32xf32> -> vector<32x32xf32>
    %477 = arith.addf %476, %22 : vector<32x32xf32>
    %cst_219 = arith.constant dense<0xFF800000> : vector<32xf32>
    %478 = vector.multi_reduction <maximumf>, %477, %cst_219 [1] : vector<32x32xf32> to vector<32xf32>
    %479 = vector.shape_cast %478 : vector<32xf32> to vector<32x1xf32>
    %480 = vector.broadcast %479 : vector<32x1xf32> to vector<32x32xf32>
    %481 = arith.subf %477, %480 : vector<32x32xf32>
    %482 = math.exp %481 : vector<32x32xf32>
    %cst_220 = arith.constant dense<0.000000e+00> : vector<32xf32>
    %483 = vector.multi_reduction <add>, %482, %cst_220 [1] : vector<32x32xf32> to vector<32xf32>
    %484 = vector.shape_cast %483 : vector<32xf32> to vector<32x1xf32>
    %485 = tpu.reciprocal %484 {approx = true} : vector<32x1xf32> -> vector<32x1xf32>
    %486 = vector.broadcast %485 : vector<32x1xf32> to vector<32x32xf32>
    %487 = arith.mulf %482, %486 : vector<32x32xf32>
    %488 = arith.truncf %487 : vector<32x32xf32> to vector<32x32xbf16>
    %489 = arith.truncf %473 : vector<32x32xf32> to vector<32x32xbf16>
    %cst_221 = arith.constant dense<0.000000e+00> : vector<32x32xf32>
    %490 = tpu.matmul %488, %489, %cst_221 {dimension_numbers = #tpu.dot_dimension_numbers<[1], [0], [0], [1], [0, 0, 1, 1], [], []>} : vector<32x32xbf16>, vector<32x32xbf16>, vector<32x32xf32> -> vector<32x32xf32>
    %491 = arith.truncf %490 : vector<32x32xf32> to vector<32x32xbf16>
    %c7_222 = arith.constant 7 : index
    %c0_223 = arith.constant 0 : index
    %c0_224 = arith.constant 0 : index
    %492 = vector.load %arg7[%c7_222, %c0_223, %c0_224] : memref<8x32x32xbf16, #tpu.memory_space<vmem>>, vector<1x32x32xbf16>
    %493 = vector.shape_cast %492 : vector<1x32x32xbf16> to vector<32x32xbf16>
    %cst_225 = arith.constant dense<0.000000e+00> : vector<32x32xf32>
    %494 = tpu.matmul %491, %493, %cst_225 {dimension_numbers = #tpu.dot_dimension_numbers<[1], [0], [0], [1], [0, 0, 1, 1], [], []>} : vector<32x32xbf16>, vector<32x32xbf16>, vector<32x32xf32> -> vector<32x32xf32>
    %495 = arith.addf %430, %494 : vector<32x32xf32>
    %c14_226 = arith.constant 14 : index
    %c0_227 = arith.constant 0 : index
    %496 = vector.load %arg5[%c14_226, %c0_227] : memref<20x32xf32, #tpu.memory_space<vmem>>, vector<1x32xf32>
    %497 = vector.broadcast %496 : vector<1x32xf32> to vector<32x32xf32>
    %498 = arith.addf %495, %497 : vector<32x32xf32>
    %c15_228 = arith.constant 15 : index
    %c0_229 = arith.constant 0 : index
    %499 = vector.load %arg5[%c15_228, %c0_229] : memref<20x32xf32, #tpu.memory_space<vmem>>, vector<1x32xf32>
    %c16_230 = arith.constant 16 : index
    %c0_231 = arith.constant 0 : index
    %500 = vector.load %arg5[%c16_230, %c0_231] : memref<20x32xf32, #tpu.memory_space<vmem>>, vector<1x32xf32>
    %cst_232 = arith.constant dense<0.000000e+00> : vector<32xf32>
    %501 = vector.multi_reduction <add>, %498, %cst_232 [1] : vector<32x32xf32> to vector<32xf32>
    %502 = vector.shape_cast %501 : vector<32xf32> to vector<32x1xf32>
    %cst_233 = arith.constant 3.200000e+01 : f32
    %503 = vector.broadcast %cst_233 : f32 to vector<32x1xf32>
    %504 = arith.divf %502, %503 : vector<32x1xf32>
    %505 = arith.mulf %498, %498 : vector<32x32xf32>
    %cst_234 = arith.constant dense<0.000000e+00> : vector<32xf32>
    %506 = vector.multi_reduction <add>, %505, %cst_234 [1] : vector<32x32xf32> to vector<32xf32>
    %507 = vector.shape_cast %506 : vector<32xf32> to vector<32x1xf32>
    %cst_235 = arith.constant 3.200000e+01 : f32
    %508 = vector.broadcast %cst_235 : f32 to vector<32x1xf32>
    %509 = arith.divf %507, %508 : vector<32x1xf32>
    %510 = arith.mulf %504, %504 : vector<32x1xf32>
    %511 = arith.subf %509, %510 : vector<32x1xf32>
    %512 = vector.broadcast %504 : vector<32x1xf32> to vector<32x32xf32>
    %513 = arith.subf %498, %512 : vector<32x32xf32>
    %cst_236 = arith.constant 9.99999974E-6 : f32
    %514 = vector.broadcast %cst_236 : f32 to vector<32x1xf32>
    %515 = arith.addf %511, %514 : vector<32x1xf32>
    %516 = math.rsqrt %515 : vector<32x1xf32>
    %517 = vector.broadcast %516 : vector<32x1xf32> to vector<32x32xf32>
    %518 = arith.mulf %513, %517 : vector<32x32xf32>
    %519 = vector.broadcast %499 : vector<1x32xf32> to vector<32x32xf32>
    %520 = arith.mulf %518, %519 : vector<32x32xf32>
    %521 = vector.broadcast %500 : vector<1x32xf32> to vector<32x32xf32>
    %522 = arith.addf %520, %521 : vector<32x32xf32>
    %523 = arith.truncf %522 : vector<32x32xf32> to vector<32x32xbf16>
    %c1_237 = arith.constant 1 : index
    %c0_238 = arith.constant 0 : index
    %c0_239 = arith.constant 0 : index
    %524 = vector.load %arg8[%c1_237, %c0_238, %c0_239] : memref<4x32x64xbf16, #tpu.memory_space<vmem>>, vector<1x32x64xbf16>
    %525 = vector.shape_cast %524 : vector<1x32x64xbf16> to vector<32x64xbf16>
    %cst_240 = arith.constant dense<0.000000e+00> : vector<32x64xf32>
    %526 = tpu.matmul %523, %525, %cst_240 {dimension_numbers = #tpu.dot_dimension_numbers<[1], [0], [0], [1], [0, 0, 1, 1], [], []>} : vector<32x32xbf16>, vector<32x64xbf16>, vector<32x64xf32> -> vector<32x64xf32>
    %c1_241 = arith.constant 1 : index
    %c0_242 = arith.constant 0 : index
    %527 = vector.load %arg6[%c1_241, %c0_242] : memref<2x64xf32, #tpu.memory_space<vmem>>, vector<1x64xf32>
    %528 = vector.broadcast %527 : vector<1x64xf32> to vector<32x64xf32>
    %529 = arith.addf %526, %528 : vector<32x64xf32>
    %530 = arith.mulf %529, %529 : vector<32x64xf32>
    %531 = arith.mulf %529, %530 : vector<32x64xf32>
    %cst_243 = arith.constant 4.471500e-02 : f32
    %532 = vector.broadcast %cst_243 : f32 to vector<32x64xf32>
    %533 = arith.mulf %532, %531 : vector<32x64xf32>
    %534 = arith.addf %529, %533 : vector<32x64xf32>
    %cst_244 = arith.constant 0.797884583 : f32
    %535 = vector.broadcast %cst_244 : f32 to vector<32x64xf32>
    %536 = arith.mulf %535, %534 : vector<32x64xf32>
    %537 = math.tanh %536 : vector<32x64xf32>
    %cst_245 = arith.constant 1.000000e+00 : f32
    %538 = vector.broadcast %cst_245 : f32 to vector<32x64xf32>
    %539 = arith.addf %538, %537 : vector<32x64xf32>
    %cst_246 = arith.constant 5.000000e-01 : f32
    %540 = vector.broadcast %cst_246 : f32 to vector<32x64xf32>
    %541 = arith.mulf %540, %539 : vector<32x64xf32>
    %542 = arith.mulf %529, %541 : vector<32x64xf32>
    %543 = arith.truncf %542 : vector<32x64xf32> to vector<32x64xbf16>
    %c3_247 = arith.constant 3 : index
    %c0_248 = arith.constant 0 : index
    %c0_249 = arith.constant 0 : index
    %544 = vector.load %arg8[%c3_247, %c0_248, %c0_249] : memref<4x32x64xbf16, #tpu.memory_space<vmem>>, vector<1x32x64xbf16>
    %545 = vector.shape_cast %544 : vector<1x32x64xbf16> to vector<32x64xbf16>
    %cst_250 = arith.constant dense<0.000000e+00> : vector<32x32xf32>
    %546 = tpu.matmul %543, %545, %cst_250 {dimension_numbers = #tpu.dot_dimension_numbers<[1], [1], [0], [0], [0, 0, 1, 0], [], []>} : vector<32x64xbf16>, vector<32x64xbf16>, vector<32x32xf32> -> vector<32x32xf32>
    %547 = arith.addf %498, %546 : vector<32x32xf32>
    %c17_251 = arith.constant 17 : index
    %c0_252 = arith.constant 0 : index
    %548 = vector.load %arg5[%c17_251, %c0_252] : memref<20x32xf32, #tpu.memory_space<vmem>>, vector<1x32xf32>
    %549 = vector.broadcast %548 : vector<1x32xf32> to vector<32x32xf32>
    %550 = arith.addf %547, %549 : vector<32x32xf32>
    %c18_253 = arith.constant 18 : index
    %c0_254 = arith.constant 0 : index
    %551 = vector.load %arg5[%c18_253, %c0_254] : memref<20x32xf32, #tpu.memory_space<vmem>>, vector<1x32xf32>
    %c19_255 = arith.constant 19 : index
    %c0_256 = arith.constant 0 : index
    %552 = vector.load %arg5[%c19_255, %c0_256] : memref<20x32xf32, #tpu.memory_space<vmem>>, vector<1x32xf32>
    %cst_257 = arith.constant dense<0.000000e+00> : vector<32xf32>
    %553 = vector.multi_reduction <add>, %550, %cst_257 [1] : vector<32x32xf32> to vector<32xf32>
    %554 = vector.shape_cast %553 : vector<32xf32> to vector<32x1xf32>
    %cst_258 = arith.constant 3.200000e+01 : f32
    %555 = vector.broadcast %cst_258 : f32 to vector<32x1xf32>
    %556 = arith.divf %554, %555 : vector<32x1xf32>
    %557 = arith.mulf %550, %550 : vector<32x32xf32>
    %cst_259 = arith.constant dense<0.000000e+00> : vector<32xf32>
    %558 = vector.multi_reduction <add>, %557, %cst_259 [1] : vector<32x32xf32> to vector<32xf32>
    %559 = vector.shape_cast %558 : vector<32xf32> to vector<32x1xf32>
    %cst_260 = arith.constant 3.200000e+01 : f32
    %560 = vector.broadcast %cst_260 : f32 to vector<32x1xf32>
    %561 = arith.divf %559, %560 : vector<32x1xf32>
    %562 = arith.mulf %556, %556 : vector<32x1xf32>
    %563 = arith.subf %561, %562 : vector<32x1xf32>
    %564 = vector.broadcast %556 : vector<32x1xf32> to vector<32x32xf32>
    %565 = arith.subf %550, %564 : vector<32x32xf32>
    %cst_261 = arith.constant 9.99999974E-6 : f32
    %566 = vector.broadcast %cst_261 : f32 to vector<32x1xf32>
    %567 = arith.addf %563, %566 : vector<32x1xf32>
    %568 = math.rsqrt %567 : vector<32x1xf32>
    %569 = vector.broadcast %568 : vector<32x1xf32> to vector<32x32xf32>
    %570 = arith.mulf %565, %569 : vector<32x32xf32>
    %571 = vector.broadcast %551 : vector<1x32xf32> to vector<32x32xf32>
    %572 = arith.mulf %570, %571 : vector<32x32xf32>
    %573 = vector.broadcast %552 : vector<1x32xf32> to vector<32x32xf32>
    %574 = arith.addf %572, %573 : vector<32x32xf32>
    %c1_i32_262 = arith.constant 1 : i32
    %575 = tpu.dynamic_rotate %574 by %c1_i32_262 dim 0 : vector<32x32xf32>, i32 -> vector<32x32xf32>
    %c1_263 = arith.constant 1 : index
    %576 = memref.load %arg1[%c1_263] : memref<4xi32, #tpu.memory_space<smem>>
    %c0_i32_264 = arith.constant 0 : i32
    %577 = arith.addi %c0_i32_264, %576 : i32
    %578 = vector.broadcast %577 : i32 to vector<32x1xi32>
    %579 = arith.cmpi eq, %23, %578 : vector<32x1xi32>
    %c1_i32_265 = arith.constant 1 : i32
    %580 = arith.cmpi sge, %576, %c1_i32_265 : i32
    %581 = vector.broadcast %580 : i1 to vector<32x1xi1>
    %582 = arith.andi %579, %581 : vector<32x1xi1>
    %c3_266 = arith.constant 3 : index
    %583 = memref.load %arg1[%c3_266] : memref<4xi32, #tpu.memory_space<smem>>
    %c16_i32_267 = arith.constant 16 : i32
    %584 = arith.addi %c16_i32_267, %583 : i32
    %585 = vector.broadcast %584 : i32 to vector<32x1xi32>
    %586 = arith.cmpi eq, %23, %585 : vector<32x1xi32>
    %c1_i32_268 = arith.constant 1 : i32
    %587 = arith.cmpi sge, %583, %c1_i32_268 : i32
    %588 = vector.broadcast %587 : i1 to vector<32x1xi1>
    %589 = arith.andi %586, %588 : vector<32x1xi1>
    %590 = arith.ori %582, %589 : vector<32x1xi1>
    %591 = vector.shape_cast %590 : vector<32x1xi1> to vector<32x1xi1>
    %592 = vector.broadcast %591 : vector<32x1xi1> to vector<32x32xi1>
    %593 = arith.select %592, %575, %309 : vector<32x32xi1>, vector<32x32xf32>
    %c0_269 = arith.constant 0 : index
    %c0_270 = arith.constant 0 : index
    %594 = vector.load %arg11[%c0_269, %c0_270] : memref<32x32xf32, #tpu.memory_space<vmem>>, vector<32x32xf32>
    tpu.vector_store %arg11[%c0_269, %c0_270], %593 {strides = array<i32>} : memref<32x32xf32, #tpu.memory_space<vmem>>, vector<32x32xf32>,
    %595 = arith.addf %593, %1 : vector<32x32xf32>
    %c0_271 = arith.constant 0 : index
    %c0_272 = arith.constant 0 : index
    %596 = vector.load %arg5[%c0_271, %c0_272] : memref<20x32xf32, #tpu.memory_space<vmem>>, vector<1x32xf32>
    %c1_273 = arith.constant 1 : index
    %c0_274 = arith.constant 0 : index
    %597 = vector.load %arg5[%c1_273, %c0_274] : memref<20x32xf32, #tpu.memory_space<vmem>>, vector<1x32xf32>
    %cst_275 = arith.constant dense<0.000000e+00> : vector<32xf32>
    %598 = vector.multi_reduction <add>, %595, %cst_275 [1] : vector<32x32xf32> to vector<32xf32>
    %599 = vector.shape_cast %598 : vector<32xf32> to vector<32x1xf32>
    %cst_276 = arith.constant 3.200000e+01 : f32
    %600 = vector.broadcast %cst_276 : f32 to vector<32x1xf32>
    %601 = arith.divf %599, %600 : vector<32x1xf32>
    %602 = arith.mulf %595, %595 : vector<32x32xf32>
    %cst_277 = arith.constant dense<0.000000e+00> : vector<32xf32>
    %603 = vector.multi_reduction <add>, %602, %cst_277 [1] : vector<32x32xf32> to vector<32xf32>
    %604 = vector.shape_cast %603 : vector<32xf32> to vector<32x1xf32>
    %cst_278 = arith.constant 3.200000e+01 : f32
    %605 = vector.broadcast %cst_278 : f32 to vector<32x1xf32>
    %606 = arith.divf %604, %605 : vector<32x1xf32>
    %607 = arith.mulf %601, %601 : vector<32x1xf32>
    %608 = arith.subf %606, %607 : vector<32x1xf32>
    %609 = vector.broadcast %601 : vector<32x1xf32> to vector<32x32xf32>
    %610 = arith.subf %595, %609 : vector<32x32xf32>
    %cst_279 = arith.constant 9.99999974E-6 : f32
    %611 = vector.broadcast %cst_279 : f32 to vector<32x1xf32>
    %612 = arith.addf %608, %611 : vector<32x1xf32>
    %613 = math.rsqrt %612 : vector<32x1xf32>
    %614 = vector.broadcast %613 : vector<32x1xf32> to vector<32x32xf32>
    %615 = arith.mulf %610, %614 : vector<32x32xf32>
    %616 = vector.broadcast %596 : vector<1x32xf32> to vector<32x32xf32>
    %617 = arith.mulf %615, %616 : vector<32x32xf32>
    %618 = vector.broadcast %597 : vector<1x32xf32> to vector<32x32xf32>
    %619 = arith.addf %617, %618 : vector<32x32xf32>
    %620 = arith.truncf %619 : vector<32x32xf32> to vector<32x32xbf16>
    %c0_280 = arith.constant 0 : index
    %c0_281 = arith.constant 0 : index
    %c0_282 = arith.constant 0 : index
    %621 = vector.load %arg7[%c0_280, %c0_281, %c0_282] : memref<8x32x32xbf16, #tpu.memory_space<vmem>>, vector<1x32x32xbf16>
    %622 = vector.shape_cast %621 : vector<1x32x32xbf16> to vector<32x32xbf16>
    %cst_283 = arith.constant dense<0.000000e+00> : vector<32x32xf32>
    %623 = tpu.matmul %620, %622, %cst_283 {dimension_numbers = #tpu.dot_dimension_numbers<[1], [0], [0], [1], [0, 0, 1, 1], [], []>} : vector<32x32xbf16>, vector<32x32xbf16>, vector<32x32xf32> -> vector<32x32xf32>
    %c2_284 = arith.constant 2 : index
    %c0_285 = arith.constant 0 : index
    %624 = vector.load %arg5[%c2_284, %c0_285] : memref<20x32xf32, #tpu.memory_space<vmem>>, vector<1x32xf32>
    %625 = vector.broadcast %624 : vector<1x32xf32> to vector<32x32xf32>
    %626 = arith.addf %623, %625 : vector<32x32xf32>
    %c2_286 = arith.constant 2 : index
    %c0_287 = arith.constant 0 : index
    %c0_288 = arith.constant 0 : index
    %627 = vector.load %arg7[%c2_286, %c0_287, %c0_288] : memref<8x32x32xbf16, #tpu.memory_space<vmem>>, vector<1x32x32xbf16>
    %628 = vector.shape_cast %627 : vector<1x32x32xbf16> to vector<32x32xbf16>
    %cst_289 = arith.constant dense<0.000000e+00> : vector<32x32xf32>
    %629 = tpu.matmul %620, %628, %cst_289 {dimension_numbers = #tpu.dot_dimension_numbers<[1], [0], [0], [1], [0, 0, 1, 1], [], []>} : vector<32x32xbf16>, vector<32x32xbf16>, vector<32x32xf32> -> vector<32x32xf32>
    %c3_290 = arith.constant 3 : index
    %c0_291 = arith.constant 0 : index
    %630 = vector.load %arg5[%c3_290, %c0_291] : memref<20x32xf32, #tpu.memory_space<vmem>>, vector<1x32xf32>
    %631 = vector.broadcast %630 : vector<1x32xf32> to vector<32x32xf32>
    %632 = arith.addf %629, %631 : vector<32x32xf32>
    %c4_292 = arith.constant 4 : index
    %c0_293 = arith.constant 0 : index
    %c0_294 = arith.constant 0 : index
    %633 = vector.load %arg7[%c4_292, %c0_293, %c0_294] : memref<8x32x32xbf16, #tpu.memory_space<vmem>>, vector<1x32x32xbf16>
    %634 = vector.shape_cast %633 : vector<1x32x32xbf16> to vector<32x32xbf16>
    %cst_295 = arith.constant dense<0.000000e+00> : vector<32x32xf32>
    %635 = tpu.matmul %620, %634, %cst_295 {dimension_numbers = #tpu.dot_dimension_numbers<[1], [0], [0], [1], [0, 0, 1, 1], [], []>} : vector<32x32xbf16>, vector<32x32xbf16>, vector<32x32xf32> -> vector<32x32xf32>
    %c4_296 = arith.constant 4 : index
    %c0_297 = arith.constant 0 : index
    %636 = vector.load %arg5[%c4_296, %c0_297] : memref<20x32xf32, #tpu.memory_space<vmem>>, vector<1x32xf32>
    %637 = vector.broadcast %636 : vector<1x32xf32> to vector<32x32xf32>
    %638 = arith.addf %635, %637 : vector<32x32xf32>
    %639 = arith.truncf %626 : vector<32x32xf32> to vector<32x32xbf16>
    %640 = arith.truncf %632 : vector<32x32xf32> to vector<32x32xbf16>
    %cst_298 = arith.constant dense<0.000000e+00> : vector<32x32xf32>
    %641 = tpu.matmul %639, %640, %cst_298 {dimension_numbers = #tpu.dot_dimension_numbers<[1], [1], [0], [0], [0, 0, 1, 0], [], []>} : vector<32x32xbf16>, vector<32x32xbf16>, vector<32x32xf32> -> vector<32x32xf32>
    %642 = arith.addf %641, %22 : vector<32x32xf32>
    %cst_299 = arith.constant dense<0xFF800000> : vector<32xf32>
    %643 = vector.multi_reduction <maximumf>, %642, %cst_299 [1] : vector<32x32xf32> to vector<32xf32>
    %644 = vector.shape_cast %643 : vector<32xf32> to vector<32x1xf32>
    %645 = vector.broadcast %644 : vector<32x1xf32> to vector<32x32xf32>
    %646 = arith.subf %642, %645 : vector<32x32xf32>
    %647 = math.exp %646 : vector<32x32xf32>
    %cst_300 = arith.constant dense<0.000000e+00> : vector<32xf32>
    %648 = vector.multi_reduction <add>, %647, %cst_300 [1] : vector<32x32xf32> to vector<32xf32>
    %649 = vector.shape_cast %648 : vector<32xf32> to vector<32x1xf32>
    %650 = tpu.reciprocal %649 {approx = true} : vector<32x1xf32> -> vector<32x1xf32>
    %651 = vector.broadcast %650 : vector<32x1xf32> to vector<32x32xf32>
    %652 = arith.mulf %647, %651 : vector<32x32xf32>
    %653 = arith.truncf %652 : vector<32x32xf32> to vector<32x32xbf16>
    %654 = arith.truncf %638 : vector<32x32xf32> to vector<32x32xbf16>
    %cst_301 = arith.constant dense<0.000000e+00> : vector<32x32xf32>
    %655 = tpu.matmul %653, %654, %cst_301 {dimension_numbers = #tpu.dot_dimension_numbers<[1], [0], [0], [1], [0, 0, 1, 1], [], []>} : vector<32x32xbf16>, vector<32x32xbf16>, vector<32x32xf32> -> vector<32x32xf32>
    %656 = arith.truncf %655 : vector<32x32xf32> to vector<32x32xbf16>
    %c6_302 = arith.constant 6 : index
    %c0_303 = arith.constant 0 : index
    %c0_304 = arith.constant 0 : index
    %657 = vector.load %arg7[%c6_302, %c0_303, %c0_304] : memref<8x32x32xbf16, #tpu.memory_space<vmem>>, vector<1x32x32xbf16>
    %658 = vector.shape_cast %657 : vector<1x32x32xbf16> to vector<32x32xbf16>
    %cst_305 = arith.constant dense<0.000000e+00> : vector<32x32xf32>
    %659 = tpu.matmul %656, %658, %cst_305 {dimension_numbers = #tpu.dot_dimension_numbers<[1], [0], [0], [1], [0, 0, 1, 1], [], []>} : vector<32x32xbf16>, vector<32x32xbf16>, vector<32x32xf32> -> vector<32x32xf32>
    %660 = arith.addf %595, %659 : vector<32x32xf32>
    %c5_306 = arith.constant 5 : index
    %c0_307 = arith.constant 0 : index
    %661 = vector.load %arg5[%c5_306, %c0_307] : memref<20x32xf32, #tpu.memory_space<vmem>>, vector<1x32xf32>
    %662 = vector.broadcast %661 : vector<1x32xf32> to vector<32x32xf32>
    %663 = arith.addf %660, %662 : vector<32x32xf32>
    %c6_308 = arith.constant 6 : index
    %c0_309 = arith.constant 0 : index
    %664 = vector.load %arg5[%c6_308, %c0_309] : memref<20x32xf32, #tpu.memory_space<vmem>>, vector<1x32xf32>
    %c7_310 = arith.constant 7 : index
    %c0_311 = arith.constant 0 : index
    %665 = vector.load %arg5[%c7_310, %c0_311] : memref<20x32xf32, #tpu.memory_space<vmem>>, vector<1x32xf32>
    %cst_312 = arith.constant dense<0.000000e+00> : vector<32xf32>
    %666 = vector.multi_reduction <add>, %663, %cst_312 [1] : vector<32x32xf32> to vector<32xf32>
    %667 = vector.shape_cast %666 : vector<32xf32> to vector<32x1xf32>
    %cst_313 = arith.constant 3.200000e+01 : f32
    %668 = vector.broadcast %cst_313 : f32 to vector<32x1xf32>
    %669 = arith.divf %667, %668 : vector<32x1xf32>
    %670 = arith.mulf %663, %663 : vector<32x32xf32>
    %cst_314 = arith.constant dense<0.000000e+00> : vector<32xf32>
    %671 = vector.multi_reduction <add>, %670, %cst_314 [1] : vector<32x32xf32> to vector<32xf32>
    %672 = vector.shape_cast %671 : vector<32xf32> to vector<32x1xf32>
    %cst_315 = arith.constant 3.200000e+01 : f32
    %673 = vector.broadcast %cst_315 : f32 to vector<32x1xf32>
    %674 = arith.divf %672, %673 : vector<32x1xf32>
    %675 = arith.mulf %669, %669 : vector<32x1xf32>
    %676 = arith.subf %674, %675 : vector<32x1xf32>
    %677 = vector.broadcast %669 : vector<32x1xf32> to vector<32x32xf32>
    %678 = arith.subf %663, %677 : vector<32x32xf32>
    %cst_316 = arith.constant 9.99999974E-6 : f32
    %679 = vector.broadcast %cst_316 : f32 to vector<32x1xf32>
    %680 = arith.addf %676, %679 : vector<32x1xf32>
    %681 = math.rsqrt %680 : vector<32x1xf32>
    %682 = vector.broadcast %681 : vector<32x1xf32> to vector<32x32xf32>
    %683 = arith.mulf %678, %682 : vector<32x32xf32>
    %684 = vector.broadcast %664 : vector<1x32xf32> to vector<32x32xf32>
    %685 = arith.mulf %683, %684 : vector<32x32xf32>
    %686 = vector.broadcast %665 : vector<1x32xf32> to vector<32x32xf32>
    %687 = arith.addf %685, %686 : vector<32x32xf32>
    %688 = arith.truncf %687 : vector<32x32xf32> to vector<32x32xbf16>
    %c0_317 = arith.constant 0 : index
    %c0_318 = arith.constant 0 : index
    %c0_319 = arith.constant 0 : index
    %689 = vector.load %arg8[%c0_317, %c0_318, %c0_319] : memref<4x32x64xbf16, #tpu.memory_space<vmem>>, vector<1x32x64xbf16>
    %690 = vector.shape_cast %689 : vector<1x32x64xbf16> to vector<32x64xbf16>
    %cst_320 = arith.constant dense<0.000000e+00> : vector<32x64xf32>
    %691 = tpu.matmul %688, %690, %cst_320 {dimension_numbers = #tpu.dot_dimension_numbers<[1], [0], [0], [1], [0, 0, 1, 1], [], []>} : vector<32x32xbf16>, vector<32x64xbf16>, vector<32x64xf32> -> vector<32x64xf32>
    %c0_321 = arith.constant 0 : index
    %c0_322 = arith.constant 0 : index
    %692 = vector.load %arg6[%c0_321, %c0_322] : memref<2x64xf32, #tpu.memory_space<vmem>>, vector<1x64xf32>
    %693 = vector.broadcast %692 : vector<1x64xf32> to vector<32x64xf32>
    %694 = arith.addf %691, %693 : vector<32x64xf32>
    %695 = arith.mulf %694, %694 : vector<32x64xf32>
    %696 = arith.mulf %694, %695 : vector<32x64xf32>
    %cst_323 = arith.constant 4.471500e-02 : f32
    %697 = vector.broadcast %cst_323 : f32 to vector<32x64xf32>
    %698 = arith.mulf %697, %696 : vector<32x64xf32>
    %699 = arith.addf %694, %698 : vector<32x64xf32>
    %cst_324 = arith.constant 0.797884583 : f32
    %700 = vector.broadcast %cst_324 : f32 to vector<32x64xf32>
    %701 = arith.mulf %700, %699 : vector<32x64xf32>
    %702 = math.tanh %701 : vector<32x64xf32>
    %cst_325 = arith.constant 1.000000e+00 : f32
    %703 = vector.broadcast %cst_325 : f32 to vector<32x64xf32>
    %704 = arith.addf %703, %702 : vector<32x64xf32>
    %cst_326 = arith.constant 5.000000e-01 : f32
    %705 = vector.broadcast %cst_326 : f32 to vector<32x64xf32>
    %706 = arith.mulf %705, %704 : vector<32x64xf32>
    %707 = arith.mulf %694, %706 : vector<32x64xf32>
    %708 = arith.truncf %707 : vector<32x64xf32> to vector<32x64xbf16>
    %c2_327 = arith.constant 2 : index
    %c0_328 = arith.constant 0 : index
    %c0_329 = arith.constant 0 : index
    %709 = vector.load %arg8[%c2_327, %c0_328, %c0_329] : memref<4x32x64xbf16, #tpu.memory_space<vmem>>, vector<1x32x64xbf16>
    %710 = vector.shape_cast %709 : vector<1x32x64xbf16> to vector<32x64xbf16>
    %cst_330 = arith.constant dense<0.000000e+00> : vector<32x32xf32>
    %711 = tpu.matmul %708, %710, %cst_330 {dimension_numbers = #tpu.dot_dimension_numbers<[1], [1], [0], [0], [0, 0, 1, 0], [], []>} : vector<32x64xbf16>, vector<32x64xbf16>, vector<32x32xf32> -> vector<32x32xf32>
    %712 = arith.addf %663, %711 : vector<32x32xf32>
    %c8_331 = arith.constant 8 : index
    %c0_332 = arith.constant 0 : index
    %713 = vector.load %arg5[%c8_331, %c0_332] : memref<20x32xf32, #tpu.memory_space<vmem>>, vector<1x32xf32>
    %714 = vector.broadcast %713 : vector<1x32xf32> to vector<32x32xf32>
    %715 = arith.addf %712, %714 : vector<32x32xf32>
    %c9_333 = arith.constant 9 : index
    %c0_334 = arith.constant 0 : index
    %716 = vector.load %arg5[%c9_333, %c0_334] : memref<20x32xf32, #tpu.memory_space<vmem>>, vector<1x32xf32>
    %c10_335 = arith.constant 10 : index
    %c0_336 = arith.constant 0 : index
    %717 = vector.load %arg5[%c10_335, %c0_336] : memref<20x32xf32, #tpu.memory_space<vmem>>, vector<1x32xf32>
    %cst_337 = arith.constant dense<0.000000e+00> : vector<32xf32>
    %718 = vector.multi_reduction <add>, %715, %cst_337 [1] : vector<32x32xf32> to vector<32xf32>
    %719 = vector.shape_cast %718 : vector<32xf32> to vector<32x1xf32>
    %cst_338 = arith.constant 3.200000e+01 : f32
    %720 = vector.broadcast %cst_338 : f32 to vector<32x1xf32>
    %721 = arith.divf %719, %720 : vector<32x1xf32>
    %722 = arith.mulf %715, %715 : vector<32x32xf32>
    %cst_339 = arith.constant dense<0.000000e+00> : vector<32xf32>
    %723 = vector.multi_reduction <add>, %722, %cst_339 [1] : vector<32x32xf32> to vector<32xf32>
    %724 = vector.shape_cast %723 : vector<32xf32> to vector<32x1xf32>
    %cst_340 = arith.constant 3.200000e+01 : f32
    %725 = vector.broadcast %cst_340 : f32 to vector<32x1xf32>
    %726 = arith.divf %724, %725 : vector<32x1xf32>
    %727 = arith.mulf %721, %721 : vector<32x1xf32>
    %728 = arith.subf %726, %727 : vector<32x1xf32>
    %729 = vector.broadcast %721 : vector<32x1xf32> to vector<32x32xf32>
    %730 = arith.subf %715, %729 : vector<32x32xf32>
    %cst_341 = arith.constant 9.99999974E-6 : f32
    %731 = vector.broadcast %cst_341 : f32 to vector<32x1xf32>
    %732 = arith.addf %728, %731 : vector<32x1xf32>
    %733 = math.rsqrt %732 : vector<32x1xf32>
    %734 = vector.broadcast %733 : vector<32x1xf32> to vector<32x32xf32>
    %735 = arith.mulf %730, %734 : vector<32x32xf32>
    %736 = vector.broadcast %716 : vector<1x32xf32> to vector<32x32xf32>
    %737 = arith.mulf %735, %736 : vector<32x32xf32>
    %738 = vector.broadcast %717 : vector<1x32xf32> to vector<32x32xf32>
    %739 = arith.addf %737, %738 : vector<32x32xf32>
    %740 = arith.truncf %739 : vector<32x32xf32> to vector<32x32xbf16>
    %c1_342 = arith.constant 1 : index
    %c0_343 = arith.constant 0 : index
    %c0_344 = arith.constant 0 : index
    %741 = vector.load %arg7[%c1_342, %c0_343, %c0_344] : memref<8x32x32xbf16, #tpu.memory_space<vmem>>, vector<1x32x32xbf16>
    %742 = vector.shape_cast %741 : vector<1x32x32xbf16> to vector<32x32xbf16>
    %cst_345 = arith.constant dense<0.000000e+00> : vector<32x32xf32>
    %743 = tpu.matmul %740, %742, %cst_345 {dimension_numbers = #tpu.dot_dimension_numbers<[1], [0], [0], [1], [0, 0, 1, 1], [], []>} : vector<32x32xbf16>, vector<32x32xbf16>, vector<32x32xf32> -> vector<32x32xf32>
    %c11_346 = arith.constant 11 : index
    %c0_347 = arith.constant 0 : index
    %744 = vector.load %arg5[%c11_346, %c0_347] : memref<20x32xf32, #tpu.memory_space<vmem>>, vector<1x32xf32>
    %745 = vector.broadcast %744 : vector<1x32xf32> to vector<32x32xf32>
    %746 = arith.addf %743, %745 : vector<32x32xf32>
    %c3_348 = arith.constant 3 : index
    %c0_349 = arith.constant 0 : index
    %c0_350 = arith.constant 0 : index
    %747 = vector.load %arg7[%c3_348, %c0_349, %c0_350] : memref<8x32x32xbf16, #tpu.memory_space<vmem>>, vector<1x32x32xbf16>
    %748 = vector.shape_cast %747 : vector<1x32x32xbf16> to vector<32x32xbf16>
    %cst_351 = arith.constant dense<0.000000e+00> : vector<32x32xf32>
    %749 = tpu.matmul %740, %748, %cst_351 {dimension_numbers = #tpu.dot_dimension_numbers<[1], [0], [0], [1], [0, 0, 1, 1], [], []>} : vector<32x32xbf16>, vector<32x32xbf16>, vector<32x32xf32> -> vector<32x32xf32>
    %c12_352 = arith.constant 12 : index
    %c0_353 = arith.constant 0 : index
    %750 = vector.load %arg5[%c12_352, %c0_353] : memref<20x32xf32, #tpu.memory_space<vmem>>, vector<1x32xf32>
    %751 = vector.broadcast %750 : vector<1x32xf32> to vector<32x32xf32>
    %752 = arith.addf %749, %751 : vector<32x32xf32>
    %c5_354 = arith.constant 5 : index
    %c0_355 = arith.constant 0 : index
    %c0_356 = arith.constant 0 : index
    %753 = vector.load %arg7[%c5_354, %c0_355, %c0_356] : memref<8x32x32xbf16, #tpu.memory_space<vmem>>, vector<1x32x32xbf16>
    %754 = vector.shape_cast %753 : vector<1x32x32xbf16> to vector<32x32xbf16>
    %cst_357 = arith.constant dense<0.000000e+00> : vector<32x32xf32>
    %755 = tpu.matmul %740, %754, %cst_357 {dimension_numbers = #tpu.dot_dimension_numbers<[1], [0], [0], [1], [0, 0, 1, 1], [], []>} : vector<32x32xbf16>, vector<32x32xbf16>, vector<32x32xf32> -> vector<32x32xf32>
    %c13_358 = arith.constant 13 : index
    %c0_359 = arith.constant 0 : index
    %756 = vector.load %arg5[%c13_358, %c0_359] : memref<20x32xf32, #tpu.memory_space<vmem>>, vector<1x32xf32>
    %757 = vector.broadcast %756 : vector<1x32xf32> to vector<32x32xf32>
    %758 = arith.addf %755, %757 : vector<32x32xf32>
    %759 = arith.truncf %746 : vector<32x32xf32> to vector<32x32xbf16>
    %760 = arith.truncf %752 : vector<32x32xf32> to vector<32x32xbf16>
    %cst_360 = arith.constant dense<0.000000e+00> : vector<32x32xf32>
    %761 = tpu.matmul %759, %760, %cst_360 {dimension_numbers = #tpu.dot_dimension_numbers<[1], [1], [0], [0], [0, 0, 1, 0], [], []>} : vector<32x32xbf16>, vector<32x32xbf16>, vector<32x32xf32> -> vector<32x32xf32>
    %762 = arith.addf %761, %22 : vector<32x32xf32>
    %cst_361 = arith.constant dense<0xFF800000> : vector<32xf32>
    %763 = vector.multi_reduction <maximumf>, %762, %cst_361 [1] : vector<32x32xf32> to vector<32xf32>
    %764 = vector.shape_cast %763 : vector<32xf32> to vector<32x1xf32>
    %765 = vector.broadcast %764 : vector<32x1xf32> to vector<32x32xf32>
    %766 = arith.subf %762, %765 : vector<32x32xf32>
    %767 = math.exp %766 : vector<32x32xf32>
    %cst_362 = arith.constant dense<0.000000e+00> : vector<32xf32>
    %768 = vector.multi_reduction <add>, %767, %cst_362 [1] : vector<32x32xf32> to vector<32xf32>
    %769 = vector.shape_cast %768 : vector<32xf32> to vector<32x1xf32>
    %770 = tpu.reciprocal %769 {approx = true} : vector<32x1xf32> -> vector<32x1xf32>
    %771 = vector.broadcast %770 : vector<32x1xf32> to vector<32x32xf32>
    %772 = arith.mulf %767, %771 : vector<32x32xf32>
    %773 = arith.truncf %772 : vector<32x32xf32> to vector<32x32xbf16>
    %774 = arith.truncf %758 : vector<32x32xf32> to vector<32x32xbf16>
    %cst_363 = arith.constant dense<0.000000e+00> : vector<32x32xf32>
    %775 = tpu.matmul %773, %774, %cst_363 {dimension_numbers = #tpu.dot_dimension_numbers<[1], [0], [0], [1], [0, 0, 1, 1], [], []>} : vector<32x32xbf16>, vector<32x32xbf16>, vector<32x32xf32> -> vector<32x32xf32>
    %776 = arith.truncf %775 : vector<32x32xf32> to vector<32x32xbf16>
    %c7_364 = arith.constant 7 : index
    %c0_365 = arith.constant 0 : index
    %c0_366 = arith.constant 0 : index
    %777 = vector.load %arg7[%c7_364, %c0_365, %c0_366] : memref<8x32x32xbf16, #tpu.memory_space<vmem>>, vector<1x32x32xbf16>
    %778 = vector.shape_cast %777 : vector<1x32x32xbf16> to vector<32x32xbf16>
    %cst_367 = arith.constant dense<0.000000e+00> : vector<32x32xf32>
    %779 = tpu.matmul %776, %778, %cst_367 {dimension_numbers = #tpu.dot_dimension_numbers<[1], [0], [0], [1], [0, 0, 1, 1], [], []>} : vector<32x32xbf16>, vector<32x32xbf16>, vector<32x32xf32> -> vector<32x32xf32>
    %780 = arith.addf %715, %779 : vector<32x32xf32>
    %c14_368 = arith.constant 14 : index
    %c0_369 = arith.constant 0 : index
    %781 = vector.load %arg5[%c14_368, %c0_369] : memref<20x32xf32, #tpu.memory_space<vmem>>, vector<1x32xf32>
    %782 = vector.broadcast %781 : vector<1x32xf32> to vector<32x32xf32>
    %783 = arith.addf %780, %782 : vector<32x32xf32>
    %c15_370 = arith.constant 15 : index
    %c0_371 = arith.constant 0 : index
    %784 = vector.load %arg5[%c15_370, %c0_371] : memref<20x32xf32, #tpu.memory_space<vmem>>, vector<1x32xf32>
    %c16_372 = arith.constant 16 : index
    %c0_373 = arith.constant 0 : index
    %785 = vector.load %arg5[%c16_372, %c0_373] : memref<20x32xf32, #tpu.memory_space<vmem>>, vector<1x32xf32>
    %cst_374 = arith.constant dense<0.000000e+00> : vector<32xf32>
    %786 = vector.multi_reduction <add>, %783, %cst_374 [1] : vector<32x32xf32> to vector<32xf32>
    %787 = vector.shape_cast %786 : vector<32xf32> to vector<32x1xf32>
    %cst_375 = arith.constant 3.200000e+01 : f32
    %788 = vector.broadcast %cst_375 : f32 to vector<32x1xf32>
    %789 = arith.divf %787, %788 : vector<32x1xf32>
    %790 = arith.mulf %783, %783 : vector<32x32xf32>
    %cst_376 = arith.constant dense<0.000000e+00> : vector<32xf32>
    %791 = vector.multi_reduction <add>, %790, %cst_376 [1] : vector<32x32xf32> to vector<32xf32>
    %792 = vector.shape_cast %791 : vector<32xf32> to vector<32x1xf32>
    %cst_377 = arith.constant 3.200000e+01 : f32
    %793 = vector.broadcast %cst_377 : f32 to vector<32x1xf32>
    %794 = arith.divf %792, %793 : vector<32x1xf32>
    %795 = arith.mulf %789, %789 : vector<32x1xf32>
    %796 = arith.subf %794, %795 : vector<32x1xf32>
    %797 = vector.broadcast %789 : vector<32x1xf32> to vector<32x32xf32>
    %798 = arith.subf %783, %797 : vector<32x32xf32>
    %cst_378 = arith.constant 9.99999974E-6 : f32
    %799 = vector.broadcast %cst_378 : f32 to vector<32x1xf32>
    %800 = arith.addf %796, %799 : vector<32x1xf32>
    %801 = math.rsqrt %800 : vector<32x1xf32>
    %802 = vector.broadcast %801 : vector<32x1xf32> to vector<32x32xf32>
    %803 = arith.mulf %798, %802 : vector<32x32xf32>
    %804 = vector.broadcast %784 : vector<1x32xf32> to vector<32x32xf32>
    %805 = arith.mulf %803, %804 : vector<32x32xf32>
    %806 = vector.broadcast %785 : vector<1x32xf32> to vector<32x32xf32>
    %807 = arith.addf %805, %806 : vector<32x32xf32>
    %808 = arith.truncf %807 : vector<32x32xf32> to vector<32x32xbf16>
    %c1_379 = arith.constant 1 : index
    %c0_380 = arith.constant 0 : index
    %c0_381 = arith.constant 0 : index
    %809 = vector.load %arg8[%c1_379, %c0_380, %c0_381] : memref<4x32x64xbf16, #tpu.memory_space<vmem>>, vector<1x32x64xbf16>
    %810 = vector.shape_cast %809 : vector<1x32x64xbf16> to vector<32x64xbf16>
    %cst_382 = arith.constant dense<0.000000e+00> : vector<32x64xf32>
    %811 = tpu.matmul %808, %810, %cst_382 {dimension_numbers = #tpu.dot_dimension_numbers<[1], [0], [0], [1], [0, 0, 1, 1], [], []>} : vector<32x32xbf16>, vector<32x64xbf16>, vector<32x64xf32> -> vector<32x64xf32>
    %c1_383 = arith.constant 1 : index
    %c0_384 = arith.constant 0 : index
    %812 = vector.load %arg6[%c1_383, %c0_384] : memref<2x64xf32, #tpu.memory_space<vmem>>, vector<1x64xf32>
    %813 = vector.broadcast %812 : vector<1x64xf32> to vector<32x64xf32>
    %814 = arith.addf %811, %813 : vector<32x64xf32>
    %815 = arith.mulf %814, %814 : vector<32x64xf32>
    %816 = arith.mulf %814, %815 : vector<32x64xf32>
    %cst_385 = arith.constant 4.471500e-02 : f32
    %817 = vector.broadcast %cst_385 : f32 to vector<32x64xf32>
    %818 = arith.mulf %817, %816 : vector<32x64xf32>
    %819 = arith.addf %814, %818 : vector<32x64xf32>
    %cst_386 = arith.constant 0.797884583 : f32
    %820 = vector.broadcast %cst_386 : f32 to vector<32x64xf32>
    %821 = arith.mulf %820, %819 : vector<32x64xf32>
    %822 = math.tanh %821 : vector<32x64xf32>
    %cst_387 = arith.constant 1.000000e+00 : f32
    %823 = vector.broadcast %cst_387 : f32 to vector<32x64xf32>
    %824 = arith.addf %823, %822 : vector<32x64xf32>
    %cst_388 = arith.constant 5.000000e-01 : f32
    %825 = vector.broadcast %cst_388 : f32 to vector<32x64xf32>
    %826 = arith.mulf %825, %824 : vector<32x64xf32>
    %827 = arith.mulf %814, %826 : vector<32x64xf32>
    %828 = arith.truncf %827 : vector<32x64xf32> to vector<32x64xbf16>
    %c3_389 = arith.constant 3 : index
    %c0_390 = arith.constant 0 : index
    %c0_391 = arith.constant 0 : index
    %829 = vector.load %arg8[%c3_389, %c0_390, %c0_391] : memref<4x32x64xbf16, #tpu.memory_space<vmem>>, vector<1x32x64xbf16>
    %830 = vector.shape_cast %829 : vector<1x32x64xbf16> to vector<32x64xbf16>
    %cst_392 = arith.constant dense<0.000000e+00> : vector<32x32xf32>
    %831 = tpu.matmul %828, %830, %cst_392 {dimension_numbers = #tpu.dot_dimension_numbers<[1], [1], [0], [0], [0, 0, 1, 0], [], []>} : vector<32x64xbf16>, vector<32x64xbf16>, vector<32x32xf32> -> vector<32x32xf32>
    %832 = arith.addf %783, %831 : vector<32x32xf32>
    %c17_393 = arith.constant 17 : index
    %c0_394 = arith.constant 0 : index
    %833 = vector.load %arg5[%c17_393, %c0_394] : memref<20x32xf32, #tpu.memory_space<vmem>>, vector<1x32xf32>
    %834 = vector.broadcast %833 : vector<1x32xf32> to vector<32x32xf32>
    %835 = arith.addf %832, %834 : vector<32x32xf32>
    %c18_395 = arith.constant 18 : index
    %c0_396 = arith.constant 0 : index
    %836 = vector.load %arg5[%c18_395, %c0_396] : memref<20x32xf32, #tpu.memory_space<vmem>>, vector<1x32xf32>
    %c19_397 = arith.constant 19 : index
    %c0_398 = arith.constant 0 : index
    %837 = vector.load %arg5[%c19_397, %c0_398] : memref<20x32xf32, #tpu.memory_space<vmem>>, vector<1x32xf32>
    %cst_399 = arith.constant dense<0.000000e+00> : vector<32xf32>
    %838 = vector.multi_reduction <add>, %835, %cst_399 [1] : vector<32x32xf32> to vector<32xf32>
    %839 = vector.shape_cast %838 : vector<32xf32> to vector<32x1xf32>
    %cst_400 = arith.constant 3.200000e+01 : f32
    %840 = vector.broadcast %cst_400 : f32 to vector<32x1xf32>
    %841 = arith.divf %839, %840 : vector<32x1xf32>
    %842 = arith.mulf %835, %835 : vector<32x32xf32>
    %cst_401 = arith.constant dense<0.000000e+00> : vector<32xf32>
    %843 = vector.multi_reduction <add>, %842, %cst_401 [1] : vector<32x32xf32> to vector<32xf32>
    %844 = vector.shape_cast %843 : vector<32xf32> to vector<32x1xf32>
    %cst_402 = arith.constant 3.200000e+01 : f32
    %845 = vector.broadcast %cst_402 : f32 to vector<32x1xf32>
    %846 = arith.divf %844, %845 : vector<32x1xf32>
    %847 = arith.mulf %841, %841 : vector<32x1xf32>
    %848 = arith.subf %846, %847 : vector<32x1xf32>
    %849 = vector.broadcast %841 : vector<32x1xf32> to vector<32x32xf32>
    %850 = arith.subf %835, %849 : vector<32x32xf32>
    %cst_403 = arith.constant 9.99999974E-6 : f32
    %851 = vector.broadcast %cst_403 : f32 to vector<32x1xf32>
    %852 = arith.addf %848, %851 : vector<32x1xf32>
    %853 = math.rsqrt %852 : vector<32x1xf32>
    %854 = vector.broadcast %853 : vector<32x1xf32> to vector<32x32xf32>
    %855 = arith.mulf %850, %854 : vector<32x32xf32>
    %856 = vector.broadcast %836 : vector<1x32xf32> to vector<32x32xf32>
    %857 = arith.mulf %855, %856 : vector<32x32xf32>
    %858 = vector.broadcast %837 : vector<1x32xf32> to vector<32x32xf32>
    %859 = arith.addf %857, %858 : vector<32x32xf32>
    %860 = arith.truncf %859 : vector<32x32xf32> to vector<32x32xbf16>
    %c0_404 = arith.constant 0 : index
    %c0_405 = arith.constant 0 : index
    %861 = vector.load %arg9[%c0_404, %c0_405] : memref<32x128xbf16, #tpu.memory_space<vmem>>, vector<32x128xbf16>
    %cst_406 = arith.constant dense<0.000000e+00> : vector<32x128xf32>
    %862 = tpu.matmul %860, %861, %cst_406 {dimension_numbers = #tpu.dot_dimension_numbers<[1], [0], [0], [1], [0, 0, 1, 1], [], []>} : vector<32x32xbf16>, vector<32x128xbf16>, vector<32x128xf32> -> vector<32x128xf32>
    %c0_407 = arith.constant 0 : index
    %c0_408 = arith.constant 0 : index
    %863 = vector.load %arg12[%c0_407, %c0_408] : memref<32x128xf32, #tpu.memory_space<vmem>>, vector<32x128xf32>
    tpu.vector_store %arg12[%c0_407, %c0_408], %862 {strides = array<i32>} : memref<32x128xf32, #tpu.memory_space<vmem>>, vector<32x128xf32>,
    %864 = tpu.iota {dimensions = array<i32: 1>} : vector<32x128xi32>
    %c64_i32 = arith.constant 64 : i32
    %865 = vector.broadcast %c64_i32 : i32 to vector<32x128xi32>
    %866 = arith.cmpi slt, %864, %865 : vector<32x128xi32>
    %cst_409 = arith.constant 0.000000e+00 : f32
    %cst_410 = arith.constant -1.000000e+09 : f32
    %867 = vector.broadcast %cst_409 : f32 to vector<32x128xf32>
    %868 = vector.broadcast %cst_410 : f32 to vector<32x128xf32>
    %869 = arith.select %866, %867, %868 : vector<32x128xi1>, vector<32x128xf32>
    %870 = arith.addf %862, %869 : vector<32x128xf32>
    %c0_411 = arith.constant 0 : index
    %c0_412 = arith.constant 0 : index
    %871 = vector.load %arg4[%c0_411, %c0_412] : memref<32x1xi32, #tpu.memory_space<vmem>>, vector<32x1xi32>
    %cst_413 = arith.constant dense<0xFF800000> : vector<32xf32>
    %872 = vector.multi_reduction <maximumf>, %870, %cst_413 [1] : vector<32x128xf32> to vector<32xf32>
    %873 = vector.shape_cast %872 : vector<32xf32> to vector<32x1xf32>
    %874 = vector.broadcast %873 : vector<32x1xf32> to vector<32x128xf32>
    %875 = arith.subf %870, %874 : vector<32x128xf32>
    %876 = math.exp %875 : vector<32x128xf32>
    %cst_414 = arith.constant dense<0.000000e+00> : vector<32xf32>
    %877 = vector.multi_reduction <add>, %876, %cst_414 [1] : vector<32x128xf32> to vector<32xf32>
    %878 = vector.shape_cast %877 : vector<32xf32> to vector<32x1xf32>
    %879 = math.log %878 : vector<32x1xf32>
    %880 = arith.addf %873, %879 : vector<32x1xf32>
    %881 = vector.broadcast %871 : vector<32x1xi32> to vector<32x128xi32>
    %882 = arith.cmpi eq, %864, %881 : vector<32x128xi32>
    %883 = arith.extui %882 : vector<32x128xi1> to vector<32x128xi32>
    %884 = arith.sitofp %883 : vector<32x128xi32> to vector<32x128xf32>
    %885 = arith.mulf %870, %884 : vector<32x128xf32>
    %cst_415 = arith.constant dense<0.000000e+00> : vector<32xf32>
    %886 = vector.multi_reduction <add>, %885, %cst_415 [1] : vector<32x128xf32> to vector<32xf32>
    %887 = vector.shape_cast %886 : vector<32xf32> to vector<32x1xf32>
    %c-100_i32 = arith.constant -100 : i32
    %888 = vector.broadcast %c-100_i32 : i32 to vector<32x1xi32>
    %889 = arith.cmpi ne, %871, %888 : vector<32x1xi32>
    %890 = arith.extui %889 : vector<32x1xi1> to vector<32x1xi32>
    %891 = arith.sitofp %890 : vector<32x1xi32> to vector<32x1xf32>
    %892 = arith.subf %880, %887 : vector<32x1xf32>
    %893 = arith.mulf %892, %891 : vector<32x1xf32>
    %cst_416 = arith.constant dense<0.000000e+00> : vector<1xf32>
    %894 = vector.multi_reduction <add>, %893, %cst_416 [0] : vector<32x1xf32> to vector<1xf32>
    %895 = vector.shape_cast %894 : vector<1xf32> to vector<1x1xf32>
    %cst_417 = arith.constant dense<0.000000e+00> : vector<1xf32>
    %896 = vector.multi_reduction <add>, %891, %cst_417 [0] : vector<32x1xf32> to vector<1xf32>
    %897 = vector.shape_cast %896 : vector<1xf32> to vector<1x1xf32>
    %cst_418 = arith.constant 1.000000e+00 : f32
    %898 = vector.broadcast %cst_418 : f32 to vector<1x1xf32>
    %899 = arith.maximumf %897, %898 : vector<1x1xf32>
    %900 = arith.divf %895, %899 : vector<1x1xf32>
    %c0_419 = arith.constant 0 : index
    %c0_420 = arith.constant 0 : index
    %901 = vector.load %arg10[%c0_419, %c0_420] : memref<1x1xf32, #tpu.memory_space<vmem>>, vector<1x1xf32>
    tpu.vector_store %arg10[%c0_419, %c0_420], %900 {strides = array<i32>} : memref<1x1xf32, #tpu.memory_space<vmem>>, vector<1x1xf32>,
    return
  }
  func.func @transform_0(%arg0: i32, %arg1: memref<4xi32, #tpu.memory_space<smem>>) -> (i32, i32, i32) {
    %c0_i32 = arith.constant 0 : i32
    %c0_i32_0 = arith.constant 0 : i32
    %c0_i32_1 = arith.constant 0 : i32
    %c0_i32_2 = arith.constant 0 : i32
    return %c0_i32, %c0_i32_0, %c0_i32_1 : i32, i32, i32
  }
  func.func @transform_1(%arg0: i32, %arg1: memref<4xi32, #tpu.memory_space<smem>>) -> (i32, i32) {
    %c0_i32 = arith.constant 0 : i32
    %c0_i32_0 = arith.constant 0 : i32
    %c0_i32_1 = arith.constant 0 : i32
    return %c0_i32, %c0_i32_0 : i32, i32
  }
  func.func @transform_2(%arg0: i32, %arg1: memref<4xi32, #tpu.memory_space<smem>>) -> (i32, i32) {
    %c0_i32 = arith.constant 0 : i32
    %c0_i32_0 = arith.constant 0 : i32
    %c0_i32_1 = arith.constant 0 : i32
    return %c0_i32, %c0_i32_0 : i32, i32
  }
  func.func @transform_3(%arg0: i32, %arg1: memref<4xi32, #tpu.memory_space<smem>>) -> (i32, i32) {
    %c0_i32 = arith.constant 0 : i32
    %c0_i32_0 = arith.constant 0 : i32
    %c0_i32_1 = arith.constant 0 : i32
    return %c0_i32, %c0_i32_0 : i32, i32
  }
  func.func @transform_4(%arg0: i32, %arg1: memref<4xi32, #tpu.memory_space<smem>>) -> (i32, i32) {
    %c0_i32 = arith.constant 0 : i32
    %c0_i32_0 = arith.constant 0 : i32
    %c0_i32_1 = arith.constant 0 : i32
    return %c0_i32, %c0_i32_0 : i32, i32
  }
  func.func @transform_5(%arg0: i32, %arg1: memref<4xi32, #tpu.memory_space<smem>>) -> (i32, i32, i32) {
    %c0_i32 = arith.constant 0 : i32
    %c0_i32_0 = arith.constant 0 : i32
    %c0_i32_1 = arith.constant 0 : i32
    %c0_i32_2 = arith.constant 0 : i32
    return %c0_i32, %c0_i32_0, %c0_i32_1 : i32, i32, i32
  }
  func.func @transform_6(%arg0: i32, %arg1: memref<4xi32, #tpu.memory_space<smem>>) -> (i32, i32, i32) {
    %c0_i32 = arith.constant 0 : i32
    %c0_i32_0 = arith.constant 0 : i32
    %c0_i32_1 = arith.constant 0 : i32
    %c0_i32_2 = arith.constant 0 : i32
    return %c0_i32, %c0_i32_0, %c0_i32_1 : i32, i32, i32
  }
  func.func @transform_7(%arg0: i32, %arg1: memref<4xi32, #tpu.memory_space<smem>>) -> (i32, i32) {
    %c0_i32 = arith.constant 0 : i32
    %c0_i32_0 = arith.constant 0 : i32
    %c0_i32_1 = arith.constant 0 : i32
    return %c0_i32, %c0_i32_0 : i32, i32
  }
  func.func @transform_8(%arg0: i32, %arg1: memref<4xi32, #tpu.memory_space<smem>>) -> (i32, i32) {
    %c0_i32 = arith.constant 0 : i32
    %c0_i32_0 = arith.constant 0 : i32
    %c0_i32_1 = arith.constant 0 : i32
    return %c0_i32, %c0_i32_0 : i32, i32
  }
  func.func @transform_9(%arg0: i32, %arg1: memref<4xi32, #tpu.memory_space<smem>>) -> (i32, i32) {
    %c0_i32 = arith.constant 0 : i32
    %c0_i32_0 = arith.constant 0 : i32
    %c0_i32_1 = arith.constant 0 : i32
    return %c0_i32, %c0_i32_0 : i32, i32
  }
  func.func @transform_10(%arg0: i32, %arg1: memref<4xi32, #tpu.memory_space<smem>>) -> (i32, i32) {
    %c0_i32 = arith.constant 0 : i32
    %c0_i32_0 = arith.constant 0 : i32
    %c0_i32_1 = arith.constant 0 : i32
    return %c0_i32, %c0_i32_0 : i32, i32
  }
}

</mosaic_0001>

<bundles_post_ra>
// kernel: coconut_fused.1
= control target key start
LH: loop header
LB: loop body
LE: loop exit
PB: predicated region body
PF: predicated region fallthrough
CT: control target
= control target key end

     0   :  { %s8496_s0 = inlined_call_operand.vmem [shape: s32[4], index: 0, kind: input, shape index: {}]   ;;  %s8497_s1 = inlined_call_operand.vmem [shape: f32[2,32,32], index: 1, kind: input, shape index: {}]   ;;  %s8498_s2 = inlined_call_operand.vmem [shape: f32[1,32], index: 2, kind: input, shape index: {}]   ;;  %s8499_s3 = inlined_call_operand.vmem [shape: s32[32,1], index: 3, kind: input, shape index: {}]   ;;  %s8500_s4 = inlined_call_operand.vmem [shape: f32[20,32], index: 4, kind: input, shape index: {}]   ;;  %s8501_s5 = inlined_call_operand.vmem [shape: f32[2,64], index: 5, kind: input, shape index: {}]   ;;  %s8502_s6 = inlined_call_operand.vmem [shape: bf16[8,32,32], index: 6, kind: input, shape index: {}]   ;;  %s8503_s7 = inlined_call_operand.vmem [shape: bf16[4,32,64], index: 7, kind: input, shape index: {}]   ;;  %s8504_s8 = inlined_call_operand.vmem [shape: bf16[32,128], index: 8, kind: input, shape index: {}]   ;;  %s8505_s9 = inlined_call_operand.hbm [shape: f32[1,1], index: 9, kind: output, shape index: {0}]   ;;  %s8506_s10 = inlined_call_operand.hbm [shape: f32[32,32], index: 10, kind: output, shape index: {1}]   ;;  %s8507_s11 = inlined_call_operand.hbm [shape: f32[32,128], index: 11, kind: output, shape index: {2}]  }
   0x1   :  { %s17_s19 = sshll.u32 %s8496_s0, 4  ;;  %s18_s19 = int_to_ptr.vmem [resolvable:$true] %s17_s19 }
   0x2   :  { %s6708_s20 = scalar_lea.vmem %s18_s19, 16  ;;  %p6713_p1 = scmp.lt.s32.totalorder %s18_s19, %s18_s19 }
   0x3   :  { %p6709_p0 = scmp.ne.s32.totalorder %s18_s19, %s6708_s20  ;;  %p6714_p2 = scmp.lt.s32.totalorder %s6708_s20, %s6708_s20 }
   0x5   :  { %p6715_p3 = por %p6714_p2, %p6713_p1 }
   0x7   :  { %p6716_p4 = pnand %p6715_p3, %p6709_p0 }
   0x9   :  { %6719 = shalt.err (!%p6716_p4)  }
   0xa   :  { %s6792_s21 = smov [#allocation3]  }
   0xb   :  { %20 = dma.vmem_to_smem %s18_s19, 16, %s6792_s21, [#allocation2] }
   0xc   :  { %6786 = dma.done.wait [#allocation2], 16 }
   0xd   :  { %6787 = vsyncadd [#allocation2], 4294967280 }
   0xe   :  { %22 = sfence }
   0xf   :  { %23 = vsyncpa [#allocation5], 0  ;;  %v5410_v0 = vld [vmem:[%s8497_s1 + $0x30] sm:$0xff]  ;;  %vm8508_vm0 = vcmask 261120   ;;  %v5408_v2 = vld [vmem:[%s8497_s1 + $0x20] sm:$0xff] }
  0x10   :  { %v94_v1 = vld [vmem:[%s8497_s1 + $0x10] sm:$0xff]  ;;  %v92_v4 = vld [vmem:[%s8497_s1] sm:$0xff]  ;;  %v5411_v5 = vld [vmem:[%s8497_s1 + $0x38] sm:$0xff] }
  0x11   :  { %v6873_v3 = vadd.f32 %v5410_v0, %v94_v1  ;;  %v95_v6 = vld [vmem:[%s8497_s1 + $0x18] sm:$0xff]  ;;  %v6884_v7 = vadd.f32 %v5408_v2, %v92_v4  ;;  %v5409_v9 = vld [vmem:[%s8497_s1 + $0x28] sm:$0xff]  ;;  %v6318_v24 = vld [vmem:[%s8502_s6] sm:$0xff]  }
  0x12   :  { %v6886_v8 = vadd.f32 %v5411_v5, %v95_v6  ;;  %v93_v10 = vld [vmem:[%s8497_s1 + $0x8] sm:$0xff]  ;;  %v6319_v25 = vld [vmem:[%s8502_s6 + $0x20] sm:$0xff]   ;;  %5891 = vmatprep.subr.bf16.mxu0 %v6318_v24 }
  0x13   :  { %v109_v11 = vsel %vm8508_vm0, %v6873_v3, 0.0  ;;  %v6896_v12 = vadd.f32 %v5409_v9, %v93_v10  ;;  %v122_v13 = vmul.f32 %v6873_v3, %v6873_v3  ;;  %v103_v14 = vsel %vm8508_vm0, %v6884_v7, 0.0  ;;  %v6320_v26 = vld [vmem:[%s8502_s6 + $0x8] sm:$0xff]   ;;  %5899 = vmatprep.subr.bf16.mxu1 %v6319_v25 }
  0x14   :  { %110 = vadd.xlane.f32.xlu1 %v109_v11  ;;  %v120_v15 = vmul.f32 %v6884_v7, %v6884_v7  ;;  %v123_v16 = vmul.f32 %v6886_v8, %v6886_v8  ;;  %104 = vadd.xlane.f32.xlu0 %v103_v14  ;;  %v112_v17 = vsel %vm8508_vm0, %v6886_v8, 0.0 }
  0x15   :  { %v106_v18 = vsel %vm8508_vm0, %v6896_v12, 0.0  ;;  %v121_v19 = vmul.f32 %v6896_v12, %v6896_v12  ;;  %v130_v21 = vsel %vm8508_vm0, %v122_v13, 0.0 }
  0x16   :  { %v124_v20 = vsel %vm8508_vm0, %v120_v15, 0.0  ;;  %v133_v23 = vsel %vm8508_vm0, %v123_v16, 0.0 }
  0x17   :  { %v127_v22 = vsel %vm8508_vm0, %v121_v19, 0.0 }
  0x18   :  { %113 = vadd.xlane.f32.xlu1 %v112_v17  ;;  %107 = vadd.xlane.f32.xlu0 %v106_v18 }
  0x1c   :  { %128 = vadd.xlane.f32.xlu1 %v127_v22  ;;  %125 = vadd.xlane.f32.xlu0 %v124_v20 }
  0x20   :  { %134 = vadd.xlane.f32.xlu1 %v133_v23  ;;  %131 = vadd.xlane.f32.xlu0 %v130_v21 }
  0x21   :  { %24 = vsyncpa [#allocation7], 0  ;;  %5892 = vmatpush3.bf16.msra.mxu0 %v6318_v24  ;;  %5900 = vmatpush3.bf16.msra.mxu1 %v6319_v25  ;;  %v6321_v27 = vld [vmem:[%s8502_s6 + $0x28] sm:$0xff]   ;;  %v6931_v28 = vld [vmem:[%s8502_s6 + $0x40] sm:$0xff]   ;;  %v6793_v22 = vmov 0   ;;  %s7341_s14 = sld [smem:[#allocation3]] }
  0x22   :  { %5893 = vmatprep.subr.bf16.mxu0 %v6320_v26  ;;  %5901 = vmatprep.subr.bf16.mxu1 %v6321_v27  ;;  %v5412_v60 = vld [vmem:[%s8500_s4] ss:$0 sm:$0xff]  ;;  %v5413_v63 = vld [vmem:[%s8500_s4 + $0x1] ss:$0 sm:$0xff]  ;;  %v6323_v21 = vld [vmem:[%s8502_s6 + $0x48] sm:$0xff]   ;;  %s7343_s15 = sld [smem:[#allocation3 + $0x2]] }
  0x23   :  { %6317 = vset.pattern.permute.xlu1 %v6793_v22  ;;  %6316 = vset.pattern.permute.xlu0 %v6793_v22  ;;  %v5414_v24 = vld [vmem:[%s8500_s4 + $0x2] ss:$0 sm:$0xff]  ;;  %s7866_s12 = sld [smem:[#allocation3 + $0x1]]  ;;  %s7868_s13 = sld [smem:[#allocation3 + $0x3]] }
  0x25   :  { %5894 = vmatpush3.bf16.msra.mxu0 %v6320_v26  ;;  %5902 = vmatpush3.bf16.msra.mxu1 %v6321_v27  ;;  %v5423_v26 = vld [vmem:[%s8500_s4 + $0x3] ss:$0 sm:$0xff] }
  0x26   :  { %5907 = vmatprep.subr.bf16.mxu0 %v6931_v28 }
  0x27   :  { %p1870_p5 = scmp.ge.s32.totalorder %s7341_s14, 1 }
  0x28   :  { %p1885_p6 = scmp.ge.s32.totalorder %s7343_s15, 1  ;;  %s1879_s18 = sadd.s32 16, %s7343_s15 }
  0x29   :  { %s1871_s16 = scalar_select %p1870_p5, 1, 0 }
  0x2a   :  { %s1886_s17 = scalar_select %p1885_p6, 1, 0 }
  0x2b   :  { %p3359_p7 = scmp.ge.s32.totalorder %s7866_s12, 1  ;;  %p3374_p8 = scmp.ge.s32.totalorder %s7868_s13, 1 }
  0x2d   :  { %s3375_s15 = scalar_select %p3374_p8, 1, 0 }
  0xa1   :  { %v111_v29 = vpop.xlane.xlu1 %110  ;;  %v105_v30 = vpop.xlane.xlu0 %104 }
  0xa2   :  { %v116_v33 = vmul.f32 0.03125, %v105_v30  ;;  %v118_v40 = vmul.f32 0.03125, %v111_v29 }
  0xa4   :  { %v140_v41 = vmul.f32 %v116_v33, %v116_v33  ;;  %v142_v50 = vmul.f32 %v118_v40, %v118_v40  ;;  %v148_v59 = vsub.f32 %v6884_v7, %v116_v33  ;;  %v150_v5 = vsub.f32 %v6873_v3, %v118_v40 }
  0xa5   :  { %v114_v31 = vpop.xlane.xlu1 %113  ;;  %v108_v32 = vpop.xlane.xlu0 %107 }
  0xa6   :  { %v117_v34 = vmul.f32 0.03125, %v108_v32  ;;  %v119_v36 = vmul.f32 0.03125, %v114_v31 }
  0xa8   :  { %v141_v37 = vmul.f32 %v117_v34, %v117_v34  ;;  %v143_v46 = vmul.f32 %v119_v36, %v119_v36  ;;  %v149_v57 = vsub.f32 %v6896_v12, %v117_v34  ;;  %v151_v1 = vsub.f32 %v6886_v8, %v119_v36 }
  0xa9   :  { %v129_v35 = vpop.xlane.xlu1 %128  ;;  %v126_v39 = vpop.xlane.xlu0 %125 }
  0xaa   :  { %v137_v38 = vmul.f32 0.03125, %v129_v35  ;;  %v136_v42 = vmul.f32 0.03125, %v126_v39 }
  0xac   :  { %v145_v43 = vsub.f32 %v137_v38, %v141_v37  ;;  %v144_v44 = vsub.f32 %v136_v42, %v140_v41 }
  0xad   :  { %v135_v45 = vpop.xlane.xlu1 %134  ;;  %v132_v49 = vpop.xlane.xlu0 %131 }
  0xae   :  { %v153_v47 = vadd.f32 1e-05, %v145_v43  ;;  %v139_v48 = vmul.f32 0.03125, %v135_v45  ;;  %v152_v51 = vadd.f32 1e-05, %v144_v44  ;;  %v138_v52 = vmul.f32 0.03125, %v132_v49 }
  0xb0   :  { %6368 = vrsqrt.f32 %v153_v47  ;;  %v147_v53 = vsub.f32 %v139_v48, %v143_v46  ;;  %v146_v54 = vsub.f32 %v138_v52, %v142_v50  ;;  %v5432_v46 = vld [vmem:[%s8500_s4 + $0x4] ss:$0 sm:$0xff] }
  0xb1   :  { %6370 = vrsqrt.f32 %v152_v51 }
  0xb2   :  { %v155_v55 = vadd.f32 1e-05, %v147_v53  ;;  %v154_v56 = vadd.f32 1e-05, %v146_v54 }
  0xb4   :  { %6372 = vrsqrt.f32 %v155_v55 }
  0xb5   :  { %6374 = vrsqrt.f32 %v154_v56 }
  0xba   :  { %v6369_v58 = vpop.eup %6368 }
  0xbb   :  { %v6371_v61 = vpop.eup %6370  ;;  %v161_v62 = vmul.f32 %v6369_v58, %v149_v57  ;;  %v47_v58 = vlaneseq }
  0xbc   :  { %v160_v0 = vmul.f32 %v6371_v61, %v148_v59 }
  0xbd   :  { %v169_v2 = vmul.f32 %v5412_v60, %v161_v62  ;;  %v6969_v59 = vshrl.u32 %v47_v58, 7  ;;  %v6974_v61 = vand.u32 127, %v47_v58 }
  0xbe   :  { %v6373_v4 = vpop.eup %6372  ;;  %v168_v6 = vmul.f32 %v5412_v60, %v160_v0 }
  0xbf   :  { %v6375_v9 = vpop.eup %6374  ;;  %v177_v10 = vadd.f32 %v5413_v63, %v169_v2  ;;  %v163_v11 = vmul.f32 %v6373_v4, %v151_v1  ;;  %v6977_v62 = vadd.s32 16, %v6969_v59  ;;  %v81_v1 = vsub.s32 0, %v6969_v59 }
  0xc0   :  { %v176_v13 = vadd.f32 %v5413_v63, %v168_v6  ;;  %v162_v14 = vmul.f32 %v6375_v9, %v150_v5  ;;  %v63_v4 = vand.u32 15, %v6974_v61  ;;  %v6985_v6 = vadd.s32 8, %v6969_v59 }
  0xc1   :  { %v171_v15 = vmul.f32 %v5412_v60, %v163_v11  ;;  %v56_v2 = vshra.s32 %v6977_v62, 4  ;;  %v66_v5 = vand.u32 15, %v6977_v62  ;;  %v54_v9 = vshra.s32 %v6969_v59, 4 }
  0xc2   :  { %v180_v16 = vpack.c.bf16 %v177_v10, %v176_v13  ;;  %v170_v17 = vmul.f32 %v5412_v60, %v162_v14  ;;  %v72_v60 = vld [vmem:[%s8498_s2] sm:$0x1]  ;;  %v64_v10 = vand.u32 15, %v6969_v59  ;;  %v6990_v11 = vadd.s32 24, %v6969_v59 }
  0xc3   :  { %v179_v18 = vadd.f32 %v5413_v63, %v171_v15  ;;  %vm73_vm1 = vcmp.gt.f32.partialorder %v72_v60, 0.0  ;;  %vm70_vm3 = vcmp.le.s32.totalorder %v63_v4, %v66_v5  ;;  %v55_v14 = vshra.s32 %v6985_v6, 4 }
  0xc4   :  { %5895 = vmatprep.mubr.msk.bf16.mxu0 %vm8508_vm0, %v180_v16  ;;  %5903 = vmatprep.mubr.msk.bf16.mxu1 %vm8508_vm0, %v180_v16  ;;  %v178_v19 = vadd.f32 %v5413_v63, %v170_v17  ;;  %v58_v63 = vshra.s32 %v6974_v61, 4  ;;  %v78_v0 = vsel %vm73_vm1, 1, %v6793_v22  ;;  %v65_v15 = vand.u32 15, %v6985_v6 }
  0xc5   :  { %v82_v13 = vrot.slane %v78_v0, %v81_v1  ;;  %vm68_vm5 = vcmp.le.s32.totalorder %v63_v4, %v64_v10  ;;  %v67_v17 = vand.u32 15, %v6990_v11 }
  0xc6   :  { %v181_v20 = vpack.c.bf16 %v179_v18, %v178_v19  ;;  %vm61_vm2 = vcmp.eq.s32.totalorder %v56_v2, %v58_v63  ;;  %vm59_vm4 = vcmp.eq.s32.totalorder %v54_v9, %v58_v63  ;;  %vm60_vm8 = vcmp.eq.s32.totalorder %v55_v14, %v58_v63 }
  0xc7   :  { %vm76_vm6 = vmand %vm61_vm2, %vm70_vm3  ;;  %vm83_vm7 = vcmp.eq.s32.totalorder %v82_v13, 1  ;;  %vm69_vm9 = vcmp.le.s32.totalorder %v63_v4, %v65_v15  ;;  %vm71_vm13 = vcmp.le.s32.totalorder %v63_v4, %v67_v17  ;;  %v6794_v18 = vmov -1e+09   ;;  %v6325_v15 = vld [vmem:[%s8502_s6 + $0x68] sm:$0xff]  }
  0xc8   :  { %5896 = vmatmul.mubr.msk.bf16.vlgmr.msra.gmra.mrb[0].mxu0 %vm8508_vm0, %v181_v20  ;;  %5904 = vmatmul.mubr.msk.bf16.vlgmr.msra.gmra.mrb[0].mxu1 %vm8508_vm0, %v181_v20  ;;  %vm74_vm10 = vmand %vm59_vm4, %vm68_vm5  ;;  %vm8509_vm3 = vcmask 261120  }
  0xc9   :  { %5908 = vmatpush3.bf16.msra.mxu0 %v6931_v28  ;;  %5911 = vmatprep.mubr.msk.bf16.mxu0 %vm8508_vm0, %v180_v16  ;;  %v57_v16 = vshra.s32 %v6990_v11, 4  ;;  %vm86_vm11 = vmand %vm76_vm6, %vm83_vm7 }
  0xca   :  { %5909 = vmatprep.subr.bf16.mxu0 %v6323_v21  ;;  %vm75_vm14 = vmand %vm60_vm8, %vm69_vm9 }
  0xcb   :  { %vm62_vm12 = vcmp.eq.s32.totalorder %v57_v16, %v58_v63  ;;  %vm84_vm15 = vmand %vm74_vm10, %vm83_vm7 }
  0xcc   :  { %vm77_vm1 = vmand %vm62_vm12, %vm71_vm13  ;;  %v6997_v19 = vsel %vm84_vm15, 0.0, %v6794_v18 }
  0xcd   :  { %5910 = vmatpush3.bf16.msra.mxu0 %v6323_v21  ;;  %vm87_vm2 = vmand %vm77_vm1, %vm83_vm7  ;;  %v7000_v21 = vsel %vm86_vm11, 0.0, %v6794_v18 }
  0xce   :  { %vm8510_vm4 = vmmov %vm8509_vm3 }
  0xd0   :  { %5912 = vmatmul.mubr.msk.bf16.vlgmr.msra.gmra.mrb[4].mxu0 %vm8508_vm0, %v181_v20 }
 0x19b   :  { %v5897_v23 = vpop.f32.mrb[0].mxu0  ;;  %v5905_v25 = vpop.f32.mrb[0].mxu1 }
 0x19c   :  { %v243_v27 = vpop.f32.mrb[1].mxu0  ;;  %v314_v28 = vpop.f32.mrb[1].mxu1  ;;  %v252_v31 = vadd.f32 %v5897_v23, %v5414_v24  ;;  %v323_v32 = vadd.f32 %v5905_v25, %v5423_v26 }
 0x19d   :  { %v5898_v29 = vpop.f32.mrb[2].mxu0  ;;  %v5906_v30 = vpop.f32.mrb[2].mxu1  ;;  %v244_v37 = vadd.f32 %v5414_v24, %v243_v27  ;;  %v315_v38 = vadd.f32 %v5423_v26, %v314_v28 }
 0x19e   :  { %v255_v33 = vadd.f32 %v5898_v29, %v5414_v24  ;;  %v326_v34 = vadd.f32 %v5906_v30, %v5423_v26  ;;  %v246_v35 = vpop.f32.mrb[3].mxu0  ;;  %v317_v36 = vpop.f32.mrb[3].mxu1 }
 0x19f   :  { %v247_v39 = vadd.f32 %v5414_v24, %v246_v35  ;;  %v318_v40 = vadd.f32 %v5423_v26, %v317_v36  ;;  %v7007_v26 = vsel %vm87_vm2, 0.0, %v6794_v18 }
 0x1a0   :  { %v401_v41 = vpack.c.bf16 %v255_v33, %v252_v31  ;;  %v403_v42 = vpack.c.bf16 %v326_v34, %v323_v32 }
 0x1a1   :  { %v400_v43 = vpack.c.bf16 %v247_v39, %v244_v37  ;;  %v402_v44 = vpack.c.bf16 %v318_v40, %v315_v38 }
 0x1a2   :  { %v414_v57 = vsel %vm8508_vm0, %v403_v42, 0 }
 0x1a3   :  { %v5913_v45 = vpop.f32.mrb[4].mxu0  ;;  %6283 = vmatprep.subr.msk.bf16.mxu1 %vm8508_vm0, %v402_v44  ;;  %5919 = vmatprep.mubr.msk.bf16.mxu1 %vm8508_vm0, %v400_v43  ;;  %v411_v47 = vsel %vm8508_vm0, %v402_v44, 0 }
 0x1a4   :  { %v385_v48 = vpop.f32.mrb[5].mxu0  ;;  %5916 = vmatpush3.bf16.xpose.msra.mxu1 %v411_v47  ;;  %v394_v50 = vadd.f32 %v5913_v45, %v5432_v46 }
 0x1a5   :  { %v5914_v49 = vpop.f32.mrb[6].mxu0  ;;  %6284 = vmatprep.subr.msk.bf16.mxu1 %vm8508_vm0, %v403_v42  ;;  %v386_v53 = vadd.f32 %v5432_v46, %v385_v48 }
 0x1a6   :  { %v397_v51 = vadd.f32 %v5914_v49, %v5432_v46  ;;  %v388_v52 = vpop.f32.mrb[7].mxu0 }
 0x1a7   :  { %v389_v54 = vadd.f32 %v5432_v46, %v388_v52 }
 0x1a8   :  { %v512_v55 = vpack.c.bf16 %v397_v51, %v394_v50 }
 0x1a9   :  { %v511_v56 = vpack.c.bf16 %v389_v54, %v386_v53 }
 0x1ab   :  { %5923 = vmatprep.subr.bf16.mxu0 %v511_v56 }
 0x1ac   :  { %5918 = vmatpush3.bf16.xpose.msra.mxu1 %v414_v57  ;;  %5924 = vmatpush3.bf16.msra.mxu0 %v511_v56 }
 0x1ad   :  { %5925 = vmatprep.subr.bf16.mxu0 %v512_v55 }
 0x1b0   :  { %5926 = vmatpush3.bf16.msra.mxu0 %v512_v55  ;;  %v6324_v55 = vld [vmem:[%s8502_s6 + $0x60] sm:$0xff]  }
 0x1b1   :  { %5931 = vmatprep.subr.bf16.mxu0 %v6324_v55 }
 0x1b3   :  { %5920 = vmatmul.mubr.msk.bf16.vlgmr.msra.gmra.mrb[4].mxu1 %vm8508_vm0, %v401_v41  ;;  %vm85_vm0 = vmand %vm75_vm14, %vm83_vm7 }
 0x1b4   :  { %v7003_v23 = vsel %vm85_vm0, 0.0, %v6794_v18  ;;  %vm8511_vm0 = vmmov %vm8509_vm3 }
 0x1b5   :  { %vm8512_vm5 = vmmov %vm8511_vm0 }
 0x1b6   :  { %vm8513_vm6 = vmmov %vm8511_vm0 }
 0x1b7   :  { %vm8514_vm7 = vmmov %vm8511_vm0 }
 0x1b8   :  { %vm8515_vm8 = vmmov %vm8511_vm0 }
 0x1b9   :  { %vm8516_vm9 = vmmov %vm8511_vm0 }
 0x1ba   :  { %vm8517_vm10 = vmmov %vm8511_vm0 }
 0x1bb   :  { %vm8518_vm11 = vmmov %vm8511_vm0 }
 0x1bc   :  { %vm8519_vm12 = vmmov %vm8511_vm0 }
 0x1bd   :  { %vm8520_vm13 = vmmov %vm8511_vm0 }
 0x1be   :  { %vm8521_vm14 = vmmov %vm8511_vm0 }
 0x1bf   :  { %vm8522_vm15 = vmmov %vm8511_vm0 }
 0x1c0   :  { %vm8523_vm1 = vmmov %vm8511_vm0 }
 0x1c1   :  { %vm8524_vm2 = vmmov %vm8511_vm0 }
 0x286   :  { %v5921_v20 = vpop.f32.mrb[4].mxu1 }
 0x287   :  { %v450_v22 = vpop.f32.mrb[5].mxu1  ;;  %v459_v28 = vadd.f32 %v5921_v20, %v7000_v21 }
 0x288   :  { %v451_v24 = vadd.f32 %v450_v22, %v6997_v19  ;;  %v5922_v25 = vpop.f32.mrb[6].mxu1 }
 0x289   :  { %v453_v27 = vpop.f32.mrb[7].mxu1  ;;  %v462_v31 = vadd.f32 %v5922_v25, %v7007_v26  ;;  %v471_v33 = vsel %vm8511_vm0, %v459_v28, -inf }
 0x28a   :  { %v454_v29 = vadd.f32 %v453_v27, %v7003_v23  ;;  %v465_v30 = vsel %vm8509_vm3, %v451_v24, -inf  ;;  %vm8525_vm3 = vmmov %vm8511_vm0 }
 0x28b   :  { %466 = vmax.xlane.f32.xlu0 %v465_v30  ;;  %v474_v34 = vsel %vm8512_vm5, %v462_v31, -inf  ;;  %vm8527_vm5 = vmmov %vm8511_vm0 }
 0x28c   :  { %v468_v32 = vsel %vm8510_vm4, %v454_v29, -inf  ;;  %vm8526_vm4 = vmmov %vm8511_vm0 }
 0x28d   :  { %469 = vmax.xlane.f32.xlu1 %v468_v32 }
 0x28f   :  { %472 = vmax.xlane.f32.xlu0 %v471_v33 }
 0x291   :  { %475 = vmax.xlane.f32.xlu1 %v474_v34 }
 0x318   :  { %v467_v35 = vpop.xlane.xlu0 %466 }
 0x319   :  { %v477_v36 = vsub.f32 %v451_v24, %v467_v35 }
 0x31a   :  { %v470_v37 = vpop.xlane.xlu1 %469 }
 0x31b   :  { %v481_v38 = vmul.f32 1.442695, %v477_v36  ;;  %v478_v39 = vsub.f32 %v454_v29, %v470_v37 }
 0x31c   :  { %v473_v40 = vpop.xlane.xlu0 %472 }
 0x31d   :  { %6376 = vpow2.f32 %v481_v38  ;;  %v483_v41 = vmul.f32 1.442695, %v478_v39  ;;  %v479_v42 = vsub.f32 %v459_v28, %v473_v40  ;;  %v5449_v28 = vld [vmem:[%s8500_s4 + $0x5] ss:$0 sm:$0xff] }
 0x31e   :  { %v476_v43 = vpop.xlane.xlu1 %475 }
 0x31f   :  { %6378 = vpow2.f32 %v483_v41  ;;  %v485_v44 = vmul.f32 1.442695, %v479_v42  ;;  %v480_v45 = vsub.f32 %v462_v31, %v476_v43 }
 0x321   :  { %6380 = vpow2.f32 %v485_v44  ;;  %v487_v46 = vmul.f32 1.442695, %v480_v45 }
 0x323   :  { %6382 = vpow2.f32 %v487_v46 }
 0x327   :  { %v6377_v47 = vpop.eup %6376 }
 0x328   :  { %v489_v48 = vsel %vm8513_vm6, %v6377_v47, 0.0  ;;  %vm8528_vm6 = vmmov %vm8511_vm0 }
 0x329   :  { %v6379_v49 = vpop.eup %6378  ;;  %490 = vadd.xlane.f32.xlu0 %v489_v48  ;;  %v6326_v48 = vld [vmem:[%s8503_s7] sm:$0xff]  }
 0x32a   :  { %v492_v50 = vsel %vm8514_vm7, %v6379_v49, 0.0  ;;  %5939 = vmatprep.subr.bf16.mxu1 %v6326_v48  ;;  %vm8529_vm7 = vmmov %vm8511_vm0 }
 0x32b   :  { %v6381_v51 = vpop.eup %6380  ;;  %493 = vadd.xlane.f32.xlu1 %v492_v50  ;;  %5940 = vmatpush3.bf16.msra.mxu1 %v6326_v48 }
 0x32c   :  { %v495_v52 = vsel %vm8515_vm8, %v6381_v51, 0.0  ;;  %vm864_vm8 = vcmask 523264  }
 0x32d   :  { %v6383_v53 = vpop.eup %6382  ;;  %496 = vadd.xlane.f32.xlu0 %v495_v52 }
 0x32e   :  { %v498_v54 = vsel %vm8516_vm9, %v6383_v53, 0.0  ;;  %vm8530_vm9 = vmmov %vm8511_vm0 }
 0x32f   :  { %499 = vadd.xlane.f32.xlu1 %v498_v54 }
 0x3b6   :  { %v491_v56 = vpop.xlane.xlu0 %490 }
 0x3b7   :  { %6384 = vrcp.f32 %v491_v56 }
 0x3b8   :  { %v494_v57 = vpop.xlane.xlu1 %493 }
 0x3b9   :  { %6386 = vrcp.f32 %v494_v57 }
 0x3ba   :  { %v497_v58 = vpop.xlane.xlu0 %496 }
 0x3bb   :  { %6388 = vrcp.f32 %v497_v58 }
 0x3bc   :  { %v500_v60 = vpop.xlane.xlu1 %499 }
 0x3bd   :  { %6390 = vrcp.f32 %v500_v60 }
 0x3c1   :  { %v6385_v63 = vpop.eup %6384 }
 0x3c2   :  { %v505_v1 = vmul.f32 %v6385_v63, %v6377_v47 }
 0x3c3   :  { %v6387_v0 = vpop.eup %6386 }
 0x3c4   :  { %v506_v2 = vmul.f32 %v6387_v0, %v6379_v49  ;;  %v6327_v49 = vld [vmem:[%s8503_s7 + $0x8] sm:$0xff]  }
 0x3c5   :  { %v6389_v4 = vpop.eup %6388  ;;  %5941 = vmatprep.subr.bf16.mxu1 %v6327_v49 }
 0x3c6   :  { %v509_v5 = vpack.c.bf16 %v506_v2, %v505_v1  ;;  %v507_v10 = vmul.f32 %v6389_v4, %v6381_v51  ;;  %5942 = vmatpush3.bf16.msra.mxu1 %v6327_v49 }
 0x3c7   :  { %v6391_v9 = vpop.eup %6390 }
 0x3c8   :  { %v508_v13 = vmul.f32 %v6391_v9, %v6383_v53  ;;  %5927 = vmatprep.mubr.msk.bf16.mxu0 %vm8517_vm10, %v509_v5  ;;  %vm8531_vm10 = vmmov %vm8511_vm0 }
 0x3ca   :  { %v510_v14 = vpack.c.bf16 %v508_v13, %v507_v10 }
 0x3cc   :  { %5928 = vmatmul.mubr.msk.bf16.vlgmr.msra.gmra.mrb[8].mxu0 %vm8518_vm11, %v510_v14  ;;  %vm8532_vm11 = vmmov %vm8511_vm0 }
 0x3cd   :  { %5932 = vmatpush3.bf16.msra.mxu0 %v6324_v55 }
 0x3ce   :  { %5933 = vmatprep.subr.bf16.mxu0 %v6325_v15 }
 0x3d1   :  { %5934 = vmatpush3.bf16.msra.mxu0 %v6325_v15 }
 0x49f   :  { %v5929_v16 = vpop.f32.mrb[8].mxu0 }
 0x4a0   :  { %v553_v17 = vpop.f32.mrb[9].mxu0 }
 0x4a1   :  { %v5930_v20 = vpop.f32.mrb[10].mxu0 }
 0x4a2   :  { %v569_v22 = vpack.c.bf16 %v5930_v20, %v5929_v16  ;;  %v556_v24 = vpop.f32.mrb[11].mxu0 }
 0x4a3   :  { %v568_v25 = vpack.c.bf16 %v556_v24, %v553_v17 }
 0x4a5   :  { %5935 = vmatprep.mubr.msk.bf16.mxu0 %vm8519_vm12, %v568_v25  ;;  %vm8533_vm12 = vmmov %vm8511_vm0 }
 0x4a6   :  { %5936 = vmatmul.mubr.msk.bf16.vlgmr.msra.gmra.mrb[12].mxu0 %vm8520_vm13, %v569_v22  ;;  %vm8534_vm13 = vmmov %vm8511_vm0 }
 0x579   :  { %v5937_v27 = vpop.f32.mrb[12].mxu0 }
 0x57a   :  { %v644_v29 = vadd.f32 %v5937_v27, %v6873_v3  ;;  %v627_v30 = vpop.f32.mrb[13].mxu0 }
 0x57b   :  { %v642_v31 = vadd.f32 %v627_v30, %v6884_v7  ;;  %v5938_v32 = vpop.f32.mrb[14].mxu0  ;;  %v5450_v30 = vld [vmem:[%s8500_s4 + $0x6] ss:$0 sm:$0xff] }
 0x57c   :  { %v7035_v33 = vadd.f32 %v5449_v28, %v644_v29  ;;  %v645_v34 = vadd.f32 %v5938_v32, %v6886_v8  ;;  %v630_v35 = vpop.f32.mrb[15].mxu0 }
 0x57d   :  { %v643_v36 = vadd.f32 %v630_v35, %v6896_v12  ;;  %v7039_v37 = vadd.f32 %v5449_v28, %v642_v31 }
 0x57e   :  { %v7041_v38 = vadd.f32 %v5449_v28, %v645_v34  ;;  %v663_v39 = vsel %vm8521_vm14, %v7035_v33, 0.0  ;;  %v675_v43 = vmul.f32 %v7035_v33, %v7035_v33  ;;  %vm8535_vm14 = vmmov %vm8511_vm0 }
 0x57f   :  { %664 = vadd.xlane.f32.xlu0 %v663_v39  ;;  %v7045_v3 = vadd.f32 %v5449_v28, %v643_v36  ;;  %v657_v8 = vsel %vm8523_vm1, %v7039_v37, 0.0  ;;  %v673_v12 = vmul.f32 %v7039_v37, %v7039_v37  ;;  %vm8537_vm1 = vmmov %vm8511_vm0 }
 0x580   :  { %v666_v7 = vsel %vm8522_vm15, %v7041_v38, 0.0  ;;  %v676_v45 = vmul.f32 %v7041_v38, %v7041_v38  ;;  %v683_v46 = vsel %vm8511_vm0, %v675_v43, 0.0  ;;  %vm8536_vm15 = vmmov %vm8511_vm0 }
 0x581   :  { %667 = vadd.xlane.f32.xlu1 %v666_v7  ;;  %v660_v40 = vsel %vm8524_vm2, %v7045_v3, 0.0  ;;  %v674_v41 = vmul.f32 %v7045_v3, %v7045_v3  ;;  %v677_v42 = vsel %vm8525_vm3, %v673_v12, 0.0  ;;  %vm8538_vm2 = vmmov %vm8511_vm0 }
 0x582   :  { %v686_v47 = vsel %vm8527_vm5, %v676_v45, 0.0  ;;  %vm8539_vm3 = vmmov %vm8511_vm0 }
 0x583   :  { %658 = vadd.xlane.f32.xlu0 %v657_v8  ;;  %v680_v44 = vsel %vm8526_vm4, %v674_v41, 0.0  ;;  %v5451_v8 = vld [vmem:[%s8500_s4 + $0x7] ss:$0 sm:$0xff]  ;;  %vm8540_vm4 = vmmov %vm8511_vm0 }
 0x584   :  { %vm8541_vm5 = vmmov %vm8511_vm0 }
 0x585   :  { %661 = vadd.xlane.f32.xlu1 %v660_v40 }
 0x587   :  { %678 = vadd.xlane.f32.xlu0 %v677_v42 }
 0x589   :  { %681 = vadd.xlane.f32.xlu1 %v680_v44 }
 0x58b   :  { %684 = vadd.xlane.f32.xlu0 %v683_v46 }
 0x58d   :  { %687 = vadd.xlane.f32.xlu1 %v686_v47 }
 0x60c   :  { %v665_v50 = vpop.xlane.xlu0 %664 }
 0x60d   :  { %v671_v57 = vmul.f32 0.03125, %v665_v50 }
 0x60e   :  { %v668_v51 = vpop.xlane.xlu1 %667 }
 0x60f   :  { %v672_v63 = vmul.f32 0.03125, %v668_v51  ;;  %v695_v9 = vmul.f32 %v671_v57, %v671_v57  ;;  %v703_v35 = vsub.f32 %v7035_v33, %v671_v57 }
 0x610   :  { %v659_v52 = vpop.xlane.xlu0 %658 }
 0x611   :  { %v669_v53 = vmul.f32 0.03125, %v659_v52  ;;  %v696_v15 = vmul.f32 %v672_v63, %v672_v63  ;;  %v704_v12 = vsub.f32 %v7041_v38, %v672_v63  ;;  %v6328_v52 = vld [vmem:[%s8503_s7 + $0x20] sm:$0xff]  }
 0x612   :  { %v662_v54 = vpop.xlane.xlu1 %661  ;;  %6285 = vmatprep.subr.msk.bf16.mxu0 %vm864_vm8, %v6328_v52 }
 0x613   :  { %v670_v55 = vmul.f32 0.03125, %v662_v54  ;;  %v693_v58 = vmul.f32 %v669_v53, %v669_v53  ;;  %v701_v28 = vsub.f32 %v7039_v37, %v669_v53  ;;  %v7088_v53 = vsel %vm864_vm8, %v6328_v52, 0  ;;  %v6329_v54 = vld [vmem:[%s8503_s7 + $0x28] sm:$0xff]  }
 0x614   :  { %v679_v56 = vpop.xlane.xlu0 %678  ;;  %5948 = vmatpush3.bf16.xpose.msra.mxu0 %v7088_v53 }
 0x615   :  { %v689_v60 = vmul.f32 0.03125, %v679_v56  ;;  %v694_v1 = vmul.f32 %v670_v55, %v670_v55  ;;  %v702_v31 = vsub.f32 %v7045_v3, %v670_v55  ;;  %6286 = vmatprep.subr.msk.bf16.mxu0 %vm864_vm8, %v6329_v54  ;;  %v7096_v55 = vsel %vm864_vm8, %v6329_v54, 0  ;;  %v5452_v56 = vld [vmem:[%s8501_s5] ss:$0 sm:$0xff] }
 0x616   :  { %v682_v0 = vpop.xlane.xlu1 %681 }
 0x617   :  { %v697_v2 = vsub.f32 %v689_v60, %v693_v58  ;;  %v690_v4 = vmul.f32 0.03125, %v682_v0 }
 0x618   :  { %v685_v5 = vpop.xlane.xlu0 %684 }
 0x619   :  { %v705_v10 = vadd.f32 1e-05, %v697_v2  ;;  %v698_v13 = vsub.f32 %v690_v4, %v694_v1  ;;  %v691_v14 = vmul.f32 0.03125, %v685_v5 }
 0x61a   :  { %v688_v16 = vpop.xlane.xlu1 %687 }
 0x61b   :  { %6392 = vrsqrt.f32 %v705_v10  ;;  %v706_v17 = vadd.f32 1e-05, %v698_v13  ;;  %v699_v20 = vsub.f32 %v691_v14, %v695_v9  ;;  %v692_v22 = vmul.f32 0.03125, %v688_v16 }
 0x61c   :  { %5950 = vmatpush3.bf16.xpose.msra.mxu0 %v7096_v55 }
 0x61d   :  { %6394 = vrsqrt.f32 %v706_v17  ;;  %v707_v24 = vadd.f32 1e-05, %v699_v20  ;;  %v700_v25 = vsub.f32 %v692_v22, %v696_v15 }
 0x61f   :  { %6396 = vrsqrt.f32 %v707_v24  ;;  %v708_v27 = vadd.f32 1e-05, %v700_v25 }
 0x621   :  { %6398 = vrsqrt.f32 %v708_v27 }
 0x625   :  { %v6393_v29 = vpop.eup %6392 }
 0x626   :  { %v713_v32 = vmul.f32 %v6393_v29, %v701_v28 }
 0x627   :  { %v6395_v34 = vpop.eup %6394 }
 0x628   :  { %v714_v36 = vmul.f32 %v6395_v34, %v702_v31  ;;  %v721_v39 = vmul.f32 %v5450_v30, %v713_v32 }
 0x629   :  { %v6397_v7 = vpop.eup %6396 }
 0x62a   :  { %v715_v40 = vmul.f32 %v6397_v7, %v703_v35  ;;  %v722_v41 = vmul.f32 %v5450_v30, %v714_v36  ;;  %v729_v44 = vadd.f32 %v5451_v8, %v721_v39 }
 0x62b   :  { %v6399_v42 = vpop.eup %6398 }
 0x62c   :  { %v716_v43 = vmul.f32 %v6399_v42, %v704_v12  ;;  %v730_v45 = vadd.f32 %v5451_v8, %v722_v41  ;;  %v723_v46 = vmul.f32 %v5450_v30, %v715_v40 }
 0x62e   :  { %v733_v47 = vpack.c.bf16 %v730_v45, %v729_v44  ;;  %v724_v48 = vmul.f32 %v5450_v30, %v716_v43  ;;  %v731_v49 = vadd.f32 %v5451_v8, %v723_v46 }
 0x630   :  { %5943 = vmatprep.mubr.msk.bf16.mxu1 %vm8528_vm6, %v733_v47  ;;  %v732_v50 = vadd.f32 %v5451_v8, %v724_v48  ;;  %vm8542_vm6 = vmmov %vm8511_vm0 }
 0x632   :  { %v734_v51 = vpack.c.bf16 %v732_v50, %v731_v49 }
 0x634   :  { %5944 = vmatmul.mubr.msk.bf16.vlgmr.msra.gmra.mrb[8].mxu1 %vm8529_vm7, %v734_v51  ;;  %vm8543_vm7 = vmmov %vm8511_vm0 }
 0x707   :  { %v5945_v57 = vpop.f32.mrb[8].mxu1 }
 0x708   :  { %v805_v58 = vadd.f32 %v5945_v57, %v5452_v56  ;;  %v796_v60 = vpop.f32.mrb[9].mxu1 }
 0x709   :  { %v797_v63 = vadd.f32 %v5452_v56, %v796_v60  ;;  %v5946_v0 = vpop.f32.mrb[10].mxu1 }
 0x70a   :  { %v813_v1 = vmul.f32 %v805_v58, %v805_v58  ;;  %v808_v2 = vadd.f32 %v5946_v0, %v5452_v56  ;;  %v799_v4 = vpop.f32.mrb[11].mxu1 }
 0x70b   :  { %v811_v5 = vmul.f32 %v797_v63, %v797_v63  ;;  %v800_v9 = vadd.f32 %v5452_v56, %v799_v4  ;;  %v5465_v56 = vld [vmem:[%s8500_s4 + $0x8] ss:$0 sm:$0xff] }
 0x70c   :  { %v817_v10 = vmul.f32 %v813_v1, %v805_v58  ;;  %v814_v13 = vmul.f32 %v808_v2, %v808_v2 }
 0x70d   :  { %v815_v14 = vmul.f32 %v811_v5, %v797_v63  ;;  %v812_v15 = vmul.f32 %v800_v9, %v800_v9 }
 0x70e   :  { %v821_v16 = vmul.f32 0.044715, %v817_v10  ;;  %v818_v17 = vmul.f32 %v814_v13, %v808_v2 }
 0x70f   :  { %v819_v20 = vmul.f32 0.044715, %v815_v14  ;;  %v816_v22 = vmul.f32 %v812_v15, %v800_v9 }
 0x710   :  { %v825_v24 = vadd.f32 %v821_v16, %v805_v58  ;;  %v822_v25 = vmul.f32 0.044715, %v818_v17 }
 0x711   :  { %v823_v27 = vadd.f32 %v819_v20, %v797_v63  ;;  %v820_v28 = vmul.f32 0.044715, %v816_v22 }
 0x712   :  { %v829_v29 = vmul.f32 0.7978846, %v825_v24  ;;  %v826_v30 = vadd.f32 %v822_v25, %v808_v2  ;;  %v6330_v25 = vld [vmem:[%s8502_s6 + $0x10] sm:$0xff]  }
 0x713   :  { %v827_v31 = vmul.f32 0.7978846, %v823_v27  ;;  %v824_v32 = vadd.f32 %v820_v28, %v800_v9  ;;  %v6331_v27 = vld [vmem:[%s8502_s6 + $0x50] sm:$0xff]   ;;  %5955 = vmatprep.subr.bf16.mxu1 %v6330_v25  ;;  %v6332_v28 = vld [vmem:[%s8502_s6 + $0x18] sm:$0xff]  }
 0x714   :  { %6400 = vtanh.f32 %v829_v29  ;;  %v830_v34 = vmul.f32 0.7978846, %v826_v30  ;;  %5971 = vmatprep.subr.bf16.mxu0 %v6331_v27  ;;  %5956 = vmatpush3.bf16.msra.mxu1 %v6330_v25  ;;  %v6333_v29 = vld [vmem:[%s8502_s6 + $0x58] sm:$0xff]   ;;  %v7154_v30 = vld [vmem:[%s8502_s6 + $0x30] sm:$0xff]  }
 0x715   :  { %6402 = vtanh.f32 %v827_v31  ;;  %v828_v35 = vmul.f32 0.7978846, %v824_v32  ;;  %5957 = vmatprep.subr.bf16.mxu1 %v6332_v28 }
 0x716   :  { %6404 = vtanh.f32 %v830_v34 }
 0x717   :  { %6406 = vtanh.f32 %v828_v35 }
 0x718   :  { %5958 = vmatpush3.bf16.msra.mxu1 %v6332_v28 }
 0x719   :  { %5963 = vmatprep.subr.bf16.mxu1 %v7154_v30 }
 0x71e   :  { %v6401_v36 = vpop.eup %6400 }
 0x71f   :  { %v6403_v39 = vpop.eup %6402  ;;  %v837_v7 = vadd.f32 1.0, %v6401_v36 }
 0x720   :  { %v6405_v8 = vpop.eup %6404  ;;  %v835_v12 = vadd.f32 1.0, %v6403_v39 }
 0x721   :  { %v6407_v40 = vpop.eup %6406  ;;  %v841_v41 = vmul.f32 0.5, %v837_v7  ;;  %v838_v42 = vadd.f32 1.0, %v6405_v8 }
 0x722   :  { %v839_v43 = vmul.f32 0.5, %v835_v12  ;;  %v836_v44 = vadd.f32 1.0, %v6407_v40 }
 0x723   :  { %v842_v45 = vmul.f32 0.5, %v838_v42  ;;  %v845_v47 = vmul.f32 %v841_v41, %v805_v58 }
 0x724   :  { %v840_v46 = vmul.f32 0.5, %v836_v44  ;;  %v843_v49 = vmul.f32 %v839_v43, %v797_v63 }
 0x725   :  { %v846_v48 = vmul.f32 %v842_v45, %v808_v2 }
 0x726   :  { %v844_v50 = vmul.f32 %v840_v46, %v800_v9 }
 0x727   :  { %v848_v51 = vpack.c.bf16 %v846_v48, %v845_v47 }
 0x728   :  { %v847_v52 = vpack.c.bf16 %v844_v50, %v843_v49 }
 0x72a   :  { %5951 = vmatprep.mubr.msk.bf16.mxu0 %vm864_vm8, %v847_v52 }
 0x72b   :  { %5952 = vmatmul.mubr.msk.bf16.vlgmr.msra.gmra.mrb[16].mxu0 %vm864_vm8, %v848_v51 }
 0x72c   :  { %5972 = vmatpush3.bf16.msra.mxu0 %v6331_v27 }
 0x72d   :  { %5973 = vmatprep.subr.bf16.mxu0 %v6333_v29 }
 0x730   :  { %5974 = vmatpush3.bf16.msra.mxu0 %v6333_v29 }
 0x7fe   :  { %v5953_v54 = vpop.f32.mrb[16].mxu0 }
 0x7ff   :  { %v928_v57 = vadd.f32 %v5953_v54, %v7035_v33  ;;  %v911_v60 = vpop.f32.mrb[17].mxu0 }
 0x800   :  { %v926_v0 = vadd.f32 %v911_v60, %v7039_v37  ;;  %v5954_v58 = vpop.f32.mrb[18].mxu0 }
 0x801   :  { %v7109_v1 = vadd.f32 %v5465_v56, %v928_v57  ;;  %v929_v63 = vadd.f32 %v5954_v58, %v7041_v38  ;;  %v914_v2 = vpop.f32.mrb[19].mxu0 }
 0x802   :  { %v927_v4 = vadd.f32 %v914_v2, %v7045_v3  ;;  %v7113_v5 = vadd.f32 %v5465_v56, %v926_v0 }
 0x803   :  { %v7115_v9 = vadd.f32 %v5465_v56, %v929_v63  ;;  %v947_v10 = vsel %vm8530_vm9, %v7109_v1, 0.0  ;;  %v959_v16 = vmul.f32 %v7109_v1, %v7109_v1  ;;  %vm8544_vm9 = vmmov %vm8511_vm0 }
 0x804   :  { %948 = vadd.xlane.f32.xlu0 %v947_v10  ;;  %v7119_v33 = vadd.f32 %v5465_v56, %v927_v4  ;;  %v941_v38 = vsel %vm8532_vm11, %v7113_v5, 0.0  ;;  %v957_v3 = vmul.f32 %v7113_v5, %v7113_v5  ;;  %v5466_v4 = vld [vmem:[%s8500_s4 + $0x9] ss:$0 sm:$0xff]  ;;  %vm8546_vm11 = vmmov %vm8511_vm0 }
 0x805   :  { %v950_v37 = vsel %vm8531_vm10, %v7115_v9, 0.0  ;;  %v960_v20 = vmul.f32 %v7115_v9, %v7115_v9  ;;  %v967_v22 = vsel %vm8536_vm15, %v959_v16, 0.0  ;;  %v5467_v16 = vld [vmem:[%s8500_s4 + $0xa] ss:$0 sm:$0xff]  ;;  %vm8545_vm10 = vmmov %vm8511_vm0 }
 0x806   :  { %951 = vadd.xlane.f32.xlu1 %v950_v37  ;;  %v944_v13 = vsel %vm8533_vm12, %v7119_v33, 0.0  ;;  %v958_v14 = vmul.f32 %v7119_v33, %v7119_v33  ;;  %v961_v15 = vsel %vm8534_vm13, %v957_v3, 0.0  ;;  %vm8547_vm12 = vmmov %vm8511_vm0 }
 0x807   :  { %v970_v24 = vsel %vm8537_vm1, %v960_v20, 0.0  ;;  %vm8548_vm13 = vmmov %vm8511_vm0 }
 0x808   :  { %942 = vadd.xlane.f32.xlu0 %v941_v38  ;;  %v964_v17 = vsel %vm8535_vm14, %v958_v14, 0.0  ;;  %vm8549_vm14 = vmmov %vm8511_vm0 }
 0x809   :  { %vm8550_vm15 = vmmov %vm8511_vm0 }
 0x80a   :  { %945 = vadd.xlane.f32.xlu1 %v944_v13  ;;  %vm8551_vm1 = vmmov %vm8511_vm0 }
 0x80c   :  { %962 = vadd.xlane.f32.xlu0 %v961_v15 }
 0x80e   :  { %965 = vadd.xlane.f32.xlu1 %v964_v17 }
 0x810   :  { %968 = vadd.xlane.f32.xlu0 %v967_v22 }
 0x812   :  { %971 = vadd.xlane.f32.xlu1 %v970_v24 }
 0x891   :  { %v949_v31 = vpop.xlane.xlu0 %948 }
 0x892   :  { %v955_v8 = vmul.f32 0.03125, %v949_v31 }
 0x893   :  { %v952_v32 = vpop.xlane.xlu1 %951 }
 0x894   :  { %v956_v41 = vmul.f32 0.03125, %v952_v32  ;;  %v979_v47 = vmul.f32 %v955_v8, %v955_v8  ;;  %v987_v3 = vsub.f32 %v7109_v1, %v955_v8  ;;  %v5472_v8 = vld [vmem:[%s8500_s4 + $0xb] ss:$0 sm:$0xff] }
 0x895   :  { %v943_v34 = vpop.xlane.xlu0 %942 }
 0x896   :  { %v953_v35 = vmul.f32 0.03125, %v943_v34  ;;  %v980_v51 = vmul.f32 %v956_v41, %v956_v41  ;;  %v988_v17 = vsub.f32 %v7115_v9, %v956_v41 }
 0x897   :  { %v946_v36 = vpop.xlane.xlu1 %945 }
 0x898   :  { %v954_v39 = vmul.f32 0.03125, %v946_v36  ;;  %v977_v12 = vmul.f32 %v953_v35, %v953_v35  ;;  %v985_v63 = vsub.f32 %v7113_v5, %v953_v35 }
 0x899   :  { %v963_v7 = vpop.xlane.xlu0 %962 }
 0x89a   :  { %v973_v40 = vmul.f32 0.03125, %v963_v7  ;;  %v978_v43 = vmul.f32 %v954_v39, %v954_v39  ;;  %v986_v10 = vsub.f32 %v7119_v33, %v954_v39  ;;  %v6335_v39 = vld [vmem:[%s8502_s6 + $0x38] sm:$0xff]  }
 0x89b   :  { %v966_v42 = vpop.xlane.xlu1 %965 }
 0x89c   :  { %v981_v44 = vsub.f32 %v973_v40, %v977_v12  ;;  %v974_v45 = vmul.f32 0.03125, %v966_v42  ;;  %v5490_v40 = vld [vmem:[%s8500_s4 + $0xd] ss:$0 sm:$0xff] }
 0x89d   :  { %v969_v46 = vpop.xlane.xlu0 %968 }
 0x89e   :  { %v989_v48 = vadd.f32 1e-05, %v981_v44  ;;  %v982_v49 = vsub.f32 %v974_v45, %v978_v43  ;;  %v975_v50 = vmul.f32 0.03125, %v969_v46 }
 0x89f   :  { %v972_v52 = vpop.xlane.xlu1 %971 }
 0x8a0   :  { %6408 = vrsqrt.f32 %v989_v48  ;;  %v990_v54 = vadd.f32 1e-05, %v982_v49  ;;  %v983_v56 = vsub.f32 %v975_v50, %v979_v47  ;;  %v976_v57 = vmul.f32 0.03125, %v972_v52 }
 0x8a2   :  { %6410 = vrsqrt.f32 %v990_v54  ;;  %v991_v60 = vadd.f32 1e-05, %v983_v56  ;;  %v984_v0 = vsub.f32 %v976_v57, %v980_v51 }
 0x8a4   :  { %6412 = vrsqrt.f32 %v991_v60  ;;  %v992_v58 = vadd.f32 1e-05, %v984_v0 }
 0x8a6   :  { %6414 = vrsqrt.f32 %v992_v58 }
 0x8aa   :  { %v6409_v2 = vpop.eup %6408 }
 0x8ab   :  { %v997_v37 = vmul.f32 %v6409_v2, %v985_v63  ;;  %v5481_v63 = vld [vmem:[%s8500_s4 + $0xc] ss:$0 sm:$0xff] }
 0x8ac   :  { %v6411_v38 = vpop.eup %6410 }
 0x8ad   :  { %v998_v13 = vmul.f32 %v6411_v38, %v986_v10  ;;  %v1005_v14 = vmul.f32 %v5466_v4, %v997_v37 }
 0x8ae   :  { %v6413_v15 = vpop.eup %6412 }
 0x8af   :  { %v999_v20 = vmul.f32 %v6413_v15, %v987_v3  ;;  %v1006_v22 = vmul.f32 %v5466_v4, %v998_v13  ;;  %v1013_v27 = vadd.f32 %v5467_v16, %v1005_v14 }
 0x8b0   :  { %v6415_v24 = vpop.eup %6414 }
 0x8b1   :  { %v1000_v25 = vmul.f32 %v6415_v24, %v988_v17  ;;  %v1014_v28 = vadd.f32 %v5467_v16, %v1006_v22  ;;  %v1007_v29 = vmul.f32 %v5466_v4, %v999_v20 }
 0x8b3   :  { %v1017_v31 = vpack.c.bf16 %v1014_v28, %v1013_v27  ;;  %v1008_v32 = vmul.f32 %v5466_v4, %v1000_v25  ;;  %v1015_v34 = vadd.f32 %v5467_v16, %v1007_v29 }
 0x8b5   :  { %5959 = vmatprep.mubr.msk.bf16.mxu1 %vm8538_vm2, %v1017_v31  ;;  %5975 = vmatprep.mubr.msk.bf16.mxu0 %vm8539_vm3, %v1017_v31  ;;  %v1016_v35 = vadd.f32 %v5467_v16, %v1008_v32  ;;  %vm8552_vm2 = vmmov %vm8511_vm0 }
 0x8b6   :  { %vm8553_vm3 = vmmov %vm8511_vm0 }
 0x8b7   :  { %v1018_v36 = vpack.c.bf16 %v1016_v35, %v1015_v34 }
 0x8b9   :  { %5960 = vmatmul.mubr.msk.bf16.vlgmr.msra.gmra.mrb[12].mxu1 %vm8540_vm4, %v1018_v36  ;;  %5976 = vmatmul.mubr.msk.bf16.vlgmr.msra.gmra.mrb[20].mxu0 %vm8511_vm0, %v1018_v36  ;;  %vm8554_vm4 = vmmov %vm8511_vm0 }
 0x8ba   :  { %5964 = vmatpush3.bf16.msra.mxu1 %v7154_v30  ;;  %5967 = vmatprep.mubr.msk.bf16.mxu1 %vm8541_vm5, %v1017_v31  ;;  %vm8555_vm5 = vmmov %vm8511_vm0 }
 0x8bb   :  { %5965 = vmatprep.subr.bf16.mxu1 %v6335_v39 }
 0x8be   :  { %5966 = vmatpush3.bf16.msra.mxu1 %v6335_v39 }
 0x8c1   :  { %5968 = vmatmul.mubr.msk.bf16.vlgmr.msra.gmra.mrb[16].mxu1 %vm8542_vm6, %v1018_v36  ;;  %vm8556_vm6 = vmmov %vm8511_vm0 }
 0x98c   :  { %v5961_v7 = vpop.f32.mrb[12].mxu1  ;;  %v5977_v12 = vpop.f32.mrb[20].mxu0 }
 0x98d   :  { %v1081_v41 = vpop.f32.mrb[13].mxu1  ;;  %v1223_v42 = vpop.f32.mrb[21].mxu0  ;;  %v1090_v44 = vadd.f32 %v5961_v7, %v5472_v8  ;;  %v1232_v45 = vadd.f32 %v5977_v12, %v5490_v40 }
 0x98e   :  { %v5962_v43 = vpop.f32.mrb[14].mxu1  ;;  %v5978_v30 = vpop.f32.mrb[22].mxu0  ;;  %v1082_v50 = vadd.f32 %v5472_v8, %v1081_v41  ;;  %v1224_v51 = vadd.f32 %v5490_v40, %v1223_v42 }
 0x98f   :  { %v1093_v46 = vadd.f32 %v5962_v43, %v5472_v8  ;;  %v1235_v47 = vadd.f32 %v5978_v30, %v5490_v40  ;;  %v1084_v48 = vpop.f32.mrb[15].mxu1  ;;  %v1226_v49 = vpop.f32.mrb[23].mxu0 }
 0x990   :  { %v1085_v52 = vadd.f32 %v5472_v8, %v1084_v48  ;;  %v1227_v54 = vadd.f32 %v5490_v40, %v1226_v49 }
 0x991   :  { %v1239_v56 = vpack.c.bf16 %v1093_v46, %v1090_v44  ;;  %v1350_v57 = vpack.c.bf16 %v1235_v47, %v1232_v45 }
 0x992   :  { %v1238_v60 = vpack.c.bf16 %v1085_v52, %v1082_v50  ;;  %v1349_v0 = vpack.c.bf16 %v1227_v54, %v1224_v51 }
 0x994   :  { %v5969_v58 = vpop.f32.mrb[16].mxu1  ;;  %5983 = vmatprep.mubr.msk.bf16.mxu1 %vm8543_vm7, %v1238_v60  ;;  %5987 = vmatprep.subr.bf16.mxu0 %v1349_v0  ;;  %vm8557_vm7 = vmmov %vm8511_vm0 }
 0x995   :  { %v1152_v2 = vpop.f32.mrb[17].mxu1  ;;  %5988 = vmatpush3.bf16.msra.mxu0 %v1349_v0  ;;  %v1161_v10 = vadd.f32 %v5969_v58, %v5481_v63 }
 0x996   :  { %v5970_v4 = vpop.f32.mrb[18].mxu1  ;;  %5989 = vmatprep.subr.bf16.mxu0 %v1350_v57  ;;  %v1153_v3 = vadd.f32 %v5481_v63, %v1152_v2 }
 0x997   :  { %v1164_v37 = vadd.f32 %v5970_v4, %v5481_v63  ;;  %v1155_v38 = vpop.f32.mrb[19].mxu1 }
 0x998   :  { %v1156_v13 = vadd.f32 %v5481_v63, %v1155_v38 }
 0x999   :  { %v1241_v14 = vpack.c.bf16 %v1164_v37, %v1161_v10  ;;  %5990 = vmatpush3.bf16.msra.mxu0 %v1350_v57  ;;  %v6336_v57 = vld [vmem:[%s8502_s6 + $0x70] sm:$0xff]  }
 0x99a   :  { %v1240_v15 = vpack.c.bf16 %v1156_v13, %v1153_v3  ;;  %5995 = vmatprep.subr.bf16.mxu0 %v6336_v57 }
 0x99b   :  { %v1252_v17 = vsel %vm8547_vm12, %v1241_v14, 0  ;;  %vm8561_vm12 = vmmov %vm8511_vm0 }
 0x99c   :  { %6287 = vmatprep.subr.msk.bf16.mxu1 %vm8544_vm9, %v1240_v15  ;;  %v1249_v16 = vsel %vm8545_vm10, %v1240_v15, 0  ;;  %vm8558_vm9 = vmmov %vm8511_vm0 }
 0x99d   :  { %5980 = vmatpush3.bf16.xpose.msra.mxu1 %v1249_v16  ;;  %vm8559_vm10 = vmmov %vm8511_vm0 }
 0x99e   :  { %6288 = vmatprep.subr.msk.bf16.mxu1 %vm8546_vm11, %v1241_v14  ;;  %vm8560_vm11 = vmmov %vm8511_vm0 }
 0x9a5   :  { %5982 = vmatpush3.bf16.xpose.msra.mxu1 %v1252_v17  ;;  %v6337_v17 = vld [vmem:[%s8502_s6 + $0x78] sm:$0xff]  }
 0x9ac   :  { %5984 = vmatmul.mubr.msk.bf16.vlgmr.msra.gmra.mrb[20].mxu1 %vm8548_vm13, %v1239_v56  ;;  %vm8562_vm13 = vmmov %vm8511_vm0 }
 0xa7f   :  { %v5985_v20 = vpop.f32.mrb[20].mxu1 }
 0xa80   :  { %v1288_v22 = vpop.f32.mrb[21].mxu1  ;;  %v1297_v28 = vadd.f32 %v5985_v20, %v7000_v21 }
 0xa81   :  { %v1289_v24 = vadd.f32 %v1288_v22, %v6997_v19  ;;  %v5986_v25 = vpop.f32.mrb[22].mxu1 }
 0xa82   :  { %v1291_v27 = vpop.f32.mrb[23].mxu1  ;;  %v1300_v32 = vadd.f32 %v5986_v25, %v7007_v26  ;;  %v1309_v35 = vsel %vm8551_vm1, %v1297_v28, -inf  ;;  %vm8565_vm1 = vmmov %vm8511_vm0 }
 0xa83   :  { %v1292_v29 = vadd.f32 %v1291_v27, %v7003_v23  ;;  %v1303_v31 = vsel %vm8549_vm14, %v1289_v24, -inf  ;;  %vm8563_vm14 = vmmov %vm8511_vm0 }
 0xa84   :  { %1304 = vmax.xlane.f32.xlu0 %v1303_v31  ;;  %v1312_v36 = vsel %vm8552_vm2, %v1300_v32, -inf  ;;  %v5507_v31 = vld [vmem:[%s8500_s4 + $0xe] ss:$0 sm:$0xff]  ;;  %vm8566_vm2 = vmmov %vm8511_vm0 }
 0xa85   :  { %v1306_v34 = vsel %vm8550_vm15, %v1292_v29, -inf  ;;  %vm8564_vm15 = vmmov %vm8511_vm0 }
 0xa86   :  { %1307 = vmax.xlane.f32.xlu1 %v1306_v34 }
 0xa88   :  { %1310 = vmax.xlane.f32.xlu0 %v1309_v35 }
 0xa8a   :  { %1313 = vmax.xlane.f32.xlu1 %v1312_v36 }
 0xb11   :  { %v1305_v39 = vpop.xlane.xlu0 %1304 }
 0xb12   :  { %v1315_v7 = vsub.f32 %v1289_v24, %v1305_v39 }
 0xb13   :  { %v1308_v8 = vpop.xlane.xlu1 %1307 }
 0xb14   :  { %v1319_v12 = vmul.f32 1.442695, %v1315_v7  ;;  %v1316_v40 = vsub.f32 %v1292_v29, %v1308_v8 }
 0xb15   :  { %v1311_v41 = vpop.xlane.xlu0 %1310 }
 0xb16   :  { %6416 = vpow2.f32 %v1319_v12  ;;  %v1321_v42 = vmul.f32 1.442695, %v1316_v40  ;;  %v1317_v43 = vsub.f32 %v1297_v28, %v1311_v41 }
 0xb17   :  { %v1314_v30 = vpop.xlane.xlu1 %1313 }
 0xb18   :  { %6418 = vpow2.f32 %v1321_v42  ;;  %v1323_v44 = vmul.f32 1.442695, %v1317_v43  ;;  %v1318_v45 = vsub.f32 %v1300_v32, %v1314_v30 }
 0xb1a   :  { %6420 = vpow2.f32 %v1323_v44  ;;  %v1325_v46 = vmul.f32 1.442695, %v1318_v45 }
 0xb1c   :  { %6422 = vpow2.f32 %v1325_v46 }
 0xb20   :  { %v6417_v47 = vpop.eup %6416 }
 0xb21   :  { %v1327_v48 = vsel %vm8553_vm3, %v6417_v47, 0.0  ;;  %vm8567_vm3 = vmmov %vm8511_vm0 }
 0xb22   :  { %v6419_v49 = vpop.eup %6418  ;;  %1328 = vadd.xlane.f32.xlu0 %v1327_v48 }
 0xb23   :  { %v1330_v50 = vsel %vm8554_vm4, %v6419_v49, 0.0  ;;  %vm8568_vm4 = vmmov %vm8511_vm0 }
 0xb24   :  { %v6421_v51 = vpop.eup %6420  ;;  %1331 = vadd.xlane.f32.xlu1 %v1330_v50  ;;  %v6338_v50 = vld [vmem:[%s8503_s7 + $0x10] sm:$0xff]  }
 0xb25   :  { %v1333_v52 = vsel %vm8511_vm0, %v6421_v51, 0.0  ;;  %6003 = vmatprep.subr.bf16.mxu1 %v6338_v50 }
 0xb26   :  { %v6423_v54 = vpop.eup %6422  ;;  %1334 = vadd.xlane.f32.xlu0 %v1333_v52  ;;  %6004 = vmatpush3.bf16.msra.mxu1 %v6338_v50  ;;  %v6650_v52 = vld [vmem:[%s8502_s6] sm:$0xff]  }
 0xb27   :  { %v1336_v56 = vsel %vm8555_vm5, %v6423_v54, 0.0  ;;  %vm8569_vm5 = vmmov %vm8511_vm0 }
 0xb28   :  { %1337 = vadd.xlane.f32.xlu1 %v1336_v56 }
 0xbaf   :  { %v1329_v60 = vpop.xlane.xlu0 %1328 }
 0xbb0   :  { %6424 = vrcp.f32 %v1329_v60 }
 0xbb1   :  { %v1332_v0 = vpop.xlane.xlu1 %1331 }
 0xbb2   :  { %6426 = vrcp.f32 %v1332_v0 }
 0xbb3   :  { %v1335_v58 = vpop.xlane.xlu0 %1334 }
 0xbb4   :  { %6428 = vrcp.f32 %v1335_v58 }
 0xbb5   :  { %v1338_v63 = vpop.xlane.xlu1 %1337 }
 0xbb6   :  { %6430 = vrcp.f32 %v1338_v63 }
 0xbba   :  { %v6425_v2 = vpop.eup %6424 }
 0xbbb   :  { %v1343_v10 = vmul.f32 %v6425_v2, %v6417_v47 }
 0xbbc   :  { %v6427_v4 = vpop.eup %6426 }
 0xbbd   :  { %v1344_v37 = vmul.f32 %v6427_v4, %v6419_v49 }
 0xbbe   :  { %v6429_v38 = vpop.eup %6428 }
 0xbbf   :  { %v1347_v3 = vpack.c.bf16 %v1344_v37, %v1343_v10  ;;  %v1345_v14 = vmul.f32 %v6429_v38, %v6421_v51  ;;  %v6339_v51 = vld [vmem:[%s8503_s7 + $0x18] sm:$0xff]  }
 0xbc0   :  { %v6431_v13 = vpop.eup %6430  ;;  %6005 = vmatprep.subr.bf16.mxu1 %v6339_v51 }
 0xbc1   :  { %v1346_v15 = vmul.f32 %v6431_v13, %v6423_v54  ;;  %5991 = vmatprep.mubr.msk.bf16.mxu0 %vm8556_vm6, %v1347_v3  ;;  %6006 = vmatpush3.bf16.msra.mxu1 %v6339_v51  ;;  %vm8570_vm6 = vmmov %vm8511_vm0 }
 0xbc2   :  { %6019 = vmatprep.subr.bf16.mxu1 %v6650_v52 }
 0xbc3   :  { %v1348_v16 = vpack.c.bf16 %v1346_v15, %v1345_v14 }
 0xbc5   :  { %5992 = vmatmul.mubr.msk.bf16.vlgmr.msra.gmra.mrb[24].mxu0 %vm8557_vm7, %v1348_v16  ;;  %vm8571_vm7 = vmmov %vm8511_vm0 }
 0xbc6   :  { %5996 = vmatpush3.bf16.msra.mxu0 %v6336_v57 }
 0xbc7   :  { %5997 = vmatprep.subr.bf16.mxu0 %v6337_v17 }
 0xbca   :  { %5998 = vmatpush3.bf16.msra.mxu0 %v6337_v17 }
 0xc98   :  { %v5993_v20 = vpop.f32.mrb[24].mxu0 }
 0xc99   :  { %v1391_v22 = vpop.f32.mrb[25].mxu0 }
 0xc9a   :  { %v5994_v24 = vpop.f32.mrb[26].mxu0 }
 0xc9b   :  { %v1407_v25 = vpack.c.bf16 %v5994_v24, %v5993_v20  ;;  %v1394_v27 = vpop.f32.mrb[27].mxu0 }
 0xc9c   :  { %v1406_v28 = vpack.c.bf16 %v1394_v27, %v1391_v22 }
 0xc9e   :  { %5999 = vmatprep.mubr.msk.bf16.mxu0 %vm8558_vm9, %v1406_v28  ;;  %vm8572_vm9 = vmmov %vm8511_vm0 }
 0xc9f   :  { %6000 = vmatmul.mubr.msk.bf16.vlgmr.msra.gmra.mrb[28].mxu0 %vm8559_vm10, %v1407_v25  ;;  %vm8573_vm10 = vmmov %vm8511_vm0 }
 0xd72   :  { %v6001_v29 = vpop.f32.mrb[28].mxu0 }
 0xd73   :  { %v1482_v32 = vadd.f32 %v6001_v29, %v7109_v1  ;;  %v1465_v34 = vpop.f32.mrb[29].mxu0 }
 0xd74   :  { %v1480_v35 = vadd.f32 %v1465_v34, %v7113_v5  ;;  %v6002_v36 = vpop.f32.mrb[30].mxu0 }
 0xd75   :  { %v7219_v39 = vadd.f32 %v5507_v31, %v1482_v32  ;;  %v1483_v7 = vadd.f32 %v6002_v36, %v7115_v9  ;;  %v1468_v8 = vpop.f32.mrb[31].mxu0 }
 0xd76   :  { %v1481_v12 = vadd.f32 %v1468_v8, %v7119_v33  ;;  %v7223_v40 = vadd.f32 %v5507_v31, %v1480_v35 }
 0xd77   :  { %v7225_v41 = vadd.f32 %v5507_v31, %v1483_v7  ;;  %v1501_v42 = vsel %vm8560_vm11, %v7219_v39, 0.0  ;;  %v1513_v45 = vmul.f32 %v7219_v39, %v7219_v39  ;;  %v5508_v7 = vld [vmem:[%s8500_s4 + $0xf] ss:$0 sm:$0xff]  ;;  %vm8574_vm11 = vmmov %vm8511_vm0 }
 0xd78   :  { %1502 = vadd.xlane.f32.xlu0 %v1501_v42  ;;  %v7229_v1 = vadd.f32 %v5507_v31, %v1481_v12  ;;  %v1495_v9 = vsel %vm8562_vm13, %v7223_v40, 0.0  ;;  %v1511_v33 = vmul.f32 %v7223_v40, %v7223_v40  ;;  %vm8576_vm13 = vmmov %vm8511_vm0 }
 0xd79   :  { %v1504_v5 = vsel %vm8561_vm12, %v7225_v41, 0.0  ;;  %v1514_v47 = vmul.f32 %v7225_v41, %v7225_v41  ;;  %v1521_v48 = vsel %vm8566_vm2, %v1513_v45, 0.0  ;;  %vm8575_vm12 = vmmov %vm8511_vm0 }
 0xd7a   :  { %1505 = vadd.xlane.f32.xlu1 %v1504_v5  ;;  %v1498_v43 = vsel %vm8563_vm14, %v7229_v1, 0.0  ;;  %v1512_v30 = vmul.f32 %v7229_v1, %v7229_v1  ;;  %v1515_v44 = vsel %vm8564_vm15, %v1511_v33, 0.0 }
 0xd7b   :  { %v1524_v49 = vsel %vm8567_vm3, %v1514_v47, 0.0 }
 0xd7c   :  { %1496 = vadd.xlane.f32.xlu0 %v1495_v9  ;;  %v1518_v46 = vsel %vm8565_vm1, %v1512_v30, 0.0  ;;  %v5509_v30 = vld [vmem:[%s8500_s4 + $0x10] ss:$0 sm:$0xff] }
 0xd7e   :  { %1499 = vadd.xlane.f32.xlu1 %v1498_v43 }
 0xd80   :  { %1516 = vadd.xlane.f32.xlu0 %v1515_v44 }
 0xd82   :  { %1519 = vadd.xlane.f32.xlu1 %v1518_v46 }
 0xd84   :  { %1522 = vadd.xlane.f32.xlu0 %v1521_v48 }
 0xd86   :  { %1525 = vadd.xlane.f32.xlu1 %v1524_v49 }
 0xe05   :  { %v1503_v54 = vpop.xlane.xlu0 %1502 }
 0xe06   :  { %v1509_v2 = vmul.f32 0.03125, %v1503_v54 }
 0xe07   :  { %v1506_v56 = vpop.xlane.xlu1 %1505 }
 0xe08   :  { %v1510_v37 = vmul.f32 0.03125, %v1506_v56  ;;  %v1533_v16 = vmul.f32 %v1509_v2, %v1509_v2  ;;  %v1541_v5 = vsub.f32 %v7219_v39, %v1509_v2  ;;  %v6340_v2 = vld [vmem:[%s8503_s7 + $0x30] sm:$0xff]  }
 0xe09   :  { %v1497_v57 = vpop.xlane.xlu0 %1496  ;;  %6289 = vmatprep.subr.msk.bf16.mxu0 %vm864_vm8, %v6340_v2 }
 0xe0a   :  { %v1507_v60 = vmul.f32 0.03125, %v1497_v57  ;;  %v1534_v24 = vmul.f32 %v1510_v37, %v1510_v37  ;;  %v1542_v44 = vsub.f32 %v7225_v41, %v1510_v37  ;;  %v6653_v37 = vld [vmem:[%s8502_s6 + $0x40] sm:$0xff]  }
 0xe0b   :  { %v1500_v0 = vpop.xlane.xlu1 %1499 }
 0xe0c   :  { %v1508_v58 = vmul.f32 0.03125, %v1500_v0  ;;  %v1531_v4 = vmul.f32 %v1507_v60, %v1507_v60  ;;  %v1539_v35 = vsub.f32 %v7223_v40, %v1507_v60 }
 0xe0d   :  { %v1517_v63 = vpop.xlane.xlu0 %1516 }
 0xe0e   :  { %v1527_v10 = vmul.f32 0.03125, %v1517_v63  ;;  %v1532_v3 = vmul.f32 %v1508_v58, %v1508_v58  ;;  %v1540_v8 = vsub.f32 %v7229_v1, %v1508_v58  ;;  %v6651_v58 = vld [vmem:[%s8502_s6 + $0x8] sm:$0xff]   ;;  %v7276_v63 = vld [vmem:[%s8502_s6 + $0x20] sm:$0xff]  }
 0xe0f   :  { %v1520_v38 = vpop.xlane.xlu1 %1519 }
 0xe10   :  { %v1535_v13 = vsub.f32 %v1527_v10, %v1531_v4  ;;  %v1528_v14 = vmul.f32 0.03125, %v1520_v38  ;;  %v6341_v4 = vld [vmem:[%s8503_s7 + $0x38] sm:$0xff]   ;;  %v5514_v38 = vld [vmem:[%s8501_s5 + $0x1] ss:$0 sm:$0xff] }
 0xe11   :  { %v1523_v15 = vpop.xlane.xlu0 %1522  ;;  %v7292_v10 = vsel %vm864_vm8, %v6341_v4, 0 }
 0xe12   :  { %v1543_v17 = vadd.f32 1e-05, %v1535_v13  ;;  %v1536_v20 = vsub.f32 %v1528_v14, %v1532_v3  ;;  %v1529_v22 = vmul.f32 0.03125, %v1523_v15 }
 0xe13   :  { %v1526_v25 = vpop.xlane.xlu1 %1525 }
 0xe14   :  { %6432 = vrsqrt.f32 %v1543_v17  ;;  %v1544_v27 = vadd.f32 1e-05, %v1536_v20  ;;  %v1537_v28 = vsub.f32 %v1529_v22, %v1533_v16  ;;  %v1530_v29 = vmul.f32 0.03125, %v1526_v25 }
 0xe16   :  { %6434 = vrsqrt.f32 %v1544_v27  ;;  %v1545_v31 = vadd.f32 1e-05, %v1537_v28  ;;  %v1538_v32 = vsub.f32 %v1530_v29, %v1534_v24 }
 0xe18   :  { %6436 = vrsqrt.f32 %v1545_v31  ;;  %v1546_v34 = vadd.f32 1e-05, %v1538_v32 }
 0xe1a   :  { %6438 = vrsqrt.f32 %v1546_v34 }
 0xe1e   :  { %v6433_v36 = vpop.eup %6432 }
 0xe1f   :  { %v1551_v12 = vmul.f32 %v6433_v36, %v1539_v35 }
 0xe20   :  { %v6435_v42 = vpop.eup %6434 }
 0xe21   :  { %v1552_v9 = vmul.f32 %v6435_v42, %v1540_v8  ;;  %v1559_v33 = vmul.f32 %v5508_v7, %v1551_v12 }
 0xe22   :  { %v6437_v43 = vpop.eup %6436 }
 0xe23   :  { %v1553_v45 = vmul.f32 %v6437_v43, %v1541_v5  ;;  %v1560_v46 = vmul.f32 %v5508_v7, %v1552_v9  ;;  %v1567_v49 = vadd.f32 %v5509_v30, %v1559_v33 }
 0xe24   :  { %v6439_v47 = vpop.eup %6438 }
 0xe25   :  { %v1554_v48 = vmul.f32 %v6439_v47, %v1542_v44  ;;  %v1568_v50 = vadd.f32 %v5509_v30, %v1560_v46  ;;  %v1561_v51 = vmul.f32 %v5508_v7, %v1553_v45 }
 0xe27   :  { %v1571_v54 = vpack.c.bf16 %v1568_v50, %v1567_v49  ;;  %v1562_v56 = vmul.f32 %v5508_v7, %v1554_v48  ;;  %v1569_v57 = vadd.f32 %v5509_v30, %v1561_v51 }
 0xe29   :  { %6007 = vmatprep.mubr.msk.bf16.mxu1 %vm8568_vm4, %v1571_v54  ;;  %v1570_v60 = vadd.f32 %v5509_v30, %v1562_v56 }
 0xe2b   :  { %v1572_v0 = vpack.c.bf16 %v1570_v60, %v1569_v57 }
 0xe2d   :  { %6008 = vmatmul.mubr.msk.bf16.vlgmr.msra.gmra.mrb[24].mxu1 %vm8511_vm0, %v1572_v0 }
 0xe2e   :  { %6020 = vmatpush3.bf16.msra.mxu1 %v6650_v52  ;;  %v7284_v52 = vsel %vm864_vm8, %v6340_v2, 0 }
 0xe2f   :  { %6021 = vmatprep.subr.bf16.mxu1 %v6651_v58  ;;  %6012 = vmatpush3.bf16.xpose.msra.mxu0 %v7284_v52 }
 0xe30   :  { %6290 = vmatprep.subr.msk.bf16.mxu0 %vm864_vm8, %v6341_v4 }
 0xe32   :  { %6022 = vmatpush3.bf16.msra.mxu1 %v6651_v58 }
 0xe33   :  { %6027 = vmatprep.subr.bf16.mxu1 %v7276_v63 }
 0xe37   :  { %6014 = vmatpush3.bf16.xpose.msra.mxu0 %v7292_v10 }
 0xe38   :  { %6035 = vmatprep.subr.bf16.mxu0 %v6653_v37 }
 0xf00   :  { %v6009_v3 = vpop.f32.mrb[24].mxu1 }
 0xf01   :  { %v1644_v13 = vadd.f32 %v6009_v3, %v5514_v38  ;;  %v1635_v14 = vpop.f32.mrb[25].mxu1 }
 0xf02   :  { %v1636_v15 = vadd.f32 %v5514_v38, %v1635_v14  ;;  %v6010_v16 = vpop.f32.mrb[26].mxu1 }
 0xf03   :  { %v1652_v17 = vmul.f32 %v1644_v13, %v1644_v13  ;;  %v1647_v20 = vadd.f32 %v6010_v16, %v5514_v38  ;;  %v1638_v22 = vpop.f32.mrb[27].mxu1  ;;  %v6654_v16 = vld [vmem:[%s8502_s6 + $0x48] sm:$0xff]  }
 0xf04   :  { %v1650_v24 = vmul.f32 %v1636_v15, %v1636_v15  ;;  %v1639_v25 = vadd.f32 %v5514_v38, %v1638_v22 }
 0xf05   :  { %v1656_v27 = vmul.f32 %v1652_v17, %v1644_v13  ;;  %v1653_v28 = vmul.f32 %v1647_v20, %v1647_v20 }
 0xf06   :  { %v1654_v29 = vmul.f32 %v1650_v24, %v1636_v15  ;;  %v1651_v31 = vmul.f32 %v1639_v25, %v1639_v25 }
 0xf07   :  { %v1660_v32 = vmul.f32 0.044715, %v1656_v27  ;;  %v1657_v34 = vmul.f32 %v1653_v28, %v1647_v20 }
 0xf08   :  { %v1658_v35 = vmul.f32 0.044715, %v1654_v29  ;;  %v1655_v36 = vmul.f32 %v1651_v31, %v1639_v25 }
 0xf09   :  { %v1664_v7 = vadd.f32 %v1660_v32, %v1644_v13  ;;  %v1661_v8 = vmul.f32 0.044715, %v1657_v34 }
 0xf0a   :  { %v1662_v12 = vadd.f32 %v1658_v35, %v1636_v15  ;;  %v1659_v42 = vmul.f32 0.044715, %v1655_v36 }
 0xf0b   :  { %v1668_v5 = vmul.f32 0.7978846, %v1664_v7  ;;  %v1665_v9 = vadd.f32 %v1661_v8, %v1647_v20 }
 0xf0c   :  { %v1666_v33 = vmul.f32 0.7978846, %v1662_v12  ;;  %v1663_v43 = vadd.f32 %v1659_v42, %v1639_v25 }
 0xf0d   :  { %6440 = vtanh.f32 %v1668_v5  ;;  %v1669_v30 = vmul.f32 0.7978846, %v1665_v9 }
 0xf0e   :  { %6442 = vtanh.f32 %v1666_v33  ;;  %v1667_v44 = vmul.f32 0.7978846, %v1663_v43 }
 0xf0f   :  { %6444 = vtanh.f32 %v1669_v30 }
 0xf10   :  { %6446 = vtanh.f32 %v1667_v44 }
 0xf17   :  { %v6441_v45 = vpop.eup %6440 }
 0xf18   :  { %v6443_v46 = vpop.eup %6442  ;;  %v1676_v47 = vadd.f32 1.0, %v6441_v45 }
 0xf19   :  { %v6445_v48 = vpop.eup %6444  ;;  %v1674_v49 = vadd.f32 1.0, %v6443_v46 }
 0xf1a   :  { %v6447_v50 = vpop.eup %6446  ;;  %v1680_v51 = vmul.f32 0.5, %v1676_v47  ;;  %v1677_v54 = vadd.f32 1.0, %v6445_v48 }
 0xf1b   :  { %v1678_v56 = vmul.f32 0.5, %v1674_v49  ;;  %v1675_v57 = vadd.f32 1.0, %v6447_v50 }
 0xf1c   :  { %v1681_v60 = vmul.f32 0.5, %v1677_v54  ;;  %v1684_v58 = vmul.f32 %v1680_v51, %v1644_v13  ;;  %v5527_v13 = vld [vmem:[%s8500_s4 + $0x11] ss:$0 sm:$0xff] }
 0xf1d   :  { %v1679_v0 = vmul.f32 0.5, %v1675_v57  ;;  %v1682_v4 = vmul.f32 %v1678_v56, %v1636_v15 }
 0xf1e   :  { %v1685_v2 = vmul.f32 %v1681_v60, %v1647_v20 }
 0xf1f   :  { %v1683_v38 = vmul.f32 %v1679_v0, %v1639_v25 }
 0xf20   :  { %v1687_v3 = vpack.c.bf16 %v1685_v2, %v1684_v58 }
 0xf21   :  { %v1686_v14 = vpack.c.bf16 %v1683_v38, %v1682_v4 }
 0xf23   :  { %6015 = vmatprep.mubr.msk.bf16.mxu0 %vm864_vm8, %v1686_v14 }
 0xf24   :  { %6016 = vmatmul.mubr.msk.bf16.vlgmr.msra.gmra.mrb[32].mxu0 %vm864_vm8, %v1687_v3 }
 0xf25   :  { %6036 = vmatpush3.bf16.msra.mxu0 %v6653_v37 }
 0xf26   :  { %6037 = vmatprep.subr.bf16.mxu0 %v6654_v16 }
 0xf29   :  { %6038 = vmatpush3.bf16.msra.mxu0 %v6654_v16 }
 0xff7   :  { %v6017_v17 = vpop.f32.mrb[32].mxu0 }
 0xff8   :  { %v1766_v15 = vadd.f32 %v6017_v17, %v7219_v39  ;;  %v1749_v20 = vpop.f32.mrb[33].mxu0 }
 0xff9   :  { %v1764_v22 = vadd.f32 %v1749_v20, %v7223_v40  ;;  %v6018_v24 = vpop.f32.mrb[34].mxu0 }
 0xffa   :  { %v7311_v25 = vadd.f32 %v5527_v13, %v1766_v15  ;;  %v1767_v37 = vadd.f32 %v6018_v24, %v7225_v41  ;;  %v1752_v27 = vpop.f32.mrb[35].mxu0  ;;  %v1872_v24 = vstv %s1871_s16  ;;  %s3368_s16 = sadd.s32 16, %s7868_s13 }
 0xffb   :  { %v7314_v28 = vadd.f32 %v5527_v13, %v1764_v22  ;;  %v1765_v29 = vadd.f32 %v1752_v27, %v7229_v1  ;;  %v1865_v22 = vstv %s7341_s14  ;;  %v1887_v27 = vstv %s1886_s17  ;;  %s3360_s14 = scalar_select %p3359_p7, 1, 0 }
 0xffc   :  { %v1785_v31 = vsel %vm8569_vm5, %v7311_v25, 0.0  ;;  %v7319_v32 = vadd.f32 %v5527_v13, %v1767_v37  ;;  %v1797_v7 = vmul.f32 %v7311_v25, %v7311_v25  ;;  %v1880_v37 = vstv %s1879_s18 }
 0xffd   :  { %v7321_v34 = vadd.f32 %v5527_v13, %v1765_v29  ;;  %1786 = vadd.xlane.f32.xlu1 %v1785_v31  ;;  %v1779_v39 = vsel %vm8570_vm6, %v7314_v28, 0.0  ;;  %v1795_v35 = vmul.f32 %v7314_v28, %v7314_v28  ;;  %vm7349_vm14 = vcmp.eq.s32.totalorder %v1872_v24, 1  ;;  %v6658_v24 = vld [vmem:[%s8497_s1 + $0x8] sm:$0xff] }
 0xffe   :  { %1780 = vadd.xlane.f32.xlu0 %v1779_v39  ;;  %v1788_v1 = vsel %vm8572_vm9, %v7319_v32, 0.0  ;;  %v1798_v12 = vmul.f32 %v7319_v32, %v7319_v32  ;;  %v1805_v42 = vsel %vm8575_vm12, %v1797_v7, 0.0  ;;  %vm1867_vm15 = vcmp.eq.s32.totalorder %v6985_v6, %v1865_v22 }
 0xfff   :  { %v1782_v40 = vsel %vm8571_vm7, %v7321_v34, 0.0  ;;  %v1796_v41 = vmul.f32 %v7321_v34, %v7321_v34  ;;  %v1799_v8 = vsel %vm8574_vm11, %v1795_v35, 0.0  ;;  %vm7355_vm1 = vcmp.eq.s32.totalorder %v1887_v27, 1  ;;  %vm7368_vm0 = vmand %vm1867_vm15, %vm7349_vm14  ;;  %v6659_v27 = vld [vmem:[%s8497_s1 + $0x20] sm:$0xff] }
0x1000   :  { %v1808_v5 = vsel %vm8576_vm13, %v1798_v12, 0.0  ;;  %vm1882_vm2 = vcmp.eq.s32.totalorder %v6985_v6, %v1880_v37  ;;  %vm1868_vm3 = vcmp.eq.s32.totalorder %v6977_v62, %v1865_v22  ;;  %vm1866_vm4 = vcmp.eq.s32.totalorder %v6969_v59, %v1865_v22 }
0x1001   :  { %1783 = vadd.xlane.f32.xlu1 %v1782_v40  ;;  %v1802_v36 = vsel %vm8573_vm10, %v1796_v41, 0.0  ;;  %vm1881_vm5 = vcmp.eq.s32.totalorder %v6969_v59, %v1880_v37  ;;  %vm7378_vm6 = vmand %vm1882_vm2, %vm7355_vm1  ;;  %vm1869_vm7 = vcmp.eq.s32.totalorder %v6990_v11, %v1865_v22  ;;  %vm1884_vm11 = vcmp.eq.s32.totalorder %v6990_v11, %v1880_v37 }
0x1002   :  { %1789 = vadd.xlane.f32.xlu0 %v1788_v1  ;;  %v5528_v1 = vld [vmem:[%s8500_s4 + $0x12] ss:$0 sm:$0xff]  ;;  %vm7386_vm9 = vmand %vm1868_vm3, %vm7349_vm14  ;;  %vm1883_vm13 = vcmp.eq.s32.totalorder %v6977_v62, %v1880_v37 }
0x1003   :  { %vm7393_vm10 = vmand %vm1866_vm4, %vm7349_vm14 }
0x1004   :  { %vm7400_vm12 = vmand %vm1881_vm5, %vm7355_vm1 }
0x1005   :  { %1803 = vadd.xlane.f32.xlu1 %v1802_v36  ;;  %vm7407_vm15 = vmand %vm1869_vm7, %vm7349_vm14  ;;  %vm1859_vm14 = vcmp.lt.s32.totalorder %v6969_v59, 1 }
0x1006   :  { %1800 = vadd.xlane.f32.xlu0 %v1799_v8  ;;  %vm7413_vm2 = vmand %vm1884_vm11, %vm7355_vm1 }
0x1007   :  { %vm7419_vm3 = vmand %vm1883_vm13, %vm7355_vm1 }
0x1008   :  { %vm1893_vm4 = vmor %vm7393_vm10, %vm7400_vm12 }
0x1009   :  { %1806 = vadd.xlane.f32.xlu1 %v1805_v42  ;;  %vm1896_vm5 = vmor %vm7407_vm15, %vm7413_vm2 }
0x100a   :  { %1809 = vadd.xlane.f32.xlu0 %v1808_v5  ;;  %vm1895_vm1 = vmor %vm7386_vm9, %vm7419_vm3 }
0x100b   :  { %vm1894_vm7 = vmor %vm7368_vm0, %vm7378_vm6  ;;  %vm8597_vm0 = vcmask 261120  }
0x100c   :  { %vm8598_vm6 = vmmov %vm8597_vm0 }
0x100d   :  { %vm8599_vm9 = vmmov %vm8597_vm0 }
0x100e   :  { %vm8600_vm10 = vmmov %vm8597_vm0 }
0x100f   :  { %vm8601_vm11 = vmmov %vm8597_vm0 }
0x1010   :  { %vm8602_vm12 = vmmov %vm8597_vm0 }
0x1011   :  { %vm8603_vm13 = vmmov %vm8597_vm0 }
0x1012   :  { %vm8604_vm15 = vmmov %vm8597_vm0 }
0x1013   :  { %vm8605_vm2 = vmmov %vm8597_vm0 }
0x1014   :  { %vm8606_vm3 = vmmov %vm8597_vm0 }
0x108a   :  { %v1787_v9 = vpop.xlane.xlu1 %1786 }
0x108b   :  { %v1781_v33 = vpop.xlane.xlu0 %1780  ;;  %v1793_v47 = vmul.f32 0.03125, %v1787_v9 }
0x108c   :  { %v1791_v45 = vmul.f32 0.03125, %v1781_v33 }
0x108d   :  { %v1817_v58 = vmul.f32 %v1793_v47, %v1793_v47  ;;  %v1825_v12 = vsub.f32 %v7311_v25, %v1793_v47 }
0x108e   :  { %v1784_v43 = vpop.xlane.xlu1 %1783  ;;  %v1815_v51 = vmul.f32 %v1791_v45, %v1791_v45  ;;  %v1823_v41 = vsub.f32 %v7314_v28, %v1791_v45  ;;  %v5529_v28 = vld [vmem:[%s8500_s4 + $0x13] ss:$0 sm:$0xff] }
0x108f   :  { %v1792_v30 = vmul.f32 0.03125, %v1784_v43  ;;  %v1790_v44 = vpop.xlane.xlu0 %1789 }
0x1090   :  { %v1794_v54 = vmul.f32 0.03125, %v1790_v44 }
0x1091   :  { %v1816_v48 = vmul.f32 %v1792_v30, %v1792_v30  ;;  %v1824_v31 = vsub.f32 %v7321_v34, %v1792_v30 }
0x1092   :  { %v1804_v46 = vpop.xlane.xlu1 %1803  ;;  %v1818_v3 = vmul.f32 %v1794_v54, %v1794_v54  ;;  %v1826_v33 = vsub.f32 %v7319_v32, %v1794_v54 }
0x1093   :  { %v1812_v49 = vmul.f32 0.03125, %v1804_v46  ;;  %v1801_v50 = vpop.xlane.xlu0 %1800 }
0x1094   :  { %v1811_v56 = vmul.f32 0.03125, %v1801_v50 }
0x1095   :  { %v1820_v57 = vsub.f32 %v1812_v49, %v1816_v48 }
0x1096   :  { %v1819_v60 = vsub.f32 %v1811_v56, %v1815_v51  ;;  %v1807_v0 = vpop.xlane.xlu1 %1806 }
0x1097   :  { %v1828_v2 = vadd.f32 1e-05, %v1820_v57  ;;  %v1813_v4 = vmul.f32 0.03125, %v1807_v0  ;;  %v1810_v38 = vpop.xlane.xlu0 %1809 }
0x1098   :  { %v1827_v14 = vadd.f32 1e-05, %v1819_v60  ;;  %v1814_v16 = vmul.f32 0.03125, %v1810_v38 }
0x1099   :  { %6448 = vrsqrt.f32 %v1828_v2  ;;  %v1821_v17 = vsub.f32 %v1813_v4, %v1817_v58 }
0x109a   :  { %6450 = vrsqrt.f32 %v1827_v14  ;;  %v1822_v13 = vsub.f32 %v1814_v16, %v1818_v3  ;;  %v6655_v16 = vld [vmem:[%s8497_s1] sm:$0xff] }
0x109b   :  { %v1829_v15 = vadd.f32 1e-05, %v1821_v17 }
0x109c   :  { %v1830_v20 = vadd.f32 1e-05, %v1822_v13  ;;  %v6656_v13 = vld [vmem:[%s8497_s1 + $0x18] sm:$0xff] }
0x109d   :  { %6452 = vrsqrt.f32 %v1829_v15 }
0x109e   :  { %6454 = vrsqrt.f32 %v1830_v20  ;;  %v6657_v20 = vld [vmem:[%s8497_s1 + $0x10] sm:$0xff] }
0x10a3   :  { %v6449_v40 = vpop.eup %6448 }
0x10a4   :  { %v6451_v35 = vpop.eup %6450  ;;  %v1836_v36 = vmul.f32 %v6449_v40, %v1824_v31  ;;  %v6660_v31 = vld [vmem:[%s8497_s1 + $0x38] sm:$0xff] }
0x10a5   :  { %v1835_v7 = vmul.f32 %v6451_v35, %v1823_v41 }
0x10a6   :  { %v1844_v42 = vmul.f32 %v5528_v1, %v1836_v36  ;;  %v6662_v36 = vld [vmem:[%s8497_s1 + $0x28] sm:$0xff] }
0x10a7   :  { %v6453_v9 = vpop.eup %6452  ;;  %v1843_v43 = vmul.f32 %v5528_v1, %v1835_v7 }
0x10a8   :  { %v6455_v25 = vpop.eup %6454  ;;  %v1837_v44 = vmul.f32 %v6453_v9, %v1825_v12  ;;  %v1852_v46 = vadd.f32 %v5529_v28, %v1844_v42 }
0x10a9   :  { %v1838_v32 = vmul.f32 %v6455_v25, %v1826_v33  ;;  %v1851_v47 = vadd.f32 %v5529_v28, %v1843_v43 }
0x10aa   :  { %v1845_v49 = vmul.f32 %v5528_v1, %v1837_v44  ;;  %v1856_v56 = vrot.slane %v1852_v46, 7 }
0x10ab   :  { %v1846_v51 = vmul.f32 %v5528_v1, %v1838_v32  ;;  %v1855_v54 = vrot.slane %v1851_v47, 7  ;;  %v6661_v1 = vld [vmem:[%s8497_s1 + $0x30] sm:$0xff] }
0x10ac   :  { %v1853_v60 = vadd.f32 %v5529_v28, %v1845_v49 }
0x10ad   :  { %v1854_v0 = vadd.f32 %v5529_v28, %v1846_v51  ;;  %v1862_v4 = vsel %vm1859_vm14, %v1855_v54, %v1856_v56 }
0x10ae   :  { %v1857_v58 = vrot.slane %v1853_v60, 7  ;;  %v7466_v37 = vsel %vm1894_vm7, %v1862_v4, %v6658_v24  ;;  %vm8610_vm7 = vmmov %vm8597_vm0 }
0x10af   :  { %v1858_v2 = vrot.slane %v1854_v0, 7  ;;  %v7494_v34 = vadd.f32 %v6662_v36, %v7466_v37 }
0x10b0   :  { %v1861_v38 = vsel %vm1859_vm14, %v1856_v56, %v1857_v58 }
0x10b1   :  { %v1863_v3 = vsel %vm1859_vm14, %v1858_v2, %v1855_v54  ;;  %v1860_v14 = vsel %vm1859_vm14, %v1857_v58, %v1858_v2  ;;  %v7461_v22 = vsel %vm1895_vm1, %v1861_v38, %v6657_v20  ;;  %v1916_v28 = vsel %vm8600_vm10, %v7494_v34, 0.0  ;;  %vm8609_vm1 = vmmov %vm8597_vm0 }
0x10b2   :  { %v7451_v17 = vsel %vm1893_vm4, %v1863_v3, %v6655_v16  ;;  %v7456_v15 = vsel %vm1896_vm5, %v1860_v14, %v6656_v13  ;;  %v7488_v35 = vadd.f32 %v6661_v1, %v7461_v22  ;;  %v1930_v12 = vmul.f32 %v7494_v34, %v7494_v34  ;;  %vm8607_vm4 = vmmov %vm8597_vm0 }
0x10b3   :  { %v7472_v29 = vadd.f32 %v6659_v27, %v7451_v17  ;;  %v7478_v39 = vadd.f32 %v6660_v31, %v7456_v15  ;;  %vm8608_vm5 = vmmov %vm8597_vm0 }
0x10b4   :  { %v1919_v7 = vsel %vm8599_vm9, %v7488_v35, 0.0  ;;  %v1936_v5 = vsel %vm8602_vm12, %v1930_v12, 0.0  ;;  %v1931_v9 = vmul.f32 %v7488_v35, %v7488_v35  ;;  %vm8612_vm9 = vmmov %vm8597_vm0 }
0x10b5   :  { %v1913_v40 = vsel %vm8597_vm0, %v7472_v29, 0.0  ;;  %v1922_v41 = vsel %vm8598_vm6, %v7478_v39, 0.0  ;;  %v1929_v8 = vmul.f32 %v7472_v29, %v7472_v29  ;;  %v1932_v33 = vmul.f32 %v7478_v39, %v7478_v39  ;;  %vm8611_vm6 = vmmov %vm8597_vm0 }
0x10b6   :  { %1914 = vadd.xlane.f32.xlu0 %v1913_v40  ;;  %1923 = vadd.xlane.f32.xlu1 %v1922_v41  ;;  %v1939_v43 = vsel %vm8603_vm13, %v1931_v9, 0.0  ;;  %vm8613_vm10 = vmmov %vm8597_vm0 }
0x10b7   :  { %v1933_v42 = vsel %vm8601_vm11, %v1929_v8, 0.0  ;;  %v1942_v30 = vsel %vm8604_vm15, %v1932_v33, 0.0  ;;  %vm8614_vm11 = vmmov %vm8597_vm0 }
0x10b8   :  { %vm8615_vm12 = vmmov %vm8597_vm0 }
0x10b9   :  { %vm8616_vm13 = vmmov %vm8597_vm0 }
0x10ba   :  { %1920 = vadd.xlane.f32.xlu0 %v1919_v7  ;;  %1917 = vadd.xlane.f32.xlu1 %v1916_v28  ;;  %vm8617_vm15 = vmmov %vm8597_vm0 }
0x10be   :  { %1934 = vadd.xlane.f32.xlu0 %v1933_v42  ;;  %1937 = vadd.xlane.f32.xlu1 %v1936_v5  ;;  %v6663_v42 = vld [vmem:[%s8500_s4] ss:$0 sm:$0xff] }
0x10c2   :  { %1940 = vadd.xlane.f32.xlu0 %v1939_v43  ;;  %1943 = vadd.xlane.f32.xlu1 %v1942_v30 }
0x1143   :  { %v1915_v25 = vpop.xlane.xlu0 %1914  ;;  %v1924_v44 = vpop.xlane.xlu1 %1923 }
0x1144   :  { %v1925_v32 = vmul.f32 0.03125, %v1915_v25  ;;  %v1928_v48 = vmul.f32 0.03125, %v1924_v44  ;;  %v6664_v44 = vld [vmem:[%s8500_s4 + $0x1] ss:$0 sm:$0xff] }
0x1146   :  { %v1949_v54 = vmul.f32 %v1925_v32, %v1925_v32  ;;  %v1952_v2 = vmul.f32 %v1928_v48, %v1928_v48  ;;  %v1957_v41 = vsub.f32 %v7472_v29, %v1925_v32  ;;  %v1960_v33 = vsub.f32 %v7478_v39, %v1928_v48 }
0x1147   :  { %v1921_v45 = vpop.xlane.xlu0 %1920  ;;  %v1918_v46 = vpop.xlane.xlu1 %1917 }
0x1148   :  { %v1926_v47 = vmul.f32 0.03125, %v1918_v46  ;;  %v1927_v49 = vmul.f32 0.03125, %v1921_v45 }
0x114a   :  { %v1950_v56 = vmul.f32 %v1926_v47, %v1926_v47  ;;  %v1951_v4 = vmul.f32 %v1927_v49, %v1927_v49  ;;  %v1958_v36 = vsub.f32 %v7494_v34, %v1926_v47  ;;  %v1959_v12 = vsub.f32 %v7488_v35, %v1927_v49 }
0x114b   :  { %v1935_v50 = vpop.xlane.xlu0 %1934  ;;  %v1938_v51 = vpop.xlane.xlu1 %1937 }
0x114c   :  { %v1945_v57 = vmul.f32 0.03125, %v1935_v50  ;;  %v1946_v60 = vmul.f32 0.03125, %v1938_v51 }
0x114e   :  { %v1953_v0 = vsub.f32 %v1945_v57, %v1949_v54  ;;  %v1954_v58 = vsub.f32 %v1946_v60, %v1950_v56  ;;  %v6665_v56 = vld [vmem:[%s8502_s6 + $0x28] sm:$0xff]  }
0x114f   :  { %v1941_v38 = vpop.xlane.xlu0 %1940  ;;  %v1944_v3 = vpop.xlane.xlu1 %1943 }
0x1150   :  { %v1961_v14 = vadd.f32 1e-05, %v1953_v0  ;;  %v1962_v16 = vadd.f32 1e-05, %v1954_v58  ;;  %v1947_v13 = vmul.f32 0.03125, %v1941_v38  ;;  %v1948_v20 = vmul.f32 0.03125, %v1944_v3 }
0x1151   :  { %v6667_v3 = vld [vmem:[%s8500_s4 + $0x4] ss:$0 sm:$0xff] }
0x1152   :  { %6456 = vrsqrt.f32 %v1961_v14  ;;  %v1955_v24 = vsub.f32 %v1947_v13, %v1951_v4  ;;  %v1956_v27 = vsub.f32 %v1948_v20, %v1952_v2 }
0x1153   :  { %6458 = vrsqrt.f32 %v1962_v16 }
0x1154   :  { %v1963_v31 = vadd.f32 1e-05, %v1955_v24  ;;  %v1964_v40 = vadd.f32 1e-05, %v1956_v27 }
0x1156   :  { %6460 = vrsqrt.f32 %v1963_v31 }
0x1157   :  { %6462 = vrsqrt.f32 %v1964_v40 }
0x115c   :  { %v6457_v1 = vpop.eup %6456 }
0x115d   :  { %v6459_v7 = vpop.eup %6458  ;;  %v1969_v28 = vmul.f32 %v6457_v1, %v1957_v41 }
0x115e   :  { %v1970_v8 = vmul.f32 %v6459_v7, %v1958_v36 }
0x115f   :  { %v1973_v5 = vmul.f32 %v6663_v42, %v1969_v28 }
0x1160   :  { %v6461_v9 = vpop.eup %6460  ;;  %v1974_v43 = vmul.f32 %v6663_v42, %v1970_v8 }
0x1161   :  { %v6463_v30 = vpop.eup %6462  ;;  %v1971_v25 = vmul.f32 %v6461_v9, %v1959_v12  ;;  %v1977_v45 = vadd.f32 %v6664_v44, %v1973_v5  ;;  %v6668_v5 = vld [vmem:[%s8500_s4 + $0x3] ss:$0 sm:$0xff] }
0x1162   :  { %v1972_v46 = vmul.f32 %v6463_v30, %v1960_v33  ;;  %v1978_v32 = vadd.f32 %v6664_v44, %v1974_v43 }
0x1163   :  { %v1975_v47 = vmul.f32 %v6663_v42, %v1971_v25 }
0x1164   :  { %v1981_v49 = vpack.c.bf16 %v1978_v32, %v1977_v45  ;;  %v1976_v50 = vmul.f32 %v6663_v42, %v1972_v46  ;;  %v7545_v46 = vld [vmem:[%s8502_s6 + $0x60] sm:$0xff]  }
0x1165   :  { %v1979_v51 = vadd.f32 %v6664_v44, %v1975_v47 }
0x1166   :  { %6023 = vmatprep.mubr.msk.bf16.mxu1 %vm8605_vm2, %v1981_v49  ;;  %6039 = vmatprep.mubr.msk.bf16.mxu0 %vm8606_vm3, %v1981_v49  ;;  %v1980_v54 = vadd.f32 %v6664_v44, %v1976_v50  ;;  %v6671_v50 = vld [vmem:[%s8503_s7 + $0x8] sm:$0xff]   ;;  %vm8618_vm2 = vmmov %vm8597_vm0 }
0x1167   :  { %vm8619_vm3 = vmmov %vm8597_vm0 }
0x1168   :  { %v1982_v48 = vpack.c.bf16 %v1980_v54, %v1979_v51  ;;  %v7562_v51 = vld [vmem:[%s8502_s6 + $0x10] sm:$0xff]  }
0x116a   :  { %6024 = vmatmul.mubr.msk.bf16.vlgmr.msra.gmra.mrb[28].mxu1 %vm8607_vm4, %v1982_v48  ;;  %6040 = vmatmul.mubr.msk.bf16.vlgmr.msra.gmra.mrb[36].mxu0 %vm8608_vm5, %v1982_v48  ;;  %vm8620_vm4 = vmmov %vm8597_vm0 }
0x116b   :  { %6028 = vmatpush3.bf16.msra.mxu1 %v7276_v63  ;;  %6031 = vmatprep.mubr.msk.bf16.mxu1 %vm8609_vm1, %v1981_v49  ;;  %v6666_v63 = vld [vmem:[%s8500_s4 + $0x2] ss:$0 sm:$0xff]  ;;  %vm8621_vm5 = vmmov %vm8597_vm0 }
0x116c   :  { %6029 = vmatprep.subr.bf16.mxu1 %v6665_v56  ;;  %v6670_v49 = vld [vmem:[%s8503_s7] sm:$0xff]   ;;  %vm8622_vm1 = vmmov %vm8597_vm0 }
0x116f   :  { %6030 = vmatpush3.bf16.msra.mxu1 %v6665_v56 }
0x1172   :  { %6032 = vmatmul.mubr.msk.bf16.vlgmr.msra.gmra.mrb[32].mxu1 %vm8610_vm7, %v1982_v48  ;;  %vm8623_vm7 = vmmov %vm8597_vm0 }
0x123d   :  { %v6025_v57 = vpop.f32.mrb[28].mxu1  ;;  %v6041_v60 = vpop.f32.mrb[36].mxu0 }
0x123e   :  { %v2023_v0 = vpop.f32.mrb[29].mxu1  ;;  %v2121_v58 = vpop.f32.mrb[37].mxu0  ;;  %v2032_v38 = vadd.f32 %v6666_v63, %v6025_v57  ;;  %v2130_v14 = vadd.f32 %v6667_v3, %v6041_v60 }
0x123f   :  { %v6026_v2 = vpop.f32.mrb[30].mxu1  ;;  %v6042_v4 = vpop.f32.mrb[38].mxu0  ;;  %v2024_v27 = vadd.f32 %v6666_v63, %v2023_v0  ;;  %v2122_v31 = vadd.f32 %v6667_v3, %v2121_v58 }
0x1240   :  { %v2035_v16 = vadd.f32 %v6666_v63, %v6026_v2  ;;  %v2133_v13 = vadd.f32 %v6667_v3, %v6042_v4  ;;  %v2026_v20 = vpop.f32.mrb[31].mxu1  ;;  %v2124_v24 = vpop.f32.mrb[39].mxu0 }
0x1241   :  { %v2027_v40 = vadd.f32 %v6666_v63, %v2026_v20  ;;  %v2125_v41 = vadd.f32 %v6667_v3, %v2124_v24 }
0x1242   :  { %v2137_v1 = vpack.c.bf16 %v2035_v16, %v2032_v38  ;;  %v2248_v36 = vpack.c.bf16 %v2133_v13, %v2130_v14 }
0x1243   :  { %v2136_v7 = vpack.c.bf16 %v2027_v40, %v2024_v27  ;;  %v2247_v28 = vpack.c.bf16 %v2125_v41, %v2122_v31 }
0x1245   :  { %v6033_v8 = vpop.f32.mrb[32].mxu1  ;;  %6047 = vmatprep.mubr.msk.bf16.mxu1 %vm8597_vm0, %v2136_v7  ;;  %6051 = vmatprep.subr.bf16.mxu0 %v2247_v28 }
0x1246   :  { %v2072_v12 = vpop.f32.mrb[33].mxu1  ;;  %6052 = vmatpush3.bf16.msra.mxu0 %v2247_v28  ;;  %v2081_v9 = vadd.f32 %v6668_v5, %v6033_v8 }
0x1247   :  { %v6034_v42 = vpop.f32.mrb[34].mxu1  ;;  %6053 = vmatprep.subr.bf16.mxu0 %v2248_v36  ;;  %v2073_v30 = vadd.f32 %v6668_v5, %v2072_v12 }
0x1248   :  { %v2084_v33 = vadd.f32 %v6668_v5, %v6034_v42  ;;  %v2075_v43 = vpop.f32.mrb[35].mxu1 }
0x1249   :  { %v2076_v25 = vadd.f32 %v6668_v5, %v2075_v43 }
0x124a   :  { %v2139_v44 = vpack.c.bf16 %v2084_v33, %v2081_v9  ;;  %6054 = vmatpush3.bf16.msra.mxu0 %v2248_v36 }
0x124b   :  { %v2138_v45 = vpack.c.bf16 %v2076_v25, %v2073_v30  ;;  %6059 = vmatprep.subr.bf16.mxu0 %v7545_v46 }
0x124c   :  { %v2150_v47 = vsel %vm8614_vm11, %v2139_v44, 0  ;;  %vm8627_vm11 = vmmov %vm8597_vm0 }
0x124d   :  { %6291 = vmatprep.subr.msk.bf16.mxu1 %vm8611_vm6, %v2138_v45  ;;  %v2147_v32 = vsel %vm8612_vm9, %v2138_v45, 0  ;;  %vm8624_vm6 = vmmov %vm8597_vm0 }
0x124e   :  { %6044 = vmatpush3.bf16.xpose.msra.mxu1 %v2147_v32  ;;  %vm8625_vm9 = vmmov %vm8597_vm0 }
0x124f   :  { %6292 = vmatprep.subr.msk.bf16.mxu1 %vm8613_vm10, %v2139_v44  ;;  %vm8626_vm10 = vmmov %vm8597_vm0 }
0x1256   :  { %6046 = vmatpush3.bf16.xpose.msra.mxu1 %v2150_v47 }
0x1257   :  { %6067 = vmatprep.subr.bf16.mxu1 %v6670_v49 }
0x125d   :  { %6048 = vmatmul.mubr.msk.bf16.vlgmr.msra.gmra.mrb[36].mxu1 %vm8615_vm12, %v2137_v1  ;;  %vm8628_vm12 = vmmov %vm8597_vm0 }
0x125e   :  { %6068 = vmatpush3.bf16.msra.mxu1 %v6670_v49 }
0x125f   :  { %6069 = vmatprep.subr.bf16.mxu1 %v6671_v50 }
0x1262   :  { %6070 = vmatpush3.bf16.msra.mxu1 %v6671_v50 }
0x1263   :  { %6083 = vmatprep.subr.bf16.mxu1 %v7562_v51 }
0x1330   :  { %v6049_v54 = vpop.f32.mrb[36].mxu1 }
0x1331   :  { %v2186_v48 = vpop.f32.mrb[37].mxu1  ;;  %v2195_v0 = vadd.f32 %v6049_v54, %v7000_v21 }
0x1332   :  { %v2187_v56 = vadd.f32 %v2186_v48, %v6997_v19  ;;  %v6050_v57 = vpop.f32.mrb[38].mxu1 }
0x1333   :  { %v2189_v60 = vpop.f32.mrb[39].mxu1  ;;  %v2198_v4 = vadd.f32 %v6050_v57, %v7007_v26  ;;  %v2207_v38 = vsel %vm8618_vm2, %v2195_v0, -inf  ;;  %vm8631_vm2 = vmmov %vm8597_vm0 }
0x1334   :  { %v2190_v58 = vadd.f32 %v2189_v60, %v7003_v23  ;;  %v2201_v2 = vsel %vm8616_vm13, %v2187_v56, -inf  ;;  %vm8629_vm13 = vmmov %vm8597_vm0 }
0x1335   :  { %2202 = vmax.xlane.f32.xlu0 %v2201_v2  ;;  %v2210_v3 = vsel %vm8619_vm3, %v2198_v4, -inf  ;;  %v6674_v2 = vld [vmem:[%s8503_s7 + $0x20] sm:$0xff]   ;;  %vm8632_vm3 = vmmov %vm8597_vm0 }
0x1336   :  { %v2204_v63 = vsel %vm8617_vm15, %v2190_v58, -inf  ;;  %vm8630_vm15 = vmmov %vm8597_vm0 }
0x1337   :  { %2205 = vmax.xlane.f32.xlu1 %v2204_v63 }
0x1339   :  { %2208 = vmax.xlane.f32.xlu0 %v2207_v38 }
0x133b   :  { %2211 = vmax.xlane.f32.xlu1 %v2210_v3 }
0x13c2   :  { %v2203_v14 = vpop.xlane.xlu0 %2202 }
0x13c3   :  { %v2213_v16 = vsub.f32 %v2187_v56, %v2203_v14 }
0x13c4   :  { %v2206_v13 = vpop.xlane.xlu1 %2205 }
0x13c5   :  { %v2217_v20 = vmul.f32 1.442695, %v2213_v16  ;;  %v2214_v24 = vsub.f32 %v2190_v58, %v2206_v13  ;;  %v6673_v58 = vld [vmem:[%s8502_s6 + $0x68] sm:$0xff]   ;;  %v7598_v13 = vld [vmem:[%s8502_s6 + $0x50] sm:$0xff]  }
0x13c6   :  { %v2209_v27 = vpop.xlane.xlu0 %2208 }
0x13c7   :  { %6464 = vpow2.f32 %v2217_v20  ;;  %v2219_v31 = vmul.f32 1.442695, %v2214_v24  ;;  %v2215_v40 = vsub.f32 %v2195_v0, %v2209_v27 }
0x13c8   :  { %v2212_v41 = vpop.xlane.xlu1 %2211 }
0x13c9   :  { %6466 = vpow2.f32 %v2219_v31  ;;  %v2221_v1 = vmul.f32 1.442695, %v2215_v40  ;;  %v2216_v36 = vsub.f32 %v2198_v4, %v2212_v41  ;;  %v6677_v40 = vld [vmem:[%s8500_s4 + $0x5] ss:$0 sm:$0xff] }
0x13cb   :  { %6468 = vpow2.f32 %v2221_v1  ;;  %v2223_v7 = vmul.f32 1.442695, %v2216_v36 }
0x13cd   :  { %6470 = vpow2.f32 %v2223_v7 }
0x13d1   :  { %v6465_v28 = vpop.eup %6464 }
0x13d2   :  { %v2225_v8 = vsel %vm8620_vm4, %v6465_v28, 0.0  ;;  %vm8633_vm4 = vmmov %vm8597_vm0 }
0x13d3   :  { %v6467_v12 = vpop.eup %6466  ;;  %2226 = vadd.xlane.f32.xlu0 %v2225_v8 }
0x13d4   :  { %v2228_v42 = vsel %vm8621_vm5, %v6467_v12, 0.0  ;;  %vm8634_vm5 = vmmov %vm8597_vm0 }
0x13d5   :  { %v6469_v5 = vpop.eup %6468  ;;  %2229 = vadd.xlane.f32.xlu1 %v2228_v42 }
0x13d6   :  { %v2231_v9 = vsel %vm8622_vm1, %v6469_v5, 0.0  ;;  %vm8635_vm1 = vmmov %vm8597_vm0 }
0x13d7   :  { %v6471_v33 = vpop.eup %6470  ;;  %2232 = vadd.xlane.f32.xlu0 %v2231_v9 }
0x13d8   :  { %v2234_v43 = vsel %vm8623_vm7, %v6471_v33, 0.0  ;;  %vm8636_vm7 = vmmov %vm8597_vm0 }
0x13d9   :  { %2235 = vadd.xlane.f32.xlu1 %v2234_v43 }
0x1460   :  { %v2227_v30 = vpop.xlane.xlu0 %2226 }
0x1461   :  { %6472 = vrcp.f32 %v2227_v30 }
0x1462   :  { %v2230_v25 = vpop.xlane.xlu1 %2229 }
0x1463   :  { %6474 = vrcp.f32 %v2230_v25 }
0x1464   :  { %v2233_v44 = vpop.xlane.xlu0 %2232 }
0x1465   :  { %6476 = vrcp.f32 %v2233_v44 }
0x1466   :  { %v2236_v45 = vpop.xlane.xlu1 %2235 }
0x1467   :  { %6478 = vrcp.f32 %v2236_v45 }
0x146b   :  { %v6473_v32 = vpop.eup %6472 }
0x146c   :  { %v2241_v49 = vmul.f32 %v6473_v32, %v6465_v28 }
0x146d   :  { %v6475_v47 = vpop.eup %6474 }
0x146e   :  { %v2242_v50 = vmul.f32 %v6475_v47, %v6467_v12 }
0x146f   :  { %v6477_v54 = vpop.eup %6476 }
0x1470   :  { %v2245_v48 = vpack.c.bf16 %v2242_v50, %v2241_v49  ;;  %v2243_v57 = vmul.f32 %v6477_v54, %v6469_v5 }
0x1471   :  { %v6479_v56 = vpop.eup %6478 }
0x1472   :  { %v2244_v60 = vmul.f32 %v6479_v56, %v6471_v33  ;;  %6055 = vmatprep.mubr.msk.bf16.mxu0 %vm8597_vm0, %v2245_v48 }
0x1474   :  { %v2246_v0 = vpack.c.bf16 %v2244_v60, %v2243_v57 }
0x1476   :  { %6056 = vmatmul.mubr.msk.bf16.vlgmr.msra.gmra.mrb[40].mxu0 %vm8624_vm6, %v2246_v0  ;;  %vm8637_vm6 = vmmov %vm8597_vm0 }
0x1477   :  { %6060 = vmatpush3.bf16.msra.mxu0 %v7545_v46  ;;  %v6675_v46 = vld [vmem:[%s8503_s7 + $0x28] sm:$0xff]  }
0x1478   :  { %6061 = vmatprep.subr.bf16.mxu0 %v6673_v58 }
0x147b   :  { %6062 = vmatpush3.bf16.msra.mxu0 %v6673_v58 }
0x147c   :  { %6293 = vmatprep.subr.msk.bf16.mxu0 %vm864_vm8, %v6674_v2 }
0x1549   :  { %v6057_v4 = vpop.f32.mrb[40].mxu0 }
0x154a   :  { %v2289_v63 = vpop.f32.mrb[41].mxu0 }
0x154b   :  { %v6058_v38 = vpop.f32.mrb[42].mxu0 }
0x154c   :  { %v2305_v3 = vpack.c.bf16 %v6058_v38, %v6057_v4  ;;  %v2292_v14 = vpop.f32.mrb[43].mxu0 }
0x154d   :  { %v2304_v16 = vpack.c.bf16 %v2292_v14, %v2289_v63 }
0x154f   :  { %6063 = vmatprep.mubr.msk.bf16.mxu0 %vm8625_vm9, %v2304_v16  ;;  %vm8638_vm9 = vmmov %vm8597_vm0 }
0x1550   :  { %6064 = vmatmul.mubr.msk.bf16.vlgmr.msra.gmra.mrb[44].mxu0 %vm8626_vm10, %v2305_v3  ;;  %vm8639_vm10 = vmmov %vm8597_vm0 }
0x1551   :  { %6076 = vmatpush3.bf16.xpose.msra.mxu0 %v7088_v53 }
0x1552   :  { %6294 = vmatprep.subr.msk.bf16.mxu0 %vm864_vm8, %v6675_v46 }
0x1559   :  { %6078 = vmatpush3.bf16.xpose.msra.mxu0 %v7096_v55 }
0x155a   :  { %6099 = vmatprep.subr.bf16.mxu0 %v7598_v13 }
0x1623   :  { %v6065_v20 = vpop.f32.mrb[44].mxu0 }
0x1624   :  { %v2363_v24 = vadd.f32 %v6065_v20, %v7488_v35  ;;  %v2346_v27 = vpop.f32.mrb[45].mxu0 }
0x1625   :  { %v2361_v53 = vadd.f32 %v2346_v27, %v7472_v29  ;;  %v6066_v31 = vpop.f32.mrb[46].mxu0 }
0x1626   :  { %v7606_v41 = vadd.f32 %v6677_v40, %v2363_v24  ;;  %v2364_v55 = vadd.f32 %v6066_v31, %v7478_v39  ;;  %v2349_v1 = vpop.f32.mrb[47].mxu0 }
0x1627   :  { %v2362_v36 = vadd.f32 %v2349_v1, %v7494_v34  ;;  %v7610_v7 = vadd.f32 %v6677_v40, %v2361_v53 }
0x1628   :  { %v7612_v28 = vadd.f32 %v6677_v40, %v2364_v55  ;;  %v2375_v35 = vsel %vm8627_vm11, %v7606_v41, 0.0  ;;  %v2387_v9 = vmul.f32 %v7606_v41, %v7606_v41  ;;  %vm8640_vm11 = vmmov %vm8597_vm0 }
0x1629   :  { %2376 = vadd.xlane.f32.xlu0 %v2375_v35  ;;  %v7616_v29 = vadd.f32 %v6677_v40, %v2362_v36  ;;  %v2369_v39 = vsel %vm8629_vm13, %v7610_v7, 0.0  ;;  %v2385_v34 = vmul.f32 %v7610_v7, %v7610_v7  ;;  %vm8642_vm13 = vmmov %vm8597_vm0 }
0x162a   :  { %v2378_v8 = vsel %vm8628_vm12, %v7612_v28, 0.0  ;;  %v2388_v43 = vmul.f32 %v7612_v28, %v7612_v28  ;;  %v2395_v30 = vsel %vm8633_vm4, %v2387_v9, 0.0  ;;  %vm8641_vm12 = vmmov %vm8597_vm0 }
0x162b   :  { %2379 = vadd.xlane.f32.xlu1 %v2378_v8  ;;  %v2372_v12 = vsel %vm8630_vm15, %v7616_v29, 0.0  ;;  %v2386_v42 = vmul.f32 %v7616_v29, %v7616_v29  ;;  %v2389_v5 = vsel %vm8631_vm2, %v2385_v34, 0.0  ;;  %vm8643_vm15 = vmmov %vm8597_vm0 }
0x162c   :  { %v2398_v25 = vsel %vm8634_vm5, %v2388_v43, 0.0  ;;  %vm8644_vm2 = vmmov %vm8597_vm0 }
0x162d   :  { %2370 = vadd.xlane.f32.xlu0 %v2369_v39  ;;  %v2392_v33 = vsel %vm8632_vm3, %v2386_v42, 0.0  ;;  %v6678_v42 = vld [vmem:[%s8500_s4 + $0x6] ss:$0 sm:$0xff]  ;;  %vm8645_vm3 = vmmov %vm8597_vm0 }
0x162e   :  { %vm8646_vm4 = vmmov %vm8597_vm0 }
0x162f   :  { %2373 = vadd.xlane.f32.xlu1 %v2372_v12  ;;  %vm8647_vm5 = vmmov %vm8597_vm0 }
0x1631   :  { %2390 = vadd.xlane.f32.xlu0 %v2389_v5 }
0x1633   :  { %2393 = vadd.xlane.f32.xlu1 %v2392_v33 }
0x1635   :  { %2396 = vadd.xlane.f32.xlu0 %v2395_v30 }
0x1637   :  { %2399 = vadd.xlane.f32.xlu1 %v2398_v25 }
0x16b6   :  { %v2377_v44 = vpop.xlane.xlu0 %2376 }
0x16b7   :  { %v2383_v48 = vmul.f32 0.03125, %v2377_v44 }
0x16b8   :  { %v2380_v45 = vpop.xlane.xlu1 %2379 }
0x16b9   :  { %v2384_v60 = vmul.f32 0.03125, %v2380_v45  ;;  %v2407_v38 = vmul.f32 %v2383_v48, %v2383_v48  ;;  %v2415_v34 = vsub.f32 %v7606_v41, %v2383_v48  ;;  %v6679_v45 = vld [vmem:[%s8500_s4 + $0x7] ss:$0 sm:$0xff] }
0x16ba   :  { %v2371_v32 = vpop.xlane.xlu0 %2370 }
0x16bb   :  { %v2381_v47 = vmul.f32 0.03125, %v2371_v32  ;;  %v2408_v46 = vmul.f32 %v2384_v60, %v2384_v60  ;;  %v2416_v33 = vsub.f32 %v7612_v28, %v2384_v60  ;;  %v6680_v60 = vld [vmem:[%s8502_s6 + $0x18] sm:$0xff]  }
0x16bc   :  { %v2374_v49 = vpop.xlane.xlu1 %2373 }
0x16bd   :  { %v2382_v50 = vmul.f32 0.03125, %v2374_v49  ;;  %v2405_v56 = vmul.f32 %v2381_v47, %v2381_v47  ;;  %v2413_v1 = vsub.f32 %v7610_v7, %v2381_v47 }
0x16be   :  { %v2391_v54 = vpop.xlane.xlu0 %2390 }
0x16bf   :  { %v2401_v57 = vmul.f32 0.03125, %v2391_v54  ;;  %v2406_v58 = vmul.f32 %v2382_v50, %v2382_v50  ;;  %v2414_v35 = vsub.f32 %v7616_v29, %v2382_v50 }
0x16c0   :  { %v2394_v0 = vpop.xlane.xlu1 %2393 }
0x16c1   :  { %v2409_v2 = vsub.f32 %v2401_v57, %v2405_v56  ;;  %v2402_v4 = vmul.f32 0.03125, %v2394_v0  ;;  %v7655_v0 = vld [vmem:[%s8502_s6 + $0x30] sm:$0xff]  }
0x16c2   :  { %v2397_v63 = vpop.xlane.xlu0 %2396 }
0x16c3   :  { %v2417_v3 = vadd.f32 1e-05, %v2409_v2  ;;  %v2410_v14 = vsub.f32 %v2402_v4, %v2406_v58  ;;  %v2403_v16 = vmul.f32 0.03125, %v2397_v63  ;;  %v6682_v2 = vld [vmem:[%s8501_s5] ss:$0 sm:$0xff] }
0x16c4   :  { %v2400_v20 = vpop.xlane.xlu1 %2399 }
0x16c5   :  { %6480 = vrsqrt.f32 %v2417_v3  ;;  %v2418_v24 = vadd.f32 1e-05, %v2410_v14  ;;  %v2411_v27 = vsub.f32 %v2403_v16, %v2407_v38  ;;  %v2404_v53 = vmul.f32 0.03125, %v2400_v20 }
0x16c7   :  { %6482 = vrsqrt.f32 %v2418_v24  ;;  %v2419_v31 = vadd.f32 1e-05, %v2411_v27  ;;  %v2412_v40 = vsub.f32 %v2404_v53, %v2408_v46 }
0x16c9   :  { %6484 = vrsqrt.f32 %v2419_v31  ;;  %v2420_v55 = vadd.f32 1e-05, %v2412_v40 }
0x16cb   :  { %6486 = vrsqrt.f32 %v2420_v55 }
0x16cf   :  { %v6481_v36 = vpop.eup %6480 }
0x16d0   :  { %v2425_v8 = vmul.f32 %v6481_v36, %v2413_v1 }
0x16d1   :  { %v6483_v39 = vpop.eup %6482 }
0x16d2   :  { %v2426_v12 = vmul.f32 %v6483_v39, %v2414_v35  ;;  %v2429_v5 = vmul.f32 %v6678_v42, %v2425_v8 }
0x16d3   :  { %v6485_v9 = vpop.eup %6484 }
0x16d4   :  { %v2427_v43 = vmul.f32 %v6485_v9, %v2415_v34  ;;  %v2430_v30 = vmul.f32 %v6678_v42, %v2426_v12  ;;  %v2433_v32 = vadd.f32 %v6679_v45, %v2429_v5 }
0x16d5   :  { %v6487_v25 = vpop.eup %6486 }
0x16d6   :  { %v2428_v44 = vmul.f32 %v6487_v25, %v2416_v33  ;;  %v2434_v47 = vadd.f32 %v6679_v45, %v2430_v30  ;;  %v2431_v49 = vmul.f32 %v6678_v42, %v2427_v43 }
0x16d8   :  { %v2437_v50 = vpack.c.bf16 %v2434_v47, %v2433_v32  ;;  %v2432_v54 = vmul.f32 %v6678_v42, %v2428_v44  ;;  %v2435_v48 = vadd.f32 %v6679_v45, %v2431_v49 }
0x16da   :  { %6071 = vmatprep.mubr.msk.bf16.mxu1 %vm8635_vm1, %v2437_v50  ;;  %v2436_v56 = vadd.f32 %v6679_v45, %v2432_v54  ;;  %vm8648_vm1 = vmmov %vm8597_vm0 }
0x16dc   :  { %v2438_v57 = vpack.c.bf16 %v2436_v56, %v2435_v48 }
0x16de   :  { %6072 = vmatmul.mubr.msk.bf16.vlgmr.msra.gmra.mrb[40].mxu1 %vm8636_vm7, %v2438_v57  ;;  %vm8649_vm7 = vmmov %vm8597_vm0 }
0x16df   :  { %6084 = vmatpush3.bf16.msra.mxu1 %v7562_v51 }
0x16e0   :  { %6085 = vmatprep.subr.bf16.mxu1 %v6680_v60 }
0x16e3   :  { %6086 = vmatpush3.bf16.msra.mxu1 %v6680_v60 }
0x16e4   :  { %6091 = vmatprep.subr.bf16.mxu1 %v7655_v0 }
0x17b1   :  { %v6073_v58 = vpop.f32.mrb[40].mxu1 }
0x17b2   :  { %v2488_v4 = vadd.f32 %v6682_v2, %v6073_v58  ;;  %v2479_v51 = vpop.f32.mrb[41].mxu1 }
0x17b3   :  { %v2480_v63 = vadd.f32 %v6682_v2, %v2479_v51  ;;  %v6074_v38 = vpop.f32.mrb[42].mxu1 }
0x17b4   :  { %v2496_v3 = vmul.f32 %v2488_v4, %v2488_v4  ;;  %v2491_v14 = vadd.f32 %v6682_v2, %v6074_v38  ;;  %v2482_v16 = vpop.f32.mrb[43].mxu1 }
0x17b5   :  { %v2494_v46 = vmul.f32 %v2480_v63, %v2480_v63  ;;  %v2483_v20 = vadd.f32 %v6682_v2, %v2482_v16  ;;  %v6683_v16 = vld [vmem:[%s8502_s6 + $0x58] sm:$0xff]  }
0x17b6   :  { %v2500_v24 = vmul.f32 %v2496_v3, %v2488_v4  ;;  %v2497_v27 = vmul.f32 %v2491_v14, %v2491_v14 }
0x17b7   :  { %v2498_v53 = vmul.f32 %v2494_v46, %v2480_v63  ;;  %v2495_v31 = vmul.f32 %v2483_v20, %v2483_v20 }
0x17b8   :  { %v2504_v40 = vmul.f32 0.044715, %v2500_v24  ;;  %v2501_v55 = vmul.f32 %v2497_v27, %v2491_v14  ;;  %v6684_v24 = vld [vmem:[%s8500_s4 + $0x8] ss:$0 sm:$0xff] }
0x17b9   :  { %v2502_v1 = vmul.f32 0.044715, %v2498_v53  ;;  %v2499_v36 = vmul.f32 %v2495_v31, %v2483_v20 }
0x17ba   :  { %v2508_v35 = vadd.f32 %v2504_v40, %v2488_v4  ;;  %v2505_v8 = vmul.f32 0.044715, %v2501_v55 }
0x17bb   :  { %v2506_v39 = vadd.f32 %v2502_v1, %v2480_v63  ;;  %v2503_v34 = vmul.f32 0.044715, %v2499_v36 }
0x17bc   :  { %v2512_v12 = vmul.f32 0.7978846, %v2508_v35  ;;  %v2509_v42 = vadd.f32 %v2505_v8, %v2491_v14 }
0x17bd   :  { %v2510_v5 = vmul.f32 0.7978846, %v2506_v39  ;;  %v2507_v9 = vadd.f32 %v2503_v34, %v2483_v20 }
0x17be   :  { %6488 = vtanh.f32 %v2512_v12  ;;  %v2513_v33 = vmul.f32 0.7978846, %v2509_v42 }
0x17bf   :  { %6490 = vtanh.f32 %v2510_v5  ;;  %v2511_v43 = vmul.f32 0.7978846, %v2507_v9 }
0x17c0   :  { %6492 = vtanh.f32 %v2513_v33 }
0x17c1   :  { %6494 = vtanh.f32 %v2511_v43 }
0x17c8   :  { %v6489_v30 = vpop.eup %6488 }
0x17c9   :  { %v6491_v25 = vpop.eup %6490  ;;  %v2520_v44 = vadd.f32 1.0, %v6489_v30 }
0x17ca   :  { %v6493_v45 = vpop.eup %6492  ;;  %v2518_v32 = vadd.f32 1.0, %v6491_v25 }
0x17cb   :  { %v6495_v47 = vpop.eup %6494  ;;  %v2524_v49 = vmul.f32 0.5, %v2520_v44  ;;  %v2521_v50 = vadd.f32 1.0, %v6493_v45 }
0x17cc   :  { %v2522_v54 = vmul.f32 0.5, %v2518_v32  ;;  %v2519_v48 = vadd.f32 1.0, %v6495_v47 }
0x17cd   :  { %v2525_v56 = vmul.f32 0.5, %v2521_v50  ;;  %v2528_v60 = vmul.f32 %v2524_v49, %v2488_v4 }
0x17ce   :  { %v2523_v57 = vmul.f32 0.5, %v2519_v48  ;;  %v2526_v2 = vmul.f32 %v2522_v54, %v2480_v63 }
0x17cf   :  { %v2529_v58 = vmul.f32 %v2525_v56, %v2491_v14 }
0x17d0   :  { %v2527_v51 = vmul.f32 %v2523_v57, %v2483_v20 }
0x17d1   :  { %v2531_v38 = vpack.c.bf16 %v2529_v58, %v2528_v60 }
0x17d2   :  { %v2530_v3 = vpack.c.bf16 %v2527_v51, %v2526_v2 }
0x17d4   :  { %6079 = vmatprep.mubr.msk.bf16.mxu0 %vm864_vm8, %v2530_v3 }
0x17d5   :  { %6080 = vmatmul.mubr.msk.bf16.vlgmr.msra.gmra.mrb[48].mxu0 %vm864_vm8, %v2531_v38 }
0x17d6   :  { %6100 = vmatpush3.bf16.msra.mxu0 %v7598_v13 }
0x17d7   :  { %6101 = vmatprep.subr.bf16.mxu0 %v6683_v16 }
0x17da   :  { %6102 = vmatpush3.bf16.msra.mxu0 %v6683_v16 }
0x18a8   :  { %v6081_v46 = vpop.f32.mrb[48].mxu0 }
0x18a9   :  { %v2589_v4 = vadd.f32 %v6081_v46, %v7606_v41  ;;  %v2572_v14 = vpop.f32.mrb[49].mxu0 }
0x18aa   :  { %v2587_v63 = vadd.f32 %v2572_v14, %v7610_v7  ;;  %v6082_v20 = vpop.f32.mrb[50].mxu0 }
0x18ab   :  { %v7672_v27 = vadd.f32 %v6684_v24, %v2589_v4  ;;  %v2590_v13 = vadd.f32 %v6082_v20, %v7612_v28  ;;  %v2575_v53 = vpop.f32.mrb[51].mxu0 }
0x18ac   :  { %v2588_v31 = vadd.f32 %v2575_v53, %v7616_v29  ;;  %v7676_v40 = vadd.f32 %v6684_v24, %v2587_v63 }
0x18ad   :  { %v7678_v55 = vadd.f32 %v6684_v24, %v2590_v13  ;;  %v2601_v41 = vsel %vm8597_vm0, %v7672_v27, 0.0  ;;  %v2613_v39 = vmul.f32 %v7672_v27, %v7672_v27 }
0x18ae   :  { %2602 = vadd.xlane.f32.xlu0 %v2601_v41  ;;  %v7682_v7 = vadd.f32 %v6684_v24, %v2588_v31  ;;  %v2595_v28 = vsel %vm8638_vm9, %v7676_v40, 0.0  ;;  %v2611_v29 = vmul.f32 %v7676_v40, %v7676_v40  ;;  %vm8651_vm9 = vmmov %vm8597_vm0 }
0x18af   :  { %v2604_v1 = vsel %vm8637_vm6, %v7678_v55, 0.0  ;;  %v2614_v12 = vmul.f32 %v7678_v55, %v7678_v55  ;;  %v2621_v42 = vsel %vm8642_vm13, %v2613_v39, 0.0  ;;  %vm8650_vm6 = vmmov %vm8597_vm0 }
0x18b0   :  { %2605 = vadd.xlane.f32.xlu1 %v2604_v1  ;;  %v2598_v36 = vsel %vm8639_vm10, %v7682_v7, 0.0  ;;  %v2612_v35 = vmul.f32 %v7682_v7, %v7682_v7  ;;  %v2615_v8 = vsel %vm8640_vm11, %v2611_v29, 0.0  ;;  %vm8652_vm10 = vmmov %vm8597_vm0 }
0x18b1   :  { %v2624_v5 = vsel %vm8643_vm15, %v2614_v12, 0.0  ;;  %vm8653_vm11 = vmmov %vm8597_vm0 }
0x18b2   :  { %2596 = vadd.xlane.f32.xlu0 %v2595_v28  ;;  %v2618_v34 = vsel %vm8641_vm12, %v2612_v35, 0.0  ;;  %vm8654_vm12 = vmmov %vm8597_vm0 }
0x18b3   :  { %vm8655_vm13 = vmmov %vm8597_vm0 }
0x18b4   :  { %2599 = vadd.xlane.f32.xlu1 %v2598_v36  ;;  %v6685_v36 = vld [vmem:[%s8500_s4 + $0x9] ss:$0 sm:$0xff]  ;;  %vm8656_vm15 = vmmov %vm8597_vm0 }
0x18b6   :  { %2616 = vadd.xlane.f32.xlu0 %v2615_v8 }
0x18b8   :  { %2619 = vadd.xlane.f32.xlu1 %v2618_v34 }
0x18ba   :  { %2622 = vadd.xlane.f32.xlu0 %v2621_v42 }
0x18bc   :  { %2625 = vadd.xlane.f32.xlu1 %v2624_v5 }
0x193b   :  { %v2603_v9 = vpop.xlane.xlu0 %2602 }
0x193c   :  { %v2609_v32 = vmul.f32 0.03125, %v2603_v9  ;;  %v6686_v9 = vld [vmem:[%s8500_s4 + $0xa] ss:$0 sm:$0xff] }
0x193d   :  { %v2606_v33 = vpop.xlane.xlu1 %2605 }
0x193e   :  { %v2610_v50 = vmul.f32 0.03125, %v2606_v33  ;;  %v2633_v58 = vmul.f32 %v2609_v32, %v2609_v32  ;;  %v2641_v28 = vsub.f32 %v7672_v27, %v2609_v32 }
0x193f   :  { %v2597_v43 = vpop.xlane.xlu0 %2596 }
0x1940   :  { %v2607_v30 = vmul.f32 0.03125, %v2597_v43  ;;  %v2634_v3 = vmul.f32 %v2610_v50, %v2610_v50  ;;  %v2642_v39 = vsub.f32 %v7678_v55, %v2610_v50 }
0x1941   :  { %v2600_v25 = vpop.xlane.xlu1 %2599 }
0x1942   :  { %v2608_v44 = vmul.f32 0.03125, %v2600_v25  ;;  %v2631_v47 = vmul.f32 %v2607_v30, %v2607_v30  ;;  %v2639_v13 = vsub.f32 %v7676_v40, %v2607_v30 }
0x1943   :  { %v2617_v45 = vpop.xlane.xlu0 %2616 }
0x1944   :  { %v2627_v49 = vmul.f32 0.03125, %v2617_v45  ;;  %v2632_v48 = vmul.f32 %v2608_v44, %v2608_v44  ;;  %v2640_v31 = vsub.f32 %v7682_v7, %v2608_v44 }
0x1945   :  { %v2620_v54 = vpop.xlane.xlu1 %2619 }
0x1946   :  { %v2635_v56 = vsub.f32 %v2627_v49, %v2631_v47  ;;  %v2628_v57 = vmul.f32 0.03125, %v2620_v54  ;;  %v6687_v49 = vld [vmem:[%s8502_s6 + $0x38] sm:$0xff]  }
0x1947   :  { %v2623_v60 = vpop.xlane.xlu0 %2622 }
0x1948   :  { %v2643_v2 = vadd.f32 1e-05, %v2635_v56  ;;  %v2636_v51 = vsub.f32 %v2628_v57, %v2632_v48  ;;  %v2629_v38 = vmul.f32 0.03125, %v2623_v60 }
0x1949   :  { %v2626_v16 = vpop.xlane.xlu1 %2625 }
0x194a   :  { %6496 = vrsqrt.f32 %v2643_v2  ;;  %v2644_v46 = vadd.f32 1e-05, %v2636_v51  ;;  %v2637_v4 = vsub.f32 %v2629_v38, %v2633_v58  ;;  %v2630_v14 = vmul.f32 0.03125, %v2626_v16  ;;  %v6689_v2 = vld [vmem:[%s8500_s4 + $0xd] ss:$0 sm:$0xff] }
0x194c   :  { %6498 = vrsqrt.f32 %v2644_v46  ;;  %v2645_v63 = vadd.f32 1e-05, %v2637_v4  ;;  %v2638_v20 = vsub.f32 %v2630_v14, %v2634_v3 }
0x194e   :  { %6500 = vrsqrt.f32 %v2645_v63  ;;  %v2646_v24 = vadd.f32 1e-05, %v2638_v20 }
0x1950   :  { %6502 = vrsqrt.f32 %v2646_v24 }
0x1954   :  { %v6497_v53 = vpop.eup %6496 }
0x1955   :  { %v2651_v41 = vmul.f32 %v6497_v53, %v2639_v13 }
0x1956   :  { %v6499_v1 = vpop.eup %6498 }
0x1957   :  { %v2652_v29 = vmul.f32 %v6499_v1, %v2640_v31  ;;  %v2655_v35 = vmul.f32 %v6685_v36, %v2651_v41 }
0x1958   :  { %v6501_v8 = vpop.eup %6500 }
0x1959   :  { %v2653_v34 = vmul.f32 %v6501_v8, %v2641_v28  ;;  %v2656_v12 = vmul.f32 %v6685_v36, %v2652_v29  ;;  %v2659_v33 = vadd.f32 %v6686_v9, %v2655_v35  ;;  %v6690_v29 = vld [vmem:[%s8500_s4 + $0xc] ss:$0 sm:$0xff] }
0x195a   :  { %v6503_v42 = vpop.eup %6502 }
0x195b   :  { %v2654_v5 = vmul.f32 %v6503_v42, %v2642_v39  ;;  %v2660_v43 = vadd.f32 %v6686_v9, %v2656_v12  ;;  %v2657_v30 = vmul.f32 %v6685_v36, %v2653_v34 }
0x195d   :  { %v2663_v25 = vpack.c.bf16 %v2660_v43, %v2659_v33  ;;  %v2658_v44 = vmul.f32 %v6685_v36, %v2654_v5  ;;  %v2661_v45 = vadd.f32 %v6686_v9, %v2657_v30  ;;  %v7735_v5 = vld [vmem:[%s8502_s6 + $0x70] sm:$0xff]   ;;  %v6693_v30 = vld [vmem:[%s8503_s7 + $0x18] sm:$0xff]  }
0x195e   :  { %v6692_v43 = vld [vmem:[%s8503_s7 + $0x10] sm:$0xff]  }
0x195f   :  { %6087 = vmatprep.mubr.msk.bf16.mxu1 %vm8644_vm2, %v2663_v25  ;;  %6103 = vmatprep.mubr.msk.bf16.mxu0 %vm8645_vm3, %v2663_v25  ;;  %v2662_v32 = vadd.f32 %v6686_v9, %v2658_v44  ;;  %vm8657_vm2 = vmmov %vm8597_vm0 }
0x1960   :  { %vm8658_vm3 = vmmov %vm8597_vm0 }
0x1961   :  { %v2664_v47 = vpack.c.bf16 %v2662_v32, %v2661_v45 }
0x1963   :  { %6088 = vmatmul.mubr.msk.bf16.vlgmr.msra.gmra.mrb[44].mxu1 %vm8646_vm4, %v2664_v47  ;;  %6104 = vmatmul.mubr.msk.bf16.vlgmr.msra.gmra.mrb[52].mxu0 %vm8647_vm5, %v2664_v47  ;;  %vm8659_vm4 = vmmov %vm8597_vm0 }
0x1964   :  { %6092 = vmatpush3.bf16.msra.mxu1 %v7655_v0  ;;  %6095 = vmatprep.mubr.msk.bf16.mxu1 %vm8648_vm1, %v2663_v25  ;;  %v6688_v0 = vld [vmem:[%s8500_s4 + $0xb] ss:$0 sm:$0xff]  ;;  %vm8660_vm5 = vmmov %vm8597_vm0 }
0x1965   :  { %6093 = vmatprep.subr.bf16.mxu1 %v6687_v49  ;;  %vm8661_vm1 = vmmov %vm8597_vm0 }
0x1968   :  { %6094 = vmatpush3.bf16.msra.mxu1 %v6687_v49 }
0x196b   :  { %6096 = vmatmul.mubr.msk.bf16.vlgmr.msra.gmra.mrb[48].mxu1 %vm8649_vm7, %v2664_v47  ;;  %vm8662_vm7 = vmmov %vm8597_vm0 }
0x1a36   :  { %v6089_v50 = vpop.f32.mrb[44].mxu1  ;;  %v6105_v54 = vpop.f32.mrb[52].mxu0 }
0x1a37   :  { %v2705_v48 = vpop.f32.mrb[45].mxu1  ;;  %v2803_v56 = vpop.f32.mrb[53].mxu0  ;;  %v2714_v58 = vadd.f32 %v6688_v0, %v6089_v50  ;;  %v2812_v51 = vadd.f32 %v6689_v2, %v6105_v54 }
0x1a38   :  { %v6090_v57 = vpop.f32.mrb[46].mxu1  ;;  %v6106_v60 = vpop.f32.mrb[54].mxu0  ;;  %v2706_v4 = vadd.f32 %v6688_v0, %v2705_v48  ;;  %v2804_v14 = vadd.f32 %v6689_v2, %v2803_v56 }
0x1a39   :  { %v2717_v38 = vadd.f32 %v6688_v0, %v6090_v57  ;;  %v2815_v3 = vadd.f32 %v6689_v2, %v6106_v60  ;;  %v2708_v16 = vpop.f32.mrb[47].mxu1  ;;  %v2806_v46 = vpop.f32.mrb[55].mxu0 }
0x1a3a   :  { %v2709_v63 = vadd.f32 %v6688_v0, %v2708_v16  ;;  %v2807_v20 = vadd.f32 %v6689_v2, %v2806_v46 }
0x1a3b   :  { %v2819_v24 = vpack.c.bf16 %v2717_v38, %v2714_v58  ;;  %v2930_v13 = vpack.c.bf16 %v2815_v3, %v2812_v51 }
0x1a3c   :  { %v2818_v53 = vpack.c.bf16 %v2709_v63, %v2706_v4  ;;  %v2929_v31 = vpack.c.bf16 %v2807_v20, %v2804_v14 }
0x1a3e   :  { %v6097_v41 = vpop.f32.mrb[48].mxu1  ;;  %6111 = vmatprep.mubr.msk.bf16.mxu1 %vm8597_vm0, %v2818_v53  ;;  %6115 = vmatprep.subr.bf16.mxu0 %v2929_v31 }
0x1a3f   :  { %v2754_v1 = vpop.f32.mrb[49].mxu1  ;;  %6116 = vmatpush3.bf16.msra.mxu0 %v2929_v31  ;;  %v2763_v36 = vadd.f32 %v6690_v29, %v6097_v41 }
0x1a40   :  { %v6098_v28 = vpop.f32.mrb[50].mxu1  ;;  %6117 = vmatprep.subr.bf16.mxu0 %v2930_v13  ;;  %v2755_v39 = vadd.f32 %v6690_v29, %v2754_v1 }
0x1a41   :  { %v2766_v35 = vadd.f32 %v6690_v29, %v6098_v28  ;;  %v2757_v8 = vpop.f32.mrb[51].mxu1 }
0x1a42   :  { %v2758_v34 = vadd.f32 %v6690_v29, %v2757_v8 }
0x1a43   :  { %v2821_v12 = vpack.c.bf16 %v2766_v35, %v2763_v36  ;;  %6118 = vmatpush3.bf16.msra.mxu0 %v2930_v13 }
0x1a44   :  { %v2820_v42 = vpack.c.bf16 %v2758_v34, %v2755_v39  ;;  %6123 = vmatprep.subr.bf16.mxu0 %v7735_v5 }
0x1a45   :  { %v2832_v33 = vsel %vm8653_vm11, %v2821_v12, 0  ;;  %vm8666_vm11 = vmmov %vm8597_vm0 }
0x1a46   :  { %6295 = vmatprep.subr.msk.bf16.mxu1 %vm8650_vm6, %v2820_v42  ;;  %v2829_v9 = vsel %vm8651_vm9, %v2820_v42, 0  ;;  %vm8663_vm6 = vmmov %vm8597_vm0 }
0x1a47   :  { %6108 = vmatpush3.bf16.xpose.msra.mxu1 %v2829_v9  ;;  %vm8664_vm9 = vmmov %vm8597_vm0 }
0x1a48   :  { %6296 = vmatprep.subr.msk.bf16.mxu1 %vm8652_vm10, %v2821_v12  ;;  %vm8665_vm10 = vmmov %vm8597_vm0 }
0x1a4f   :  { %6110 = vmatpush3.bf16.xpose.msra.mxu1 %v2832_v33 }
0x1a50   :  { %6131 = vmatprep.subr.bf16.mxu1 %v6692_v43 }
0x1a56   :  { %6112 = vmatmul.mubr.msk.bf16.vlgmr.msra.gmra.mrb[52].mxu1 %vm8654_vm12, %v2819_v24  ;;  %vm8667_vm12 = vmmov %vm8597_vm0 }
0x1a57   :  { %6132 = vmatpush3.bf16.msra.mxu1 %v6692_v43 }
0x1a58   :  { %6133 = vmatprep.subr.bf16.mxu1 %v6693_v30 }
0x1a5b   :  { %6134 = vmatpush3.bf16.msra.mxu1 %v6693_v30 }
0x1b29   :  { %v6113_v25 = vpop.f32.mrb[52].mxu1 }
0x1b2a   :  { %v2868_v44 = vpop.f32.mrb[53].mxu1  ;;  %v2877_v49 = vadd.f32 %v6113_v25, %v7000_v21 }
0x1b2b   :  { %v2869_v45 = vadd.f32 %v2868_v44, %v6997_v19  ;;  %v6114_v32 = vpop.f32.mrb[54].mxu1 }
0x1b2c   :  { %v2871_v47 = vpop.f32.mrb[55].mxu1  ;;  %v2880_v48 = vadd.f32 %v6114_v32, %v7007_v26  ;;  %v2889_v57 = vsel %vm8657_vm2, %v2877_v49, -inf  ;;  %v6694_v32 = vld [vmem:[%s8502_s6 + $0x78] sm:$0xff]   ;;  %vm8670_vm2 = vmmov %vm8597_vm0 }
0x1b2d   :  { %v2872_v50 = vadd.f32 %v2871_v47, %v7003_v23  ;;  %v2883_v54 = vsel %vm8655_vm13, %v2869_v45, -inf  ;;  %v6695_v47 = vld [vmem:[%s8503_s7 + $0x30] sm:$0xff]   ;;  %vm8668_vm13 = vmmov %vm8597_vm0 }
0x1b2e   :  { %2884 = vmax.xlane.f32.xlu0 %v2883_v54  ;;  %v2892_v60 = vsel %vm8658_vm3, %v2880_v48, -inf  ;;  %vm8671_vm3 = vmmov %vm8597_vm0 }
0x1b2f   :  { %v2886_v56 = vsel %vm8656_vm15, %v2872_v50, -inf  ;;  %vm8669_vm15 = vmmov %vm8597_vm0 }
0x1b30   :  { %2887 = vmax.xlane.f32.xlu1 %v2886_v56 }
0x1b32   :  { %2890 = vmax.xlane.f32.xlu0 %v2889_v57 }
0x1b34   :  { %2893 = vmax.xlane.f32.xlu1 %v2892_v60 }
0x1bbb   :  { %v2885_v0 = vpop.xlane.xlu0 %2884 }
0x1bbc   :  { %v2895_v58 = vsub.f32 %v2869_v45, %v2885_v0 }
0x1bbd   :  { %v2888_v2 = vpop.xlane.xlu1 %2887 }
0x1bbe   :  { %v2899_v51 = vmul.f32 1.442695, %v2895_v58  ;;  %v2896_v38 = vsub.f32 %v2872_v50, %v2888_v2 }
0x1bbf   :  { %v2891_v3 = vpop.xlane.xlu0 %2890 }
0x1bc0   :  { %6504 = vpow2.f32 %v2899_v51  ;;  %v2901_v16 = vmul.f32 1.442695, %v2896_v38  ;;  %v2897_v46 = vsub.f32 %v2877_v49, %v2891_v3  ;;  %v6697_v38 = vld [vmem:[%s8500_s4 + $0xe] ss:$0 sm:$0xff] }
0x1bc1   :  { %v2894_v4 = vpop.xlane.xlu1 %2893 }
0x1bc2   :  { %6506 = vpow2.f32 %v2901_v16  ;;  %v2903_v14 = vmul.f32 1.442695, %v2897_v46  ;;  %v2898_v63 = vsub.f32 %v2880_v48, %v2894_v4 }
0x1bc4   :  { %6508 = vpow2.f32 %v2903_v14  ;;  %v2905_v20 = vmul.f32 1.442695, %v2898_v63 }
0x1bc6   :  { %6510 = vpow2.f32 %v2905_v20 }
0x1bca   :  { %v6505_v24 = vpop.eup %6504 }
0x1bcb   :  { %v2907_v13 = vsel %vm8659_vm4, %v6505_v24, 0.0  ;;  %vm8672_vm4 = vmmov %vm8597_vm0 }
0x1bcc   :  { %v6507_v53 = vpop.eup %6506  ;;  %2908 = vadd.xlane.f32.xlu0 %v2907_v13 }
0x1bcd   :  { %v2910_v31 = vsel %vm8660_vm5, %v6507_v53, 0.0  ;;  %vm8673_vm5 = vmmov %vm8597_vm0 }
0x1bce   :  { %v6509_v41 = vpop.eup %6508  ;;  %2911 = vadd.xlane.f32.xlu1 %v2910_v31 }
0x1bcf   :  { %v2913_v1 = vsel %vm8661_vm1, %v6509_v41, 0.0  ;;  %vm8674_vm1 = vmmov %vm8597_vm0 }
0x1bd0   :  { %v6511_v28 = vpop.eup %6510  ;;  %2914 = vadd.xlane.f32.xlu0 %v2913_v1 }
0x1bd1   :  { %v2916_v29 = vsel %vm8662_vm7, %v6511_v28, 0.0  ;;  %vm8675_vm7 = vmmov %vm8597_vm0 }
0x1bd2   :  { %2917 = vadd.xlane.f32.xlu1 %v2916_v29 }
0x1c59   :  { %v2909_v36 = vpop.xlane.xlu0 %2908 }
0x1c5a   :  { %6512 = vrcp.f32 %v2909_v36 }
0x1c5b   :  { %v2912_v35 = vpop.xlane.xlu1 %2911 }
0x1c5c   :  { %6514 = vrcp.f32 %v2912_v35 }
0x1c5d   :  { %v2915_v8 = vpop.xlane.xlu0 %2914 }
0x1c5e   :  { %6516 = vrcp.f32 %v2915_v8 }
0x1c5f   :  { %v2918_v39 = vpop.xlane.xlu1 %2917 }
0x1c60   :  { %6518 = vrcp.f32 %v2918_v39 }
0x1c64   :  { %v6513_v34 = vpop.eup %6512 }
0x1c65   :  { %v2923_v42 = vmul.f32 %v6513_v34, %v6505_v24 }
0x1c66   :  { %v6515_v12 = vpop.eup %6514 }
0x1c67   :  { %v2924_v9 = vmul.f32 %v6515_v12, %v6507_v53 }
0x1c68   :  { %v6517_v33 = vpop.eup %6516 }
0x1c69   :  { %v2927_v43 = vpack.c.bf16 %v2924_v9, %v2923_v42  ;;  %v2925_v25 = vmul.f32 %v6517_v33, %v6509_v41 }
0x1c6a   :  { %v6519_v30 = vpop.eup %6518 }
0x1c6b   :  { %v2926_v44 = vmul.f32 %v6519_v30, %v6511_v28  ;;  %6119 = vmatprep.mubr.msk.bf16.mxu0 %vm8597_vm0, %v2927_v43 }
0x1c6d   :  { %v2928_v45 = vpack.c.bf16 %v2926_v44, %v2925_v25 }
0x1c6f   :  { %6120 = vmatmul.mubr.msk.bf16.vlgmr.msra.gmra.mrb[56].mxu0 %vm8663_vm6, %v2928_v45  ;;  %vm8676_vm6 = vmmov %vm8597_vm0 }
0x1c70   :  { %6124 = vmatpush3.bf16.msra.mxu0 %v7735_v5  ;;  %v6696_v5 = vld [vmem:[%s8503_s7 + $0x38] sm:$0xff]  }
0x1c71   :  { %6125 = vmatprep.subr.bf16.mxu0 %v6694_v32 }
0x1c74   :  { %6126 = vmatpush3.bf16.msra.mxu0 %v6694_v32 }
0x1c75   :  { %6297 = vmatprep.subr.msk.bf16.mxu0 %vm864_vm8, %v6695_v47 }
0x1d42   :  { %v6121_v49 = vpop.f32.mrb[56].mxu0 }
0x1d43   :  { %v2971_v50 = vpop.f32.mrb[57].mxu0 }
0x1d44   :  { %v6122_v54 = vpop.f32.mrb[58].mxu0 }
0x1d45   :  { %v2987_v48 = vpack.c.bf16 %v6122_v54, %v6121_v49  ;;  %v2974_v56 = vpop.f32.mrb[59].mxu0 }
0x1d46   :  { %v2986_v57 = vpack.c.bf16 %v2974_v56, %v2971_v50 }
0x1d48   :  { %6127 = vmatprep.mubr.msk.bf16.mxu0 %vm8664_vm9, %v2986_v57  ;;  %vm8677_vm9 = vmmov %vm8597_vm0 }
0x1d49   :  { %6128 = vmatmul.mubr.msk.bf16.vlgmr.msra.gmra.mrb[60].mxu0 %vm8665_vm10, %v2987_v48  ;;  %vm8678_vm10 = vmmov %vm8597_vm0 }
0x1d4a   :  { %6140 = vmatpush3.bf16.xpose.msra.mxu0 %v7284_v52 }
0x1d4b   :  { %6298 = vmatprep.subr.msk.bf16.mxu0 %vm864_vm8, %v6696_v5 }
0x1d52   :  { %6142 = vmatpush3.bf16.xpose.msra.mxu0 %v7292_v10 }
0x1e1c   :  { %v6129_v60 = vpop.f32.mrb[60].mxu0 }
0x1e1d   :  { %v3045_v0 = vadd.f32 %v6129_v60, %v7672_v27  ;;  %v3028_v58 = vpop.f32.mrb[61].mxu0 }
0x1e1e   :  { %v3043_v2 = vadd.f32 %v3028_v58, %v7676_v40  ;;  %v6130_v51 = vpop.f32.mrb[62].mxu0 }
0x1e1f   :  { %v7784_v52 = vadd.f32 %v6697_v38, %v3045_v0  ;;  %v3046_v3 = vadd.f32 %v6130_v51, %v7678_v55  ;;  %v3031_v16 = vpop.f32.mrb[63].mxu0 }
0x1e20   :  { %v3044_v46 = vadd.f32 %v3031_v16, %v7682_v7  ;;  %v7788_v4 = vadd.f32 %v6697_v38, %v3043_v2 }
0x1e21   :  { %v7790_v10 = vadd.f32 %v6697_v38, %v3046_v3  ;;  %v3057_v27 = vsel %vm8666_vm11, %v7784_v52, 0.0  ;;  %v3069_v13 = vmul.f32 %v7784_v52, %v7784_v52  ;;  %vm8679_vm11 = vmmov %vm8597_vm0 }
0x1e22   :  { %3058 = vadd.xlane.f32.xlu0 %v3057_v27  ;;  %v7794_v40 = vadd.f32 %v6697_v38, %v3044_v46  ;;  %v3051_v55 = vsel %vm8668_vm13, %v7788_v4, 0.0  ;;  %v3067_v7 = vmul.f32 %v7788_v4, %v7788_v4  ;;  %vm8681_vm13 = vmmov %vm8597_vm0 }
0x1e23   :  { %v3060_v14 = vsel %vm8667_vm12, %v7790_v10, 0.0  ;;  %v3070_v31 = vmul.f32 %v7790_v10, %v7790_v10  ;;  %v3077_v41 = vsel %vm8672_vm4, %v3069_v13, 0.0  ;;  %vm8680_vm12 = vmmov %vm8597_vm0 }
0x1e24   :  { %3061 = vadd.xlane.f32.xlu1 %v3060_v14  ;;  %v3054_v63 = vsel %vm8669_vm15, %v7794_v40, 0.0  ;;  %v3068_v20 = vmul.f32 %v7794_v40, %v7794_v40  ;;  %v3071_v24 = vsel %vm8670_vm2, %v3067_v7, 0.0  ;;  %v6698_v14 = vld [vmem:[%s8500_s4 + $0xf] ss:$0 sm:$0xff]  ;;  %vm8682_vm15 = vmmov %vm8597_vm0 }
0x1e25   :  { %v3080_v1 = vsel %vm8673_vm5, %v3070_v31, 0.0  ;;  %v6699_v31 = vld [vmem:[%s8500_s4 + $0x10] ss:$0 sm:$0xff] }
0x1e26   :  { %3052 = vadd.xlane.f32.xlu0 %v3051_v55  ;;  %v3074_v53 = vsel %vm8671_vm3, %v3068_v20, 0.0 }
0x1e28   :  { %3055 = vadd.xlane.f32.xlu1 %v3054_v63 }
0x1e2a   :  { %3072 = vadd.xlane.f32.xlu0 %v3071_v24 }
0x1e2c   :  { %3075 = vadd.xlane.f32.xlu1 %v3074_v53 }
0x1e2e   :  { %3078 = vadd.xlane.f32.xlu0 %v3077_v41 }
0x1e30   :  { %3081 = vadd.xlane.f32.xlu1 %v3080_v1 }
0x1eaf   :  { %v3059_v28 = vpop.xlane.xlu0 %3058 }
0x1eb0   :  { %v3065_v12 = vmul.f32 0.03125, %v3059_v28 }
0x1eb1   :  { %v3062_v29 = vpop.xlane.xlu1 %3061 }
0x1eb2   :  { %v3066_v33 = vmul.f32 0.03125, %v3062_v29  ;;  %v3089_v32 = vmul.f32 %v3065_v12, %v3065_v12  ;;  %v3097_v46 = vsub.f32 %v7784_v52, %v3065_v12  ;;  %v6700_v12 = vld [vmem:[%s8501_s5 + $0x1] ss:$0 sm:$0xff] }
0x1eb3   :  { %v3053_v36 = vpop.xlane.xlu0 %3052 }
0x1eb4   :  { %v3063_v35 = vmul.f32 0.03125, %v3053_v36  ;;  %v3090_v54 = vmul.f32 %v3066_v33, %v3066_v33  ;;  %v3098_v63 = vsub.f32 %v7790_v10, %v3066_v33 }
0x1eb5   :  { %v3056_v8 = vpop.xlane.xlu1 %3055 }
0x1eb6   :  { %v3064_v39 = vmul.f32 0.03125, %v3056_v8  ;;  %v3087_v42 = vmul.f32 %v3063_v35, %v3063_v35  ;;  %v3095_v2 = vsub.f32 %v7788_v4, %v3063_v35 }
0x1eb7   :  { %v3073_v34 = vpop.xlane.xlu0 %3072 }
0x1eb8   :  { %v3083_v9 = vmul.f32 0.03125, %v3073_v34  ;;  %v3088_v30 = vmul.f32 %v3064_v39, %v3064_v39  ;;  %v3096_v38 = vsub.f32 %v7794_v40, %v3064_v39 }
0x1eb9   :  { %v3076_v43 = vpop.xlane.xlu1 %3075 }
0x1eba   :  { %v3091_v25 = vsub.f32 %v3083_v9, %v3087_v42  ;;  %v3084_v44 = vmul.f32 0.03125, %v3076_v43 }
0x1ebb   :  { %v3079_v45 = vpop.xlane.xlu0 %3078 }
0x1ebc   :  { %v3099_v47 = vadd.f32 1e-05, %v3091_v25  ;;  %v3092_v49 = vsub.f32 %v3084_v44, %v3088_v30  ;;  %v3085_v50 = vmul.f32 0.03125, %v3079_v45 }
0x1ebd   :  { %v3082_v48 = vpop.xlane.xlu1 %3081 }
0x1ebe   :  { %6520 = vrsqrt.f32 %v3099_v47  ;;  %v3100_v56 = vadd.f32 1e-05, %v3092_v49  ;;  %v3093_v57 = vsub.f32 %v3085_v50, %v3089_v32  ;;  %v3086_v5 = vmul.f32 0.03125, %v3082_v48 }
0x1ec0   :  { %6522 = vrsqrt.f32 %v3100_v56  ;;  %v3101_v60 = vadd.f32 1e-05, %v3093_v57  ;;  %v3094_v0 = vsub.f32 %v3086_v5, %v3090_v54 }
0x1ec2   :  { %6524 = vrsqrt.f32 %v3101_v60  ;;  %v3102_v58 = vadd.f32 1e-05, %v3094_v0 }
0x1ec4   :  { %6526 = vrsqrt.f32 %v3102_v58 }
0x1ec8   :  { %v6521_v51 = vpop.eup %6520 }
0x1ec9   :  { %v3107_v3 = vmul.f32 %v6521_v51, %v3095_v2 }
0x1eca   :  { %v6523_v16 = vpop.eup %6522 }
0x1ecb   :  { %v3108_v27 = vmul.f32 %v6523_v16, %v3096_v38  ;;  %v3111_v55 = vmul.f32 %v6698_v14, %v3107_v3 }
0x1ecc   :  { %v6525_v7 = vpop.eup %6524 }
0x1ecd   :  { %v3109_v20 = vmul.f32 %v6525_v7, %v3097_v46  ;;  %v3112_v24 = vmul.f32 %v6698_v14, %v3108_v27  ;;  %v3115_v41 = vadd.f32 %v6699_v31, %v3111_v55 }
0x1ece   :  { %v6527_v13 = vpop.eup %6526 }
0x1ecf   :  { %v3110_v53 = vmul.f32 %v6527_v13, %v3098_v63  ;;  %v3116_v1 = vadd.f32 %v6699_v31, %v3112_v24  ;;  %v3113_v28 = vmul.f32 %v6698_v14, %v3109_v20 }
0x1ed1   :  { %v3119_v29 = vpack.c.bf16 %v3116_v1, %v3115_v41  ;;  %v3114_v36 = vmul.f32 %v6698_v14, %v3110_v53  ;;  %v3117_v35 = vadd.f32 %v6699_v31, %v3113_v28 }
0x1ed3   :  { %6135 = vmatprep.mubr.msk.bf16.mxu1 %vm8674_vm1, %v3119_v29  ;;  %v3118_v8 = vadd.f32 %v6699_v31, %v3114_v36 }
0x1ed5   :  { %v3120_v39 = vpack.c.bf16 %v3118_v8, %v3117_v35 }
0x1ed7   :  { %6136 = vmatmul.mubr.msk.bf16.vlgmr.msra.gmra.mrb[56].mxu1 %vm8675_vm7, %v3120_v39 }
0x1faa   :  { %v6137_v34 = vpop.f32.mrb[56].mxu1 }
0x1fab   :  { %v3170_v42 = vadd.f32 %v6700_v12, %v6137_v34  ;;  %v3161_v9 = vpop.f32.mrb[57].mxu1 }
0x1fac   :  { %v3162_v33 = vadd.f32 %v6700_v12, %v3161_v9  ;;  %v6138_v43 = vpop.f32.mrb[58].mxu1 }
0x1fad   :  { %v3178_v30 = vmul.f32 %v3170_v42, %v3170_v42  ;;  %v3173_v25 = vadd.f32 %v6700_v12, %v6138_v43  ;;  %v3164_v44 = vpop.f32.mrb[59].mxu1 }
0x1fae   :  { %v3176_v45 = vmul.f32 %v3162_v33, %v3162_v33  ;;  %v3165_v32 = vadd.f32 %v6700_v12, %v3164_v44 }
0x1faf   :  { %v3182_v47 = vmul.f32 %v3178_v30, %v3170_v42  ;;  %v3179_v49 = vmul.f32 %v3173_v25, %v3173_v25 }
0x1fb0   :  { %v3180_v50 = vmul.f32 %v3176_v45, %v3162_v33  ;;  %v3177_v54 = vmul.f32 %v3165_v32, %v3165_v32 }
0x1fb1   :  { %v3186_v48 = vmul.f32 0.044715, %v3182_v47  ;;  %v3183_v56 = vmul.f32 %v3179_v49, %v3173_v25 }
0x1fb2   :  { %v3184_v57 = vmul.f32 0.044715, %v3180_v50  ;;  %v3181_v5 = vmul.f32 %v3177_v54, %v3165_v32 }
0x1fb3   :  { %v3190_v60 = vadd.f32 %v3186_v48, %v3170_v42  ;;  %v3187_v0 = vmul.f32 0.044715, %v3183_v56 }
0x1fb4   :  { %v3188_v58 = vadd.f32 %v3184_v57, %v3162_v33  ;;  %v3185_v2 = vmul.f32 0.044715, %v3181_v5 }
0x1fb5   :  { %v3194_v51 = vmul.f32 0.7978846, %v3190_v60  ;;  %v3191_v38 = vadd.f32 %v3187_v0, %v3173_v25 }
0x1fb6   :  { %v3192_v3 = vmul.f32 0.7978846, %v3188_v58  ;;  %v3189_v16 = vadd.f32 %v3185_v2, %v3165_v32 }
0x1fb7   :  { %6528 = vtanh.f32 %v3194_v51  ;;  %v3195_v46 = vmul.f32 0.7978846, %v3191_v38 }
0x1fb8   :  { %6530 = vtanh.f32 %v3192_v3  ;;  %v3193_v27 = vmul.f32 0.7978846, %v3189_v16 }
0x1fb9   :  { %6532 = vtanh.f32 %v3195_v46 }
0x1fba   :  { %6534 = vtanh.f32 %v3193_v27 }
0x1fc1   :  { %v6529_v14 = vpop.eup %6528 }
0x1fc2   :  { %v6531_v55 = vpop.eup %6530  ;;  %v3202_v7 = vadd.f32 1.0, %v6529_v14 }
0x1fc3   :  { %v6533_v63 = vpop.eup %6532  ;;  %v3200_v20 = vadd.f32 1.0, %v6531_v55 }
0x1fc4   :  { %v6535_v24 = vpop.eup %6534  ;;  %v3206_v13 = vmul.f32 0.5, %v3202_v7  ;;  %v3203_v53 = vadd.f32 1.0, %v6533_v63 }
0x1fc5   :  { %v3204_v31 = vmul.f32 0.5, %v3200_v20  ;;  %v3201_v41 = vadd.f32 1.0, %v6535_v24 }
0x1fc6   :  { %v3207_v1 = vmul.f32 0.5, %v3203_v53  ;;  %v3210_v29 = vmul.f32 %v3206_v13, %v3170_v42  ;;  %v6701_v42 = vld [vmem:[%s8500_s4 + $0x11] ss:$0 sm:$0xff] }
0x1fc7   :  { %v3205_v28 = vmul.f32 0.5, %v3201_v41  ;;  %v3208_v35 = vmul.f32 %v3204_v31, %v3162_v33 }
0x1fc8   :  { %v3211_v36 = vmul.f32 %v3207_v1, %v3173_v25 }
0x1fc9   :  { %v3209_v8 = vmul.f32 %v3205_v28, %v3165_v32 }
0x1fca   :  { %v3213_v39 = vpack.c.bf16 %v3211_v36, %v3210_v29 }
0x1fcb   :  { %v3212_v34 = vpack.c.bf16 %v3209_v8, %v3208_v35 }
0x1fcd   :  { %6143 = vmatprep.mubr.msk.bf16.mxu0 %vm864_vm8, %v3212_v34 }
0x1fce   :  { %6144 = vmatmul.mubr.msk.bf16.vlgmr.msra.gmra.mrb[64].mxu0 %vm864_vm8, %v3213_v39 }
0x20a1   :  { %v6145_v12 = vpop.f32.mrb[64].mxu0 }
0x20a2   :  { %v3271_v9 = vadd.f32 %v6145_v12, %v7784_v52  ;;  %v3254_v43 = vpop.f32.mrb[65].mxu0 }
0x20a3   :  { %v3269_v30 = vadd.f32 %v3254_v43, %v7788_v4  ;;  %v6146_v44 = vpop.f32.mrb[66].mxu0 }
0x20a4   :  { %v7836_v25 = vadd.f32 %v6701_v42, %v3271_v9  ;;  %v3272_v33 = vadd.f32 %v6146_v44, %v7790_v10  ;;  %v3257_v45 = vpop.f32.mrb[67].mxu0  ;;  %v3361_v44 = vstv %s3360_s14 }
0x20a5   :  { %v7839_v32 = vadd.f32 %v6701_v42, %v3269_v30  ;;  %v3270_v47 = vadd.f32 %v3257_v45, %v7794_v40  ;;  %v3354_v30 = vstv %s7866_s12  ;;  %vm7874_vm2 = vcmp.eq.s32.totalorder %v3361_v44, 1 }
0x20a6   :  { %v3283_v52 = vsel %vm8597_vm0, %v7836_v25, 0.0  ;;  %v7844_v49 = vadd.f32 %v6701_v42, %v3272_v33  ;;  %v3295_v57 = vmul.f32 %v7836_v25, %v7836_v25  ;;  %v3376_v33 = vstv %s3375_s15 }
0x20a7   :  { %v7846_v4 = vadd.f32 %v6701_v42, %v3270_v47  ;;  %3284 = vadd.xlane.f32.xlu1 %v3283_v52  ;;  %v3277_v50 = vsel %vm8676_vm6, %v7839_v32, 0.0  ;;  %v3293_v48 = vmul.f32 %v7839_v32, %v7839_v32  ;;  %v3369_v42 = vstv %s3368_s16 }
0x20a8   :  { %3278 = vadd.xlane.f32.xlu0 %v3277_v50  ;;  %v3286_v40 = vsel %vm8678_vm10, %v7844_v49, 0.0  ;;  %v3296_v60 = vmul.f32 %v7844_v49, %v7844_v49  ;;  %v3303_v0 = vsel %vm8681_vm13, %v3295_v57, 0.0  ;;  %vm3356_vm3 = vcmp.eq.s32.totalorder %v6985_v6, %v3354_v30 }
0x20a9   :  { %v3280_v10 = vsel %vm8677_vm9, %v7846_v4, 0.0  ;;  %v3294_v54 = vmul.f32 %v7846_v4, %v7846_v4  ;;  %v3297_v5 = vsel %vm8680_vm12, %v3293_v48, 0.0  ;;  %vm7880_vm4 = vcmp.eq.s32.totalorder %v3376_v33, 1  ;;  %vm7890_vm0 = vmand %vm3356_vm3, %vm7874_vm2  ;;  %v6343_v48 = vld [vmem:[%s8502_s6 + $0x40] sm:$0xff]  }
0x20aa   :  { %v3306_v58 = vsel %vm8682_vm15, %v3296_v60, 0.0  ;;  %vm3371_vm5 = vcmp.eq.s32.totalorder %v6985_v6, %v3369_v42  ;;  %vm3357_vm1 = vcmp.eq.s32.totalorder %v6977_v62, %v3354_v30  ;;  %vm3355_vm7 = vcmp.eq.s32.totalorder %v6969_v59, %v3354_v30  ;;  %6163 = vmatprep.subr.bf16.mxu0 %v6343_v48  ;;  %v6345_v6 = vld [vmem:[%s8502_s6 + $0x48] sm:$0xff]  }
0x20ab   :  { %3281 = vadd.xlane.f32.xlu1 %v3280_v10  ;;  %v3300_v56 = vsel %vm8679_vm11, %v3294_v54, 0.0  ;;  %vm3370_vm6 = vcmp.eq.s32.totalorder %v6969_v59, %v3369_v42  ;;  %vm7897_vm9 = vmand %vm3371_vm5, %vm7880_vm4  ;;  %vm3358_vm10 = vcmp.eq.s32.totalorder %v6990_v11, %v3354_v30  ;;  %vm3372_vm13 = vcmp.eq.s32.totalorder %v6977_v62, %v3369_v42  ;;  %v6705_v59 = vld [vmem:[%s8497_s1 + $0x38] sm:$0xff]  ;;  %6164 = vmatpush3.bf16.msra.mxu0 %v6343_v48 }
0x20ac   :  { %3287 = vadd.xlane.f32.xlu0 %v3286_v40  ;;  %vm7908_vm11 = vmand %vm3357_vm1, %vm7874_vm2  ;;  %vm3373_vm5 = vcmp.eq.s32.totalorder %v6990_v11, %v3369_v42  ;;  %6165 = vmatprep.subr.bf16.mxu0 %v6345_v6 }
0x20ad   :  { %vm7915_vm12 = vmand %vm3355_vm7, %vm7874_vm2 }
0x20ae   :  { %vm7922_vm15 = vmand %vm3370_vm6, %vm7880_vm4 }
0x20af   :  { %3301 = vadd.xlane.f32.xlu1 %v3300_v56  ;;  %v6702_v56 = vld [vmem:[%s8500_s4 + $0x12] ss:$0 sm:$0xff]  ;;  %vm7931_vm3 = vmand %vm3358_vm10, %vm7874_vm2  ;;  %6166 = vmatpush3.bf16.msra.mxu0 %v6345_v6  ;;  %v6347_v6 = vld [vmem:[%s8502_s6 + $0x28] sm:$0xff]  }
0x20b0   :  { %3298 = vadd.xlane.f32.xlu0 %v3297_v5  ;;  %vm7938_vm1 = vmand %vm3372_vm13, %vm7880_vm4 }
0x20b1   :  { %vm3383_vm2 = vmor %vm7890_vm0, %vm7897_vm9  ;;  %vm8703_vm9 = vcmask 261120  }
0x20b2   :  { %vm7948_vm7 = vmand %vm3373_vm5, %vm7880_vm4 }
0x20b3   :  { %3304 = vadd.xlane.f32.xlu1 %v3303_v0  ;;  %vm3382_vm6 = vmor %vm7915_vm12, %vm7922_vm15 }
0x20b4   :  { %3307 = vadd.xlane.f32.xlu0 %v3306_v58  ;;  %vm3384_vm0 = vmor %vm7908_vm11, %vm7938_vm1 }
0x20b5   :  { %vm3385_vm4 = vmor %vm7931_vm3, %vm7948_vm7 }
0x20b6   :  { %vm8704_vm10 = vmmov %vm8703_vm9 }
0x20b7   :  { %vm8705_vm11 = vmmov %vm8703_vm9 }
0x20b8   :  { %vm8707_vm12 = vmmov %vm8703_vm9 }
0x20b9   :  { %vm8708_vm13 = vmmov %vm8703_vm9 }
0x20ba   :  { %vm8709_vm15 = vmmov %vm8703_vm9 }
0x20bb   :  { %vm8710_vm3 = vmmov %vm8703_vm9 }
0x20bc   :  { %vm8711_vm5 = vmmov %vm8710_vm3 }
0x20bd   :  { %vm8712_vm1 = vmmov %vm8710_vm3 }
0x20be   :  { %vm8714_vm7 = vmmov %vm8712_vm1 }
0x2134   :  { %v3285_v2 = vpop.xlane.xlu1 %3284 }
0x2135   :  { %v3279_v51 = vpop.xlane.xlu0 %3278  ;;  %v3291_v14 = vmul.f32 0.03125, %v3285_v2 }
0x2136   :  { %v3289_v46 = vmul.f32 0.03125, %v3279_v51 }
0x2137   :  { %v3315_v1 = vmul.f32 %v3291_v14, %v3291_v14 }
0x2138   :  { %v3282_v38 = vpop.xlane.xlu1 %3281  ;;  %v3313_v20 = vmul.f32 %v3289_v46, %v3289_v46  ;;  %v3321_v10 = vsub.f32 %v7839_v32, %v3289_v46  ;;  %v3323_v32 = vsub.f32 %v7836_v25, %v3291_v14 }
0x2139   :  { %v3290_v3 = vmul.f32 0.03125, %v3282_v38  ;;  %v3288_v16 = vpop.xlane.xlu0 %3287 }
0x213a   :  { %v3292_v24 = vmul.f32 0.03125, %v3288_v16 }
0x213b   :  { %v3314_v55 = vmul.f32 %v3290_v3, %v3290_v3  ;;  %v3322_v47 = vsub.f32 %v7846_v4, %v3290_v3 }
0x213c   :  { %v3302_v27 = vpop.xlane.xlu1 %3301  ;;  %v3316_v35 = vmul.f32 %v3292_v24, %v3292_v24  ;;  %v3324_v0 = vsub.f32 %v7844_v49, %v3292_v24  ;;  %v6703_v49 = vld [vmem:[%s8500_s4 + $0x13] ss:$0 sm:$0xff] }
0x213d   :  { %v3310_v7 = vmul.f32 0.03125, %v3302_v27  ;;  %v3299_v63 = vpop.xlane.xlu0 %3298 }
0x213e   :  { %v3309_v13 = vmul.f32 0.03125, %v3299_v63 }
0x213f   :  { %v3318_v53 = vsub.f32 %v3310_v7, %v3314_v55 }
0x2140   :  { %v3317_v31 = vsub.f32 %v3309_v13, %v3313_v20  ;;  %v3305_v41 = vpop.xlane.xlu1 %3304 }
0x2141   :  { %v3326_v28 = vadd.f32 1e-05, %v3318_v53  ;;  %v3311_v29 = vmul.f32 0.03125, %v3305_v41  ;;  %v3308_v36 = vpop.xlane.xlu0 %3307 }
0x2142   :  { %v3325_v8 = vadd.f32 1e-05, %v3317_v31  ;;  %v3312_v39 = vmul.f32 0.03125, %v3308_v36 }
0x2143   :  { %6536 = vrsqrt.f32 %v3326_v28  ;;  %v3319_v34 = vsub.f32 %v3311_v29, %v3315_v1 }
0x2144   :  { %6538 = vrsqrt.f32 %v3325_v8  ;;  %v3320_v12 = vsub.f32 %v3312_v39, %v3316_v35  ;;  %v6704_v8 = vld [vmem:[%s8497_s1 + $0x20] sm:$0xff] }
0x2145   :  { %v3327_v9 = vadd.f32 1e-05, %v3319_v34 }
0x2146   :  { %v3328_v43 = vadd.f32 1e-05, %v3320_v12 }
0x2147   :  { %6540 = vrsqrt.f32 %v3327_v9  ;;  %v6707_v9 = vld [vmem:[%s8497_s1 + $0x28] sm:$0xff] }
0x2148   :  { %6542 = vrsqrt.f32 %v3328_v43 }
0x214d   :  { %v6537_v50 = vpop.eup %6536 }
0x214e   :  { %v6539_v54 = vpop.eup %6538  ;;  %v3334_v40 = vmul.f32 %v6537_v50, %v3322_v47 }
0x214f   :  { %v3333_v4 = vmul.f32 %v6539_v54, %v3321_v10 }
0x2150   :  { %v3338_v57 = vmul.f32 %v6702_v56, %v3334_v40  ;;  %v6342_v40 = vld [vmem:[%s8502_s6] sm:$0xff]  }
0x2151   :  { %v6541_v60 = vpop.eup %6540  ;;  %v3337_v58 = vmul.f32 %v6702_v56, %v3333_v4  ;;  %6147 = vmatprep.subr.bf16.mxu1 %v6342_v40  ;;  %v6344_v4 = vld [vmem:[%s8502_s6 + $0x8] sm:$0xff]  }
0x2152   :  { %v6543_v2 = vpop.eup %6542  ;;  %v3335_v51 = vmul.f32 %v6541_v60, %v3323_v32  ;;  %v3342_v3 = vadd.f32 %v6703_v49, %v3338_v57  ;;  %6148 = vmatpush3.bf16.msra.mxu1 %v6342_v40  ;;  %v8035_v32 = vld [vmem:[%s8502_s6 + $0x20] sm:$0xff]  }
0x2153   :  { %v3336_v16 = vmul.f32 %v6543_v2, %v3324_v0  ;;  %v3341_v46 = vadd.f32 %v6703_v49, %v3337_v58  ;;  %6149 = vmatprep.subr.bf16.mxu1 %v6344_v4 }
0x2154   :  { %v3339_v62 = vmul.f32 %v6702_v56, %v3335_v51  ;;  %v3346_v14 = vrot.slane %v3342_v3, 7 }
0x2155   :  { %v3340_v7 = vmul.f32 %v6702_v56, %v3336_v16  ;;  %v3345_v63 = vrot.slane %v3341_v46, 7 }
0x2156   :  { %v3343_v20 = vadd.f32 %v6703_v49, %v3339_v62  ;;  %6150 = vmatpush3.bf16.msra.mxu1 %v6344_v4 }
0x2157   :  { %v3344_v24 = vadd.f32 %v6703_v49, %v3340_v7  ;;  %v3351_v13 = vsel %vm1859_vm14, %v3345_v63, %v3346_v14  ;;  %6155 = vmatprep.subr.bf16.mxu1 %v8035_v32 }
0x2158   :  { %v3347_v53 = vrot.slane %v3343_v20, 7  ;;  %v3395_v31 = vsel %vm3383_vm2, %v3351_v13, %v7466_v37  ;;  %vm8713_vm2 = vmmov %vm8712_vm1 }
0x2159   :  { %v3348_v41 = vrot.slane %v3344_v24, 7  ;;  %3399 = vst.msk [vmem:[#allocation6 + $0x8] sm:$0xff] %vm8703_vm9, %v3395_v31  ;;  %v8002_v43 = vadd.f32 %v6707_v9, %v3395_v31 }
0x215a   :  { %v3350_v1 = vsel %vm1859_vm14, %v3346_v14, %v3347_v53 }
0x215b   :  { %v3352_v28 = vsel %vm1859_vm14, %v3348_v41, %v3345_v63  ;;  %v3349_v29 = vsel %vm1859_vm14, %v3347_v53, %v3348_v41  ;;  %v3396_v36 = vsel %vm3384_vm0, %v3350_v1, %v7461_v22  ;;  %vm8706_vm14 = vmmov %vm8703_vm9  ;;  %v6706_v22 = vld [vmem:[%s8497_s1 + $0x30] sm:$0xff]  ;;  %v3411_v44 = vsel %vm8710_vm3, %v8002_v43, 0.0 }
0x215c   :  { %v3394_v37 = vsel %vm3382_vm6, %v3352_v28, %v7451_v17  ;;  %v3397_v35 = vsel %vm3385_vm4, %v3349_v29, %v7456_v15  ;;  %3400 = vst.msk [vmem:[#allocation6 + $0x10] sm:$0xff] %vm8704_vm10, %v3396_v36  ;;  %v7997_v12 = vadd.f32 %v6706_v22, %v3396_v36  ;;  %v3425_v33 = vmul.f32 %v8002_v43, %v8002_v43  ;;  %vm8715_vm6 = vmmov %vm8712_vm1 }
0x215d   :  { %v7981_v39 = vadd.f32 %v6704_v8, %v3394_v37  ;;  %3398 = vst.msk [vmem:[#allocation6] sm:$0xff] %vm8705_vm11, %v3394_v37  ;;  %v7987_v34 = vadd.f32 %v6705_v59, %v3397_v35  ;;  %v5565_v37 = vld [vmem:[%s8500_s4] ss:$0 sm:$0xff]  ;;  %v5566_v59 = vld [vmem:[%s8500_s4 + $0x1] ss:$0 sm:$0xff]  ;;  %vm8716_vm0 = vmmov %vm8712_vm1 }
0x215e   :  { %3401 = vst.msk [vmem:[#allocation6 + $0x18] sm:$0xff] %vm8706_vm14, %v3397_v35  ;;  %v3414_v30 = vsel %vm8709_vm15, %v7997_v12, 0.0  ;;  %v3431_v47 = vsel %vm8712_vm1, %v3425_v33, 0.0  ;;  %v3426_v52 = vmul.f32 %v7997_v12, %v7997_v12  ;;  %vm8717_vm4 = vmmov %vm8716_vm0 }
0x215f   :  { %v3408_v17 = vsel %vm8707_vm12, %v7981_v39, 0.0  ;;  %v3417_v15 = vsel %vm8708_vm13, %v7987_v34, 0.0  ;;  %v3424_v42 = vmul.f32 %v7981_v39, %v7981_v39  ;;  %v3427_v50 = vmul.f32 %v7987_v34, %v7987_v34  ;;  %vm8718_vm9 = vmmov %vm8716_vm0 }
0x2160   :  { %3409 = vadd.xlane.f32.xlu0 %v3408_v17  ;;  %3418 = vadd.xlane.f32.xlu1 %v3417_v15  ;;  %v3434_v10 = vsel %vm8713_vm2, %v3426_v52, 0.0  ;;  %vm8719_vm10 = vmmov %vm8716_vm0 }
0x2161   :  { %v3428_v45 = vsel %vm8711_vm5, %v3424_v42, 0.0  ;;  %v3437_v54 = vsel %vm8714_vm7, %v3427_v50, 0.0  ;;  %vm8720_vm11 = vmmov %vm8716_vm0 }
0x2162   :  { %vm8721_vm14 = vmmov %vm8716_vm0 }
0x2163   :  { %vm8722_vm12 = vmmov %vm8716_vm0 }
0x2164   :  { %3415 = vadd.xlane.f32.xlu0 %v3414_v30  ;;  %3412 = vadd.xlane.f32.xlu1 %v3411_v44  ;;  %vm8723_vm13 = vmmov %vm8716_vm0 }
0x2165   :  { %vm8724_vm15 = vmmov %vm8716_vm0 }
0x2166   :  { %vm8725_vm3 = vmmov %vm8716_vm0 }
0x2167   :  { %vm8726_vm5 = vmmov %vm8716_vm0 }
0x2168   :  { %3429 = vadd.xlane.f32.xlu0 %v3428_v45  ;;  %3432 = vadd.xlane.f32.xlu1 %v3431_v47  ;;  %vm8727_vm1 = vmmov %vm8716_vm0 }
0x2169   :  { %vm8728_vm2 = vmmov %vm8716_vm0 }
0x216a   :  { %vm8729_vm7 = vmmov %vm8716_vm0 }
0x216c   :  { %3435 = vadd.xlane.f32.xlu0 %v3434_v10  ;;  %3438 = vadd.xlane.f32.xlu1 %v3437_v54 }
0x21ed   :  { %v3410_v56 = vpop.xlane.xlu0 %3409  ;;  %v3419_v57 = vpop.xlane.xlu1 %3418 }
0x21ee   :  { %v3420_v0 = vmul.f32 0.03125, %v3410_v56  ;;  %v3423_v25 = vmul.f32 0.03125, %v3419_v57  ;;  %v5567_v57 = vld [vmem:[%s8500_s4 + $0x2] ss:$0 sm:$0xff] }
0x21f0   :  { %v3444_v49 = vmul.f32 %v3420_v0, %v3420_v0  ;;  %v3447_v14 = vmul.f32 %v3423_v25, %v3423_v25  ;;  %v3452_v28 = vsub.f32 %v7981_v39, %v3420_v0  ;;  %v3455_v30 = vsub.f32 %v7987_v34, %v3423_v25 }
0x21f1   :  { %v3416_v5 = vpop.xlane.xlu0 %3415  ;;  %v3413_v60 = vpop.xlane.xlu1 %3412 }
0x21f2   :  { %v3421_v58 = vmul.f32 0.03125, %v3413_v60  ;;  %v3422_v2 = vmul.f32 0.03125, %v3416_v5  ;;  %v5585_v60 = vld [vmem:[%s8500_s4 + $0x4] ss:$0 sm:$0xff] }
0x21f4   :  { %v3445_v3 = vmul.f32 %v3421_v58, %v3421_v58  ;;  %v3446_v55 = vmul.f32 %v3422_v2, %v3422_v2  ;;  %v3453_v36 = vsub.f32 %v8002_v43, %v3421_v58  ;;  %v3454_v15 = vsub.f32 %v7997_v12, %v3422_v2 }
0x21f5   :  { %v3430_v51 = vpop.xlane.xlu0 %3429  ;;  %v3433_v38 = vpop.xlane.xlu1 %3432 }
0x21f6   :  { %v3440_v16 = vmul.f32 0.03125, %v3430_v51  ;;  %v3441_v46 = vmul.f32 0.03125, %v3433_v38 }
0x21f8   :  { %v3448_v27 = vsub.f32 %v3440_v16, %v3444_v49  ;;  %v3449_v62 = vsub.f32 %v3441_v46, %v3445_v3 }
0x21f9   :  { %v3436_v7 = vpop.xlane.xlu0 %3435  ;;  %v3439_v63 = vpop.xlane.xlu1 %3438 }
0x21fa   :  { %v3456_v20 = vadd.f32 1e-05, %v3448_v27  ;;  %v3457_v11 = vadd.f32 1e-05, %v3449_v62  ;;  %v3442_v24 = vmul.f32 0.03125, %v3436_v7  ;;  %v3443_v13 = vmul.f32 0.03125, %v3439_v63 }
0x21fc   :  { %6544 = vrsqrt.f32 %v3456_v20  ;;  %v3450_v53 = vsub.f32 %v3442_v24, %v3446_v55  ;;  %v3451_v31 = vsub.f32 %v3443_v13, %v3447_v14  ;;  %v5576_v24 = vld [vmem:[%s8500_s4 + $0x3] ss:$0 sm:$0xff] }
0x21fd   :  { %6546 = vrsqrt.f32 %v3457_v11 }
0x21fe   :  { %v3458_v41 = vadd.f32 1e-05, %v3450_v53  ;;  %v3459_v1 = vadd.f32 1e-05, %v3451_v31 }
0x2200   :  { %6548 = vrsqrt.f32 %v3458_v41 }
0x2201   :  { %6550 = vrsqrt.f32 %v3459_v1 }
0x2206   :  { %v6545_v29 = vpop.eup %6544 }
0x2207   :  { %v6547_v35 = vpop.eup %6546  ;;  %v3464_v8 = vmul.f32 %v6545_v29, %v3452_v28 }
0x2208   :  { %v3465_v17 = vmul.f32 %v6547_v35, %v3453_v36 }
0x2209   :  { %v3472_v22 = vmul.f32 %v5565_v37, %v3464_v8 }
0x220a   :  { %v6549_v9 = vpop.eup %6548  ;;  %v3473_v44 = vmul.f32 %v5565_v37, %v3465_v17 }
0x220b   :  { %v6551_v42 = vpop.eup %6550  ;;  %v3466_v33 = vmul.f32 %v6549_v9, %v3454_v15  ;;  %v3480_v45 = vadd.f32 %v5566_v59, %v3472_v22 }
0x220c   :  { %v3467_v47 = vmul.f32 %v6551_v42, %v3455_v30  ;;  %v3481_v52 = vadd.f32 %v5566_v59, %v3473_v44 }
0x220d   :  { %v3474_v50 = vmul.f32 %v5565_v37, %v3466_v33 }
0x220e   :  { %v3484_v10 = vpack.c.bf16 %v3481_v52, %v3480_v45  ;;  %v3475_v54 = vmul.f32 %v5565_v37, %v3467_v47 }
0x220f   :  { %v3482_v40 = vadd.f32 %v5566_v59, %v3474_v50 }
0x2210   :  { %6151 = vmatprep.mubr.msk.bf16.mxu1 %vm8715_vm6, %v3484_v10  ;;  %6167 = vmatprep.mubr.msk.bf16.mxu0 %vm8716_vm0, %v3484_v10  ;;  %v3483_v48 = vadd.f32 %v5566_v59, %v3475_v54  ;;  %vm8730_vm6 = vmmov %vm8716_vm0 }
0x2212   :  { %v3485_v4 = vpack.c.bf16 %v3483_v48, %v3482_v40 }
0x2214   :  { %6152 = vmatmul.mubr.msk.bf16.vlgmr.msra.gmra.mrb[60].mxu1 %vm8717_vm4, %v3485_v4  ;;  %6168 = vmatmul.mubr.msk.bf16.vlgmr.msra.gmra.mrb[68].mxu0 %vm8718_vm9, %v3485_v4  ;;  %vm8731_vm4 = vmmov %vm8716_vm0 }
0x2215   :  { %6156 = vmatpush3.bf16.msra.mxu1 %v8035_v32  ;;  %6159 = vmatprep.mubr.msk.bf16.mxu1 %vm8719_vm10, %v3484_v10  ;;  %vm8732_vm9 = vmmov %vm8716_vm0 }
0x2216   :  { %6157 = vmatprep.subr.bf16.mxu1 %v6347_v6  ;;  %vm8733_vm10 = vmmov %vm8716_vm0 }
0x2219   :  { %6158 = vmatpush3.bf16.msra.mxu1 %v6347_v6 }
0x221c   :  { %6160 = vmatmul.mubr.msk.bf16.vlgmr.msra.gmra.mrb[64].mxu1 %vm8720_vm11, %v3485_v4  ;;  %vm8734_vm11 = vmmov %vm8716_vm0 }
0x22e7   :  { %v6153_v56 = vpop.f32.mrb[60].mxu1  ;;  %v6169_v5 = vpop.f32.mrb[68].mxu0 }
0x22e8   :  { %v3547_v0 = vpop.f32.mrb[61].mxu1  ;;  %v3687_v58 = vpop.f32.mrb[69].mxu0  ;;  %v3556_v2 = vadd.f32 %v6153_v56, %v5567_v57  ;;  %v3696_v51 = vadd.f32 %v6169_v5, %v5585_v60 }
0x22e9   :  { %v6154_v25 = vpop.f32.mrb[62].mxu1  ;;  %v6170_v32 = vpop.f32.mrb[70].mxu0  ;;  %v3548_v46 = vadd.f32 %v5567_v57, %v3547_v0  ;;  %v3688_v27 = vadd.f32 %v5585_v60, %v3687_v58 }
0x22ea   :  { %v3559_v38 = vadd.f32 %v6154_v25, %v5567_v57  ;;  %v3699_v49 = vadd.f32 %v6170_v32, %v5585_v60  ;;  %v3550_v3 = vpop.f32.mrb[63].mxu1  ;;  %v3690_v16 = vpop.f32.mrb[71].mxu0 }
0x22eb   :  { %v3551_v62 = vadd.f32 %v5567_v57, %v3550_v3  ;;  %v3691_v14 = vadd.f32 %v5585_v60, %v3690_v16  ;;  %v6348_v16 = vld [vmem:[%s8502_s6 + $0x60] sm:$0xff]  }
0x22ec   :  { %v3703_v55 = vpack.c.bf16 %v3559_v38, %v3556_v2  ;;  %v3814_v7 = vpack.c.bf16 %v3699_v49, %v3696_v51 }
0x22ed   :  { %v3702_v63 = vpack.c.bf16 %v3551_v62, %v3548_v46  ;;  %v3813_v20 = vpack.c.bf16 %v3691_v14, %v3688_v27 }
0x22ef   :  { %v6161_v11 = vpop.f32.mrb[64].mxu1  ;;  %6175 = vmatprep.mubr.msk.bf16.mxu1 %vm8721_vm14, %v3702_v63  ;;  %6179 = vmatprep.subr.bf16.mxu0 %v3813_v20  ;;  %vm8735_vm14 = vmmov %vm8716_vm0 }
0x22f0   :  { %v3617_v13 = vpop.f32.mrb[65].mxu1  ;;  %6180 = vmatpush3.bf16.msra.mxu0 %v3813_v20  ;;  %v3626_v31 = vadd.f32 %v6161_v11, %v5576_v24 }
0x22f1   :  { %v6162_v53 = vpop.f32.mrb[66].mxu1  ;;  %6181 = vmatprep.subr.bf16.mxu0 %v3814_v7  ;;  %v3618_v28 = vadd.f32 %v5576_v24, %v3617_v13 }
0x22f2   :  { %v3629_v41 = vadd.f32 %v6162_v53, %v5576_v24  ;;  %v3620_v1 = vpop.f32.mrb[67].mxu1 }
0x22f3   :  { %v3621_v29 = vadd.f32 %v5576_v24, %v3620_v1  ;;  %v6349_v1 = vld [vmem:[%s8502_s6 + $0x68] sm:$0xff]  }
0x22f4   :  { %v3705_v36 = vpack.c.bf16 %v3629_v41, %v3626_v31  ;;  %6182 = vmatpush3.bf16.msra.mxu0 %v3814_v7 }
0x22f5   :  { %v3704_v37 = vpack.c.bf16 %v3621_v29, %v3618_v28  ;;  %6187 = vmatprep.subr.bf16.mxu0 %v6348_v16 }
0x22f6   :  { %v3716_v8 = vsel %vm8725_vm3, %v3705_v36, 0  ;;  %vm8739_vm3 = vmmov %vm8716_vm0 }
0x22f7   :  { %6299 = vmatprep.subr.msk.bf16.mxu1 %vm8722_vm12, %v3704_v37  ;;  %v3713_v35 = vsel %vm8723_vm13, %v3704_v37, 0  ;;  %vm8736_vm12 = vmmov %vm8716_vm0 }
0x22f8   :  { %6172 = vmatpush3.bf16.xpose.msra.mxu1 %v3713_v35  ;;  %vm8737_vm13 = vmmov %vm8716_vm0 }
0x22f9   :  { %6300 = vmatprep.subr.msk.bf16.mxu1 %vm8724_vm15, %v3705_v36  ;;  %vm8738_vm15 = vmmov %vm8716_vm0 }
0x2300   :  { %6174 = vmatpush3.bf16.xpose.msra.mxu1 %v3716_v8 }
0x2307   :  { %6176 = vmatmul.mubr.msk.bf16.vlgmr.msra.gmra.mrb[68].mxu1 %vm8726_vm5, %v3703_v55  ;;  %vm8740_vm5 = vmmov %vm8716_vm0 }
0x23da   :  { %v6177_v59 = vpop.f32.mrb[68].mxu1 }
0x23db   :  { %v3752_v17 = vpop.f32.mrb[69].mxu1  ;;  %v3761_v30 = vadd.f32 %v6177_v59, %v7000_v21 }
0x23dc   :  { %v3753_v15 = vadd.f32 %v3752_v17, %v6997_v19  ;;  %v6178_v22 = vpop.f32.mrb[70].mxu1  ;;  %v5602_v17 = vld [vmem:[%s8500_s4 + $0x5] ss:$0 sm:$0xff] }
0x23dd   :  { %v3755_v9 = vpop.f32.mrb[71].mxu1  ;;  %v3764_v33 = vadd.f32 %v6178_v22, %v7007_v26  ;;  %v3773_v47 = vsel %vm8729_vm7, %v3761_v30, -inf  ;;  %vm8743_vm7 = vmmov %vm8716_vm0 }
0x23de   :  { %v3756_v44 = vadd.f32 %v3755_v9, %v7003_v23  ;;  %v3767_v42 = vsel %vm8727_vm1, %v3753_v15, -inf  ;;  %vm8741_vm1 = vmmov %vm8716_vm0 }
0x23df   :  { %3768 = vmax.xlane.f32.xlu0 %v3767_v42  ;;  %v3776_v52 = vsel %vm8730_vm6, %v3764_v33, -inf  ;;  %vm8744_vm6 = vmmov %vm8716_vm0 }
0x23e0   :  { %v3770_v45 = vsel %vm8728_vm2, %v3756_v44, -inf  ;;  %vm8742_vm2 = vmmov %vm8716_vm0 }
0x23e1   :  { %3771 = vmax.xlane.f32.xlu1 %v3770_v45 }
0x23e3   :  { %3774 = vmax.xlane.f32.xlu0 %v3773_v47 }
0x23e5   :  { %3777 = vmax.xlane.f32.xlu1 %v3776_v52 }
0x246c   :  { %v3769_v50 = vpop.xlane.xlu0 %3768 }
0x246d   :  { %v3779_v10 = vsub.f32 %v3753_v15, %v3769_v50 }
0x246e   :  { %v3772_v54 = vpop.xlane.xlu1 %3771 }
0x246f   :  { %v3783_v40 = vmul.f32 1.442695, %v3779_v10  ;;  %v3780_v48 = vsub.f32 %v3756_v44, %v3772_v54 }
0x2470   :  { %v3775_v4 = vpop.xlane.xlu0 %3774 }
0x2471   :  { %6552 = vpow2.f32 %v3783_v40  ;;  %v3785_v6 = vmul.f32 1.442695, %v3780_v48  ;;  %v3781_v56 = vsub.f32 %v3761_v30, %v3775_v4 }
0x2472   :  { %v3778_v57 = vpop.xlane.xlu1 %3777 }
0x2473   :  { %6554 = vpow2.f32 %v3785_v6  ;;  %v3787_v5 = vmul.f32 1.442695, %v3781_v56  ;;  %v3782_v60 = vsub.f32 %v3764_v33, %v3778_v57 }
0x2475   :  { %6556 = vpow2.f32 %v3787_v5  ;;  %v3789_v0 = vmul.f32 1.442695, %v3782_v60  ;;  %v6350_v5 = vld [vmem:[%s8503_s7] sm:$0xff]   ;;  %v6351_v60 = vld [vmem:[%s8503_s7 + $0x8] sm:$0xff]  }
0x2476   :  { %6195 = vmatprep.subr.bf16.mxu1 %v6350_v5 }
0x2477   :  { %6558 = vpow2.f32 %v3789_v0  ;;  %6196 = vmatpush3.bf16.msra.mxu1 %v6350_v5  ;;  %v6352_v5 = vld [vmem:[%s8503_s7 + $0x20] sm:$0xff]  }
0x2478   :  { %6197 = vmatprep.subr.bf16.mxu1 %v6351_v60 }
0x247b   :  { %v6553_v58 = vpop.eup %6552  ;;  %6198 = vmatpush3.bf16.msra.mxu1 %v6351_v60  ;;  %v4171_v60 = vsel %vm864_vm8, %v6352_v5, 0 }
0x247c   :  { %v3791_v25 = vsel %vm8716_vm0, %v6553_v58, 0.0 }
0x247d   :  { %v6555_v32 = vpop.eup %6554  ;;  %3792 = vadd.xlane.f32.xlu0 %v3791_v25 }
0x247e   :  { %v3794_v2 = vsel %vm8731_vm4, %v6555_v32, 0.0  ;;  %vm8745_vm4 = vmmov %vm8716_vm0 }
0x247f   :  { %v6557_v51 = vpop.eup %6556  ;;  %3795 = vadd.xlane.f32.xlu1 %v3794_v2 }
0x2480   :  { %v3797_v38 = vsel %vm8732_vm9, %v6557_v51, 0.0  ;;  %vm8746_vm9 = vmmov %vm8716_vm0 }
0x2481   :  { %v6559_v49 = vpop.eup %6558  ;;  %3798 = vadd.xlane.f32.xlu0 %v3797_v38 }
0x2482   :  { %v3800_v3 = vsel %vm8733_vm10, %v6559_v49, 0.0  ;;  %vm8747_vm10 = vmmov %vm8716_vm0 }
0x2483   :  { %3801 = vadd.xlane.f32.xlu1 %v3800_v3 }
0x250a   :  { %v3793_v46 = vpop.xlane.xlu0 %3792 }
0x250b   :  { %6560 = vrcp.f32 %v3793_v46 }
0x250c   :  { %v3796_v27 = vpop.xlane.xlu1 %3795 }
0x250d   :  { %6562 = vrcp.f32 %v3796_v27 }
0x250e   :  { %v3799_v62 = vpop.xlane.xlu0 %3798 }
0x250f   :  { %6564 = vrcp.f32 %v3799_v62 }
0x2510   :  { %v3802_v14 = vpop.xlane.xlu1 %3801 }
0x2511   :  { %6566 = vrcp.f32 %v3802_v14 }
0x2515   :  { %v6561_v55 = vpop.eup %6560 }
0x2516   :  { %v3807_v63 = vmul.f32 %v6561_v55, %v6553_v58 }
0x2517   :  { %v6563_v7 = vpop.eup %6562 }
0x2518   :  { %v3808_v20 = vmul.f32 %v6563_v7, %v6555_v32 }
0x2519   :  { %v6565_v11 = vpop.eup %6564 }
0x251a   :  { %v3811_v24 = vpack.c.bf16 %v3808_v20, %v3807_v63  ;;  %v3809_v53 = vmul.f32 %v6565_v11, %v6557_v51 }
0x251b   :  { %v6567_v13 = vpop.eup %6566 }
0x251c   :  { %v3810_v31 = vmul.f32 %v6567_v13, %v6559_v49  ;;  %6183 = vmatprep.mubr.msk.bf16.mxu0 %vm8734_vm11, %v3811_v24  ;;  %vm8748_vm11 = vmmov %vm8716_vm0 }
0x251e   :  { %v3812_v41 = vpack.c.bf16 %v3810_v31, %v3809_v53 }
0x2520   :  { %6184 = vmatmul.mubr.msk.bf16.vlgmr.msra.gmra.mrb[72].mxu0 %vm8735_vm14, %v3812_v41  ;;  %vm8749_vm14 = vmmov %vm8716_vm0 }
0x2521   :  { %6188 = vmatpush3.bf16.msra.mxu0 %v6348_v16 }
0x2522   :  { %6189 = vmatprep.subr.bf16.mxu0 %v6349_v1 }
0x2525   :  { %6190 = vmatpush3.bf16.msra.mxu0 %v6349_v1 }
0x2526   :  { %6301 = vmatprep.subr.msk.bf16.mxu0 %vm864_vm8, %v6352_v5 }
0x25f3   :  { %v6185_v28 = vpop.f32.mrb[72].mxu0 }
0x25f4   :  { %v3855_v29 = vpop.f32.mrb[73].mxu0 }
0x25f5   :  { %v6186_v36 = vpop.f32.mrb[74].mxu0 }
0x25f6   :  { %v3871_v37 = vpack.c.bf16 %v6186_v36, %v6185_v28  ;;  %v3858_v35 = vpop.f32.mrb[75].mxu0 }
0x25f7   :  { %v3870_v8 = vpack.c.bf16 %v3858_v35, %v3855_v29 }
0x25f9   :  { %6191 = vmatprep.mubr.msk.bf16.mxu0 %vm8736_vm12, %v3870_v8  ;;  %v5603_v8 = vld [vmem:[%s8500_s4 + $0x6] ss:$0 sm:$0xff]  ;;  %vm8750_vm12 = vmmov %vm8716_vm0 }
0x25fa   :  { %6192 = vmatmul.mubr.msk.bf16.vlgmr.msra.gmra.mrb[76].mxu0 %vm8737_vm13, %v3871_v37  ;;  %vm8751_vm13 = vmmov %vm8716_vm0 }
0x25fb   :  { %6204 = vmatpush3.bf16.xpose.msra.mxu0 %v4171_v60 }
0x26cd   :  { %v6193_v59 = vpop.f32.mrb[76].mxu0 }
0x26ce   :  { %v3945_v15 = vadd.f32 %v6193_v59, %v7997_v12  ;;  %v3928_v22 = vpop.f32.mrb[77].mxu0 }
0x26cf   :  { %v3943_v9 = vadd.f32 %v3928_v22, %v7981_v39  ;;  %v6194_v30 = vpop.f32.mrb[78].mxu0 }
0x26d0   :  { %v8100_v44 = vadd.f32 %v5602_v17, %v3945_v15  ;;  %v3946_v42 = vadd.f32 %v6194_v30, %v7987_v34  ;;  %v3931_v33 = vpop.f32.mrb[79].mxu0 }
0x26d1   :  { %v3944_v45 = vadd.f32 %v3931_v33, %v8002_v43  ;;  %v8104_v47 = vadd.f32 %v5602_v17, %v3943_v9  ;;  %v5604_v33 = vld [vmem:[%s8500_s4 + $0x7] ss:$0 sm:$0xff] }
0x26d2   :  { %v8106_v52 = vadd.f32 %v5602_v17, %v3946_v42  ;;  %v3964_v50 = vsel %vm8738_vm15, %v8100_v44, 0.0  ;;  %v3976_v48 = vmul.f32 %v8100_v44, %v8100_v44  ;;  %vm8752_vm15 = vmmov %vm8716_vm0 }
0x26d3   :  { %3965 = vadd.xlane.f32.xlu0 %v3964_v50  ;;  %v8110_v12 = vadd.f32 %v5602_v17, %v3944_v45  ;;  %v3958_v34 = vsel %vm8740_vm5, %v8104_v47, 0.0  ;;  %v3974_v43 = vmul.f32 %v8104_v47, %v8104_v47  ;;  %vm8754_vm5 = vmmov %vm8716_vm0 }
0x26d4   :  { %v3967_v39 = vsel %vm8739_vm3, %v8106_v52, 0.0  ;;  %v3977_v6 = vmul.f32 %v8106_v52, %v8106_v52  ;;  %v3984_v56 = vsel %vm8744_vm6, %v3976_v48, 0.0  ;;  %vm8753_vm3 = vmmov %vm8716_vm0 }
0x26d5   :  { %3968 = vadd.xlane.f32.xlu1 %v3967_v39  ;;  %v3961_v10 = vsel %vm8741_vm1, %v8110_v12, 0.0  ;;  %v3975_v54 = vmul.f32 %v8110_v12, %v8110_v12  ;;  %v3978_v40 = vsel %vm8742_vm2, %v3974_v43, 0.0  ;;  %vm8755_vm1 = vmmov %vm8716_vm0 }
0x26d6   :  { %v3987_v57 = vsel %vm8716_vm0, %v3977_v6, 0.0  ;;  %vm8756_vm2 = vmmov %vm8716_vm0 }
0x26d7   :  { %3959 = vadd.xlane.f32.xlu0 %v3958_v34  ;;  %v3981_v4 = vsel %vm8743_vm7, %v3975_v54, 0.0  ;;  %vm8757_vm7 = vmmov %vm8716_vm0 }
0x26d8   :  { %vm8758_vm6 = vmmov %vm8716_vm0 }
0x26d9   :  { %3962 = vadd.xlane.f32.xlu1 %v3961_v10 }
0x26db   :  { %3979 = vadd.xlane.f32.xlu0 %v3978_v40 }
0x26dd   :  { %3982 = vadd.xlane.f32.xlu1 %v3981_v4 }
0x26df   :  { %3985 = vadd.xlane.f32.xlu0 %v3984_v56 }
0x26e1   :  { %3988 = vadd.xlane.f32.xlu1 %v3987_v57 }
0x2760   :  { %v3966_v0 = vpop.xlane.xlu0 %3965 }
0x2761   :  { %v3972_v49 = vmul.f32 0.03125, %v3966_v0  ;;  %v6353_v0 = vld [vmem:[%s8503_s7 + $0x28] sm:$0xff]  }
0x2762   :  { %v3969_v58 = vpop.xlane.xlu1 %3968  ;;  %6302 = vmatprep.subr.msk.bf16.mxu0 %vm864_vm8, %v6353_v0 }
0x2763   :  { %v3973_v46 = vmul.f32 0.03125, %v3969_v58  ;;  %v3996_v63 = vmul.f32 %v3972_v49, %v3972_v49  ;;  %v4004_v22 = vsub.f32 %v8100_v44, %v3972_v49  ;;  %v4174_v58 = vsel %vm864_vm8, %v6353_v0, 0 }
0x2764   :  { %v3960_v25 = vpop.xlane.xlu0 %3959  ;;  %6206 = vmatpush3.bf16.xpose.msra.mxu0 %v4174_v58 }
0x2765   :  { %v3970_v32 = vmul.f32 0.03125, %v3960_v25  ;;  %v3997_v13 = vmul.f32 %v3973_v46, %v3973_v46  ;;  %v4005_v45 = vsub.f32 %v8106_v52, %v3973_v46  ;;  %v5605_v25 = vld [vmem:[%s8501_s5] ss:$0 sm:$0xff] }
0x2766   :  { %v3963_v2 = vpop.xlane.xlu1 %3962 }
0x2767   :  { %v3971_v51 = vmul.f32 0.03125, %v3963_v2  ;;  %v3994_v3 = vmul.f32 %v3970_v32, %v3970_v32  ;;  %v4002_v37 = vsub.f32 %v8104_v47, %v3970_v32 }
0x2768   :  { %v3980_v38 = vpop.xlane.xlu0 %3979 }
0x2769   :  { %v3990_v16 = vmul.f32 0.03125, %v3980_v38  ;;  %v3995_v62 = vmul.f32 %v3971_v51, %v3971_v51  ;;  %v4003_v59 = vsub.f32 %v8110_v12, %v3971_v51 }
0x276a   :  { %v3983_v27 = vpop.xlane.xlu1 %3982 }
0x276b   :  { %v3998_v14 = vsub.f32 %v3990_v16, %v3994_v3  ;;  %v3991_v55 = vmul.f32 0.03125, %v3983_v27 }
0x276c   :  { %v3986_v7 = vpop.xlane.xlu0 %3985 }
0x276d   :  { %v4006_v20 = vadd.f32 1e-05, %v3998_v14  ;;  %v3999_v11 = vsub.f32 %v3991_v55, %v3995_v62  ;;  %v3992_v24 = vmul.f32 0.03125, %v3986_v7 }
0x276e   :  { %v3989_v53 = vpop.xlane.xlu1 %3988 }
0x276f   :  { %6568 = vrsqrt.f32 %v4006_v20  ;;  %v4007_v31 = vadd.f32 1e-05, %v3999_v11  ;;  %v4000_v41 = vsub.f32 %v3992_v24, %v3996_v63  ;;  %v3993_v1 = vmul.f32 0.03125, %v3989_v53 }
0x2771   :  { %6570 = vrsqrt.f32 %v4007_v31  ;;  %v4008_v28 = vadd.f32 1e-05, %v4000_v41  ;;  %v4001_v29 = vsub.f32 %v3993_v1, %v3997_v13 }
0x2773   :  { %6572 = vrsqrt.f32 %v4008_v28  ;;  %v4009_v36 = vadd.f32 1e-05, %v4001_v29 }
0x2775   :  { %6574 = vrsqrt.f32 %v4009_v36 }
0x2779   :  { %v6569_v35 = vpop.eup %6568 }
0x277a   :  { %v4014_v17 = vmul.f32 %v6569_v35, %v4002_v37 }
0x277b   :  { %v6571_v15 = vpop.eup %6570 }
0x277c   :  { %v4015_v9 = vmul.f32 %v6571_v15, %v4003_v59  ;;  %v4022_v30 = vmul.f32 %v5603_v8, %v4014_v17 }
0x277d   :  { %v6573_v42 = vpop.eup %6572 }
0x277e   :  { %v4016_v50 = vmul.f32 %v6573_v42, %v4004_v22  ;;  %v4023_v39 = vmul.f32 %v5603_v8, %v4015_v9  ;;  %v4030_v10 = vadd.f32 %v5604_v33, %v4022_v30 }
0x277f   :  { %v6575_v34 = vpop.eup %6574 }
0x2780   :  { %v4017_v43 = vmul.f32 %v6575_v34, %v4005_v45  ;;  %v4031_v54 = vadd.f32 %v5604_v33, %v4023_v39  ;;  %v4024_v40 = vmul.f32 %v5603_v8, %v4016_v50 }
0x2782   :  { %v4034_v48 = vpack.c.bf16 %v4031_v54, %v4030_v10  ;;  %v4025_v4 = vmul.f32 %v5603_v8, %v4017_v43  ;;  %v4032_v6 = vadd.f32 %v5604_v33, %v4024_v40 }
0x2784   :  { %6199 = vmatprep.mubr.msk.bf16.mxu1 %vm8745_vm4, %v4034_v48  ;;  %v4033_v56 = vadd.f32 %v5604_v33, %v4025_v4  ;;  %vm8759_vm4 = vmmov %vm8716_vm0 }
0x2786   :  { %v4035_v57 = vpack.c.bf16 %v4033_v56, %v4032_v6  ;;  %v5618_v56 = vld [vmem:[%s8500_s4 + $0x8] ss:$0 sm:$0xff] }
0x2788   :  { %6200 = vmatmul.mubr.msk.bf16.vlgmr.msra.gmra.mrb[72].mxu1 %vm8746_vm9, %v4035_v57  ;;  %vm8760_vm9 = vmmov %vm8716_vm0 }
0x285b   :  { %v6201_v32 = vpop.f32.mrb[72].mxu1 }
0x285c   :  { %v4106_v2 = vadd.f32 %v6201_v32, %v5605_v25  ;;  %v4097_v51 = vpop.f32.mrb[73].mxu1 }
0x285d   :  { %v4098_v38 = vadd.f32 %v5605_v25, %v4097_v51  ;;  %v6202_v49 = vpop.f32.mrb[74].mxu1 }
0x285e   :  { %v4114_v3 = vmul.f32 %v4106_v2, %v4106_v2  ;;  %v4109_v16 = vadd.f32 %v6202_v49, %v5605_v25  ;;  %v4100_v46 = vpop.f32.mrb[75].mxu1 }
0x285f   :  { %v4112_v27 = vmul.f32 %v4098_v38, %v4098_v38  ;;  %v4101_v62 = vadd.f32 %v5605_v25, %v4100_v46 }
0x2860   :  { %v4118_v14 = vmul.f32 %v4114_v3, %v4106_v2  ;;  %v4115_v55 = vmul.f32 %v4109_v16, %v4109_v16 }
0x2861   :  { %v4116_v7 = vmul.f32 %v4112_v27, %v4098_v38  ;;  %v4113_v63 = vmul.f32 %v4101_v62, %v4101_v62 }
0x2862   :  { %v4122_v20 = vmul.f32 0.044715, %v4118_v14  ;;  %v4119_v11 = vmul.f32 %v4115_v55, %v4109_v16 }
0x2863   :  { %v4120_v24 = vmul.f32 0.044715, %v4116_v7  ;;  %v4117_v13 = vmul.f32 %v4113_v63, %v4101_v62  ;;  %v6354_v63 = vld [vmem:[%s8502_s6 + $0x10] sm:$0xff]  }
0x2864   :  { %v4126_v53 = vadd.f32 %v4122_v20, %v4106_v2  ;;  %v4123_v31 = vmul.f32 0.044715, %v4119_v11  ;;  %v6355_v20 = vld [vmem:[%s8502_s6 + $0x50] sm:$0xff]   ;;  %6211 = vmatprep.subr.bf16.mxu1 %v6354_v63  ;;  %v6356_v11 = vld [vmem:[%s8502_s6 + $0x18] sm:$0xff]  }
0x2865   :  { %v4124_v41 = vadd.f32 %v4120_v24, %v4098_v38  ;;  %v4121_v1 = vmul.f32 0.044715, %v4117_v13  ;;  %6227 = vmatprep.subr.bf16.mxu0 %v6355_v20  ;;  %6212 = vmatpush3.bf16.msra.mxu1 %v6354_v63  ;;  %v6357_v24 = vld [vmem:[%s8502_s6 + $0x58] sm:$0xff]   ;;  %v8213_v13 = vld [vmem:[%s8502_s6 + $0x30] sm:$0xff]  }
0x2866   :  { %v4130_v28 = vmul.f32 0.7978846, %v4126_v53  ;;  %v4127_v29 = vadd.f32 %v4123_v31, %v4109_v16  ;;  %6213 = vmatprep.subr.bf16.mxu1 %v6356_v11 }
0x2867   :  { %v4128_v36 = vmul.f32 0.7978846, %v4124_v41  ;;  %v4125_v37 = vadd.f32 %v4121_v1, %v4101_v62 }
0x2868   :  { %6576 = vtanh.f32 %v4130_v28  ;;  %v4131_v35 = vmul.f32 0.7978846, %v4127_v29 }
0x2869   :  { %6578 = vtanh.f32 %v4128_v36  ;;  %v4129_v8 = vmul.f32 0.7978846, %v4125_v37  ;;  %6214 = vmatpush3.bf16.msra.mxu1 %v6356_v11 }
0x286a   :  { %6580 = vtanh.f32 %v4131_v35  ;;  %6219 = vmatprep.subr.bf16.mxu1 %v8213_v13 }
0x286b   :  { %6582 = vtanh.f32 %v4129_v8 }
0x2872   :  { %v6577_v59 = vpop.eup %6576 }
0x2873   :  { %v6579_v17 = vpop.eup %6578  ;;  %v4138_v15 = vadd.f32 1.0, %v6577_v59 }
0x2874   :  { %v6581_v22 = vpop.eup %6580  ;;  %v4136_v9 = vadd.f32 1.0, %v6579_v17 }
0x2875   :  { %v6583_v30 = vpop.eup %6582  ;;  %v4142_v42 = vmul.f32 0.5, %v4138_v15  ;;  %v4139_v33 = vadd.f32 1.0, %v6581_v22 }
0x2876   :  { %v4140_v45 = vmul.f32 0.5, %v4136_v9  ;;  %v4137_v50 = vadd.f32 1.0, %v6583_v30 }
0x2877   :  { %v4143_v39 = vmul.f32 0.5, %v4139_v33  ;;  %v4146_v43 = vmul.f32 %v4142_v42, %v4106_v2 }
0x2878   :  { %v4141_v34 = vmul.f32 0.5, %v4137_v50  ;;  %v4144_v54 = vmul.f32 %v4140_v45, %v4098_v38 }
0x2879   :  { %v4147_v10 = vmul.f32 %v4143_v39, %v4109_v16 }
0x287a   :  { %v4145_v40 = vmul.f32 %v4141_v34, %v4101_v62 }
0x287b   :  { %v4149_v48 = vpack.c.bf16 %v4147_v10, %v4146_v43 }
0x287c   :  { %v4148_v4 = vpack.c.bf16 %v4145_v40, %v4144_v54 }
0x287e   :  { %6207 = vmatprep.mubr.msk.bf16.mxu0 %vm864_vm8, %v4148_v4 }
0x287f   :  { %6208 = vmatmul.mubr.msk.bf16.vlgmr.msra.gmra.mrb[80].mxu0 %vm864_vm8, %v4149_v48 }
0x2880   :  { %6228 = vmatpush3.bf16.msra.mxu0 %v6355_v20 }
0x2881   :  { %6229 = vmatprep.subr.bf16.mxu0 %v6357_v24 }
0x2884   :  { %6230 = vmatpush3.bf16.msra.mxu0 %v6357_v24  ;;  %v6359_v24 = vld [vmem:[%s8502_s6 + $0x38] sm:$0xff]  }
0x2952   :  { %v6209_v6 = vpop.f32.mrb[80].mxu0 }
0x2953   :  { %v4227_v57 = vadd.f32 %v6209_v6, %v8100_v44  ;;  %v4210_v5 = vpop.f32.mrb[81].mxu0 }
0x2954   :  { %v4225_v60 = vadd.f32 %v4210_v5, %v8104_v47  ;;  %v6210_v0 = vpop.f32.mrb[82].mxu0 }
0x2955   :  { %v8168_v58 = vadd.f32 %v5618_v56, %v4227_v57  ;;  %v4228_v25 = vadd.f32 %v6210_v0, %v8106_v52  ;;  %v4213_v32 = vpop.f32.mrb[83].mxu0  ;;  %v5619_v57 = vld [vmem:[%s8500_s4 + $0x9] ss:$0 sm:$0xff] }
0x2956   :  { %v4226_v2 = vadd.f32 %v4213_v32, %v8110_v12  ;;  %v8172_v51 = vadd.f32 %v5618_v56, %v4225_v60 }
0x2957   :  { %v8174_v38 = vadd.f32 %v5618_v56, %v4228_v25  ;;  %v4246_v49 = vsel %vm8747_vm10, %v8168_v58, 0.0  ;;  %v4258_v27 = vmul.f32 %v8168_v58, %v8168_v58  ;;  %vm8761_vm10 = vmmov %vm8716_vm0 }
0x2958   :  { %4247 = vadd.xlane.f32.xlu0 %v4246_v49  ;;  %v8178_v44 = vadd.f32 %v5618_v56, %v4226_v2  ;;  %v4240_v52 = vsel %vm8749_vm14, %v8172_v51, 0.0  ;;  %v4256_v12 = vmul.f32 %v8172_v51, %v8172_v51  ;;  %vm8763_vm14 = vmmov %vm8716_vm0 }
0x2959   :  { %v4249_v47 = vsel %vm8748_vm11, %v8174_v38, 0.0  ;;  %v4259_v14 = vmul.f32 %v8174_v38, %v8174_v38  ;;  %v4266_v55 = vsel %vm8753_vm3, %v4258_v27, 0.0  ;;  %vm8762_vm11 = vmmov %vm8716_vm0 }
0x295a   :  { %4250 = vadd.xlane.f32.xlu1 %v4249_v47  ;;  %v4243_v3 = vsel %vm8750_vm12, %v8178_v44, 0.0  ;;  %v4257_v16 = vmul.f32 %v8178_v44, %v8178_v44  ;;  %v4260_v46 = vsel %vm8751_vm13, %v4256_v12, 0.0  ;;  %v5620_v47 = vld [vmem:[%s8500_s4 + $0xa] ss:$0 sm:$0xff]  ;;  %vm8764_vm12 = vmmov %vm8716_vm0 }
0x295b   :  { %v4269_v7 = vsel %vm8754_vm5, %v4259_v14, 0.0  ;;  %vm8765_vm13 = vmmov %vm8716_vm0 }
0x295c   :  { %4241 = vadd.xlane.f32.xlu0 %v4240_v52  ;;  %v4263_v62 = vsel %vm8752_vm15, %v4257_v16, 0.0  ;;  %vm8766_vm15 = vmmov %vm8716_vm0 }
0x295d   :  { %vm8767_vm3 = vmmov %vm8716_vm0 }
0x295e   :  { %4244 = vadd.xlane.f32.xlu1 %v4243_v3  ;;  %vm8768_vm5 = vmmov %vm8716_vm0 }
0x2960   :  { %4261 = vadd.xlane.f32.xlu0 %v4260_v46 }
0x2962   :  { %4264 = vadd.xlane.f32.xlu1 %v4263_v62 }
0x2964   :  { %4267 = vadd.xlane.f32.xlu0 %v4266_v55 }
0x2966   :  { %4270 = vadd.xlane.f32.xlu1 %v4269_v7 }
0x29e5   :  { %v4248_v53 = vpop.xlane.xlu0 %4247 }
0x29e6   :  { %v4254_v37 = vmul.f32 0.03125, %v4248_v53 }
0x29e7   :  { %v4251_v31 = vpop.xlane.xlu1 %4250 }
0x29e8   :  { %v4255_v59 = vmul.f32 0.03125, %v4251_v31  ;;  %v4278_v42 = vmul.f32 %v4254_v37, %v4254_v37  ;;  %v4286_v25 = vsub.f32 %v8168_v58, %v4254_v37  ;;  %v5625_v31 = vld [vmem:[%s8500_s4 + $0xb] ss:$0 sm:$0xff] }
0x29e9   :  { %v4242_v41 = vpop.xlane.xlu0 %4241 }
0x29ea   :  { %v4252_v1 = vmul.f32 0.03125, %v4242_v41  ;;  %v4279_v39 = vmul.f32 %v4255_v59, %v4255_v59  ;;  %v4287_v52 = vsub.f32 %v8174_v38, %v4255_v59 }
0x29eb   :  { %v4245_v28 = vpop.xlane.xlu1 %4244 }
0x29ec   :  { %v4253_v29 = vmul.f32 0.03125, %v4245_v28  ;;  %v4276_v35 = vmul.f32 %v4252_v1, %v4252_v1  ;;  %v4284_v6 = vsub.f32 %v8172_v51, %v4252_v1  ;;  %v5643_v1 = vld [vmem:[%s8500_s4 + $0xd] ss:$0 sm:$0xff] }
0x29ed   :  { %v4262_v36 = vpop.xlane.xlu0 %4261 }
0x29ee   :  { %v4272_v8 = vmul.f32 0.03125, %v4262_v36  ;;  %v4277_v15 = vmul.f32 %v4253_v29, %v4253_v29  ;;  %v4285_v5 = vsub.f32 %v8178_v44, %v4253_v29 }
0x29ef   :  { %v4265_v17 = vpop.xlane.xlu1 %4264 }
0x29f0   :  { %v4280_v22 = vsub.f32 %v4272_v8, %v4276_v35  ;;  %v4273_v9 = vmul.f32 0.03125, %v4265_v17 }
0x29f1   :  { %v4268_v30 = vpop.xlane.xlu0 %4267 }
0x29f2   :  { %v4288_v33 = vadd.f32 1e-05, %v4280_v22  ;;  %v4281_v45 = vsub.f32 %v4273_v9, %v4277_v15  ;;  %v4274_v50 = vmul.f32 0.03125, %v4268_v30 }
0x29f3   :  { %v4271_v34 = vpop.xlane.xlu1 %4270 }
0x29f4   :  { %6584 = vrsqrt.f32 %v4288_v33  ;;  %v4289_v43 = vadd.f32 1e-05, %v4281_v45  ;;  %v4282_v10 = vsub.f32 %v4274_v50, %v4278_v42  ;;  %v4275_v54 = vmul.f32 0.03125, %v4271_v34 }
0x29f6   :  { %6586 = vrsqrt.f32 %v4289_v43  ;;  %v4290_v40 = vadd.f32 1e-05, %v4282_v10  ;;  %v4283_v48 = vsub.f32 %v4275_v54, %v4279_v39  ;;  %v5634_v43 = vld [vmem:[%s8500_s4 + $0xc] ss:$0 sm:$0xff] }
0x29f8   :  { %6588 = vrsqrt.f32 %v4290_v40  ;;  %v4291_v4 = vadd.f32 1e-05, %v4283_v48 }
0x29fa   :  { %6590 = vrsqrt.f32 %v4291_v4 }
0x29fe   :  { %v6585_v56 = vpop.eup %6584 }
0x29ff   :  { %v4296_v60 = vmul.f32 %v6585_v56, %v4284_v6 }
0x2a00   :  { %v6587_v0 = vpop.eup %6586 }
0x2a01   :  { %v4297_v32 = vmul.f32 %v6587_v0, %v4285_v5  ;;  %v4304_v2 = vmul.f32 %v5619_v57, %v4296_v60 }
0x2a02   :  { %v6589_v49 = vpop.eup %6588 }
0x2a03   :  { %v4298_v12 = vmul.f32 %v6589_v49, %v4286_v25  ;;  %v4305_v3 = vmul.f32 %v5619_v57, %v4297_v32  ;;  %v4312_v27 = vadd.f32 %v5620_v47, %v4304_v2 }
0x2a04   :  { %v6591_v16 = vpop.eup %6590 }
0x2a05   :  { %v4299_v46 = vmul.f32 %v6591_v16, %v4287_v52  ;;  %v4313_v62 = vadd.f32 %v5620_v47, %v4305_v3  ;;  %v4306_v14 = vmul.f32 %v5619_v57, %v4298_v12 }
0x2a07   :  { %v4316_v55 = vpack.c.bf16 %v4313_v62, %v4312_v27  ;;  %v4307_v7 = vmul.f32 %v5619_v57, %v4299_v46  ;;  %v4314_v63 = vadd.f32 %v5620_v47, %v4306_v14 }
0x2a09   :  { %6215 = vmatprep.mubr.msk.bf16.mxu1 %vm8755_vm1, %v4316_v55  ;;  %6231 = vmatprep.mubr.msk.bf16.mxu0 %vm8756_vm2, %v4316_v55  ;;  %v4315_v20 = vadd.f32 %v5620_v47, %v4307_v7  ;;  %vm8769_vm1 = vmmov %vm8716_vm0 }
0x2a0a   :  { %vm8770_vm2 = vmmov %vm8716_vm0 }
0x2a0b   :  { %v4317_v11 = vpack.c.bf16 %v4315_v20, %v4314_v63 }
0x2a0d   :  { %6216 = vmatmul.mubr.msk.bf16.vlgmr.msra.gmra.mrb[76].mxu1 %vm8757_vm7, %v4317_v11  ;;  %6232 = vmatmul.mubr.msk.bf16.vlgmr.msra.gmra.mrb[84].mxu0 %vm8758_vm6, %v4317_v11  ;;  %vm8771_vm7 = vmmov %vm8716_vm0 }
0x2a0e   :  { %6220 = vmatpush3.bf16.msra.mxu1 %v8213_v13  ;;  %6223 = vmatprep.mubr.msk.bf16.mxu1 %vm8716_vm0, %v4316_v55  ;;  %vm8772_vm6 = vmmov %vm8716_vm0 }
0x2a0f   :  { %6221 = vmatprep.subr.bf16.mxu1 %v6359_v24 }
0x2a12   :  { %6222 = vmatpush3.bf16.msra.mxu1 %v6359_v24 }
0x2a15   :  { %6224 = vmatmul.mubr.msk.bf16.vlgmr.msra.gmra.mrb[80].mxu1 %vm8759_vm4, %v4317_v11  ;;  %vm8773_vm4 = vmmov %vm8716_vm0 }
0x2ae0   :  { %v6217_v53 = vpop.f32.mrb[76].mxu1  ;;  %v6233_v41 = vpop.f32.mrb[84].mxu0 }
0x2ae1   :  { %v4379_v28 = vpop.f32.mrb[77].mxu1  ;;  %v4519_v29 = vpop.f32.mrb[85].mxu0  ;;  %v4388_v37 = vadd.f32 %v6217_v53, %v5625_v31  ;;  %v4528_v35 = vadd.f32 %v6233_v41, %v5643_v1 }
0x2ae2   :  { %v6218_v36 = vpop.f32.mrb[78].mxu1  ;;  %v6234_v13 = vpop.f32.mrb[86].mxu0  ;;  %v4380_v22 = vadd.f32 %v5625_v31, %v4379_v28  ;;  %v4520_v9 = vadd.f32 %v5643_v1, %v4519_v29 }
0x2ae3   :  { %v4391_v8 = vadd.f32 %v6218_v36, %v5625_v31  ;;  %v4531_v59 = vadd.f32 %v6234_v13, %v5643_v1  ;;  %v4382_v17 = vpop.f32.mrb[79].mxu1  ;;  %v4522_v15 = vpop.f32.mrb[87].mxu0 }
0x2ae4   :  { %v4383_v30 = vadd.f32 %v5625_v31, %v4382_v17  ;;  %v4523_v42 = vadd.f32 %v5643_v1, %v4522_v15 }
0x2ae5   :  { %v4535_v33 = vpack.c.bf16 %v4391_v8, %v4388_v37  ;;  %v4646_v45 = vpack.c.bf16 %v4531_v59, %v4528_v35  ;;  %v6360_v35 = vld [vmem:[%s8502_s6 + $0x70] sm:$0xff]  }
0x2ae6   :  { %v4534_v50 = vpack.c.bf16 %v4383_v30, %v4380_v22  ;;  %v4645_v39 = vpack.c.bf16 %v4523_v42, %v4520_v9 }
0x2ae8   :  { %v6225_v34 = vpop.f32.mrb[80].mxu1  ;;  %6239 = vmatprep.mubr.msk.bf16.mxu1 %vm8760_vm9, %v4534_v50  ;;  %6243 = vmatprep.subr.bf16.mxu0 %v4645_v39  ;;  %vm8774_vm9 = vmmov %vm8716_vm0 }
0x2ae9   :  { %v4449_v10 = vpop.f32.mrb[81].mxu1  ;;  %6244 = vmatpush3.bf16.msra.mxu0 %v4645_v39  ;;  %v4458_v40 = vadd.f32 %v6225_v34, %v5634_v43 }
0x2aea   :  { %v6226_v54 = vpop.f32.mrb[82].mxu1  ;;  %6245 = vmatprep.subr.bf16.mxu0 %v4646_v45  ;;  %v4450_v6 = vadd.f32 %v5634_v43, %v4449_v10  ;;  %v6361_v10 = vld [vmem:[%s8502_s6 + $0x78] sm:$0xff]  }
0x2aeb   :  { %v4461_v48 = vadd.f32 %v6226_v54, %v5634_v43  ;;  %v4452_v4 = vpop.f32.mrb[83].mxu1 }
0x2aec   :  { %v4453_v56 = vadd.f32 %v5634_v43, %v4452_v4 }
0x2aed   :  { %v4537_v57 = vpack.c.bf16 %v4461_v48, %v4458_v40  ;;  %6246 = vmatpush3.bf16.msra.mxu0 %v4646_v45 }
0x2aee   :  { %v4536_v5 = vpack.c.bf16 %v4453_v56, %v4450_v6  ;;  %6251 = vmatprep.subr.bf16.mxu0 %v6360_v35 }
0x2aef   :  { %v4548_v0 = vsel %vm8764_vm12, %v4537_v57, 0  ;;  %vm8778_vm12 = vmmov %vm8716_vm0 }
0x2af0   :  { %6303 = vmatprep.subr.msk.bf16.mxu1 %vm8761_vm10, %v4536_v5  ;;  %v4545_v60 = vsel %vm8762_vm11, %v4536_v5, 0  ;;  %vm8775_vm10 = vmmov %vm8716_vm0  ;;  %v5660_v5 = vld [vmem:[%s8500_s4 + $0xe] ss:$0 sm:$0xff] }
0x2af1   :  { %6236 = vmatpush3.bf16.xpose.msra.mxu1 %v4545_v60  ;;  %vm8776_vm11 = vmmov %vm8716_vm0 }
0x2af2   :  { %6304 = vmatprep.subr.msk.bf16.mxu1 %vm8763_vm14, %v4537_v57  ;;  %vm8777_vm14 = vmmov %vm8716_vm0 }
0x2af9   :  { %6238 = vmatpush3.bf16.xpose.msra.mxu1 %v4548_v0 }
0x2b00   :  { %6240 = vmatmul.mubr.msk.bf16.vlgmr.msra.gmra.mrb[84].mxu1 %vm8765_vm13, %v4535_v33  ;;  %vm8779_vm13 = vmmov %vm8716_vm0 }
0x2bd3   :  { %v6241_v25 = vpop.f32.mrb[84].mxu1 }
0x2bd4   :  { %v4584_v32 = vpop.f32.mrb[85].mxu1  ;;  %v4593_v52 = vadd.f32 %v6241_v25, %v7000_v21 }
0x2bd5   :  { %v4585_v2 = vadd.f32 %v4584_v32, %v6997_v19  ;;  %v6242_v49 = vpop.f32.mrb[86].mxu1 }
0x2bd6   :  { %v4587_v47 = vpop.f32.mrb[87].mxu1  ;;  %v4596_v16 = vadd.f32 %v6242_v49, %v7007_v26  ;;  %v4605_v27 = vsel %vm8768_vm5, %v4593_v52, -inf  ;;  %vm8782_vm5 = vmmov %vm8716_vm0 }
0x2bd7   :  { %v4588_v12 = vadd.f32 %v4587_v47, %v7003_v23  ;;  %v4599_v3 = vsel %vm8766_vm15, %v4585_v2, -inf  ;;  %vm8780_vm15 = vmmov %vm8716_vm0 }
0x2bd8   :  { %4600 = vmax.xlane.f32.xlu0 %v4599_v3  ;;  %v4608_v62 = vsel %vm8769_vm1, %v4596_v16, -inf  ;;  %vm8783_vm1 = vmmov %vm8716_vm0 }
0x2bd9   :  { %v4602_v46 = vsel %vm8767_vm3, %v4588_v12, -inf  ;;  %vm8781_vm3 = vmmov %vm8716_vm0 }
0x2bda   :  { %4603 = vmax.xlane.f32.xlu1 %v4602_v46 }
0x2bdc   :  { %4606 = vmax.xlane.f32.xlu0 %v4605_v27 }
0x2bde   :  { %4609 = vmax.xlane.f32.xlu1 %v4608_v62 }
0x2c65   :  { %v4601_v19 = vpop.xlane.xlu0 %4600 }
0x2c66   :  { %v4611_v14 = vsub.f32 %v4585_v2, %v4601_v19 }
0x2c67   :  { %v4604_v55 = vpop.xlane.xlu1 %4603 }
0x2c68   :  { %v4615_v21 = vmul.f32 1.442695, %v4611_v14  ;;  %v4612_v7 = vsub.f32 %v4588_v12, %v4604_v55 }
0x2c69   :  { %v4607_v23 = vpop.xlane.xlu0 %4606 }
0x2c6a   :  { %6592 = vpow2.f32 %v4615_v21  ;;  %v4617_v63 = vmul.f32 1.442695, %v4612_v7  ;;  %v4613_v20 = vsub.f32 %v4593_v52, %v4607_v23  ;;  %v6362_v23 = vld [vmem:[%s8503_s7 + $0x10] sm:$0xff]  }
0x2c6b   :  { %v4610_v11 = vpop.xlane.xlu1 %4609  ;;  %6259 = vmatprep.subr.bf16.mxu1 %v6362_v23 }
0x2c6c   :  { %6594 = vpow2.f32 %v4617_v63  ;;  %v4619_v26 = vmul.f32 1.442695, %v4613_v20  ;;  %v4614_v24 = vsub.f32 %v4596_v16, %v4610_v11  ;;  %v6363_v63 = vld [vmem:[%s8503_s7 + $0x18] sm:$0xff]   ;;  %6260 = vmatpush3.bf16.msra.mxu1 %v6362_v23  ;;  %v5667_v23 = vld [vmem:[%s8501_s5 + $0x1] ss:$0 sm:$0xff] }
0x2c6d   :  { %6261 = vmatprep.subr.bf16.mxu1 %v6363_v63 }
0x2c6e   :  { %6596 = vpow2.f32 %v4619_v26  ;;  %v4621_v53 = vmul.f32 1.442695, %v4614_v24 }
0x2c70   :  { %6598 = vpow2.f32 %v4621_v53  ;;  %6262 = vmatpush3.bf16.msra.mxu1 %v6363_v63 }
0x2c74   :  { %v6593_v31 = vpop.eup %6592 }
0x2c75   :  { %v4623_v41 = vsel %vm8770_vm2, %v6593_v31, 0.0  ;;  %vm8784_vm2 = vmmov %vm8716_vm0 }
0x2c76   :  { %v6595_v1 = vpop.eup %6594  ;;  %4624 = vadd.xlane.f32.xlu0 %v4623_v41 }
0x2c77   :  { %v4626_v28 = vsel %vm8771_vm7, %v6595_v1, 0.0  ;;  %vm8785_vm7 = vmmov %vm8716_vm0 }
0x2c78   :  { %v6597_v29 = vpop.eup %6596  ;;  %4627 = vadd.xlane.f32.xlu1 %v4626_v28 }
0x2c79   :  { %v4629_v36 = vsel %vm8772_vm6, %v6597_v29, 0.0  ;;  %vm8786_vm6 = vmmov %vm8716_vm0 }
0x2c7a   :  { %v6599_v13 = vpop.eup %6598  ;;  %4630 = vadd.xlane.f32.xlu0 %v4629_v36 }
0x2c7b   :  { %v4632_v37 = vsel %vm8716_vm0, %v6599_v13, 0.0 }
0x2c7c   :  { %4633 = vadd.xlane.f32.xlu1 %v4632_v37 }
0x2d03   :  { %v4625_v8 = vpop.xlane.xlu0 %4624 }
0x2d04   :  { %6600 = vrcp.f32 %v4625_v8 }
0x2d05   :  { %v4628_v59 = vpop.xlane.xlu1 %4627 }
0x2d06   :  { %6602 = vrcp.f32 %v4628_v59 }
0x2d07   :  { %v4631_v17 = vpop.xlane.xlu0 %4630 }
0x2d08   :  { %6604 = vrcp.f32 %v4631_v17 }
0x2d09   :  { %v4634_v15 = vpop.xlane.xlu1 %4633 }
0x2d0a   :  { %6606 = vrcp.f32 %v4634_v15 }
0x2d0e   :  { %v6601_v22 = vpop.eup %6600 }
0x2d0f   :  { %v4639_v30 = vmul.f32 %v6601_v22, %v6593_v31 }
0x2d10   :  { %v6603_v9 = vpop.eup %6602 }
0x2d11   :  { %v4640_v42 = vmul.f32 %v6603_v9, %v6595_v1 }
0x2d12   :  { %v6605_v33 = vpop.eup %6604 }
0x2d13   :  { %v4643_v45 = vpack.c.bf16 %v4640_v42, %v4639_v30  ;;  %v4641_v39 = vmul.f32 %v6605_v33, %v6597_v29 }
0x2d14   :  { %v6607_v50 = vpop.eup %6606 }
0x2d15   :  { %v4642_v34 = vmul.f32 %v6607_v50, %v6599_v13  ;;  %6247 = vmatprep.mubr.msk.bf16.mxu0 %vm8773_vm4, %v4643_v45  ;;  %vm8788_vm4 = vmmov %vm8716_vm0 }
0x2d17   :  { %v4644_v43 = vpack.c.bf16 %v4642_v34, %v4641_v39 }
0x2d19   :  { %6248 = vmatmul.mubr.msk.bf16.vlgmr.msra.gmra.mrb[88].mxu0 %vm8774_vm9, %v4644_v43  ;;  %vm8789_vm9 = vmmov %vm8716_vm0 }
0x2d1a   :  { %6252 = vmatpush3.bf16.msra.mxu0 %v6360_v35 }
0x2d1b   :  { %6253 = vmatprep.subr.bf16.mxu0 %v6361_v10 }
0x2d1e   :  { %6254 = vmatpush3.bf16.msra.mxu0 %v6361_v10 }
0x2dec   :  { %v6249_v54 = vpop.f32.mrb[88].mxu0 }
0x2ded   :  { %v4687_v40 = vpop.f32.mrb[89].mxu0 }
0x2dee   :  { %v6250_v48 = vpop.f32.mrb[90].mxu0 }
0x2def   :  { %v4703_v4 = vpack.c.bf16 %v6250_v48, %v6249_v54  ;;  %v4690_v6 = vpop.f32.mrb[91].mxu0 }
0x2df0   :  { %v4702_v56 = vpack.c.bf16 %v4690_v6, %v4687_v40  ;;  %v5661_v40 = vld [vmem:[%s8500_s4 + $0xf] ss:$0 sm:$0xff] }
0x2df2   :  { %6255 = vmatprep.mubr.msk.bf16.mxu0 %vm8775_vm10, %v4702_v56  ;;  %vm8790_vm10 = vmmov %vm8716_vm0 }
0x2df3   :  { %6256 = vmatmul.mubr.msk.bf16.vlgmr.msra.gmra.mrb[92].mxu0 %vm8776_vm11, %v4703_v4  ;;  %vm8791_vm11 = vmmov %vm8716_vm0 }
0x2ec6   :  { %v6257_v57 = vpop.f32.mrb[92].mxu0 }
0x2ec7   :  { %v4777_v60 = vadd.f32 %v6257_v57, %v8168_v58  ;;  %v4760_v0 = vpop.f32.mrb[93].mxu0 }
0x2ec8   :  { %v4775_v25 = vadd.f32 %v4760_v0, %v8172_v51  ;;  %v6258_v32 = vpop.f32.mrb[94].mxu0  ;;  %v5662_v0 = vld [vmem:[%s8500_s4 + $0x10] ss:$0 sm:$0xff] }
0x2ec9   :  { %v8278_v2 = vadd.f32 %v5660_v5, %v4777_v60  ;;  %v4778_v49 = vadd.f32 %v6258_v32, %v8174_v38  ;;  %v4763_v47 = vpop.f32.mrb[95].mxu0 }
0x2eca   :  { %v4776_v52 = vadd.f32 %v4763_v47, %v8178_v44  ;;  %v8282_v12 = vadd.f32 %v5660_v5, %v4775_v25 }
0x2ecb   :  { %v8284_v3 = vadd.f32 %v5660_v5, %v4778_v49  ;;  %v4796_v16 = vsel %vm8777_vm14, %v8278_v2, 0.0  ;;  %v4808_v19 = vmul.f32 %v8278_v2, %v8278_v2  ;;  %vm8792_vm14 = vmmov %vm8716_vm0 }
0x2ecc   :  { %4797 = vadd.xlane.f32.xlu0 %v4796_v16  ;;  %v8288_v58 = vadd.f32 %v5660_v5, %v4776_v52  ;;  %v4790_v38 = vsel %vm8779_vm13, %v8282_v12, 0.0  ;;  %v4806_v44 = vmul.f32 %v8282_v12, %v8282_v12  ;;  %vm8794_vm13 = vmmov %vm8716_vm0 }
0x2ecd   :  { %v4799_v51 = vsel %vm8778_vm12, %v8284_v3, 0.0  ;;  %v4809_v55 = vmul.f32 %v8284_v3, %v8284_v3  ;;  %v4816_v21 = vsel %vm8783_vm1, %v4808_v19, 0.0  ;;  %vm8793_vm12 = vmmov %vm8716_vm0 }
0x2ece   :  { %4800 = vadd.xlane.f32.xlu1 %v4799_v51  ;;  %v4793_v46 = vsel %vm8780_vm15, %v8288_v58, 0.0  ;;  %v4807_v27 = vmul.f32 %v8288_v58, %v8288_v58  ;;  %v4810_v62 = vsel %vm8781_vm3, %v4806_v44, 0.0  ;;  %vm8795_vm15 = vmmov %vm8716_vm0  ;;  %vm5225_vm3 = vcmp.lt.s32.totalorder %v6974_v61, 64 }
0x2ecf   :  { %v4819_v7 = vsel %vm8784_vm2, %v4809_v55, 0.0 }
0x2ed0   :  { %4791 = vadd.xlane.f32.xlu0 %v4790_v38  ;;  %v4813_v14 = vsel %vm8782_vm5, %v4807_v27, 0.0 }
0x2ed2   :  { %4794 = vadd.xlane.f32.xlu1 %v4793_v46 }
0x2ed4   :  { %4811 = vadd.xlane.f32.xlu0 %v4810_v62 }
0x2ed6   :  { %4814 = vadd.xlane.f32.xlu1 %v4813_v14  ;;  %v6364_v14 = vld [vmem:[%s8503_s7 + $0x30] sm:$0xff]  }
0x2ed7   :  { %6305 = vmatprep.subr.msk.bf16.mxu0 %vm864_vm8, %v6364_v14  ;;  %v5003_v55 = vsel %vm864_vm8, %v6364_v14, 0 }
0x2ed8   :  { %4817 = vadd.xlane.f32.xlu0 %v4816_v21  ;;  %6268 = vmatpush3.bf16.xpose.msra.mxu0 %v5003_v55  ;;  %v6365_v21 = vld [vmem:[%s8503_s7 + $0x38] sm:$0xff]  }
0x2ed9   :  { %6306 = vmatprep.subr.msk.bf16.mxu0 %vm864_vm8, %v6365_v21 }
0x2eda   :  { %4820 = vadd.xlane.f32.xlu1 %v4819_v7  ;;  %v5006_v7 = vsel %vm864_vm8, %v6365_v21, 0 }
0x2ee0   :  { %6270 = vmatpush3.bf16.xpose.msra.mxu0 %v5006_v7 }
0x2f59   :  { %v4798_v20 = vpop.xlane.xlu0 %4797 }
0x2f5a   :  { %v4804_v1 = vmul.f32 0.03125, %v4798_v20 }
0x2f5b   :  { %v4801_v11 = vpop.xlane.xlu1 %4800 }
0x2f5c   :  { %v4805_v36 = vmul.f32 0.03125, %v4801_v11  ;;  %v4828_v17 = vmul.f32 %v4804_v1, %v4804_v1  ;;  %v4836_v56 = vsub.f32 %v8278_v2, %v4804_v1 }
0x2f5d   :  { %v4792_v26 = vpop.xlane.xlu0 %4791 }
0x2f5e   :  { %v4802_v24 = vmul.f32 0.03125, %v4792_v26  ;;  %v4829_v30 = vmul.f32 %v4805_v36, %v4805_v36  ;;  %v4837_v25 = vsub.f32 %v8284_v3, %v4805_v36 }
0x2f5f   :  { %v4795_v53 = vpop.xlane.xlu1 %4794 }
0x2f60   :  { %v4803_v31 = vmul.f32 0.03125, %v4795_v53  ;;  %v4826_v28 = vmul.f32 %v4802_v24, %v4802_v24  ;;  %v4834_v10 = vsub.f32 %v8282_v12, %v4802_v24 }
0x2f61   :  { %v4812_v41 = vpop.xlane.xlu0 %4811 }
0x2f62   :  { %v4822_v29 = vmul.f32 0.03125, %v4812_v41  ;;  %v4827_v37 = vmul.f32 %v4803_v31, %v4803_v31  ;;  %v4835_v48 = vsub.f32 %v8288_v58, %v4803_v31 }
0x2f63   :  { %v4815_v13 = vpop.xlane.xlu1 %4814 }
0x2f64   :  { %v4830_v35 = vsub.f32 %v4822_v29, %v4826_v28  ;;  %v4823_v8 = vmul.f32 0.03125, %v4815_v13 }
0x2f65   :  { %v4818_v59 = vpop.xlane.xlu0 %4817 }
0x2f66   :  { %v4838_v15 = vadd.f32 1e-05, %v4830_v35  ;;  %v4831_v22 = vsub.f32 %v4823_v8, %v4827_v37  ;;  %v4824_v9 = vmul.f32 0.03125, %v4818_v59 }
0x2f67   :  { %v4821_v42 = vpop.xlane.xlu1 %4820 }
0x2f68   :  { %6608 = vrsqrt.f32 %v4838_v15  ;;  %v4839_v33 = vadd.f32 1e-05, %v4831_v22  ;;  %v4832_v45 = vsub.f32 %v4824_v9, %v4828_v17  ;;  %v4825_v50 = vmul.f32 0.03125, %v4821_v42 }
0x2f6a   :  { %6610 = vrsqrt.f32 %v4839_v33  ;;  %v4840_v39 = vadd.f32 1e-05, %v4832_v45  ;;  %v4833_v34 = vsub.f32 %v4825_v50, %v4829_v30 }
0x2f6c   :  { %6612 = vrsqrt.f32 %v4840_v39  ;;  %v4841_v43 = vadd.f32 1e-05, %v4833_v34 }
0x2f6e   :  { %6614 = vrsqrt.f32 %v4841_v43 }
0x2f72   :  { %v6609_v54 = vpop.eup %6608 }
0x2f73   :  { %v4846_v4 = vmul.f32 %v6609_v54, %v4834_v10 }
0x2f74   :  { %v6611_v6 = vpop.eup %6610 }
0x2f75   :  { %v4847_v57 = vmul.f32 %v6611_v6, %v4835_v48  ;;  %v4854_v5 = vmul.f32 %v5661_v40, %v4846_v4 }
0x2f76   :  { %v6613_v60 = vpop.eup %6612 }
0x2f77   :  { %v4848_v32 = vmul.f32 %v6613_v60, %v4836_v56  ;;  %v4855_v49 = vmul.f32 %v5661_v40, %v4847_v57  ;;  %v4862_v16 = vadd.f32 %v5662_v0, %v4854_v5 }
0x2f78   :  { %v6615_v47 = vpop.eup %6614 }
0x2f79   :  { %v4849_v52 = vmul.f32 %v6615_v47, %v4837_v25  ;;  %v4863_v51 = vadd.f32 %v5662_v0, %v4855_v49  ;;  %v4856_v38 = vmul.f32 %v5661_v40, %v4848_v32 }
0x2f7b   :  { %v4866_v44 = vpack.c.bf16 %v4863_v51, %v4862_v16  ;;  %v4857_v46 = vmul.f32 %v5661_v40, %v4849_v52  ;;  %v4864_v27 = vadd.f32 %v5662_v0, %v4856_v38  ;;  %v5680_v38 = vld [vmem:[%s8500_s4 + $0x11] ss:$0 sm:$0xff] }
0x2f7d   :  { %6263 = vmatprep.mubr.msk.bf16.mxu1 %vm8785_vm7, %v4866_v44  ;;  %v4865_v62 = vadd.f32 %v5662_v0, %v4857_v46 }
0x2f7f   :  { %v4867_v19 = vpack.c.bf16 %v4865_v62, %v4864_v27 }
0x2f81   :  { %6264 = vmatmul.mubr.msk.bf16.vlgmr.msra.gmra.mrb[88].mxu1 %vm8786_vm6, %v4867_v19 }
0x3054   :  { %v6265_v63 = vpop.f32.mrb[88].mxu1 }
0x3055   :  { %v4938_v20 = vadd.f32 %v6265_v63, %v5667_v23  ;;  %v4929_v11 = vpop.f32.mrb[89].mxu1 }
0x3056   :  { %v4930_v26 = vadd.f32 %v5667_v23, %v4929_v11  ;;  %v6266_v24 = vpop.f32.mrb[90].mxu1 }
0x3057   :  { %v4946_v53 = vmul.f32 %v4938_v20, %v4938_v20  ;;  %v4941_v31 = vadd.f32 %v6266_v24, %v5667_v23  ;;  %v4932_v41 = vpop.f32.mrb[91].mxu1 }
0x3058   :  { %v4944_v1 = vmul.f32 %v4930_v26, %v4930_v26  ;;  %v4933_v28 = vadd.f32 %v5667_v23, %v4932_v41 }
0x3059   :  { %v4950_v29 = vmul.f32 %v4946_v53, %v4938_v20  ;;  %v4947_v36 = vmul.f32 %v4941_v31, %v4941_v31 }
0x305a   :  { %v4948_v13 = vmul.f32 %v4944_v1, %v4930_v26  ;;  %v4945_v37 = vmul.f32 %v4933_v28, %v4933_v28 }
0x305b   :  { %v4954_v35 = vmul.f32 0.044715, %v4950_v29  ;;  %v4951_v8 = vmul.f32 %v4947_v36, %v4941_v31  ;;  %v6367_v29 = vld [vmem:[%s8504_s8 + $0x8] sm:$0xff]  }
0x305c   :  { %v4952_v59 = vmul.f32 0.044715, %v4948_v13  ;;  %v4949_v17 = vmul.f32 %v4945_v37, %v4933_v28  ;;  %v8385_v36 = vld [vmem:[%s8499_s3 + $0x8] sm:$0xff] }
0x305d   :  { %v4958_v15 = vadd.f32 %v4954_v35, %v4938_v20  ;;  %v4955_v22 = vmul.f32 0.044715, %v4951_v8 }
0x305e   :  { %v4956_v9 = vadd.f32 %v4952_v59, %v4930_v26  ;;  %v4953_v30 = vmul.f32 0.044715, %v4949_v17 }
0x305f   :  { %v4962_v42 = vmul.f32 0.7978846, %v4958_v15  ;;  %v4959_v33 = vadd.f32 %v4955_v22, %v4941_v31 }
0x3060   :  { %v4960_v45 = vmul.f32 0.7978846, %v4956_v9  ;;  %v4957_v50 = vadd.f32 %v4953_v30, %v4933_v28 }
0x3061   :  { %6616 = vtanh.f32 %v4962_v42  ;;  %v4963_v39 = vmul.f32 0.7978846, %v4959_v33 }
0x3062   :  { %6618 = vtanh.f32 %v4960_v45  ;;  %v4961_v34 = vmul.f32 0.7978846, %v4957_v50 }
0x3063   :  { %6620 = vtanh.f32 %v4963_v39 }
0x3064   :  { %6622 = vtanh.f32 %v4961_v34 }
0x306b   :  { %v6617_v43 = vpop.eup %6616 }
0x306c   :  { %v6619_v10 = vpop.eup %6618  ;;  %v4970_v54 = vadd.f32 1.0, %v6617_v43 }
0x306d   :  { %v6621_v40 = vpop.eup %6620  ;;  %v4968_v48 = vadd.f32 1.0, %v6619_v10 }
0x306e   :  { %v6623_v4 = vpop.eup %6622  ;;  %v4974_v6 = vmul.f32 0.5, %v4970_v54  ;;  %v4971_v56 = vadd.f32 1.0, %v6621_v40 }
0x306f   :  { %v4972_v57 = vmul.f32 0.5, %v4968_v48  ;;  %v4969_v5 = vadd.f32 1.0, %v6623_v4 }
0x3070   :  { %v4975_v60 = vmul.f32 0.5, %v4971_v56  ;;  %v4978_v25 = vmul.f32 %v4974_v6, %v4938_v20 }
0x3071   :  { %v4973_v0 = vmul.f32 0.5, %v4969_v5  ;;  %v4976_v49 = vmul.f32 %v4972_v57, %v4930_v26 }
0x3072   :  { %v4979_v32 = vmul.f32 %v4975_v60, %v4941_v31 }
0x3073   :  { %v4977_v47 = vmul.f32 %v4973_v0, %v4933_v28  ;;  %v6366_v28 = vld [vmem:[%s8504_s8] sm:$0xff]  }
0x3074   :  { %v4981_v52 = vpack.c.bf16 %v4979_v32, %v4978_v25  ;;  %6275 = vmatprep.subr.bf16.mxu1 %v6366_v28 }
0x3075   :  { %v4980_v16 = vpack.c.bf16 %v4977_v47, %v4976_v49  ;;  %6276 = vmatpush3.bf16.msra.mxu1 %v6366_v28  ;;  %v5681_v49 = vld [vmem:[%s8500_s4 + $0x12] ss:$0 sm:$0xff] }
0x3076   :  { %6277 = vmatprep.subr.bf16.mxu1 %v6367_v29 }
0x3077   :  { %6271 = vmatprep.mubr.msk.bf16.mxu0 %vm864_vm8, %v4980_v16 }
0x3078   :  { %6272 = vmatmul.mubr.msk.bf16.vlgmr.msra.gmra.mrb[96].mxu0 %vm864_vm8, %v4981_v52  ;;  %vm8787_vm8 = vmmov %vm8716_vm0 }
0x3079   :  { %6278 = vmatpush3.bf16.msra.mxu1 %v6367_v29 }
0x314b   :  { %v6273_v51 = vpop.f32.mrb[96].mxu0 }
0x314c   :  { %v5059_v44 = vadd.f32 %v6273_v51, %v8278_v2  ;;  %v5042_v46 = vpop.f32.mrb[97].mxu0 }
0x314d   :  { %v5057_v27 = vadd.f32 %v5042_v46, %v8282_v12  ;;  %v6274_v62 = vpop.f32.mrb[98].mxu0 }
0x314e   :  { %v8346_v19 = vadd.f32 %v5680_v38, %v5059_v44  ;;  %v5060_v14 = vadd.f32 %v6274_v62, %v8284_v3  ;;  %v5045_v55 = vpop.f32.mrb[99].mxu0 }
0x314f   :  { %v5058_v21 = vadd.f32 %v5045_v55, %v8288_v58  ;;  %v8350_v7 = vadd.f32 %v5680_v38, %v5057_v27  ;;  %v5682_v27 = vld [vmem:[%s8500_s4 + $0x13] ss:$0 sm:$0xff] }
0x3150   :  { %v8352_v23 = vadd.f32 %v5680_v38, %v5060_v14  ;;  %v5078_v63 = vsel %vm8787_vm8, %v8346_v19, 0.0  ;;  %v5090_v24 = vmul.f32 %v8346_v19, %v8346_v19 }
0x3151   :  { %5079 = vadd.xlane.f32.xlu0 %v5078_v63  ;;  %v8356_v2 = vadd.f32 %v5680_v38, %v5058_v21  ;;  %v5072_v3 = vsel %vm8788_vm4, %v8350_v7, 0.0  ;;  %v5088_v58 = vmul.f32 %v8350_v7, %v8350_v7 }
0x3152   :  { %v5081_v12 = vsel %vm8716_vm0, %v8352_v23, 0.0  ;;  %v5091_v31 = vmul.f32 %v8352_v23, %v8352_v23  ;;  %v5098_v41 = vsel %vm8792_vm14, %v5090_v24, 0.0 }
0x3153   :  { %5082 = vadd.xlane.f32.xlu1 %v5081_v12  ;;  %v5075_v20 = vsel %vm8789_vm9, %v8356_v2, 0.0  ;;  %v5089_v11 = vmul.f32 %v8356_v2, %v8356_v2  ;;  %v5092_v26 = vsel %vm8790_vm10, %v5088_v58, 0.0 }
0x3154   :  { %v5101_v1 = vsel %vm8793_vm12, %v5091_v31, 0.0 }
0x3155   :  { %5073 = vadd.xlane.f32.xlu0 %v5072_v3  ;;  %v5095_v53 = vsel %vm8791_vm11, %v5089_v11, 0.0 }
0x3157   :  { %5076 = vadd.xlane.f32.xlu1 %v5075_v20 }
0x3159   :  { %5093 = vadd.xlane.f32.xlu0 %v5092_v26 }
0x315b   :  { %5096 = vadd.xlane.f32.xlu1 %v5095_v53 }
0x315d   :  { %5099 = vadd.xlane.f32.xlu0 %v5098_v41 }
0x315f   :  { %5102 = vadd.xlane.f32.xlu1 %v5101_v1 }
0x3170   :  { %5279 = vperm.xlu1 %6317, %v8385_v36  }
0x31de   :  { %v5080_v13 = vpop.xlane.xlu0 %5079 }
0x31df   :  { %v5086_v22 = vmul.f32 0.03125, %v5080_v13  ;;  %v8411_v13 = vld [vmem:[%s8499_s3] sm:$0xff] }
0x31e0   :  { %v5083_v37 = vpop.xlane.xlu1 %5082 }
0x31e1   :  { %v5087_v42 = vmul.f32 0.03125, %v5083_v37  ;;  %v5110_v43 = vmul.f32 %v5086_v22, %v5086_v22  ;;  %v5118_v51 = vsub.f32 %v8346_v19, %v5086_v22  ;;  %v8416_v37 = vld [vmem:[%s8499_s3 + $0x18] sm:$0xff] }
0x31e2   :  { %v5074_v35 = vpop.xlane.xlu0 %5073 }
0x31e3   :  { %v5084_v8 = vmul.f32 0.03125, %v5074_v35  ;;  %v5111_v48 = vmul.f32 %v5087_v42, %v5087_v42  ;;  %v5119_v62 = vsub.f32 %v8352_v23, %v5087_v42  ;;  %v5226_v23 = vsel %vm5225_vm3, 0.0, %v6794_v18  ;;  %v8405_v18 = vld [vmem:[%s8499_s3 + $0x10] sm:$0xff]  ;;  %s6796_s3 = smov [#allocation6]  }
0x31e4   :  { %v5077_v59 = vpop.xlane.xlu1 %5076  ;;  %s5378_s17 = sshll.u32 %s6796_s3, 4  ;;  %s5379_s17 = int_to_ptr.vmem [resolvable:$true] %s5378_s17 }
0x31e5   :  { %v5085_v17 = vmul.f32 0.03125, %v5077_v59  ;;  %v5108_v9 = vmul.f32 %v5084_v8, %v5084_v8  ;;  %v5116_v25 = vsub.f32 %v8350_v7, %v5084_v8  ;;  %s6720_s18 = scalar_lea.vmem %s5379_s17, 512  ;;  %p6725_p10 = scmp.lt.s32.totalorder %s5379_s17, %s5379_s17 }
0x31e6   :  { %v5094_v15 = vpop.xlane.xlu0 %5093  ;;  %p6721_p9 = scmp.ne.s32.totalorder %s5379_s17, %s6720_s18  ;;  %p6726_p11 = scmp.lt.s32.totalorder %s6720_s18, %s6720_s18 }
0x31e7   :  { %v5104_v30 = vmul.f32 0.03125, %v5094_v15  ;;  %v5109_v45 = vmul.f32 %v5085_v17, %v5085_v17  ;;  %v5117_v47 = vsub.f32 %v8356_v2, %v5085_v17 }
0x31e8   :  { %v5097_v33 = vpop.xlane.xlu1 %5096  ;;  %p6727_p12 = por %p6726_p11, %p6725_p10 }
0x31e9   :  { %v5112_v50 = vsub.f32 %v5104_v30, %v5108_v9  ;;  %v5105_v39 = vmul.f32 0.03125, %v5097_v33 }
0x31ea   :  { %v5100_v34 = vpop.xlane.xlu0 %5099  ;;  %p6728_p13 = pnand %p6727_p12, %p6721_p9 }
0x31eb   :  { %v5120_v10 = vadd.f32 1e-05, %v5112_v50  ;;  %v5113_v54 = vsub.f32 %v5105_v39, %v5109_v45  ;;  %v5106_v40 = vmul.f32 0.03125, %v5100_v34 }
0x31ec   :  { %v5103_v4 = vpop.xlane.xlu1 %5102 }
0x31ed   :  { %6624 = vrsqrt.f32 %v5120_v10  ;;  %v5121_v6 = vadd.f32 1e-05, %v5113_v54  ;;  %v5114_v56 = vsub.f32 %v5106_v40, %v5110_v43  ;;  %v5107_v57 = vmul.f32 0.03125, %v5103_v4 }
0x31ef   :  { %6626 = vrsqrt.f32 %v5121_v6  ;;  %v5122_v5 = vadd.f32 1e-05, %v5114_v56  ;;  %v5115_v60 = vsub.f32 %v5107_v57, %v5111_v48  ;;  %v6795_v48 = vmov 0.0  }
0x31f0   :  { %v5280_v35 = vpop.permute.xlu1 %5279 }
0x31f1   :  { %6628 = vrsqrt.f32 %v5122_v5  ;;  %v5123_v0 = vadd.f32 1e-05, %v5115_v60  ;;  %vm5288_vm2 = vcmp.eq.s32.totalorder %v6974_v61, %v5280_v35 }
0x31f3   :  { %6630 = vrsqrt.f32 %v5123_v0  ;;  %v5688_v0 = vsel %vm5288_vm2, 1.0, %v6795_v48 }
0x31f7   :  { %v6625_v32 = vpop.eup %6624 }
0x31f8   :  { %v5128_v52 = vmul.f32 %v6625_v32, %v5116_v25 }
0x31f9   :  { %v6627_v16 = vpop.eup %6626 }
0x31fa   :  { %v5129_v38 = vmul.f32 %v6627_v16, %v5117_v47  ;;  %v5136_v44 = vmul.f32 %v5681_v49, %v5128_v52 }
0x31fb   :  { %v6629_v46 = vpop.eup %6628 }
0x31fc   :  { %v5130_v14 = vmul.f32 %v6629_v46, %v5118_v51  ;;  %v5137_v55 = vmul.f32 %v5681_v49, %v5129_v38  ;;  %v5144_v63 = vadd.f32 %v5682_v27, %v5136_v44 }
0x31fd   :  { %v6631_v21 = vpop.eup %6630 }
0x31fe   :  { %v5131_v7 = vmul.f32 %v6631_v21, %v5119_v62  ;;  %v5145_v12 = vadd.f32 %v5682_v27, %v5137_v55  ;;  %v5138_v2 = vmul.f32 %v5681_v49, %v5130_v14 }
0x3200   :  { %v5148_v3 = vpack.c.bf16 %v5145_v12, %v5144_v63  ;;  %v5139_v58 = vmul.f32 %v5681_v49, %v5131_v7  ;;  %v5146_v19 = vadd.f32 %v5682_v27, %v5138_v2 }
0x3202   :  { %6279 = vmatprep.mubr.msk.bf16.mxu1 %vm8794_vm13, %v5148_v3  ;;  %v5147_v20 = vadd.f32 %v5682_v27, %v5139_v58 }
0x3204   :  { %v5149_v11 = vpack.c.bf16 %v5147_v20, %v5146_v19 }
0x3206   :  { %6280 = vmatmul.mubr.msk.bf16.vlgmr.msra.gmra.mrb[92].mxu1 %vm8795_vm15, %v5149_v11 }
0x32d9   :  { %v6281_v26 = vpop.f32.mrb[92].mxu1 }
0x32da   :  { %5223 = vst [vmem:[#allocation8 + $0x10] sm:$0xff] %v6281_v26  ;;  %v5206_v24 = vpop.f32.mrb[93].mxu1  ;;  %v5229_v28 = vadd.f32 %v6281_v26, %v5226_v23 }
0x32db   :  { %5221 = vst [vmem:[#allocation8] sm:$0xff] %v5206_v24  ;;  %v5227_v53 = vadd.f32 %v5226_v23, %v5206_v24  ;;  %v6282_v31 = vpop.f32.mrb[94].mxu1 }
0x32dc   :  { %5224 = vst [vmem:[#allocation8 + $0x18] sm:$0xff] %v6282_v31  ;;  %v5230_v41 = vadd.f32 %v6282_v31, %v5226_v23  ;;  %v5209_v1 = vpop.f32.mrb[95].mxu1 }
0x32dd   :  { %5222 = vst [vmem:[#allocation8 + $0x8] sm:$0xff] %v5209_v1  ;;  %5235 = vmax.xlane.f32.xlu0 %v5227_v53  ;;  %v5228_v29 = vadd.f32 %v5226_v23, %v5209_v1 }
0x32de   :  { %5241 = vmax.xlane.f32.xlu1 %v5230_v41 }
0x32df   :  { %v5300_v25 = vmul.f32 %v5688_v0, %v5228_v29 }
0x32e1   :  { %5239 = vmax.xlane.f32.xlu0 %v5229_v28 }
0x32e2   :  { %5237 = vmax.xlane.f32.xlu1 %v5228_v29 }
0x32f3   :  { %5282 = vperm.xlu1 %6317, %v8405_v18  }
0x32f7   :  { %5276 = vperm.xlu0 %6316, %v8411_v13   ;;  %5285 = vperm.xlu1 %6317, %v8416_v37  }
0x336a   :  { %v8420_v8 = vpop.xlane.xlu0 %5235 }
0x336b   :  { %v5243_v59 = vsub.f32 %v5227_v53, %v8420_v8  ;;  %v8423_v17 = vpop.xlane.xlu1 %5241 }
0x336c   :  { %v5246_v9 = vsub.f32 %v5230_v41, %v8423_v17 }
0x336d   :  { %v5247_v15 = vmul.f32 1.442695, %v5243_v59 }
0x336e   :  { %v8425_v22 = vpop.xlane.xlu0 %5239  ;;  %v5253_v39 = vmul.f32 1.442695, %v5246_v9 }
0x336f   :  { %6632 = vpow2.f32 %v5247_v15  ;;  %v5245_v30 = vsub.f32 %v5229_v28, %v8425_v22  ;;  %v8429_v42 = vpop.xlane.xlu1 %5237 }
0x3370   :  { %v5244_v33 = vsub.f32 %v5228_v29, %v8429_v42 }
0x3371   :  { %v5251_v45 = vmul.f32 1.442695, %v5245_v30 }
0x3372   :  { %v5249_v50 = vmul.f32 1.442695, %v5244_v33 }
0x3373   :  { %6634 = vpow2.f32 %v5251_v45  ;;  %v5283_v34 = vpop.permute.xlu1 %5282 }
0x3374   :  { %6636 = vpow2.f32 %v5249_v50  ;;  %vm5289_vm5 = vcmp.eq.s32.totalorder %v6974_v61, %v5283_v34 }
0x3375   :  { %6638 = vpow2.f32 %v5253_v39  ;;  %v5689_v4 = vsel %vm5289_vm5, 1.0, %v6795_v48 }
0x3376   :  { %v5277_v10 = vpop.permute.xlu0 %5276  ;;  %v5301_v56 = vmul.f32 %v5689_v4, %v5229_v28 }
0x3377   :  { %vm5287_vm1 = vcmp.eq.s32.totalorder %v6974_v61, %v5277_v10  ;;  %v5286_v5 = vpop.permute.xlu1 %5285 }
0x3378   :  { %v5687_v57 = vsel %vm5287_vm1, 1.0, %v6795_v48  ;;  %vm5290_vm7 = vcmp.eq.s32.totalorder %v6974_v61, %v5286_v5 }
0x3379   :  { %v6633_v43 = vpop.eup %6632  ;;  %v5299_v60 = vmul.f32 %v5687_v57, %v5227_v53  ;;  %v5690_v32 = vsel %vm5290_vm7, 1.0, %v6795_v48 }
0x337a   :  { %5255 = vadd.xlane.f32.xlu1 %v6633_v43  ;;  %v5302_v49 = vmul.f32 %v5690_v32, %v5230_v41 }
0x337d   :  { %v6635_v54 = vpop.eup %6634 }
0x337e   :  { %v6637_v40 = vpop.eup %6636  ;;  %5259 = vadd.xlane.f32.xlu1 %v6635_v54 }
0x337f   :  { %5257 = vadd.xlane.f32.xlu0 %v6637_v40  ;;  %v6639_v6 = vpop.eup %6638 }
0x3382   :  { %5261 = vadd.xlane.f32.xlu1 %v6639_v6 }
0x3383   :  { %5307 = vadd.xlane.f32.xlu0 %v5301_v56 }
0x3386   :  { %5303 = vadd.xlane.f32.xlu1 %v5299_v60 }
0x338a   :  { %5305 = vadd.xlane.f32.xlu1 %v5300_v25 }
0x338e   :  { %5309 = vadd.xlane.f32.xlu1 %v5302_v49 }
0x338f   :  { %6731 = shalt.err (!%p6728_p13)
}
0x3390   :  { %s6732_s21 = scalar_lea.hbm %s8506_s10, 512 }
0x3391   :  { %p6733_p0 = scmp.ne.s32.totalorder %s8506_s10, %s6732_s21  ;;  %p6736_p1 = scmp.lt.u32.totalorder %s6732_s21, %s8506_s10 }
0x3393   :  { %p6738_p2 = pnand %p6736_p1, %p6733_p0 }
0x3395   :  { %6741 = shalt.err (!%p6738_p2)
}
0x3396   :  { %s6797_s5 = smov 128   ;;  %s6798_s7 = smov 8  }
0x3397   :  { %5384 = dma.vmem_to_hbm [thread:$0]  %s5379_s17, 512, %s8506_s10, [#allocation7], %s6797_s5, %s6797_s5, %s6798_s7  }
0x3398   :  { %s6799_s26 = smov [#allocation8]  }
0x3399   :  { %s5390_s1 = sshll.u32 %s6799_s26, 4  ;;  %s5391_s1 = int_to_ptr.vmem [resolvable:$true] %s5390_s1 }
0x339a   :  { %s6742_s27 = scalar_lea.vmem %s5391_s1, 512  ;;  %p6747_p4 = scmp.lt.s32.totalorder %s5391_s1, %s5391_s1 }
0x339b   :  { %p6743_p3 = scmp.ne.s32.totalorder %s5391_s1, %s6742_s27  ;;  %p6748_p5 = scmp.lt.s32.totalorder %s6742_s27, %s6742_s27 }
0x339d   :  { %p6749_p6 = por %p6748_p5, %p6747_p4 }
0x339f   :  { %p6750_p7 = pnand %p6749_p6, %p6743_p3 }
0x33a1   :  { %6753 = shalt.err (!%p6750_p7)
}
0x33a2   :  { %s6754_s29 = scalar_lea.hbm %s8507_s11, 512 }
0x33a3   :  { %p6755_p8 = scmp.ne.s32.totalorder %s8507_s11, %s6754_s29  ;;  %p6758_p9 = scmp.lt.u32.totalorder %s6754_s29, %s8507_s11 }
0x33a5   :  { %p6760_p10 = pnand %p6758_p9, %p6755_p8 }
0x33a7   :  { %6763 = shalt.err (!%p6760_p10)
}
0x33a8   :  { %5396 = dma.vmem_to_hbm [thread:$0]  %s5391_s1, 512, %s8507_s11, [#allocation7], %s6797_s5, %s6797_s5, %s6798_s7   ;;  %vm5311_vm6 = vcmp.ne.s32.totalorder %v8411_v13, 4294967196  ;;  %vm5312_vm8 = vcmp.ne.s32.totalorder %v8385_v36, 4294967196  ;;  %vm5331_vm0 = vcmask 7168   ;;  %vm5313_vm4 = vcmp.ne.s32.totalorder %v8405_v18, 4294967196 }
0x33a9   :  { %v5691_v61 = vsel %vm5311_vm6, 1.0, %v6795_v48  ;;  %v5692_v47 = vsel %vm5312_vm8, 1.0, %v6795_v48  ;;  %v5693_v51 = vsel %vm5313_vm4, 1.0, %v6795_v48  ;;  %vm5314_vm9 = vcmp.ne.s32.totalorder %v8416_v37, 4294967196  ;;  %s6800_s11 = smov [#allocation4]  }
0x33aa   :  { %v5345_v52 = vsel %vm5331_vm0, %v5691_v61, 0.0  ;;  %v5346_v16 = vsel %vm5331_vm0, %v5692_v47, 0.0  ;;  %v5348_v44 = vsel %vm5331_vm0, %v5693_v51, 0.0  ;;  %v5694_v36 = vsel %vm5314_vm9, 1.0, %v6795_v48  ;;  %s5369_s14 = sshll.u32 %s6800_s11, 4  ;;  %s5370_s14 = int_to_ptr.vmem [resolvable:$true] %s5369_s14 }
0x33ab   :  { %v5347_v38 = vadd.f32 %v5346_v16, %v5345_v52  ;;  %v5350_v27 = vsel %vm5331_vm0, %v5694_v36, 0.0  ;;  %vm5361_vm10 = vcmask 0   ;;  %s6764_s15 = scalar_lea.vmem %s5370_s14, 16  ;;  %s6768_s16 = scalar_lea.vmem %s5370_s14, 32 }
0x33ac   :  { %p6765_p11 = scmp.ne.s32.totalorder %s5370_s14, %s6764_s15  ;;  %p6769_p12 = scmp.lt.s32.totalorder %s5370_s14, %s5370_s14 }
0x33ad   :  { %v5349_v46 = vadd.f32 %v5348_v44, %v5347_v38  ;;  %p6770_p13 = scmp.lt.s32.totalorder %s6768_s16, %s6764_s15 }
0x33af   :  { %v5351_v62 = vadd.f32 %v5350_v27, %v5349_v46  ;;  %p6771_p0 = por %p6770_p13, %p6769_p12 }
0x33b1   :  { %v5352_v55 = vrot.slane %v5351_v62, 4  ;;  %p6772_p1 = pnand %p6771_p0, %p6765_p11 }
0x33b3   :  { %v5353_v63 = vadd.f32 %v5352_v55, %v5351_v62 }
0x33b5   :  { %v5354_v3 = vrot.slane %v5353_v63, 2 }
0x33b7   :  { %v5355_v23 = vadd.f32 %v5354_v3, %v5353_v63 }
0x33b9   :  { %v5356_v13 = vrot.slane %v5355_v23, 1 }
0x33bb   :  { %v5357_v33 = vadd.f32 %v5356_v13, %v5355_v23 }
0x33bd   :  { %v5358_v10 = vmax.f32 %v5357_v33, 1.0 }
0x3407   :  { %v5256_v14 = vpop.xlane.xlu1 %5255 }
0x3408   :  { %6640 = vlog2.f32 %v5256_v14 }
0x340b   :  { %v5260_v21 = vpop.xlane.xlu1 %5259 }
0x340c   :  { %6642 = vlog2.f32 %v5260_v21  ;;  %v5258_v7 = vpop.xlane.xlu0 %5257 }
0x340d   :  { %6644 = vlog2.f32 %v5258_v7 }
0x340f   :  { %v5262_v12 = vpop.xlane.xlu1 %5261 }
0x3410   :  { %6646 = vlog2.f32 %v5262_v12  ;;  %v5308_v29 = vpop.xlane.xlu0 %5307 }
0x3411   :  { %6648 = vrcp.f32 %v5358_v10 }
0x3412   :  { %v6641_v2 = vpop.eup %6640 }
0x3413   :  { %v5264_v58 = vmul.f32 0.6931472, %v6641_v2  ;;  %v5304_v19 = vpop.xlane.xlu1 %5303 }
0x3415   :  { %v5271_v20 = vadd.f32 %v5264_v58, %v8420_v8 }
0x3416   :  { %v6643_v11 = vpop.eup %6642 }
0x3417   :  { %v6645_v26 = vpop.eup %6644  ;;  %v5268_v24 = vmul.f32 0.6931472, %v6643_v11  ;;  %v5323_v31 = vsub.f32 %v5271_v20, %v5304_v19  ;;  %v5306_v41 = vpop.xlane.xlu1 %5305 }
0x3418   :  { %v5266_v53 = vmul.f32 0.6931472, %v6645_v26 }
0x3419   :  { %v5273_v1 = vadd.f32 %v5268_v24, %v8425_v22  ;;  %v5327_v59 = vmul.f32 %v5691_v61, %v5323_v31 }
0x341a   :  { %v6647_v28 = vpop.eup %6646  ;;  %v5272_v18 = vadd.f32 %v5266_v53, %v8429_v42 }
0x341b   :  { %v5270_v37 = vmul.f32 0.6931472, %v6647_v28  ;;  %v5325_v35 = vsub.f32 %v5273_v1, %v5308_v29  ;;  %v5310_v45 = vpop.xlane.xlu1 %5309  ;;  %v5332_v39 = vsel %vm5331_vm0, %v5327_v59, 0.0  ;;  %v6649_v5 = vpop.eup %6648 }
0x341c   :  { %v5324_v15 = vsub.f32 %v5272_v18, %v5306_v41 }
0x341d   :  { %v5274_v8 = vadd.f32 %v5270_v37, %v8423_v17  ;;  %v5329_v9 = vmul.f32 %v5693_v51, %v5325_v35 }
0x341e   :  { %v5328_v30 = vmul.f32 %v5692_v47, %v5324_v15 }
0x341f   :  { %v5326_v50 = vsub.f32 %v5274_v8, %v5310_v45  ;;  %v5335_v42 = vsel %vm5331_vm0, %v5329_v9, 0.0 }
0x3420   :  { %v5333_v22 = vsel %vm5331_vm0, %v5328_v30, 0.0 }
0x3421   :  { %v5334_v34 = vadd.f32 %v5333_v22, %v5332_v39  ;;  %v5330_v43 = vmul.f32 %v5694_v36, %v5326_v50 }
0x3423   :  { %v5336_v54 = vadd.f32 %v5335_v42, %v5334_v34  ;;  %v5337_v40 = vsel %vm5331_vm0, %v5330_v43, 0.0 }
0x3425   :  { %v5338_v48 = vadd.f32 %v5337_v40, %v5336_v54 }
0x3427   :  { %v5339_v17 = vrot.slane %v5338_v48, 4 }
0x3429   :  { %v5340_v4 = vadd.f32 %v5339_v17, %v5338_v48 }
0x342b   :  { %v5341_v6 = vrot.slane %v5340_v4, 2 }
0x342d   :  { %v5342_v56 = vadd.f32 %v5341_v6, %v5340_v4 }
0x342f   :  { %v5343_v57 = vrot.slane %v5342_v56, 1 }
0x3431   :  { %v5344_v60 = vadd.f32 %v5343_v57, %v5342_v56 }
0x3433   :  { %v5360_v0 = vmul.f32 %v6649_v5, %v5344_v60 }
0x3435   :  { %5362 = vst.msk [vmem:[#allocation4] sm:$0x1] %vm5361_vm10, %v5360_v0 }
0x3436   :  { %6775 = shalt.err (!%p6772_p1)
}
0x3437   :  { %s6776_s18 = scalar_lea.hbm %s8505_s9, 16 }
0x3438   :  { %p6777_p2 = scmp.ne.s32.totalorder %s8505_s9, %s6776_s18  ;;  %p6780_p3 = scmp.lt.u32.totalorder %s6776_s18, %s8505_s9 }
0x343a   :  { %p6782_p4 = pnand %p6780_p3, %p6777_p2 }
0x343c   :  { %6785 = shalt.err (!%p6782_p4)
}
0x343d   :  { %5372 = dma.vmem_to_hbm [thread:$0]  %s5370_s14, 16, %s8505_s9, [#allocation5]  }
0x343e   :  { %6788 = dma.done.wait [#allocation5], 16  }
0x343f   :  { %6789 = vsyncadd [#allocation5], 4294967280 }
0x3440   :  { %6790 = dma.done.wait [#allocation7], 1024  }
0x3441   :  { %6791 = vsyncadd [#allocation7], 4294966272 }
0x3442   :  { %5406 = vsyncpa [#allocation5], 1 }
0x3443   :  { %5407 = vsyncpa [#allocation7], 1 }

</bundles_post_ra>
